<compile_context>
chip_gen: v6e
topology: v6e:2x2x1
jax: 0.10.0
libtpu: 0.0.40
codegen_flags: <defaults>
</compile_context>

<pallas_src>
import jax
import jax.numpy as jnp
from jax.experimental import pallas as pl
from jax.experimental.pallas import tpu as pltpu

NUM_CLASSES = 10
PAD_CLASSES = 128   # lane-dense classifier width
BT = 32             # images per grid step (multiple of 8); 64 also fits the VMEM limit (v5e/v6e)
C1 = 32             # conv output channels
N1 = 256            # fc hidden width
P_POOL = 49         # 7*7 pooled spatial positions


# ----------------------------------------------------------------------------
# Fused kernel: conv(im2col GEMM, BN folded) + ReLU + MaxPool2d(2,2) + fc1 + ReLU
#               + fc2 (padded to 128) + Softmax.  Grid iterates over batch tiles.
# ----------------------------------------------------------------------------
def fused_cnn_kernel(patch_ref, wc_ref, shift_ref, w1_ref, b1_ref, w2_ref, b2_ref, out_ref):
    # patch_ref: (196*BT, 9) bf16, row = (hj*2+wj)*49*BT + (h2*7+w2)*BT + b
    # wc_ref:    (9, 32)     bf16  conv weight with BatchNorm scale folded in
    # shift_ref: (1, 32)     f32   conv bias + BatchNorm shift (eval mode)
    # w1_ref:    (49, 32, 256) bf16 fc1 weight [p, c, n] (NCHW flatten permutation folded)
    # b1_ref:    (1, 256)    f32
    # w2_ref:    (256, 128)  bf16  classifier padded to 128 lanes
    # b2_ref:    (1, 128)    f32   (-1e9 on padded classes)
    # out_ref:   (BT, 128)   bf16  softmax probabilities
    bt = out_ref.shape[0]
    q = P_POOL * bt

    # Conv2d(1->32, k=3, s=2, p=1) as patches @ W, then BN(+bias) + ReLU — all on values.
    y = jnp.dot(patch_ref[...], wc_ref[...], preferred_element_type=jnp.float32)
    y = jnp.maximum(y + shift_ref[...], 0.0)                       # (196*BT, 32)
    # TODO(synk): Dropout(p=0.3) is identity at inference; train-mode RNG dropout not implemented.

    # MaxPool2d(2,2): the 4 pool members are 4 contiguous row slabs thanks to the patch ordering.
    pooled = jnp.maximum(jnp.maximum(y[0:q], y[q:2 * q]),
                         jnp.maximum(y[2 * q:3 * q], y[3 * q:4 * q]))   # (49*BT, 32), row = p*BT+b

    # fc (Linear 1568->256): contract over (p, c) as 49 accumulated K=32 matmuls; keeps the batch
    # on sublanes end-to-end — no sublane<->lane relayout of the pooled activations is needed.
    h = jnp.zeros((bt, w1_ref.shape[2]), jnp.float32)
    for p in range(P_POOL):
        xp = pooled[p * bt:(p + 1) * bt, :].astype(jnp.bfloat16)        # (BT, 32)
        h = h + jnp.dot(xp, w1_ref[p], preferred_element_type=jnp.float32)
    h = jnp.maximum(h + b1_ref[...], 0.0)                               # ReLU

    # outlayer (Linear 256->num_classes, lane-padded to 128) + Softmax (f32, approx reciprocal).
    logits = jnp.dot(h.astype(jnp.bfloat16), w2_ref[...],
                     preferred_element_type=jnp.float32) + b2_ref[...]
    m = jnp.max(logits, axis=-1, keepdims=True)
    e = jnp.exp(logits - m)
    s = jnp.sum(e, axis=-1, keepdims=True)
    out_ref[...] = (e * pl.reciprocal(s, approx=True)).astype(out_ref.dtype)


# ----------------------------------------------------------------------------
# Wrapper glue: im2col (pool/batch-tile friendly ordering), pallas_call setup.
# ----------------------------------------------------------------------------
def im2col_3x3_s2_p1_pool_order(x, bt):
    # x: (N, 28, 28) f32 with N % bt == 0  ->  (N*196, 9) bf16 patches, tap order k = ky*3+kx.
    # Within each batch tile, row = (hj*2+wj)*49*bt + (h2*7+w2)*bt + b, so the kernel pools with
    # 4 contiguous slab maxes and the pooled rows land as p*bt + b (batch innermost).
    n = x.shape[0]
    xp = jnp.pad(x, ((0, 0), (1, 1), (1, 1)))
    taps = [xp[:, ky:ky + 28:2, kx:kx + 28:2] for ky in range(3) for kx in range(3)]
    t = jnp.stack(taps, axis=-1)                               # (N, 14, 14, 9), conv-output (h, w)
    t = t.reshape(n // bt, bt, 7, 2, 7, 2, 9)                  # (tile, b, h2, hj, w2, wj, k)
    t = t.transpose(0, 3, 5, 2, 4, 1, 6)                       # (tile, hj, wj, h2, w2, b, k)
    return t.reshape(n * 196, 9).astype(jnp.bfloat16)


def fused_forward(patches, params, n_pad):
    return pl.pallas_call(
        fused_cnn_kernel,
        out_shape=jax.ShapeDtypeStruct((n_pad, PAD_CLASSES), jnp.bfloat16),
        grid=(n_pad // BT,),
        in_specs=[
            pl.BlockSpec((196 * BT, 9), lambda i: (i, 0)),
            pl.BlockSpec((9, C1), lambda i: (0, 0)),
            pl.BlockSpec((1, C1), lambda i: (0, 0)),
            pl.BlockSpec((P_POOL, C1, N1), lambda i: (0, 0, 0)),
            pl.BlockSpec((1, N1), lambda i: (0, 0)),
            pl.BlockSpec((N1, PAD_CLASSES), lambda i: (0, 0)),
            pl.BlockSpec((1, PAD_CLASSES), lambda i: (0, 0)),
        ],
        out_specs=pl.BlockSpec((BT, PAD_CLASSES), lambda i: (i, 0)),
        compiler_params=pltpu.CompilerParams(
            dimension_semantics=("parallel",),
            vmem_limit_bytes=32 * 1024 * 1024,
        ),
    )(patches, params["conv_w_mat"], params["bn_shift"],
      params["fc1_w"], params["fc1_b"], params["fc2_w"], params["fc2_b"])


def init_params(key, num_classes=NUM_CLASSES):
    ks = jax.random.split(key, 6)
    conv_w = jax.random.normal(ks[0], (C1, 1, 3, 3), jnp.float32) * 0.1   # torch (Cout,Cin,KH,KW)
    conv_b = jax.random.normal(ks[1], (C1,), jnp.float32) * 0.1
    # BatchNorm2d(32) eval-mode defaults: gamma=1, beta=0, running stats (0, 1).
    gamma = jnp.ones((C1,), jnp.float32)
    beta = jnp.zeros((C1,), jnp.float32)
    run_mean = jnp.zeros((C1,), jnp.float32)
    run_var = jnp.ones((C1,), jnp.float32)
    eps = 1e-5
    scale = gamma / jnp.sqrt(run_var + eps)
    shift = beta + (conv_b - run_mean) * scale                  # conv bias folded into BN shift
    # NOTE: patches/weights truncated to bf16 (MXU path); keep f32 here if strict conv parity needed.
    conv_w_mat = (conv_w.reshape(C1, 9).T * scale[None, :]).astype(jnp.bfloat16)

    fc1_w = jax.random.normal(ks[2], (N1, P_POOL * C1), jnp.float32) * 0.02  # torch (out, c*49+p)
    fc1_b = jax.random.normal(ks[3], (N1,), jnp.float32) * 0.02
    # Fold torch's NCHW flatten: kernel contracts pooled[p*BT+b, c] against w1[p, c, n].
    fc1_w_fold = (fc1_w.reshape(N1, C1, P_POOL)     # (n, c, p)
                  .transpose(2, 1, 0)               # (p, c, n)
                  .astype(jnp.bfloat16))

    fc2_w = jax.random.normal(ks[4], (num_classes, N1), jnp.float32) * 0.05
    fc2_b = jax.random.normal(ks[5], (num_classes,), jnp.float32) * 0.05
    # Lane-dense classifier: pad to 128 columns; padded logits get -1e9 f32 bias -> exp == 0.
    fc2_w_pad = jnp.zeros((N1, PAD_CLASSES), jnp.float32).at[:, :num_classes].set(fc2_w.T)
    fc2_b_pad = jnp.full((PAD_CLASSES,), -1e9, jnp.float32).at[:num_classes].set(fc2_b)
    return dict(
        conv_w_mat=conv_w_mat,
        bn_shift=shift.reshape(1, C1),
        fc1_w=fc1_w_fold, fc1_b=fc1_b.reshape(1, N1),
        fc2_w=fc2_w_pad.astype(jnp.bfloat16), fc2_b=fc2_b_pad.reshape(1, PAD_CLASSES),
    )


@jax.jit
def forward(x_nchw, params):
    n = x_nchw.shape[0]
    n_pad = -(-n // BT) * BT
    x = x_nchw[:, 0]                                            # (N, 28, 28), single input channel
    if n_pad != n:
        x = jnp.pad(x, ((0, n_pad - n), (0, 0), (0, 0)))
    patches = im2col_3x3_s2_p1_pool_order(x, BT)                # (n_pad*196, 9) bf16
    probs = fused_forward(patches, params, n_pad)               # (n_pad, 128) bf16
    return probs[:n, :NUM_CLASSES].astype(jnp.float32)


if __name__ == "__main__":
    key = jax.random.PRNGKey(0)
    pkey, xkey = jax.random.split(key)
    params = init_params(pkey, NUM_CLASSES)
    x = jax.random.normal(xkey, (2, 1, 28, 28), jnp.float32)    # NCHW, like PyTorch
    out = forward(x, params)
    out = jax.block_until_ready(out)
    assert out.shape == (2, NUM_CLASSES)
    assert bool(jnp.all(jnp.isfinite(out)))
    # bf16 matmuls + approx reciprocal + bf16 probability store -> loose tolerance on row sums
    assert bool(jnp.allclose(jnp.sum(out, axis=-1), 1.0, atol=2e-2))
    print("KERNEL_OK")
</pallas_src>

<mosaic_0001>
module attributes {stable_mosaic.version = 11 : i64} {
  func.func @fused_cnn_kernel(%arg0: i32, %arg1: memref<6272x9xbf16, #tpu.memory_space<vmem>>, %arg2: memref<9x32xbf16, #tpu.memory_space<vmem>>, %arg3: memref<1x32xf32, #tpu.memory_space<vmem>>, %arg4: memref<49x32x256xbf16, #tpu.memory_space<vmem>>, %arg5: memref<1x256xf32, #tpu.memory_space<vmem>>, %arg6: memref<256x128xbf16, #tpu.memory_space<vmem>>, %arg7: memref<1x128xf32, #tpu.memory_space<vmem>>, %arg8: memref<32x128xbf16, #tpu.memory_space<vmem>>) attributes {dimension_semantics = [#tpu.dimension_semantics<parallel>], iteration_bounds = array<i64: 1>, scalar_prefetch = 0 : i64, scratch_operands = 0 : i64, tpu.core_type = #tpu.core_type<tc>, window_params = [{transform_indices = @transform_0, window_bounds = array<i64: 6272, 9>}, {pipeline_mode = #tpu.pipeline_mode<synchronous>, transform_indices = @transform_1, window_bounds = array<i64: 9, 32>}, {pipeline_mode = #tpu.pipeline_mode<synchronous>, transform_indices = @transform_2, window_bounds = array<i64: 1, 32>}, {pipeline_mode = #tpu.pipeline_mode<synchronous>, transform_indices = @transform_3, window_bounds = array<i64: 49, 32, 256>}, {pipeline_mode = #tpu.pipeline_mode<synchronous>, transform_indices = @transform_4, window_bounds = array<i64: 1, 256>}, {pipeline_mode = #tpu.pipeline_mode<synchronous>, transform_indices = @transform_5, window_bounds = array<i64: 256, 128>}, {pipeline_mode = #tpu.pipeline_mode<synchronous>, transform_indices = @transform_6, window_bounds = array<i64: 1, 128>}, {transform_indices = @transform_7, window_bounds = array<i64: 32, 128>}]} {
    %c0 = arith.constant 0 : index
    %c0_0 = arith.constant 0 : index
    %0 = vector.load %arg1[%c0, %c0_0] : memref<6272x9xbf16, #tpu.memory_space<vmem>>, vector<6272x9xbf16>
    %c0_1 = arith.constant 0 : index
    %c0_2 = arith.constant 0 : index
    %1 = vector.load %arg2[%c0_1, %c0_2] : memref<9x32xbf16, #tpu.memory_space<vmem>>, vector<9x32xbf16>
    %cst = arith.constant dense<0.000000e+00> : vector<6272x32xf32>
    %2 = tpu.matmul %0, %1, %cst {dimension_numbers = #tpu.dot_dimension_numbers<[1], [0], [0], [1], [0, 0, 1, 1], [], []>} : vector<6272x9xbf16>, vector<9x32xbf16>, vector<6272x32xf32> -> vector<6272x32xf32>
    %c0_3 = arith.constant 0 : index
    %c0_4 = arith.constant 0 : index
    %3 = vector.load %arg3[%c0_3, %c0_4] : memref<1x32xf32, #tpu.memory_space<vmem>>, vector<1x32xf32>
    %4 = vector.broadcast %3 : vector<1x32xf32> to vector<6272x32xf32>
    %5 = arith.addf %2, %4 : vector<6272x32xf32>
    %cst_5 = arith.constant 0.000000e+00 : f32
    %6 = vector.broadcast %cst_5 : f32 to vector<6272x32xf32>
    %7 = arith.maximumf %5, %6 : vector<6272x32xf32>
    %8 = vector.extract_strided_slice %7 {offsets = [0, 0], sizes = [1568, 32], strides = [1, 1]} : vector<6272x32xf32> to vector<1568x32xf32>
    %9 = vector.extract_strided_slice %7 {offsets = [1568, 0], sizes = [1568, 32], strides = [1, 1]} : vector<6272x32xf32> to vector<1568x32xf32>
    %10 = arith.maximumf %8, %9 : vector<1568x32xf32>
    %11 = vector.extract_strided_slice %7 {offsets = [3136, 0], sizes = [1568, 32], strides = [1, 1]} : vector<6272x32xf32> to vector<1568x32xf32>
    %12 = vector.extract_strided_slice %7 {offsets = [4704, 0], sizes = [1568, 32], strides = [1, 1]} : vector<6272x32xf32> to vector<1568x32xf32>
    %13 = arith.maximumf %11, %12 : vector<1568x32xf32>
    %14 = arith.maximumf %10, %13 : vector<1568x32xf32>
    %cst_6 = arith.constant 0.000000e+00 : f32
    %15 = vector.broadcast %cst_6 : f32 to vector<32x256xf32>
    %16 = vector.extract_strided_slice %14 {offsets = [0, 0], sizes = [32, 32], strides = [1, 1]} : vector<1568x32xf32> to vector<32x32xf32>
    %17 = arith.truncf %16 : vector<32x32xf32> to vector<32x32xbf16>
    %c0_7 = arith.constant 0 : index
    %c0_8 = arith.constant 0 : index
    %c0_9 = arith.constant 0 : index
    %18 = vector.load %arg4[%c0_7, %c0_8, %c0_9] : memref<49x32x256xbf16, #tpu.memory_space<vmem>>, vector<1x32x256xbf16>
    %19 = vector.shape_cast %18 : vector<1x32x256xbf16> to vector<32x256xbf16>
    %cst_10 = arith.constant dense<0.000000e+00> : vector<32x256xf32>
    %20 = tpu.matmul %17, %19, %cst_10 {dimension_numbers = #tpu.dot_dimension_numbers<[1], [0], [0], [1], [0, 0, 1, 1], [], []>} : vector<32x32xbf16>, vector<32x256xbf16>, vector<32x256xf32> -> vector<32x256xf32>
    %21 = arith.addf %15, %20 : vector<32x256xf32>
    %22 = vector.extract_strided_slice %14 {offsets = [32, 0], sizes = [32, 32], strides = [1, 1]} : vector<1568x32xf32> to vector<32x32xf32>
    %23 = arith.truncf %22 : vector<32x32xf32> to vector<32x32xbf16>
    %c1 = arith.constant 1 : index
    %c0_11 = arith.constant 0 : index
    %c0_12 = arith.constant 0 : index
    %24 = vector.load %arg4[%c1, %c0_11, %c0_12] : memref<49x32x256xbf16, #tpu.memory_space<vmem>>, vector<1x32x256xbf16>
    %25 = vector.shape_cast %24 : vector<1x32x256xbf16> to vector<32x256xbf16>
    %cst_13 = arith.constant dense<0.000000e+00> : vector<32x256xf32>
    %26 = tpu.matmul %23, %25, %cst_13 {dimension_numbers = #tpu.dot_dimension_numbers<[1], [0], [0], [1], [0, 0, 1, 1], [], []>} : vector<32x32xbf16>, vector<32x256xbf16>, vector<32x256xf32> -> vector<32x256xf32>
    %27 = arith.addf %21, %26 : vector<32x256xf32>
    %28 = vector.extract_strided_slice %14 {offsets = [64, 0], sizes = [32, 32], strides = [1, 1]} : vector<1568x32xf32> to vector<32x32xf32>
    %29 = arith.truncf %28 : vector<32x32xf32> to vector<32x32xbf16>
    %c2 = arith.constant 2 : index
    %c0_14 = arith.constant 0 : index
    %c0_15 = arith.constant 0 : index
    %30 = vector.load %arg4[%c2, %c0_14, %c0_15] : memref<49x32x256xbf16, #tpu.memory_space<vmem>>, vector<1x32x256xbf16>
    %31 = vector.shape_cast %30 : vector<1x32x256xbf16> to vector<32x256xbf16>
    %cst_16 = arith.constant dense<0.000000e+00> : vector<32x256xf32>
    %32 = tpu.matmul %29, %31, %cst_16 {dimension_numbers = #tpu.dot_dimension_numbers<[1], [0], [0], [1], [0, 0, 1, 1], [], []>} : vector<32x32xbf16>, vector<32x256xbf16>, vector<32x256xf32> -> vector<32x256xf32>
    %33 = arith.addf %27, %32 : vector<32x256xf32>
    %34 = vector.extract_strided_slice %14 {offsets = [96, 0], sizes = [32, 32], strides = [1, 1]} : vector<1568x32xf32> to vector<32x32xf32>
    %35 = arith.truncf %34 : vector<32x32xf32> to vector<32x32xbf16>
    %c3 = arith.constant 3 : index
    %c0_17 = arith.constant 0 : index
    %c0_18 = arith.constant 0 : index
    %36 = vector.load %arg4[%c3, %c0_17, %c0_18] : memref<49x32x256xbf16, #tpu.memory_space<vmem>>, vector<1x32x256xbf16>
    %37 = vector.shape_cast %36 : vector<1x32x256xbf16> to vector<32x256xbf16>
    %cst_19 = arith.constant dense<0.000000e+00> : vector<32x256xf32>
    %38 = tpu.matmul %35, %37, %cst_19 {dimension_numbers = #tpu.dot_dimension_numbers<[1], [0], [0], [1], [0, 0, 1, 1], [], []>} : vector<32x32xbf16>, vector<32x256xbf16>, vector<32x256xf32> -> vector<32x256xf32>
    %39 = arith.addf %33, %38 : vector<32x256xf32>
    %40 = vector.extract_strided_slice %14 {offsets = [128, 0], sizes = [32, 32], strides = [1, 1]} : vector<1568x32xf32> to vector<32x32xf32>
    %41 = arith.truncf %40 : vector<32x32xf32> to vector<32x32xbf16>
    %c4 = arith.constant 4 : index
    %c0_20 = arith.constant 0 : index
    %c0_21 = arith.constant 0 : index
    %42 = vector.load %arg4[%c4, %c0_20, %c0_21] : memref<49x32x256xbf16, #tpu.memory_space<vmem>>, vector<1x32x256xbf16>
    %43 = vector.shape_cast %42 : vector<1x32x256xbf16> to vector<32x256xbf16>
    %cst_22 = arith.constant dense<0.000000e+00> : vector<32x256xf32>
    %44 = tpu.matmul %41, %43, %cst_22 {dimension_numbers = #tpu.dot_dimension_numbers<[1], [0], [0], [1], [0, 0, 1, 1], [], []>} : vector<32x32xbf16>, vector<32x256xbf16>, vector<32x256xf32> -> vector<32x256xf32>
    %45 = arith.addf %39, %44 : vector<32x256xf32>
    %46 = vector.extract_strided_slice %14 {offsets = [160, 0], sizes = [32, 32], strides = [1, 1]} : vector<1568x32xf32> to vector<32x32xf32>
    %47 = arith.truncf %46 : vector<32x32xf32> to vector<32x32xbf16>
    %c5 = arith.constant 5 : index
    %c0_23 = arith.constant 0 : index
    %c0_24 = arith.constant 0 : index
    %48 = vector.load %arg4[%c5, %c0_23, %c0_24] : memref<49x32x256xbf16, #tpu.memory_space<vmem>>, vector<1x32x256xbf16>
    %49 = vector.shape_cast %48 : vector<1x32x256xbf16> to vector<32x256xbf16>
    %cst_25 = arith.constant dense<0.000000e+00> : vector<32x256xf32>
    %50 = tpu.matmul %47, %49, %cst_25 {dimension_numbers = #tpu.dot_dimension_numbers<[1], [0], [0], [1], [0, 0, 1, 1], [], []>} : vector<32x32xbf16>, vector<32x256xbf16>, vector<32x256xf32> -> vector<32x256xf32>
    %51 = arith.addf %45, %50 : vector<32x256xf32>
    %52 = vector.extract_strided_slice %14 {offsets = [192, 0], sizes = [32, 32], strides = [1, 1]} : vector<1568x32xf32> to vector<32x32xf32>
    %53 = arith.truncf %52 : vector<32x32xf32> to vector<32x32xbf16>
    %c6 = arith.constant 6 : index
    %c0_26 = arith.constant 0 : index
    %c0_27 = arith.constant 0 : index
    %54 = vector.load %arg4[%c6, %c0_26, %c0_27] : memref<49x32x256xbf16, #tpu.memory_space<vmem>>, vector<1x32x256xbf16>
    %55 = vector.shape_cast %54 : vector<1x32x256xbf16> to vector<32x256xbf16>
    %cst_28 = arith.constant dense<0.000000e+00> : vector<32x256xf32>
    %56 = tpu.matmul %53, %55, %cst_28 {dimension_numbers = #tpu.dot_dimension_numbers<[1], [0], [0], [1], [0, 0, 1, 1], [], []>} : vector<32x32xbf16>, vector<32x256xbf16>, vector<32x256xf32> -> vector<32x256xf32>
    %57 = arith.addf %51, %56 : vector<32x256xf32>
    %58 = vector.extract_strided_slice %14 {offsets = [224, 0], sizes = [32, 32], strides = [1, 1]} : vector<1568x32xf32> to vector<32x32xf32>
    %59 = arith.truncf %58 : vector<32x32xf32> to vector<32x32xbf16>
    %c7 = arith.constant 7 : index
    %c0_29 = arith.constant 0 : index
    %c0_30 = arith.constant 0 : index
    %60 = vector.load %arg4[%c7, %c0_29, %c0_30] : memref<49x32x256xbf16, #tpu.memory_space<vmem>>, vector<1x32x256xbf16>
    %61 = vector.shape_cast %60 : vector<1x32x256xbf16> to vector<32x256xbf16>
    %cst_31 = arith.constant dense<0.000000e+00> : vector<32x256xf32>
    %62 = tpu.matmul %59, %61, %cst_31 {dimension_numbers = #tpu.dot_dimension_numbers<[1], [0], [0], [1], [0, 0, 1, 1], [], []>} : vector<32x32xbf16>, vector<32x256xbf16>, vector<32x256xf32> -> vector<32x256xf32>
    %63 = arith.addf %57, %62 : vector<32x256xf32>
    %64 = vector.extract_strided_slice %14 {offsets = [256, 0], sizes = [32, 32], strides = [1, 1]} : vector<1568x32xf32> to vector<32x32xf32>
    %65 = arith.truncf %64 : vector<32x32xf32> to vector<32x32xbf16>
    %c8 = arith.constant 8 : index
    %c0_32 = arith.constant 0 : index
    %c0_33 = arith.constant 0 : index
    %66 = vector.load %arg4[%c8, %c0_32, %c0_33] : memref<49x32x256xbf16, #tpu.memory_space<vmem>>, vector<1x32x256xbf16>
    %67 = vector.shape_cast %66 : vector<1x32x256xbf16> to vector<32x256xbf16>
    %cst_34 = arith.constant dense<0.000000e+00> : vector<32x256xf32>
    %68 = tpu.matmul %65, %67, %cst_34 {dimension_numbers = #tpu.dot_dimension_numbers<[1], [0], [0], [1], [0, 0, 1, 1], [], []>} : vector<32x32xbf16>, vector<32x256xbf16>, vector<32x256xf32> -> vector<32x256xf32>
    %69 = arith.addf %63, %68 : vector<32x256xf32>
    %70 = vector.extract_strided_slice %14 {offsets = [288, 0], sizes = [32, 32], strides = [1, 1]} : vector<1568x32xf32> to vector<32x32xf32>
    %71 = arith.truncf %70 : vector<32x32xf32> to vector<32x32xbf16>
    %c9 = arith.constant 9 : index
    %c0_35 = arith.constant 0 : index
    %c0_36 = arith.constant 0 : index
    %72 = vector.load %arg4[%c9, %c0_35, %c0_36] : memref<49x32x256xbf16, #tpu.memory_space<vmem>>, vector<1x32x256xbf16>
    %73 = vector.shape_cast %72 : vector<1x32x256xbf16> to vector<32x256xbf16>
    %cst_37 = arith.constant dense<0.000000e+00> : vector<32x256xf32>
    %74 = tpu.matmul %71, %73, %cst_37 {dimension_numbers = #tpu.dot_dimension_numbers<[1], [0], [0], [1], [0, 0, 1, 1], [], []>} : vector<32x32xbf16>, vector<32x256xbf16>, vector<32x256xf32> -> vector<32x256xf32>
    %75 = arith.addf %69, %74 : vector<32x256xf32>
    %76 = vector.extract_strided_slice %14 {offsets = [320, 0], sizes = [32, 32], strides = [1, 1]} : vector<1568x32xf32> to vector<32x32xf32>
    %77 = arith.truncf %76 : vector<32x32xf32> to vector<32x32xbf16>
    %c10 = arith.constant 10 : index
    %c0_38 = arith.constant 0 : index
    %c0_39 = arith.constant 0 : index
    %78 = vector.load %arg4[%c10, %c0_38, %c0_39] : memref<49x32x256xbf16, #tpu.memory_space<vmem>>, vector<1x32x256xbf16>
    %79 = vector.shape_cast %78 : vector<1x32x256xbf16> to vector<32x256xbf16>
    %cst_40 = arith.constant dense<0.000000e+00> : vector<32x256xf32>
    %80 = tpu.matmul %77, %79, %cst_40 {dimension_numbers = #tpu.dot_dimension_numbers<[1], [0], [0], [1], [0, 0, 1, 1], [], []>} : vector<32x32xbf16>, vector<32x256xbf16>, vector<32x256xf32> -> vector<32x256xf32>
    %81 = arith.addf %75, %80 : vector<32x256xf32>
    %82 = vector.extract_strided_slice %14 {offsets = [352, 0], sizes = [32, 32], strides = [1, 1]} : vector<1568x32xf32> to vector<32x32xf32>
    %83 = arith.truncf %82 : vector<32x32xf32> to vector<32x32xbf16>
    %c11 = arith.constant 11 : index
    %c0_41 = arith.constant 0 : index
    %c0_42 = arith.constant 0 : index
    %84 = vector.load %arg4[%c11, %c0_41, %c0_42] : memref<49x32x256xbf16, #tpu.memory_space<vmem>>, vector<1x32x256xbf16>
    %85 = vector.shape_cast %84 : vector<1x32x256xbf16> to vector<32x256xbf16>
    %cst_43 = arith.constant dense<0.000000e+00> : vector<32x256xf32>
    %86 = tpu.matmul %83, %85, %cst_43 {dimension_numbers = #tpu.dot_dimension_numbers<[1], [0], [0], [1], [0, 0, 1, 1], [], []>} : vector<32x32xbf16>, vector<32x256xbf16>, vector<32x256xf32> -> vector<32x256xf32>
    %87 = arith.addf %81, %86 : vector<32x256xf32>
    %88 = vector.extract_strided_slice %14 {offsets = [384, 0], sizes = [32, 32], strides = [1, 1]} : vector<1568x32xf32> to vector<32x32xf32>
    %89 = arith.truncf %88 : vector<32x32xf32> to vector<32x32xbf16>
    %c12 = arith.constant 12 : index
    %c0_44 = arith.constant 0 : index
    %c0_45 = arith.constant 0 : index
    %90 = vector.load %arg4[%c12, %c0_44, %c0_45] : memref<49x32x256xbf16, #tpu.memory_space<vmem>>, vector<1x32x256xbf16>
    %91 = vector.shape_cast %90 : vector<1x32x256xbf16> to vector<32x256xbf16>
    %cst_46 = arith.constant dense<0.000000e+00> : vector<32x256xf32>
    %92 = tpu.matmul %89, %91, %cst_46 {dimension_numbers = #tpu.dot_dimension_numbers<[1], [0], [0], [1], [0, 0, 1, 1], [], []>} : vector<32x32xbf16>, vector<32x256xbf16>, vector<32x256xf32> -> vector<32x256xf32>
    %93 = arith.addf %87, %92 : vector<32x256xf32>
    %94 = vector.extract_strided_slice %14 {offsets = [416, 0], sizes = [32, 32], strides = [1, 1]} : vector<1568x32xf32> to vector<32x32xf32>
    %95 = arith.truncf %94 : vector<32x32xf32> to vector<32x32xbf16>
    %c13 = arith.constant 13 : index
    %c0_47 = arith.constant 0 : index
    %c0_48 = arith.constant 0 : index
    %96 = vector.load %arg4[%c13, %c0_47, %c0_48] : memref<49x32x256xbf16, #tpu.memory_space<vmem>>, vector<1x32x256xbf16>
    %97 = vector.shape_cast %96 : vector<1x32x256xbf16> to vector<32x256xbf16>
    %cst_49 = arith.constant dense<0.000000e+00> : vector<32x256xf32>
    %98 = tpu.matmul %95, %97, %cst_49 {dimension_numbers = #tpu.dot_dimension_numbers<[1], [0], [0], [1], [0, 0, 1, 1], [], []>} : vector<32x32xbf16>, vector<32x256xbf16>, vector<32x256xf32> -> vector<32x256xf32>
    %99 = arith.addf %93, %98 : vector<32x256xf32>
    %100 = vector.extract_strided_slice %14 {offsets = [448, 0], sizes = [32, 32], strides = [1, 1]} : vector<1568x32xf32> to vector<32x32xf32>
    %101 = arith.truncf %100 : vector<32x32xf32> to vector<32x32xbf16>
    %c14 = arith.constant 14 : index
    %c0_50 = arith.constant 0 : index
    %c0_51 = arith.constant 0 : index
    %102 = vector.load %arg4[%c14, %c0_50, %c0_51] : memref<49x32x256xbf16, #tpu.memory_space<vmem>>, vector<1x32x256xbf16>
    %103 = vector.shape_cast %102 : vector<1x32x256xbf16> to vector<32x256xbf16>
    %cst_52 = arith.constant dense<0.000000e+00> : vector<32x256xf32>
    %104 = tpu.matmul %101, %103, %cst_52 {dimension_numbers = #tpu.dot_dimension_numbers<[1], [0], [0], [1], [0, 0, 1, 1], [], []>} : vector<32x32xbf16>, vector<32x256xbf16>, vector<32x256xf32> -> vector<32x256xf32>
    %105 = arith.addf %99, %104 : vector<32x256xf32>
    %106 = vector.extract_strided_slice %14 {offsets = [480, 0], sizes = [32, 32], strides = [1, 1]} : vector<1568x32xf32> to vector<32x32xf32>
    %107 = arith.truncf %106 : vector<32x32xf32> to vector<32x32xbf16>
    %c15 = arith.constant 15 : index
    %c0_53 = arith.constant 0 : index
    %c0_54 = arith.constant 0 : index
    %108 = vector.load %arg4[%c15, %c0_53, %c0_54] : memref<49x32x256xbf16, #tpu.memory_space<vmem>>, vector<1x32x256xbf16>
    %109 = vector.shape_cast %108 : vector<1x32x256xbf16> to vector<32x256xbf16>
    %cst_55 = arith.constant dense<0.000000e+00> : vector<32x256xf32>
    %110 = tpu.matmul %107, %109, %cst_55 {dimension_numbers = #tpu.dot_dimension_numbers<[1], [0], [0], [1], [0, 0, 1, 1], [], []>} : vector<32x32xbf16>, vector<32x256xbf16>, vector<32x256xf32> -> vector<32x256xf32>
    %111 = arith.addf %105, %110 : vector<32x256xf32>
    %112 = vector.extract_strided_slice %14 {offsets = [512, 0], sizes = [32, 32], strides = [1, 1]} : vector<1568x32xf32> to vector<32x32xf32>
    %113 = arith.truncf %112 : vector<32x32xf32> to vector<32x32xbf16>
    %c16 = arith.constant 16 : index
    %c0_56 = arith.constant 0 : index
    %c0_57 = arith.constant 0 : index
    %114 = vector.load %arg4[%c16, %c0_56, %c0_57] : memref<49x32x256xbf16, #tpu.memory_space<vmem>>, vector<1x32x256xbf16>
    %115 = vector.shape_cast %114 : vector<1x32x256xbf16> to vector<32x256xbf16>
    %cst_58 = arith.constant dense<0.000000e+00> : vector<32x256xf32>
    %116 = tpu.matmul %113, %115, %cst_58 {dimension_numbers = #tpu.dot_dimension_numbers<[1], [0], [0], [1], [0, 0, 1, 1], [], []>} : vector<32x32xbf16>, vector<32x256xbf16>, vector<32x256xf32> -> vector<32x256xf32>
    %117 = arith.addf %111, %116 : vector<32x256xf32>
    %118 = vector.extract_strided_slice %14 {offsets = [544, 0], sizes = [32, 32], strides = [1, 1]} : vector<1568x32xf32> to vector<32x32xf32>
    %119 = arith.truncf %118 : vector<32x32xf32> to vector<32x32xbf16>
    %c17 = arith.constant 17 : index
    %c0_59 = arith.constant 0 : index
    %c0_60 = arith.constant 0 : index
    %120 = vector.load %arg4[%c17, %c0_59, %c0_60] : memref<49x32x256xbf16, #tpu.memory_space<vmem>>, vector<1x32x256xbf16>
    %121 = vector.shape_cast %120 : vector<1x32x256xbf16> to vector<32x256xbf16>
    %cst_61 = arith.constant dense<0.000000e+00> : vector<32x256xf32>
    %122 = tpu.matmul %119, %121, %cst_61 {dimension_numbers = #tpu.dot_dimension_numbers<[1], [0], [0], [1], [0, 0, 1, 1], [], []>} : vector<32x32xbf16>, vector<32x256xbf16>, vector<32x256xf32> -> vector<32x256xf32>
    %123 = arith.addf %117, %122 : vector<32x256xf32>
    %124 = vector.extract_strided_slice %14 {offsets = [576, 0], sizes = [32, 32], strides = [1, 1]} : vector<1568x32xf32> to vector<32x32xf32>
    %125 = arith.truncf %124 : vector<32x32xf32> to vector<32x32xbf16>
    %c18 = arith.constant 18 : index
    %c0_62 = arith.constant 0 : index
    %c0_63 = arith.constant 0 : index
    %126 = vector.load %arg4[%c18, %c0_62, %c0_63] : memref<49x32x256xbf16, #tpu.memory_space<vmem>>, vector<1x32x256xbf16>
    %127 = vector.shape_cast %126 : vector<1x32x256xbf16> to vector<32x256xbf16>
    %cst_64 = arith.constant dense<0.000000e+00> : vector<32x256xf32>
    %128 = tpu.matmul %125, %127, %cst_64 {dimension_numbers = #tpu.dot_dimension_numbers<[1], [0], [0], [1], [0, 0, 1, 1], [], []>} : vector<32x32xbf16>, vector<32x256xbf16>, vector<32x256xf32> -> vector<32x256xf32>
    %129 = arith.addf %123, %128 : vector<32x256xf32>
    %130 = vector.extract_strided_slice %14 {offsets = [608, 0], sizes = [32, 32], strides = [1, 1]} : vector<1568x32xf32> to vector<32x32xf32>
    %131 = arith.truncf %130 : vector<32x32xf32> to vector<32x32xbf16>
    %c19 = arith.constant 19 : index
    %c0_65 = arith.constant 0 : index
    %c0_66 = arith.constant 0 : index
    %132 = vector.load %arg4[%c19, %c0_65, %c0_66] : memref<49x32x256xbf16, #tpu.memory_space<vmem>>, vector<1x32x256xbf16>
    %133 = vector.shape_cast %132 : vector<1x32x256xbf16> to vector<32x256xbf16>
    %cst_67 = arith.constant dense<0.000000e+00> : vector<32x256xf32>
    %134 = tpu.matmul %131, %133, %cst_67 {dimension_numbers = #tpu.dot_dimension_numbers<[1], [0], [0], [1], [0, 0, 1, 1], [], []>} : vector<32x32xbf16>, vector<32x256xbf16>, vector<32x256xf32> -> vector<32x256xf32>
    %135 = arith.addf %129, %134 : vector<32x256xf32>
    %136 = vector.extract_strided_slice %14 {offsets = [640, 0], sizes = [32, 32], strides = [1, 1]} : vector<1568x32xf32> to vector<32x32xf32>
    %137 = arith.truncf %136 : vector<32x32xf32> to vector<32x32xbf16>
    %c20 = arith.constant 20 : index
    %c0_68 = arith.constant 0 : index
    %c0_69 = arith.constant 0 : index
    %138 = vector.load %arg4[%c20, %c0_68, %c0_69] : memref<49x32x256xbf16, #tpu.memory_space<vmem>>, vector<1x32x256xbf16>
    %139 = vector.shape_cast %138 : vector<1x32x256xbf16> to vector<32x256xbf16>
    %cst_70 = arith.constant dense<0.000000e+00> : vector<32x256xf32>
    %140 = tpu.matmul %137, %139, %cst_70 {dimension_numbers = #tpu.dot_dimension_numbers<[1], [0], [0], [1], [0, 0, 1, 1], [], []>} : vector<32x32xbf16>, vector<32x256xbf16>, vector<32x256xf32> -> vector<32x256xf32>
    %141 = arith.addf %135, %140 : vector<32x256xf32>
    %142 = vector.extract_strided_slice %14 {offsets = [672, 0], sizes = [32, 32], strides = [1, 1]} : vector<1568x32xf32> to vector<32x32xf32>
    %143 = arith.truncf %142 : vector<32x32xf32> to vector<32x32xbf16>
    %c21 = arith.constant 21 : index
    %c0_71 = arith.constant 0 : index
    %c0_72 = arith.constant 0 : index
    %144 = vector.load %arg4[%c21, %c0_71, %c0_72] : memref<49x32x256xbf16, #tpu.memory_space<vmem>>, vector<1x32x256xbf16>
    %145 = vector.shape_cast %144 : vector<1x32x256xbf16> to vector<32x256xbf16>
    %cst_73 = arith.constant dense<0.000000e+00> : vector<32x256xf32>
    %146 = tpu.matmul %143, %145, %cst_73 {dimension_numbers = #tpu.dot_dimension_numbers<[1], [0], [0], [1], [0, 0, 1, 1], [], []>} : vector<32x32xbf16>, vector<32x256xbf16>, vector<32x256xf32> -> vector<32x256xf32>
    %147 = arith.addf %141, %146 : vector<32x256xf32>
    %148 = vector.extract_strided_slice %14 {offsets = [704, 0], sizes = [32, 32], strides = [1, 1]} : vector<1568x32xf32> to vector<32x32xf32>
    %149 = arith.truncf %148 : vector<32x32xf32> to vector<32x32xbf16>
    %c22 = arith.constant 22 : index
    %c0_74 = arith.constant 0 : index
    %c0_75 = arith.constant 0 : index
    %150 = vector.load %arg4[%c22, %c0_74, %c0_75] : memref<49x32x256xbf16, #tpu.memory_space<vmem>>, vector<1x32x256xbf16>
    %151 = vector.shape_cast %150 : vector<1x32x256xbf16> to vector<32x256xbf16>
    %cst_76 = arith.constant dense<0.000000e+00> : vector<32x256xf32>
    %152 = tpu.matmul %149, %151, %cst_76 {dimension_numbers = #tpu.dot_dimension_numbers<[1], [0], [0], [1], [0, 0, 1, 1], [], []>} : vector<32x32xbf16>, vector<32x256xbf16>, vector<32x256xf32> -> vector<32x256xf32>
    %153 = arith.addf %147, %152 : vector<32x256xf32>
    %154 = vector.extract_strided_slice %14 {offsets = [736, 0], sizes = [32, 32], strides = [1, 1]} : vector<1568x32xf32> to vector<32x32xf32>
    %155 = arith.truncf %154 : vector<32x32xf32> to vector<32x32xbf16>
    %c23 = arith.constant 23 : index
    %c0_77 = arith.constant 0 : index
    %c0_78 = arith.constant 0 : index
    %156 = vector.load %arg4[%c23, %c0_77, %c0_78] : memref<49x32x256xbf16, #tpu.memory_space<vmem>>, vector<1x32x256xbf16>
    %157 = vector.shape_cast %156 : vector<1x32x256xbf16> to vector<32x256xbf16>
    %cst_79 = arith.constant dense<0.000000e+00> : vector<32x256xf32>
    %158 = tpu.matmul %155, %157, %cst_79 {dimension_numbers = #tpu.dot_dimension_numbers<[1], [0], [0], [1], [0, 0, 1, 1], [], []>} : vector<32x32xbf16>, vector<32x256xbf16>, vector<32x256xf32> -> vector<32x256xf32>
    %159 = arith.addf %153, %158 : vector<32x256xf32>
    %160 = vector.extract_strided_slice %14 {offsets = [768, 0], sizes = [32, 32], strides = [1, 1]} : vector<1568x32xf32> to vector<32x32xf32>
    %161 = arith.truncf %160 : vector<32x32xf32> to vector<32x32xbf16>
    %c24 = arith.constant 24 : index
    %c0_80 = arith.constant 0 : index
    %c0_81 = arith.constant 0 : index
    %162 = vector.load %arg4[%c24, %c0_80, %c0_81] : memref<49x32x256xbf16, #tpu.memory_space<vmem>>, vector<1x32x256xbf16>
    %163 = vector.shape_cast %162 : vector<1x32x256xbf16> to vector<32x256xbf16>
    %cst_82 = arith.constant dense<0.000000e+00> : vector<32x256xf32>
    %164 = tpu.matmul %161, %163, %cst_82 {dimension_numbers = #tpu.dot_dimension_numbers<[1], [0], [0], [1], [0, 0, 1, 1], [], []>} : vector<32x32xbf16>, vector<32x256xbf16>, vector<32x256xf32> -> vector<32x256xf32>
    %165 = arith.addf %159, %164 : vector<32x256xf32>
    %166 = vector.extract_strided_slice %14 {offsets = [800, 0], sizes = [32, 32], strides = [1, 1]} : vector<1568x32xf32> to vector<32x32xf32>
    %167 = arith.truncf %166 : vector<32x32xf32> to vector<32x32xbf16>
    %c25 = arith.constant 25 : index
    %c0_83 = arith.constant 0 : index
    %c0_84 = arith.constant 0 : index
    %168 = vector.load %arg4[%c25, %c0_83, %c0_84] : memref<49x32x256xbf16, #tpu.memory_space<vmem>>, vector<1x32x256xbf16>
    %169 = vector.shape_cast %168 : vector<1x32x256xbf16> to vector<32x256xbf16>
    %cst_85 = arith.constant dense<0.000000e+00> : vector<32x256xf32>
    %170 = tpu.matmul %167, %169, %cst_85 {dimension_numbers = #tpu.dot_dimension_numbers<[1], [0], [0], [1], [0, 0, 1, 1], [], []>} : vector<32x32xbf16>, vector<32x256xbf16>, vector<32x256xf32> -> vector<32x256xf32>
    %171 = arith.addf %165, %170 : vector<32x256xf32>
    %172 = vector.extract_strided_slice %14 {offsets = [832, 0], sizes = [32, 32], strides = [1, 1]} : vector<1568x32xf32> to vector<32x32xf32>
    %173 = arith.truncf %172 : vector<32x32xf32> to vector<32x32xbf16>
    %c26 = arith.constant 26 : index
    %c0_86 = arith.constant 0 : index
    %c0_87 = arith.constant 0 : index
    %174 = vector.load %arg4[%c26, %c0_86, %c0_87] : memref<49x32x256xbf16, #tpu.memory_space<vmem>>, vector<1x32x256xbf16>
    %175 = vector.shape_cast %174 : vector<1x32x256xbf16> to vector<32x256xbf16>
    %cst_88 = arith.constant dense<0.000000e+00> : vector<32x256xf32>
    %176 = tpu.matmul %173, %175, %cst_88 {dimension_numbers = #tpu.dot_dimension_numbers<[1], [0], [0], [1], [0, 0, 1, 1], [], []>} : vector<32x32xbf16>, vector<32x256xbf16>, vector<32x256xf32> -> vector<32x256xf32>
    %177 = arith.addf %171, %176 : vector<32x256xf32>
    %178 = vector.extract_strided_slice %14 {offsets = [864, 0], sizes = [32, 32], strides = [1, 1]} : vector<1568x32xf32> to vector<32x32xf32>
    %179 = arith.truncf %178 : vector<32x32xf32> to vector<32x32xbf16>
    %c27 = arith.constant 27 : index
    %c0_89 = arith.constant 0 : index
    %c0_90 = arith.constant 0 : index
    %180 = vector.load %arg4[%c27, %c0_89, %c0_90] : memref<49x32x256xbf16, #tpu.memory_space<vmem>>, vector<1x32x256xbf16>
    %181 = vector.shape_cast %180 : vector<1x32x256xbf16> to vector<32x256xbf16>
    %cst_91 = arith.constant dense<0.000000e+00> : vector<32x256xf32>
    %182 = tpu.matmul %179, %181, %cst_91 {dimension_numbers = #tpu.dot_dimension_numbers<[1], [0], [0], [1], [0, 0, 1, 1], [], []>} : vector<32x32xbf16>, vector<32x256xbf16>, vector<32x256xf32> -> vector<32x256xf32>
    %183 = arith.addf %177, %182 : vector<32x256xf32>
    %184 = vector.extract_strided_slice %14 {offsets = [896, 0], sizes = [32, 32], strides = [1, 1]} : vector<1568x32xf32> to vector<32x32xf32>
    %185 = arith.truncf %184 : vector<32x32xf32> to vector<32x32xbf16>
    %c28 = arith.constant 28 : index
    %c0_92 = arith.constant 0 : index
    %c0_93 = arith.constant 0 : index
    %186 = vector.load %arg4[%c28, %c0_92, %c0_93] : memref<49x32x256xbf16, #tpu.memory_space<vmem>>, vector<1x32x256xbf16>
    %187 = vector.shape_cast %186 : vector<1x32x256xbf16> to vector<32x256xbf16>
    %cst_94 = arith.constant dense<0.000000e+00> : vector<32x256xf32>
    %188 = tpu.matmul %185, %187, %cst_94 {dimension_numbers = #tpu.dot_dimension_numbers<[1], [0], [0], [1], [0, 0, 1, 1], [], []>} : vector<32x32xbf16>, vector<32x256xbf16>, vector<32x256xf32> -> vector<32x256xf32>
    %189 = arith.addf %183, %188 : vector<32x256xf32>
    %190 = vector.extract_strided_slice %14 {offsets = [928, 0], sizes = [32, 32], strides = [1, 1]} : vector<1568x32xf32> to vector<32x32xf32>
    %191 = arith.truncf %190 : vector<32x32xf32> to vector<32x32xbf16>
    %c29 = arith.constant 29 : index
    %c0_95 = arith.constant 0 : index
    %c0_96 = arith.constant 0 : index
    %192 = vector.load %arg4[%c29, %c0_95, %c0_96] : memref<49x32x256xbf16, #tpu.memory_space<vmem>>, vector<1x32x256xbf16>
    %193 = vector.shape_cast %192 : vector<1x32x256xbf16> to vector<32x256xbf16>
    %cst_97 = arith.constant dense<0.000000e+00> : vector<32x256xf32>
    %194 = tpu.matmul %191, %193, %cst_97 {dimension_numbers = #tpu.dot_dimension_numbers<[1], [0], [0], [1], [0, 0, 1, 1], [], []>} : vector<32x32xbf16>, vector<32x256xbf16>, vector<32x256xf32> -> vector<32x256xf32>
    %195 = arith.addf %189, %194 : vector<32x256xf32>
    %196 = vector.extract_strided_slice %14 {offsets = [960, 0], sizes = [32, 32], strides = [1, 1]} : vector<1568x32xf32> to vector<32x32xf32>
    %197 = arith.truncf %196 : vector<32x32xf32> to vector<32x32xbf16>
    %c30 = arith.constant 30 : index
    %c0_98 = arith.constant 0 : index
    %c0_99 = arith.constant 0 : index
    %198 = vector.load %arg4[%c30, %c0_98, %c0_99] : memref<49x32x256xbf16, #tpu.memory_space<vmem>>, vector<1x32x256xbf16>
    %199 = vector.shape_cast %198 : vector<1x32x256xbf16> to vector<32x256xbf16>
    %cst_100 = arith.constant dense<0.000000e+00> : vector<32x256xf32>
    %200 = tpu.matmul %197, %199, %cst_100 {dimension_numbers = #tpu.dot_dimension_numbers<[1], [0], [0], [1], [0, 0, 1, 1], [], []>} : vector<32x32xbf16>, vector<32x256xbf16>, vector<32x256xf32> -> vector<32x256xf32>
    %201 = arith.addf %195, %200 : vector<32x256xf32>
    %202 = vector.extract_strided_slice %14 {offsets = [992, 0], sizes = [32, 32], strides = [1, 1]} : vector<1568x32xf32> to vector<32x32xf32>
    %203 = arith.truncf %202 : vector<32x32xf32> to vector<32x32xbf16>
    %c31 = arith.constant 31 : index
    %c0_101 = arith.constant 0 : index
    %c0_102 = arith.constant 0 : index
    %204 = vector.load %arg4[%c31, %c0_101, %c0_102] : memref<49x32x256xbf16, #tpu.memory_space<vmem>>, vector<1x32x256xbf16>
    %205 = vector.shape_cast %204 : vector<1x32x256xbf16> to vector<32x256xbf16>
    %cst_103 = arith.constant dense<0.000000e+00> : vector<32x256xf32>
    %206 = tpu.matmul %203, %205, %cst_103 {dimension_numbers = #tpu.dot_dimension_numbers<[1], [0], [0], [1], [0, 0, 1, 1], [], []>} : vector<32x32xbf16>, vector<32x256xbf16>, vector<32x256xf32> -> vector<32x256xf32>
    %207 = arith.addf %201, %206 : vector<32x256xf32>
    %208 = vector.extract_strided_slice %14 {offsets = [1024, 0], sizes = [32, 32], strides = [1, 1]} : vector<1568x32xf32> to vector<32x32xf32>
    %209 = arith.truncf %208 : vector<32x32xf32> to vector<32x32xbf16>
    %c32 = arith.constant 32 : index
    %c0_104 = arith.constant 0 : index
    %c0_105 = arith.constant 0 : index
    %210 = vector.load %arg4[%c32, %c0_104, %c0_105] : memref<49x32x256xbf16, #tpu.memory_space<vmem>>, vector<1x32x256xbf16>
    %211 = vector.shape_cast %210 : vector<1x32x256xbf16> to vector<32x256xbf16>
    %cst_106 = arith.constant dense<0.000000e+00> : vector<32x256xf32>
    %212 = tpu.matmul %209, %211, %cst_106 {dimension_numbers = #tpu.dot_dimension_numbers<[1], [0], [0], [1], [0, 0, 1, 1], [], []>} : vector<32x32xbf16>, vector<32x256xbf16>, vector<32x256xf32> -> vector<32x256xf32>
    %213 = arith.addf %207, %212 : vector<32x256xf32>
    %214 = vector.extract_strided_slice %14 {offsets = [1056, 0], sizes = [32, 32], strides = [1, 1]} : vector<1568x32xf32> to vector<32x32xf32>
    %215 = arith.truncf %214 : vector<32x32xf32> to vector<32x32xbf16>
    %c33 = arith.constant 33 : index
    %c0_107 = arith.constant 0 : index
    %c0_108 = arith.constant 0 : index
    %216 = vector.load %arg4[%c33, %c0_107, %c0_108] : memref<49x32x256xbf16, #tpu.memory_space<vmem>>, vector<1x32x256xbf16>
    %217 = vector.shape_cast %216 : vector<1x32x256xbf16> to vector<32x256xbf16>
    %cst_109 = arith.constant dense<0.000000e+00> : vector<32x256xf32>
    %218 = tpu.matmul %215, %217, %cst_109 {dimension_numbers = #tpu.dot_dimension_numbers<[1], [0], [0], [1], [0, 0, 1, 1], [], []>} : vector<32x32xbf16>, vector<32x256xbf16>, vector<32x256xf32> -> vector<32x256xf32>
    %219 = arith.addf %213, %218 : vector<32x256xf32>
    %220 = vector.extract_strided_slice %14 {offsets = [1088, 0], sizes = [32, 32], strides = [1, 1]} : vector<1568x32xf32> to vector<32x32xf32>
    %221 = arith.truncf %220 : vector<32x32xf32> to vector<32x32xbf16>
    %c34 = arith.constant 34 : index
    %c0_110 = arith.constant 0 : index
    %c0_111 = arith.constant 0 : index
    %222 = vector.load %arg4[%c34, %c0_110, %c0_111] : memref<49x32x256xbf16, #tpu.memory_space<vmem>>, vector<1x32x256xbf16>
    %223 = vector.shape_cast %222 : vector<1x32x256xbf16> to vector<32x256xbf16>
    %cst_112 = arith.constant dense<0.000000e+00> : vector<32x256xf32>
    %224 = tpu.matmul %221, %223, %cst_112 {dimension_numbers = #tpu.dot_dimension_numbers<[1], [0], [0], [1], [0, 0, 1, 1], [], []>} : vector<32x32xbf16>, vector<32x256xbf16>, vector<32x256xf32> -> vector<32x256xf32>
    %225 = arith.addf %219, %224 : vector<32x256xf32>
    %226 = vector.extract_strided_slice %14 {offsets = [1120, 0], sizes = [32, 32], strides = [1, 1]} : vector<1568x32xf32> to vector<32x32xf32>
    %227 = arith.truncf %226 : vector<32x32xf32> to vector<32x32xbf16>
    %c35 = arith.constant 35 : index
    %c0_113 = arith.constant 0 : index
    %c0_114 = arith.constant 0 : index
    %228 = vector.load %arg4[%c35, %c0_113, %c0_114] : memref<49x32x256xbf16, #tpu.memory_space<vmem>>, vector<1x32x256xbf16>
    %229 = vector.shape_cast %228 : vector<1x32x256xbf16> to vector<32x256xbf16>
    %cst_115 = arith.constant dense<0.000000e+00> : vector<32x256xf32>
    %230 = tpu.matmul %227, %229, %cst_115 {dimension_numbers = #tpu.dot_dimension_numbers<[1], [0], [0], [1], [0, 0, 1, 1], [], []>} : vector<32x32xbf16>, vector<32x256xbf16>, vector<32x256xf32> -> vector<32x256xf32>
    %231 = arith.addf %225, %230 : vector<32x256xf32>
    %232 = vector.extract_strided_slice %14 {offsets = [1152, 0], sizes = [32, 32], strides = [1, 1]} : vector<1568x32xf32> to vector<32x32xf32>
    %233 = arith.truncf %232 : vector<32x32xf32> to vector<32x32xbf16>
    %c36 = arith.constant 36 : index
    %c0_116 = arith.constant 0 : index
    %c0_117 = arith.constant 0 : index
    %234 = vector.load %arg4[%c36, %c0_116, %c0_117] : memref<49x32x256xbf16, #tpu.memory_space<vmem>>, vector<1x32x256xbf16>
    %235 = vector.shape_cast %234 : vector<1x32x256xbf16> to vector<32x256xbf16>
    %cst_118 = arith.constant dense<0.000000e+00> : vector<32x256xf32>
    %236 = tpu.matmul %233, %235, %cst_118 {dimension_numbers = #tpu.dot_dimension_numbers<[1], [0], [0], [1], [0, 0, 1, 1], [], []>} : vector<32x32xbf16>, vector<32x256xbf16>, vector<32x256xf32> -> vector<32x256xf32>
    %237 = arith.addf %231, %236 : vector<32x256xf32>
    %238 = vector.extract_strided_slice %14 {offsets = [1184, 0], sizes = [32, 32], strides = [1, 1]} : vector<1568x32xf32> to vector<32x32xf32>
    %239 = arith.truncf %238 : vector<32x32xf32> to vector<32x32xbf16>
    %c37 = arith.constant 37 : index
    %c0_119 = arith.constant 0 : index
    %c0_120 = arith.constant 0 : index
    %240 = vector.load %arg4[%c37, %c0_119, %c0_120] : memref<49x32x256xbf16, #tpu.memory_space<vmem>>, vector<1x32x256xbf16>
    %241 = vector.shape_cast %240 : vector<1x32x256xbf16> to vector<32x256xbf16>
    %cst_121 = arith.constant dense<0.000000e+00> : vector<32x256xf32>
    %242 = tpu.matmul %239, %241, %cst_121 {dimension_numbers = #tpu.dot_dimension_numbers<[1], [0], [0], [1], [0, 0, 1, 1], [], []>} : vector<32x32xbf16>, vector<32x256xbf16>, vector<32x256xf32> -> vector<32x256xf32>
    %243 = arith.addf %237, %242 : vector<32x256xf32>
    %244 = vector.extract_strided_slice %14 {offsets = [1216, 0], sizes = [32, 32], strides = [1, 1]} : vector<1568x32xf32> to vector<32x32xf32>
    %245 = arith.truncf %244 : vector<32x32xf32> to vector<32x32xbf16>
    %c38 = arith.constant 38 : index
    %c0_122 = arith.constant 0 : index
    %c0_123 = arith.constant 0 : index
    %246 = vector.load %arg4[%c38, %c0_122, %c0_123] : memref<49x32x256xbf16, #tpu.memory_space<vmem>>, vector<1x32x256xbf16>
    %247 = vector.shape_cast %246 : vector<1x32x256xbf16> to vector<32x256xbf16>
    %cst_124 = arith.constant dense<0.000000e+00> : vector<32x256xf32>
    %248 = tpu.matmul %245, %247, %cst_124 {dimension_numbers = #tpu.dot_dimension_numbers<[1], [0], [0], [1], [0, 0, 1, 1], [], []>} : vector<32x32xbf16>, vector<32x256xbf16>, vector<32x256xf32> -> vector<32x256xf32>
    %249 = arith.addf %243, %248 : vector<32x256xf32>
    %250 = vector.extract_strided_slice %14 {offsets = [1248, 0], sizes = [32, 32], strides = [1, 1]} : vector<1568x32xf32> to vector<32x32xf32>
    %251 = arith.truncf %250 : vector<32x32xf32> to vector<32x32xbf16>
    %c39 = arith.constant 39 : index
    %c0_125 = arith.constant 0 : index
    %c0_126 = arith.constant 0 : index
    %252 = vector.load %arg4[%c39, %c0_125, %c0_126] : memref<49x32x256xbf16, #tpu.memory_space<vmem>>, vector<1x32x256xbf16>
    %253 = vector.shape_cast %252 : vector<1x32x256xbf16> to vector<32x256xbf16>
    %cst_127 = arith.constant dense<0.000000e+00> : vector<32x256xf32>
    %254 = tpu.matmul %251, %253, %cst_127 {dimension_numbers = #tpu.dot_dimension_numbers<[1], [0], [0], [1], [0, 0, 1, 1], [], []>} : vector<32x32xbf16>, vector<32x256xbf16>, vector<32x256xf32> -> vector<32x256xf32>
    %255 = arith.addf %249, %254 : vector<32x256xf32>
    %256 = vector.extract_strided_slice %14 {offsets = [1280, 0], sizes = [32, 32], strides = [1, 1]} : vector<1568x32xf32> to vector<32x32xf32>
    %257 = arith.truncf %256 : vector<32x32xf32> to vector<32x32xbf16>
    %c40 = arith.constant 40 : index
    %c0_128 = arith.constant 0 : index
    %c0_129 = arith.constant 0 : index
    %258 = vector.load %arg4[%c40, %c0_128, %c0_129] : memref<49x32x256xbf16, #tpu.memory_space<vmem>>, vector<1x32x256xbf16>
    %259 = vector.shape_cast %258 : vector<1x32x256xbf16> to vector<32x256xbf16>
    %cst_130 = arith.constant dense<0.000000e+00> : vector<32x256xf32>
    %260 = tpu.matmul %257, %259, %cst_130 {dimension_numbers = #tpu.dot_dimension_numbers<[1], [0], [0], [1], [0, 0, 1, 1], [], []>} : vector<32x32xbf16>, vector<32x256xbf16>, vector<32x256xf32> -> vector<32x256xf32>
    %261 = arith.addf %255, %260 : vector<32x256xf32>
    %262 = vector.extract_strided_slice %14 {offsets = [1312, 0], sizes = [32, 32], strides = [1, 1]} : vector<1568x32xf32> to vector<32x32xf32>
    %263 = arith.truncf %262 : vector<32x32xf32> to vector<32x32xbf16>
    %c41 = arith.constant 41 : index
    %c0_131 = arith.constant 0 : index
    %c0_132 = arith.constant 0 : index
    %264 = vector.load %arg4[%c41, %c0_131, %c0_132] : memref<49x32x256xbf16, #tpu.memory_space<vmem>>, vector<1x32x256xbf16>
    %265 = vector.shape_cast %264 : vector<1x32x256xbf16> to vector<32x256xbf16>
    %cst_133 = arith.constant dense<0.000000e+00> : vector<32x256xf32>
    %266 = tpu.matmul %263, %265, %cst_133 {dimension_numbers = #tpu.dot_dimension_numbers<[1], [0], [0], [1], [0, 0, 1, 1], [], []>} : vector<32x32xbf16>, vector<32x256xbf16>, vector<32x256xf32> -> vector<32x256xf32>
    %267 = arith.addf %261, %266 : vector<32x256xf32>
    %268 = vector.extract_strided_slice %14 {offsets = [1344, 0], sizes = [32, 32], strides = [1, 1]} : vector<1568x32xf32> to vector<32x32xf32>
    %269 = arith.truncf %268 : vector<32x32xf32> to vector<32x32xbf16>
    %c42 = arith.constant 42 : index
    %c0_134 = arith.constant 0 : index
    %c0_135 = arith.constant 0 : index
    %270 = vector.load %arg4[%c42, %c0_134, %c0_135] : memref<49x32x256xbf16, #tpu.memory_space<vmem>>, vector<1x32x256xbf16>
    %271 = vector.shape_cast %270 : vector<1x32x256xbf16> to vector<32x256xbf16>
    %cst_136 = arith.constant dense<0.000000e+00> : vector<32x256xf32>
    %272 = tpu.matmul %269, %271, %cst_136 {dimension_numbers = #tpu.dot_dimension_numbers<[1], [0], [0], [1], [0, 0, 1, 1], [], []>} : vector<32x32xbf16>, vector<32x256xbf16>, vector<32x256xf32> -> vector<32x256xf32>
    %273 = arith.addf %267, %272 : vector<32x256xf32>
    %274 = vector.extract_strided_slice %14 {offsets = [1376, 0], sizes = [32, 32], strides = [1, 1]} : vector<1568x32xf32> to vector<32x32xf32>
    %275 = arith.truncf %274 : vector<32x32xf32> to vector<32x32xbf16>
    %c43 = arith.constant 43 : index
    %c0_137 = arith.constant 0 : index
    %c0_138 = arith.constant 0 : index
    %276 = vector.load %arg4[%c43, %c0_137, %c0_138] : memref<49x32x256xbf16, #tpu.memory_space<vmem>>, vector<1x32x256xbf16>
    %277 = vector.shape_cast %276 : vector<1x32x256xbf16> to vector<32x256xbf16>
    %cst_139 = arith.constant dense<0.000000e+00> : vector<32x256xf32>
    %278 = tpu.matmul %275, %277, %cst_139 {dimension_numbers = #tpu.dot_dimension_numbers<[1], [0], [0], [1], [0, 0, 1, 1], [], []>} : vector<32x32xbf16>, vector<32x256xbf16>, vector<32x256xf32> -> vector<32x256xf32>
    %279 = arith.addf %273, %278 : vector<32x256xf32>
    %280 = vector.extract_strided_slice %14 {offsets = [1408, 0], sizes = [32, 32], strides = [1, 1]} : vector<1568x32xf32> to vector<32x32xf32>
    %281 = arith.truncf %280 : vector<32x32xf32> to vector<32x32xbf16>
    %c44 = arith.constant 44 : index
    %c0_140 = arith.constant 0 : index
    %c0_141 = arith.constant 0 : index
    %282 = vector.load %arg4[%c44, %c0_140, %c0_141] : memref<49x32x256xbf16, #tpu.memory_space<vmem>>, vector<1x32x256xbf16>
    %283 = vector.shape_cast %282 : vector<1x32x256xbf16> to vector<32x256xbf16>
    %cst_142 = arith.constant dense<0.000000e+00> : vector<32x256xf32>
    %284 = tpu.matmul %281, %283, %cst_142 {dimension_numbers = #tpu.dot_dimension_numbers<[1], [0], [0], [1], [0, 0, 1, 1], [], []>} : vector<32x32xbf16>, vector<32x256xbf16>, vector<32x256xf32> -> vector<32x256xf32>
    %285 = arith.addf %279, %284 : vector<32x256xf32>
    %286 = vector.extract_strided_slice %14 {offsets = [1440, 0], sizes = [32, 32], strides = [1, 1]} : vector<1568x32xf32> to vector<32x32xf32>
    %287 = arith.truncf %286 : vector<32x32xf32> to vector<32x32xbf16>
    %c45 = arith.constant 45 : index
    %c0_143 = arith.constant 0 : index
    %c0_144 = arith.constant 0 : index
    %288 = vector.load %arg4[%c45, %c0_143, %c0_144] : memref<49x32x256xbf16, #tpu.memory_space<vmem>>, vector<1x32x256xbf16>
    %289 = vector.shape_cast %288 : vector<1x32x256xbf16> to vector<32x256xbf16>
    %cst_145 = arith.constant dense<0.000000e+00> : vector<32x256xf32>
    %290 = tpu.matmul %287, %289, %cst_145 {dimension_numbers = #tpu.dot_dimension_numbers<[1], [0], [0], [1], [0, 0, 1, 1], [], []>} : vector<32x32xbf16>, vector<32x256xbf16>, vector<32x256xf32> -> vector<32x256xf32>
    %291 = arith.addf %285, %290 : vector<32x256xf32>
    %292 = vector.extract_strided_slice %14 {offsets = [1472, 0], sizes = [32, 32], strides = [1, 1]} : vector<1568x32xf32> to vector<32x32xf32>
    %293 = arith.truncf %292 : vector<32x32xf32> to vector<32x32xbf16>
    %c46 = arith.constant 46 : index
    %c0_146 = arith.constant 0 : index
    %c0_147 = arith.constant 0 : index
    %294 = vector.load %arg4[%c46, %c0_146, %c0_147] : memref<49x32x256xbf16, #tpu.memory_space<vmem>>, vector<1x32x256xbf16>
    %295 = vector.shape_cast %294 : vector<1x32x256xbf16> to vector<32x256xbf16>
    %cst_148 = arith.constant dense<0.000000e+00> : vector<32x256xf32>
    %296 = tpu.matmul %293, %295, %cst_148 {dimension_numbers = #tpu.dot_dimension_numbers<[1], [0], [0], [1], [0, 0, 1, 1], [], []>} : vector<32x32xbf16>, vector<32x256xbf16>, vector<32x256xf32> -> vector<32x256xf32>
    %297 = arith.addf %291, %296 : vector<32x256xf32>
    %298 = vector.extract_strided_slice %14 {offsets = [1504, 0], sizes = [32, 32], strides = [1, 1]} : vector<1568x32xf32> to vector<32x32xf32>
    %299 = arith.truncf %298 : vector<32x32xf32> to vector<32x32xbf16>
    %c47 = arith.constant 47 : index
    %c0_149 = arith.constant 0 : index
    %c0_150 = arith.constant 0 : index
    %300 = vector.load %arg4[%c47, %c0_149, %c0_150] : memref<49x32x256xbf16, #tpu.memory_space<vmem>>, vector<1x32x256xbf16>
    %301 = vector.shape_cast %300 : vector<1x32x256xbf16> to vector<32x256xbf16>
    %cst_151 = arith.constant dense<0.000000e+00> : vector<32x256xf32>
    %302 = tpu.matmul %299, %301, %cst_151 {dimension_numbers = #tpu.dot_dimension_numbers<[1], [0], [0], [1], [0, 0, 1, 1], [], []>} : vector<32x32xbf16>, vector<32x256xbf16>, vector<32x256xf32> -> vector<32x256xf32>
    %303 = arith.addf %297, %302 : vector<32x256xf32>
    %304 = vector.extract_strided_slice %14 {offsets = [1536, 0], sizes = [32, 32], strides = [1, 1]} : vector<1568x32xf32> to vector<32x32xf32>
    %305 = arith.truncf %304 : vector<32x32xf32> to vector<32x32xbf16>
    %c48 = arith.constant 48 : index
    %c0_152 = arith.constant 0 : index
    %c0_153 = arith.constant 0 : index
    %306 = vector.load %arg4[%c48, %c0_152, %c0_153] : memref<49x32x256xbf16, #tpu.memory_space<vmem>>, vector<1x32x256xbf16>
    %307 = vector.shape_cast %306 : vector<1x32x256xbf16> to vector<32x256xbf16>
    %cst_154 = arith.constant dense<0.000000e+00> : vector<32x256xf32>
    %308 = tpu.matmul %305, %307, %cst_154 {dimension_numbers = #tpu.dot_dimension_numbers<[1], [0], [0], [1], [0, 0, 1, 1], [], []>} : vector<32x32xbf16>, vector<32x256xbf16>, vector<32x256xf32> -> vector<32x256xf32>
    %309 = arith.addf %303, %308 : vector<32x256xf32>
    %c0_155 = arith.constant 0 : index
    %c0_156 = arith.constant 0 : index
    %310 = vector.load %arg5[%c0_155, %c0_156] : memref<1x256xf32, #tpu.memory_space<vmem>>, vector<1x256xf32>
    %311 = vector.broadcast %310 : vector<1x256xf32> to vector<32x256xf32>
    %312 = arith.addf %309, %311 : vector<32x256xf32>
    %cst_157 = arith.constant 0.000000e+00 : f32
    %313 = vector.broadcast %cst_157 : f32 to vector<32x256xf32>
    %314 = arith.maximumf %312, %313 : vector<32x256xf32>
    %315 = arith.truncf %314 : vector<32x256xf32> to vector<32x256xbf16>
    %c0_158 = arith.constant 0 : index
    %c0_159 = arith.constant 0 : index
    %316 = vector.load %arg6[%c0_158, %c0_159] : memref<256x128xbf16, #tpu.memory_space<vmem>>, vector<256x128xbf16>
    %cst_160 = arith.constant dense<0.000000e+00> : vector<32x128xf32>
    %317 = tpu.matmul %315, %316, %cst_160 {dimension_numbers = #tpu.dot_dimension_numbers<[1], [0], [0], [1], [0, 0, 1, 1], [], []>} : vector<32x256xbf16>, vector<256x128xbf16>, vector<32x128xf32> -> vector<32x128xf32>
    %c0_161 = arith.constant 0 : index
    %c0_162 = arith.constant 0 : index
    %318 = vector.load %arg7[%c0_161, %c0_162] : memref<1x128xf32, #tpu.memory_space<vmem>>, vector<1x128xf32>
    %319 = vector.broadcast %318 : vector<1x128xf32> to vector<32x128xf32>
    %320 = arith.addf %317, %319 : vector<32x128xf32>
    %cst_163 = arith.constant dense<0xFF800000> : vector<32xf32>
    %321 = vector.multi_reduction <maximumf>, %320, %cst_163 [1] : vector<32x128xf32> to vector<32xf32>
    %322 = vector.shape_cast %321 : vector<32xf32> to vector<32x1xf32>
    %323 = vector.broadcast %322 : vector<32x1xf32> to vector<32x128xf32>
    %324 = arith.subf %320, %323 : vector<32x128xf32>
    %325 = math.exp %324 : vector<32x128xf32>
    %cst_164 = arith.constant dense<0.000000e+00> : vector<32xf32>
    %326 = vector.multi_reduction <add>, %325, %cst_164 [1] : vector<32x128xf32> to vector<32xf32>
    %327 = vector.shape_cast %326 : vector<32xf32> to vector<32x1xf32>
    %328 = tpu.reciprocal %327 {approx = true} : vector<32x1xf32> -> vector<32x1xf32>
    %329 = vector.broadcast %328 : vector<32x1xf32> to vector<32x128xf32>
    %330 = arith.mulf %325, %329 : vector<32x128xf32>
    %331 = arith.truncf %330 : vector<32x128xf32> to vector<32x128xbf16>
    %c0_165 = arith.constant 0 : index
    %c0_166 = arith.constant 0 : index
    %332 = vector.load %arg8[%c0_165, %c0_166] : memref<32x128xbf16, #tpu.memory_space<vmem>>, vector<32x128xbf16>
    tpu.vector_store %arg8[%c0_165, %c0_166], %331 {strides = array<i32>} : memref<32x128xbf16, #tpu.memory_space<vmem>>, vector<32x128xbf16>,
    return
  }
  func.func @transform_0(%arg0: i32) -> (i32, i32) {
    %c0_i32 = arith.constant 0 : i32
    %c0_i32_0 = arith.constant 0 : i32
    return %arg0, %c0_i32 : i32, i32
  }
  func.func @transform_1(%arg0: i32) -> (i32, i32) {
    %c0_i32 = arith.constant 0 : i32
    %c0_i32_0 = arith.constant 0 : i32
    %c0_i32_1 = arith.constant 0 : i32
    return %c0_i32, %c0_i32_0 : i32, i32
  }
  func.func @transform_2(%arg0: i32) -> (i32, i32) {
    %c0_i32 = arith.constant 0 : i32
    %c0_i32_0 = arith.constant 0 : i32
    %c0_i32_1 = arith.constant 0 : i32
    return %c0_i32, %c0_i32_0 : i32, i32
  }
  func.func @transform_3(%arg0: i32) -> (i32, i32, i32) {
    %c0_i32 = arith.constant 0 : i32
    %c0_i32_0 = arith.constant 0 : i32
    %c0_i32_1 = arith.constant 0 : i32
    %c0_i32_2 = arith.constant 0 : i32
    return %c0_i32, %c0_i32_0, %c0_i32_1 : i32, i32, i32
  }
  func.func @transform_4(%arg0: i32) -> (i32, i32) {
    %c0_i32 = arith.constant 0 : i32
    %c0_i32_0 = arith.constant 0 : i32
    %c0_i32_1 = arith.constant 0 : i32
    return %c0_i32, %c0_i32_0 : i32, i32
  }
  func.func @transform_5(%arg0: i32) -> (i32, i32) {
    %c0_i32 = arith.constant 0 : i32
    %c0_i32_0 = arith.constant 0 : i32
    %c0_i32_1 = arith.constant 0 : i32
    return %c0_i32, %c0_i32_0 : i32, i32
  }
  func.func @transform_6(%arg0: i32) -> (i32, i32) {
    %c0_i32 = arith.constant 0 : i32
    %c0_i32_0 = arith.constant 0 : i32
    %c0_i32_1 = arith.constant 0 : i32
    return %c0_i32, %c0_i32_0 : i32, i32
  }
  func.func @transform_7(%arg0: i32) -> (i32, i32) {
    %c0_i32 = arith.constant 0 : i32
    %c0_i32_0 = arith.constant 0 : i32
    return %arg0, %c0_i32 : i32, i32
  }
}

</mosaic_0001>

<bundles_post_ra>
// kernel: forward.1
= control target key start
LH: loop header
LB: loop body
LE: loop exit
PB: predicated region body
PF: predicated region fallthrough
CT: control target
= control target key end

     0   :  { %vm3962_vm0 = vcmask 1043456   ;;  %vm3963_vm1 = vcmask 1044480   ;;  %vm2785_vm2 = vcmask 72704   ;;  %v16620_v1 = vmov 65535   ;;  %s21927_s1 = inlined_call_operand.vmem [shape: bf16[9,32], index: 1, kind: input, shape index: {}]   ;;  %s21928_s0 = inlined_call_operand.vmem [shape: bf16[6272,9], index: 0, kind: input, shape index: {}]   ;;  %s21929_s2 = inlined_call_operand.vmem [shape: f32[1,32], index: 2, kind: input, shape index: {}]   ;;  %s21930_s3 = inlined_call_operand.vmem [shape: bf16[49,32,256], index: 3, kind: input, shape index: {}]   ;;  %s21931_s5 = inlined_call_operand.vmem [shape: bf16[256,128], index: 5, kind: input, shape index: {}]   ;;  %s21932_s4 = inlined_call_operand.vmem [shape: f32[1,256], index: 4, kind: input, shape index: {}]   ;;  %s21933_s6 = inlined_call_operand.vmem [shape: f32[1,128], index: 6, kind: input, shape index: {}]   ;;  %s21934_s7 = inlined_call_operand.vmem [shape: bf16[32,128], index: 7, kind: output, shape index: {}]  }
   0x1   :  { %v15895_v0 = vld [vmem:[%s21927_s1] sm:$0x1f]   ;;  %v3964_v2 = vsel %vm3962_vm0, 4294967295, %v16620_v1  ;;  %v15897_v6 = vld [vmem:[%s21928_s0 + $0x8] sm:$0xff]   ;;  %v15898_v7 = vld [vmem:[%s21928_s0 + $0x10] sm:$0xff]   ;;  %vm8543_vm3 = vcmask 261120  }
   0x2   :  { %v15896_v3 = vld [vmem:[%s21928_s0] sm:$0xff]   ;;  %v3965_v4 = vsel %vm3963_vm1, %v3964_v2, 0  ;;  %v15899_v8 = vld [vmem:[%s21928_s0 + $0x18] sm:$0xff]   ;;  %v15901_v10 = vld [vmem:[%s21928_s0 + $0x28] sm:$0xff]  }
   0x3   :  { %v3967_v5 = vand.u32 %v15895_v0, %v3965_v4  ;;  %15107 = vmatprep.mubr.msk.bf16.mxu0 %vm2785_vm2, %v15896_v3  ;;  %v15900_v9 = vld [vmem:[%s21928_s0 + $0x20] sm:$0xff]   ;;  %v15902_v11 = vld [vmem:[%s21928_s0 + $0x30] sm:$0xff]   ;;  %v15903_v12 = vld [vmem:[%s21928_s0 + $0x38] sm:$0xff]  }
   0x4   :  { %v15904_v13 = vld [vmem:[%s21928_s0 + $0x40] sm:$0xff]   ;;  %v15905_v14 = vld [vmem:[%s21928_s0 + $0x48] sm:$0xff]   ;;  %v15906_v15 = vld [vmem:[%s21928_s0 + $0x50] sm:$0xff]  }
   0x5   :  { %15105 = vmatprep.subr.bf16.mxu0 %v3967_v5  ;;  %15891 = vmatprep.subr.bf16.mxu1 %v3967_v5  ;;  %v15907_v16 = vld [vmem:[%s21928_s0 + $0x58] sm:$0xff]   ;;  %v15908_v17 = vld [vmem:[%s21928_s0 + $0x60] sm:$0xff]   ;;  %v15909_v18 = vld [vmem:[%s21928_s0 + $0x68] sm:$0xff]  }
   0x6   :  { %15106 = vmatpush3.bf16.msra.mxu0 %v3967_v5  ;;  %15892 = vmatpush3.bf16.msra.mxu1 %v3967_v5  ;;  %v15910_v19 = vld [vmem:[%s21928_s0 + $0x70] sm:$0xff]   ;;  %v15911_v20 = vld [vmem:[%s21928_s0 + $0x78] sm:$0xff]   ;;  %v15912_v21 = vld [vmem:[%s21928_s0 + $0x80] sm:$0xff]  }
   0x7   :  { %v15913_v22 = vld [vmem:[%s21928_s0 + $0x88] sm:$0xff]   ;;  %v15914_v23 = vld [vmem:[%s21928_s0 + $0x90] sm:$0xff]   ;;  %v15915_v24 = vld [vmem:[%s21928_s0 + $0x98] sm:$0xff]  }
   0x8   :  { %v15916_v25 = vld [vmem:[%s21928_s0 + $0xa0] sm:$0xff]   ;;  %v15917_v26 = vld [vmem:[%s21928_s0 + $0xa8] sm:$0xff]   ;;  %v15918_v27 = vld [vmem:[%s21928_s0 + $0xb0] sm:$0xff]  }
   0x9   :  { %15108 = vmatmul.mubr.msk.bf16.vlgmr.msra.gmra.mxu0 %vm2785_vm2, %v15897_v6  ;;  %v15919_v28 = vld [vmem:[%s21928_s0 + $0xb8] sm:$0xff]   ;;  %v15920_v29 = vld [vmem:[%s21928_s0 + $0xc0] sm:$0xff]   ;;  %v15921_v30 = vld [vmem:[%s21928_s0 + $0xc8] sm:$0xff]  }
   0xa   :  { %15111 = vmatprep.mubr.msk.bf16.mxu0 %vm2785_vm2, %v15898_v7  ;;  %v15922_v31 = vld [vmem:[%s21928_s0 + $0xd0] sm:$0xff]   ;;  %v15923_v32 = vld [vmem:[%s21928_s0 + $0xd8] sm:$0xff]   ;;  %v15924_v33 = vld [vmem:[%s21928_s0 + $0xe0] sm:$0xff]  }
   0xb   :  { %v15925_v34 = vld [vmem:[%s21928_s0 + $0xe8] sm:$0xff]   ;;  %v15926_v35 = vld [vmem:[%s21928_s0 + $0xf0] sm:$0xff]   ;;  %v15927_v36 = vld [vmem:[%s21928_s0 + $0xf8] sm:$0xff]  }
   0xc   :  { %v15928_v37 = vld [vmem:[%s21928_s0 + $0x100] sm:$0xff]   ;;  %v15929_v38 = vld [vmem:[%s21928_s0 + $0x108] sm:$0xff]   ;;  %v15930_v39 = vld [vmem:[%s21928_s0 + $0x110] sm:$0xff]  }
   0xd   :  { %v15931_v40 = vld [vmem:[%s21928_s0 + $0x118] sm:$0xff]   ;;  %v15932_v41 = vld [vmem:[%s21928_s0 + $0x120] sm:$0xff]   ;;  %v15933_v42 = vld [vmem:[%s21928_s0 + $0x128] sm:$0xff]  }
   0xe   :  { %v15934_v43 = vld [vmem:[%s21928_s0 + $0x130] sm:$0xff]   ;;  %v15935_v44 = vld [vmem:[%s21928_s0 + $0x138] sm:$0xff]   ;;  %v15936_v45 = vld [vmem:[%s21928_s0 + $0x140] sm:$0xff]  }
   0xf   :  { %v15937_v46 = vld [vmem:[%s21928_s0 + $0x148] sm:$0xff]   ;;  %v15938_v47 = vld [vmem:[%s21928_s0 + $0x150] sm:$0xff]   ;;  %v15939_v48 = vld [vmem:[%s21928_s0 + $0x158] sm:$0xff]  }
  0x10   :  { %v15940_v49 = vld [vmem:[%s21928_s0 + $0x160] sm:$0xff]   ;;  %v15941_v50 = vld [vmem:[%s21928_s0 + $0x168] sm:$0xff]   ;;  %v15942_v51 = vld [vmem:[%s21928_s0 + $0x170] sm:$0xff]  }
  0x11   :  { %15112 = vmatmul.mubr.msk.bf16.gmra.mxu0 %vm2785_vm2, %v15899_v8  ;;  %v15943_v52 = vld [vmem:[%s21928_s0 + $0x178] sm:$0xff]   ;;  %v15944_v53 = vld [vmem:[%s21928_s0 + $0x180] sm:$0xff]   ;;  %v15945_v54 = vld [vmem:[%s21928_s0 + $0x188] sm:$0xff]  }
  0x12   :  { %15115 = vmatprep.mubr.msk.bf16.mxu0 %vm2785_vm2, %v15900_v9  ;;  %v15946_v55 = vld [vmem:[%s21928_s0 + $0x190] sm:$0xff]   ;;  %v15947_v58 = vld [vmem:[%s21928_s0 + $0x198] sm:$0xff]   ;;  %v15948_v60 = vld [vmem:[%s21928_s0 + $0x1a0] sm:$0xff]  }
  0x13   :  { %v15949_v0 = vld [vmem:[%s21928_s0 + $0x1a8] sm:$0xff]   ;;  %v15950_v2 = vld [vmem:[%s21928_s0 + $0x1b0] sm:$0xff]   ;;  %v15951_v6 = vld [vmem:[%s21928_s0 + $0x1b8] sm:$0xff]  }
  0x14   :  { %v15952_v8 = vld [vmem:[%s21928_s0 + $0x1c0] sm:$0xff]  }
  0x19   :  { %15116 = vmatmul.mubr.msk.bf16.gmra.mxu0 %vm2785_vm2, %v15901_v10 }
  0x1a   :  { %15119 = vmatprep.mubr.msk.bf16.mxu0 %vm2785_vm2, %v15902_v11 }
  0x21   :  { %15120 = vmatmul.mubr.msk.bf16.gmra.mxu0 %vm2785_vm2, %v15903_v12  ;;  %v15953_v12 = vld [vmem:[%s21928_s0 + $0x1c8] sm:$0xff]  }
  0x22   :  { %15123 = vmatprep.mubr.msk.bf16.mxu0 %vm2785_vm2, %v15904_v13 }
  0x29   :  { %15124 = vmatmul.mubr.msk.bf16.gmra.mxu0 %vm2785_vm2, %v15905_v14  ;;  %v15954_v14 = vld [vmem:[%s21928_s0 + $0x1d0] sm:$0xff]  }
  0x2a   :  { %15127 = vmatprep.mubr.msk.bf16.mxu0 %vm2785_vm2, %v15906_v15 }
  0x31   :  { %15128 = vmatmul.mubr.msk.bf16.gmra.mxu0 %vm2785_vm2, %v15907_v16 }
  0x32   :  { %15131 = vmatprep.mubr.msk.bf16.mxu0 %vm2785_vm2, %v15908_v17 }
  0x39   :  { %15132 = vmatmul.mubr.msk.bf16.gmra.mxu0 %vm2785_vm2, %v15909_v18  ;;  %v15955_v18 = vld [vmem:[%s21928_s0 + $0x1d8] sm:$0xff]  }
  0x3a   :  { %15135 = vmatprep.mubr.msk.bf16.mxu0 %vm2785_vm2, %v15910_v19 }
  0x41   :  { %15136 = vmatmul.mubr.msk.bf16.gmra.mxu0 %vm2785_vm2, %v15911_v20  ;;  %v15956_v20 = vld [vmem:[%s21928_s0 + $0x1e0] sm:$0xff]  }
  0x42   :  { %15139 = vmatprep.mubr.msk.bf16.mxu0 %vm2785_vm2, %v15912_v21 }
  0x49   :  { %15140 = vmatmul.mubr.msk.bf16.gmra.mxu0 %vm2785_vm2, %v15913_v22 }
  0x4a   :  { %15143 = vmatprep.mubr.msk.bf16.mxu0 %vm2785_vm2, %v15914_v23 }
  0x51   :  { %15144 = vmatmul.mubr.msk.bf16.gmra.mxu0 %vm2785_vm2, %v15915_v24  ;;  %v15957_v24 = vld [vmem:[%s21928_s0 + $0x1e8] sm:$0xff]  }
  0x52   :  { %15147 = vmatprep.mubr.msk.bf16.mxu0 %vm2785_vm2, %v15916_v25 }
  0x59   :  { %15148 = vmatmul.mubr.msk.bf16.gmra.mxu0 %vm2785_vm2, %v15917_v26  ;;  %v15958_v26 = vld [vmem:[%s21928_s0 + $0x1f0] sm:$0xff]  }
  0x5a   :  { %15151 = vmatprep.mubr.msk.bf16.mxu0 %vm2785_vm2, %v15918_v27 }
  0x61   :  { %15152 = vmatmul.mubr.msk.bf16.gmra.mxu0 %vm2785_vm2, %v15919_v28 }
  0x62   :  { %15155 = vmatprep.mubr.msk.bf16.mxu0 %vm2785_vm2, %v15920_v29 }
  0x69   :  { %15156 = vmatmul.mubr.msk.bf16.gmra.mxu0 %vm2785_vm2, %v15921_v30  ;;  %v15959_v30 = vld [vmem:[%s21928_s0 + $0x1f8] sm:$0xff]  }
  0x6a   :  { %15159 = vmatprep.mubr.msk.bf16.mxu0 %vm2785_vm2, %v15922_v31 }
  0x71   :  { %15160 = vmatmul.mubr.msk.bf16.gmra.mxu0 %vm2785_vm2, %v15923_v32  ;;  %v15960_v32 = vld [vmem:[%s21928_s0 + $0x200] sm:$0xff]  }
  0x72   :  { %15163 = vmatprep.mubr.msk.bf16.mxu0 %vm2785_vm2, %v15924_v33 }
  0x79   :  { %15164 = vmatmul.mubr.msk.bf16.gmra.mxu0 %vm2785_vm2, %v15925_v34 }
  0x7a   :  { %15167 = vmatprep.mubr.msk.bf16.mxu0 %vm2785_vm2, %v15926_v35 }
  0x81   :  { %15168 = vmatmul.mubr.msk.bf16.gmra.mxu0 %vm2785_vm2, %v15927_v36  ;;  %v15961_v36 = vld [vmem:[%s21928_s0 + $0x208] sm:$0xff]  }
  0x82   :  { %15171 = vmatprep.mubr.msk.bf16.mxu0 %vm2785_vm2, %v15928_v37 }
  0x89   :  { %15172 = vmatmul.mubr.msk.bf16.gmra.mxu0 %vm2785_vm2, %v15929_v38  ;;  %v15962_v38 = vld [vmem:[%s21928_s0 + $0x210] sm:$0xff]  }
  0x8a   :  { %15175 = vmatprep.mubr.msk.bf16.mxu0 %vm2785_vm2, %v15930_v39 }
  0x91   :  { %15176 = vmatmul.mubr.msk.bf16.gmra.mxu0 %vm2785_vm2, %v15931_v40 }
  0x92   :  { %15179 = vmatprep.mubr.msk.bf16.mxu0 %vm2785_vm2, %v15932_v41 }
  0x99   :  { %15180 = vmatmul.mubr.msk.bf16.gmra.mxu0 %vm2785_vm2, %v15933_v42  ;;  %v15963_v42 = vld [vmem:[%s21928_s0 + $0x218] sm:$0xff]  }
  0x9a   :  { %15183 = vmatprep.mubr.msk.bf16.mxu0 %vm2785_vm2, %v15934_v43 }
  0xa1   :  { %15184 = vmatmul.mubr.msk.bf16.gmra.mxu0 %vm2785_vm2, %v15935_v44  ;;  %v15964_v44 = vld [vmem:[%s21928_s0 + $0x220] sm:$0xff]  }
  0xa2   :  { %15187 = vmatprep.mubr.msk.bf16.mxu0 %vm2785_vm2, %v15936_v45 }
  0xa9   :  { %15188 = vmatmul.mubr.msk.bf16.gmra.mxu0 %vm2785_vm2, %v15937_v46 }
  0xaa   :  { %15191 = vmatprep.mubr.msk.bf16.mxu0 %vm2785_vm2, %v15938_v47 }
  0xb1   :  { %15192 = vmatmul.mubr.msk.bf16.gmra.mxu0 %vm2785_vm2, %v15939_v48  ;;  %v15965_v48 = vld [vmem:[%s21928_s0 + $0x228] sm:$0xff]  }
  0xb2   :  { %15195 = vmatprep.mubr.msk.bf16.mxu0 %vm2785_vm2, %v15940_v49 }
  0xb9   :  { %15196 = vmatmul.mubr.msk.bf16.gmra.mxu0 %vm2785_vm2, %v15941_v50  ;;  %v15966_v50 = vld [vmem:[%s21928_s0 + $0x230] sm:$0xff]  }
  0xba   :  { %15199 = vmatprep.mubr.msk.bf16.mxu0 %vm2785_vm2, %v15942_v51 }
  0xc1   :  { %15200 = vmatmul.mubr.msk.bf16.gmra.mxu0 %vm2785_vm2, %v15943_v52 }
  0xc2   :  { %15203 = vmatprep.mubr.msk.bf16.mxu0 %vm2785_vm2, %v15944_v53 }
  0xc9   :  { %v16867_v56 = vpop.f32.mrf.mxu0  ;;  %15204 = vmatmul.mubr.msk.bf16.gmra.mxu0 %vm2785_vm2, %v15945_v54  ;;  %v15967_v54 = vld [vmem:[%s21928_s0 + $0x238] sm:$0xff]  }
  0xca   :  { %15207 = vmatprep.mubr.msk.bf16.mxu0 %vm2785_vm2, %v15946_v55 }
  0xcb   :  { %v16871_v57 = vpop.f32.mrf.mxu0 }
  0xcd   :  { %v16876_v59 = vpop.f32.mrf.mxu0 }
  0xcf   :  { %v16881_v61 = vpop.f32.mrf.mxu0 }
  0xd1   :  { %v16883_v62 = vpop.f32.mrf.mxu0  ;;  %15208 = vmatmul.mubr.msk.bf16.gmra.mxu0 %vm2785_vm2, %v15947_v58  ;;  %v15968_v58 = vld [vmem:[%s21928_s0 + $0x240] sm:$0xff]  }
  0xd2   :  { %15211 = vmatprep.mubr.msk.bf16.mxu0 %vm2785_vm2, %v15948_v60 }
  0xd3   :  { %v16887_v63 = vpop.f32.mrf.mxu0 }
  0xd5   :  { %v16892_v1 = vpop.f32.mrf.mxu0 }
  0xd7   :  { %v16897_v3 = vpop.f32.mrf.mxu0 }
  0xd9   :  { %v16899_v4 = vpop.f32.mrf.mxu0  ;;  %15212 = vmatmul.mubr.msk.bf16.gmra.mxu0 %vm2785_vm2, %v15949_v0 }
  0xda   :  { %15215 = vmatprep.mubr.msk.bf16.mxu0 %vm2785_vm2, %v15950_v2 }
  0xdb   :  { %v16903_v5 = vpop.f32.mrf.mxu0 }
  0xdd   :  { %v16908_v7 = vpop.f32.mrf.mxu0 }
  0xdf   :  { %v16913_v9 = vpop.f32.mrf.mxu0 }
  0xe1   :  { %v16915_v10 = vpop.f32.mrf.mxu0  ;;  %15216 = vmatmul.mubr.msk.bf16.gmra.mxu0 %vm2785_vm2, %v15951_v6  ;;  %v15969_v6 = vld [vmem:[%s21928_s0 + $0x248] sm:$0xff]  }
  0xe2   :  { %15219 = vmatprep.mubr.msk.bf16.mxu0 %vm2785_vm2, %v15952_v8 }
  0xe3   :  { %v16919_v11 = vpop.f32.mrf.mxu0 }
  0xe5   :  { %v16924_v13 = vpop.f32.mrf.mxu0 }
  0xe7   :  { %v16929_v15 = vpop.f32.mrf.mxu0 }
  0xe9   :  { %v16931_v16 = vpop.f32.mrf.mxu0  ;;  %15220 = vmatmul.mubr.msk.bf16.gmra.mxu0 %vm2785_vm2, %v15953_v12  ;;  %v15970_v12 = vld [vmem:[%s21928_s0 + $0x250] sm:$0xff]  }
  0xea   :  { %15223 = vmatprep.mubr.msk.bf16.mxu0 %vm2785_vm2, %v15954_v14 }
  0xeb   :  { %v16935_v17 = vpop.f32.mrf.mxu0 }
  0xed   :  { %v16940_v19 = vpop.f32.mrf.mxu0 }
  0xef   :  { %v16945_v21 = vpop.f32.mrf.mxu0 }
  0xf1   :  { %v16947_v22 = vpop.f32.mrf.mxu0  ;;  %15224 = vmatmul.mubr.msk.bf16.gmra.mxu0 %vm2785_vm2, %v15955_v18 }
  0xf2   :  { %15227 = vmatprep.mubr.msk.bf16.mxu0 %vm2785_vm2, %v15956_v20 }
  0xf3   :  { %v16951_v23 = vpop.f32.mrf.mxu0 }
  0xf5   :  { %v16956_v25 = vpop.f32.mrf.mxu0 }
  0xf7   :  { %v16961_v27 = vpop.f32.mrf.mxu0 }
  0xf9   :  { %v16963_v28 = vpop.f32.mrf.mxu0  ;;  %15228 = vmatmul.mubr.msk.bf16.gmra.mxu0 %vm2785_vm2, %v15957_v24  ;;  %v15971_v24 = vld [vmem:[%s21928_s0 + $0x258] sm:$0xff]  }
  0xfa   :  { %15231 = vmatprep.mubr.msk.bf16.mxu0 %vm2785_vm2, %v15958_v26 }
  0xfb   :  { %v16967_v29 = vpop.f32.mrf.mxu0 }
  0xfd   :  { %v16972_v31 = vpop.f32.mrf.mxu0 }
  0xff   :  { %v16977_v33 = vpop.f32.mrf.mxu0 }
 0x101   :  { %v16979_v34 = vpop.f32.mrf.mxu0  ;;  %15232 = vmatmul.mubr.msk.bf16.gmra.mxu0 %vm2785_vm2, %v15959_v30  ;;  %v15972_v30 = vld [vmem:[%s21928_s0 + $0x260] sm:$0xff]  }
 0x102   :  { %15235 = vmatprep.mubr.msk.bf16.mxu0 %vm2785_vm2, %v15960_v32 }
 0x103   :  { %v16983_v35 = vpop.f32.mrf.mxu0 }
 0x105   :  { %v16988_v37 = vpop.f32.mrf.mxu0 }
 0x107   :  { %v16993_v39 = vpop.f32.mrf.mxu0 }
 0x109   :  { %v16995_v40 = vpop.f32.mrf.mxu0  ;;  %15236 = vmatmul.mubr.msk.bf16.gmra.mxu0 %vm2785_vm2, %v15961_v36 }
 0x10a   :  { %15239 = vmatprep.mubr.msk.bf16.mxu0 %vm2785_vm2, %v15962_v38 }
 0x10b   :  { %v16999_v41 = vpop.f32.mrf.mxu0 }
 0x10d   :  { %v17004_v43 = vpop.f32.mrf.mxu0 }
 0x10f   :  { %v17009_v45 = vpop.f32.mrf.mxu0 }
 0x111   :  { %v17011_v46 = vpop.f32.mrf.mxu0  ;;  %15240 = vmatmul.mubr.msk.bf16.gmra.mxu0 %vm2785_vm2, %v15963_v42  ;;  %v15973_v42 = vld [vmem:[%s21928_s0 + $0x268] sm:$0xff]  }
 0x112   :  { %15243 = vmatprep.mubr.msk.bf16.mxu0 %vm2785_vm2, %v15964_v44 }
 0x113   :  { %v17015_v47 = vpop.f32.mrf.mxu0 }
 0x115   :  { %v17020_v49 = vpop.f32.mrf.mxu0 }
 0x117   :  { %v17025_v51 = vpop.f32.mrf.mxu0 }
 0x119   :  { %v17027_v52 = vpop.f32.mrf.mxu0  ;;  %15244 = vmatmul.mubr.msk.bf16.gmra.mxu0 %vm2785_vm2, %v15965_v48  ;;  %v15974_v48 = vld [vmem:[%s21928_s0 + $0x270] sm:$0xff]  }
 0x11a   :  { %15247 = vmatprep.mubr.msk.bf16.mxu0 %vm2785_vm2, %v15966_v50 }
 0x11b   :  { %v17031_v53 = vpop.f32.mrf.mxu0 }
 0x11d   :  { %v17036_v55 = vpop.f32.mrf.mxu0 }
 0x11f   :  { %v17041_v60 = vpop.f32.mrf.mxu0 }
 0x121   :  { %v17043_v0 = vpop.f32.mrf.mxu0  ;;  %15248 = vmatmul.mubr.msk.bf16.gmra.mxu0 %vm2785_vm2, %v15967_v54 }
 0x122   :  { %15251 = vmatprep.mubr.msk.bf16.mxu0 %vm2785_vm2, %v15968_v58 }
 0x123   :  { %v17047_v2 = vpop.f32.mrf.mxu0 }
 0x125   :  { %v17052_v8 = vpop.f32.mrf.mxu0 }
 0x127   :  { %v17057_v14 = vpop.f32.mrf.mxu0 }
 0x129   :  { %v17059_v18 = vpop.f32.mrf.mxu0  ;;  %15252 = vmatmul.mubr.msk.bf16.gmra.mxu0 %vm2785_vm2, %v15969_v6 }
 0x12a   :  { %21937 = vst [vmem:[#allocation2_spill] sm:$0xff] %v17059_v18  ;;  %15255 = vmatprep.mubr.msk.bf16.mxu0 %vm2785_vm2, %v15970_v12  ;;  %v15975_v12 = vld [vmem:[%s21928_s0 + $0x278] sm:$0xff]  }
 0x12b   :  { %v17063_v20 = vpop.f32.mrf.mxu0 }
 0x12c   :  { %21938 = vst [vmem:[#allocation3_spill] sm:$0xff] %v17063_v20 }
 0x12d   :  { %v17068_v26 = vpop.f32.mrf.mxu0 }
 0x12e   :  { %21939 = vst [vmem:[#allocation4_spill] sm:$0xff] %v17068_v26 }
 0x12f   :  { %v17073_v32 = vpop.f32.mrf.mxu0 }
 0x130   :  { %21940 = vst [vmem:[#allocation5_spill] sm:$0xff] %v17073_v32 }
 0x131   :  { %v17075_v36 = vpop.f32.mrf.mxu0  ;;  %15256 = vmatmul.mubr.msk.bf16.gmra.mxu0 %vm2785_vm2, %v15971_v24  ;;  %v15976_v24 = vld [vmem:[%s21928_s0 + $0x280] sm:$0xff]  }
 0x132   :  { %21941 = vst [vmem:[#allocation6_spill] sm:$0xff] %v17075_v36  ;;  %15259 = vmatprep.mubr.msk.bf16.mxu0 %vm2785_vm2, %v15972_v30 }
 0x133   :  { %v17079_v38 = vpop.f32.mrf.mxu0 }
 0x134   :  { %21942 = vst [vmem:[#allocation7_spill] sm:$0xff] %v17079_v38 }
 0x135   :  { %v17084_v44 = vpop.f32.mrf.mxu0 }
 0x136   :  { %21943 = vst [vmem:[#allocation8_spill] sm:$0xff] %v17084_v44 }
 0x137   :  { %v17089_v50 = vpop.f32.mrf.mxu0 }
 0x138   :  { %21944 = vst [vmem:[#allocation9_spill] sm:$0xff] %v17089_v50 }
 0x139   :  { %v17091_v54 = vpop.f32.mrf.mxu0  ;;  %15260 = vmatmul.mubr.msk.bf16.gmra.mxu0 %vm2785_vm2, %v15973_v42 }
 0x13a   :  { %21945 = vst [vmem:[#allocation10_spill] sm:$0xff] %v17091_v54  ;;  %15263 = vmatprep.mubr.msk.bf16.mxu0 %vm2785_vm2, %v15974_v48 }
 0x13b   :  { %v17095_v58 = vpop.f32.mrf.mxu0 }
 0x13c   :  { %21946 = vst [vmem:[#allocation11_spill] sm:$0xff] %v17095_v58  ;;  %v15978_v58 = vld [vmem:[%s21928_s0 + $0x290] sm:$0xff]  }
 0x13d   :  { %v17097_v6 = vpop.f32.mrf.mxu0 }
 0x13e   :  { %21947 = vst [vmem:[#allocation12_spill] sm:$0xff] %v17097_v6  ;;  %v15977_v6 = vld [vmem:[%s21928_s0 + $0x288] sm:$0xff]  }
 0x13f   :  { %v17105_v30 = vpop.f32.mrf.mxu0 }
 0x140   :  { %21948 = vst [vmem:[#allocation13_spill] sm:$0xff] %v17105_v30 }
 0x141   :  { %v17107_v50 = vpop.f32.mrf.mxu0  ;;  %15264 = vmatmul.mubr.msk.bf16.gmra.mxu0 %vm2785_vm2, %v15975_v12 }
 0x142   :  { %21949 = vst [vmem:[#allocation14_spill] sm:$0xff] %v17107_v50  ;;  %15267 = vmatprep.mubr.msk.bf16.mxu0 %vm2785_vm2, %v15976_v24 }
 0x143   :  { %v17111_v42 = vpop.f32.mrf.mxu0 }
 0x144   :  { %21950 = vst [vmem:[#allocation15_spill] sm:$0xff] %v17111_v42  ;;  %v15980_v42 = vld [vmem:[%s21928_s0 + $0x2a0] sm:$0xff]  }
 0x145   :  { %v17113_v48 = vpop.f32.mrf.mxu0 }
 0x146   :  { %21951 = vst [vmem:[#allocation16_spill] sm:$0xff] %v17113_v48  ;;  %v15979_v48 = vld [vmem:[%s21928_s0 + $0x298] sm:$0xff]  }
 0x147   :  { %v17121_v54 = vpop.f32.mrf.mxu0 }
 0x148   :  { %21952 = vst [vmem:[#allocation17_spill] sm:$0xff] %v17121_v54 }
 0x149   :  { %v17123_v30 = vpop.f32.mrf.mxu0  ;;  %15268 = vmatmul.mubr.msk.bf16.gmra.mxu0 %vm2785_vm2, %v15977_v6 }
 0x14a   :  { %21953 = vst [vmem:[#allocation18_spill] sm:$0xff] %v17123_v30  ;;  %15271 = vmatprep.mubr.msk.bf16.mxu0 %vm2785_vm2, %v15978_v58 }
 0x14b   :  { %v17127_v12 = vpop.f32.mrf.mxu0 }
 0x14c   :  { %21954 = vst [vmem:[#allocation19_spill] sm:$0xff] %v17127_v12  ;;  %v15982_v12 = vld [vmem:[%s21928_s0 + $0x2b0] sm:$0xff]  }
 0x14d   :  { %v17129_v24 = vpop.f32.mrf.mxu0 }
 0x14e   :  { %21955 = vst [vmem:[#allocation20_spill] sm:$0xff] %v17129_v24  ;;  %v15981_v24 = vld [vmem:[%s21928_s0 + $0x2a8] sm:$0xff]  }
 0x14f   :  { %v17137_v50 = vpop.f32.mrf.mxu0 }
 0x150   :  { %21956 = vst [vmem:[#allocation21_spill] sm:$0xff] %v17137_v50 }
 0x151   :  { %v17139_v54 = vpop.f32.mrf.mxu0  ;;  %15272 = vmatmul.mubr.msk.bf16.gmra.mxu0 %vm2785_vm2, %v15979_v48 }
 0x152   :  { %21957 = vst [vmem:[#allocation22_spill] sm:$0xff] %v17139_v54  ;;  %15275 = vmatprep.mubr.msk.bf16.mxu0 %vm2785_vm2, %v15980_v42 }
 0x153   :  { %v17143_v58 = vpop.f32.mrf.mxu0 }
 0x154   :  { %21958 = vst [vmem:[#allocation23_spill] sm:$0xff] %v17143_v58  ;;  %v15984_v58 = vld [vmem:[%s21928_s0 + $0x2c0] sm:$0xff]  }
 0x155   :  { %v17145_v6 = vpop.f32.mrf.mxu0 }
 0x156   :  { %21959 = vst [vmem:[#allocation24_spill] sm:$0xff] %v17145_v6  ;;  %v15983_v6 = vld [vmem:[%s21928_s0 + $0x2b8] sm:$0xff]  }
 0x157   :  { %v17153_v30 = vpop.f32.mrf.mxu0 }
 0x158   :  { %21960 = vst [vmem:[#allocation25_spill] sm:$0xff] %v17153_v30 }
 0x159   :  { %v17155_v50 = vpop.f32.mrf.mxu0  ;;  %15276 = vmatmul.mubr.msk.bf16.gmra.mxu0 %vm2785_vm2, %v15981_v24 }
 0x15a   :  { %21961 = vst [vmem:[#allocation26_spill] sm:$0xff] %v17155_v50  ;;  %15279 = vmatprep.mubr.msk.bf16.mxu0 %vm2785_vm2, %v15982_v12 }
 0x15b   :  { %v17159_v42 = vpop.f32.mrf.mxu0 }
 0x15c   :  { %21962 = vst [vmem:[#allocation27_spill] sm:$0xff] %v17159_v42  ;;  %v15986_v42 = vld [vmem:[%s21928_s0 + $0x2d0] sm:$0xff]  }
 0x15d   :  { %v17161_v48 = vpop.f32.mrf.mxu0 }
 0x15e   :  { %21963 = vst [vmem:[#allocation28_spill] sm:$0xff] %v17161_v48  ;;  %v15985_v48 = vld [vmem:[%s21928_s0 + $0x2c8] sm:$0xff]  }
 0x15f   :  { %v17169_v54 = vpop.f32.mrf.mxu0 }
 0x160   :  { %21964 = vst [vmem:[#allocation29_spill] sm:$0xff] %v17169_v54 }
 0x161   :  { %v17171_v30 = vpop.f32.mrf.mxu0  ;;  %15280 = vmatmul.mubr.msk.bf16.gmra.mxu0 %vm2785_vm2, %v15983_v6 }
 0x162   :  { %21965 = vst [vmem:[#allocation30_spill] sm:$0xff] %v17171_v30  ;;  %15283 = vmatprep.mubr.msk.bf16.mxu0 %vm2785_vm2, %v15984_v58 }
 0x163   :  { %v17175_v12 = vpop.f32.mrf.mxu0 }
 0x164   :  { %21966 = vst [vmem:[#allocation31_spill] sm:$0xff] %v17175_v12  ;;  %v15988_v12 = vld [vmem:[%s21928_s0 + $0x2e0] sm:$0xff]  }
 0x165   :  { %v17177_v24 = vpop.f32.mrf.mxu0 }
 0x166   :  { %21967 = vst [vmem:[#allocation32_spill] sm:$0xff] %v17177_v24  ;;  %v15987_v24 = vld [vmem:[%s21928_s0 + $0x2d8] sm:$0xff]  }
 0x167   :  { %v17185_v50 = vpop.f32.mrf.mxu0 }
 0x168   :  { %21968 = vst [vmem:[#allocation33_spill] sm:$0xff] %v17185_v50 }
 0x169   :  { %v17187_v54 = vpop.f32.mrf.mxu0  ;;  %15284 = vmatmul.mubr.msk.bf16.gmra.mxu0 %vm2785_vm2, %v15985_v48 }
 0x16a   :  { %21969 = vst [vmem:[#allocation34_spill] sm:$0xff] %v17187_v54  ;;  %15287 = vmatprep.mubr.msk.bf16.mxu0 %vm2785_vm2, %v15986_v42 }
 0x16b   :  { %v17191_v58 = vpop.f32.mrf.mxu0 }
 0x16c   :  { %21970 = vst [vmem:[#allocation35_spill] sm:$0xff] %v17191_v58  ;;  %v15990_v58 = vld [vmem:[%s21928_s0 + $0x2f0] sm:$0xff]  }
 0x16d   :  { %v17193_v6 = vpop.f32.mrf.mxu0 }
 0x16e   :  { %21971 = vst [vmem:[#allocation36_spill] sm:$0xff] %v17193_v6  ;;  %v15989_v6 = vld [vmem:[%s21928_s0 + $0x2e8] sm:$0xff]  }
 0x16f   :  { %v17201_v30 = vpop.f32.mrf.mxu0 }
 0x170   :  { %21972 = vst [vmem:[#allocation37_spill] sm:$0xff] %v17201_v30 }
 0x171   :  { %v17203_v50 = vpop.f32.mrf.mxu0  ;;  %15288 = vmatmul.mubr.msk.bf16.gmra.mxu0 %vm2785_vm2, %v15987_v24 }
 0x172   :  { %21973 = vst [vmem:[#allocation38_spill] sm:$0xff] %v17203_v50  ;;  %15291 = vmatprep.mubr.msk.bf16.mxu0 %vm2785_vm2, %v15988_v12 }
 0x173   :  { %v17207_v42 = vpop.f32.mrf.mxu0 }
 0x174   :  { %21974 = vst [vmem:[#allocation39_spill] sm:$0xff] %v17207_v42  ;;  %v15992_v42 = vld [vmem:[%s21928_s0 + $0x300] sm:$0xff]  }
 0x175   :  { %v17209_v48 = vpop.f32.mrf.mxu0 }
 0x176   :  { %21975 = vst [vmem:[#allocation40_spill] sm:$0xff] %v17209_v48  ;;  %v15991_v48 = vld [vmem:[%s21928_s0 + $0x2f8] sm:$0xff]  }
 0x177   :  { %v17217_v54 = vpop.f32.mrf.mxu0 }
 0x178   :  { %21976 = vst [vmem:[#allocation41_spill] sm:$0xff] %v17217_v54 }
 0x179   :  { %v17219_v30 = vpop.f32.mrf.mxu0  ;;  %15292 = vmatmul.mubr.msk.bf16.gmra.mxu0 %vm2785_vm2, %v15989_v6 }
 0x17a   :  { %21977 = vst [vmem:[#allocation42_spill] sm:$0xff] %v17219_v30  ;;  %15295 = vmatprep.mubr.msk.bf16.mxu0 %vm2785_vm2, %v15990_v58 }
 0x17b   :  { %v17223_v12 = vpop.f32.mrf.mxu0 }
 0x17c   :  { %21978 = vst [vmem:[#allocation43_spill] sm:$0xff] %v17223_v12  ;;  %v15994_v12 = vld [vmem:[%s21928_s0 + $0x310] sm:$0xff]  }
 0x17d   :  { %v17225_v24 = vpop.f32.mrf.mxu0 }
 0x17e   :  { %21979 = vst [vmem:[#allocation44_spill] sm:$0xff] %v17225_v24  ;;  %v15993_v24 = vld [vmem:[%s21928_s0 + $0x308] sm:$0xff]  }
 0x17f   :  { %v17233_v50 = vpop.f32.mrf.mxu0 }
 0x180   :  { %21980 = vst [vmem:[#allocation45_spill] sm:$0xff] %v17233_v50 }
 0x181   :  { %v17235_v54 = vpop.f32.mrf.mxu0  ;;  %15296 = vmatmul.mubr.msk.bf16.gmra.mxu0 %vm2785_vm2, %v15991_v48 }
 0x182   :  { %21981 = vst [vmem:[#allocation46_spill] sm:$0xff] %v17235_v54  ;;  %15299 = vmatprep.mubr.msk.bf16.mxu0 %vm2785_vm2, %v15992_v42 }
 0x183   :  { %v17239_v58 = vpop.f32.mrf.mxu0 }
 0x184   :  { %21982 = vst [vmem:[#allocation47_spill] sm:$0xff] %v17239_v58  ;;  %v15996_v58 = vld [vmem:[%s21928_s0 + $0x320] sm:$0xff]  }
 0x185   :  { %v17241_v6 = vpop.f32.mrf.mxu0 }
 0x186   :  { %21983 = vst [vmem:[#allocation48_spill] sm:$0xff] %v17241_v6  ;;  %v15995_v6 = vld [vmem:[%s21928_s0 + $0x318] sm:$0xff]  }
 0x187   :  { %v17249_v30 = vpop.f32.mrf.mxu0 }
 0x188   :  { %21984 = vst [vmem:[#allocation49_spill] sm:$0xff] %v17249_v30 }
 0x189   :  { %v17251_v50 = vpop.f32.mrf.mxu0  ;;  %15300 = vmatmul.mubr.msk.bf16.gmra.mxu0 %vm2785_vm2, %v15993_v24 }
 0x18a   :  { %21985 = vst [vmem:[#allocation50_spill] sm:$0xff] %v17251_v50  ;;  %15303 = vmatprep.mubr.msk.bf16.mxu0 %vm2785_vm2, %v15994_v12 }
 0x18b   :  { %v17255_v42 = vpop.f32.mrf.mxu0 }
 0x18c   :  { %21986 = vst [vmem:[#allocation51_spill] sm:$0xff] %v17255_v42  ;;  %v15998_v42 = vld [vmem:[%s21928_s0 + $0x330] sm:$0xff]  }
 0x18d   :  { %v17257_v48 = vpop.f32.mrf.mxu0 }
 0x18e   :  { %21987 = vst [vmem:[#allocation52_spill] sm:$0xff] %v17257_v48  ;;  %v15997_v48 = vld [vmem:[%s21928_s0 + $0x328] sm:$0xff]  }
 0x18f   :  { %v17265_v54 = vpop.f32.mrf.mxu0 }
 0x190   :  { %21988 = vst [vmem:[#allocation53_spill] sm:$0xff] %v17265_v54 }
 0x191   :  { %v17267_v30 = vpop.f32.mrf.mxu0  ;;  %15304 = vmatmul.mubr.msk.bf16.gmra.mxu0 %vm2785_vm2, %v15995_v6 }
 0x192   :  { %21989 = vst [vmem:[#allocation54_spill] sm:$0xff] %v17267_v30  ;;  %15307 = vmatprep.mubr.msk.bf16.mxu0 %vm2785_vm2, %v15996_v58 }
 0x193   :  { %v17271_v12 = vpop.f32.mrf.mxu0 }
 0x194   :  { %21990 = vst [vmem:[#allocation55_spill] sm:$0xff] %v17271_v12  ;;  %v16000_v12 = vld [vmem:[%s21928_s0 + $0x340] sm:$0xff]  }
 0x195   :  { %v17273_v24 = vpop.f32.mrf.mxu0 }
 0x196   :  { %21991 = vst [vmem:[#allocation56_spill] sm:$0xff] %v17273_v24  ;;  %v15999_v24 = vld [vmem:[%s21928_s0 + $0x338] sm:$0xff]  }
 0x197   :  { %v17281_v50 = vpop.f32.mrf.mxu0 }
 0x198   :  { %21992 = vst [vmem:[#allocation57_spill] sm:$0xff] %v17281_v50 }
 0x199   :  { %v17283_v54 = vpop.f32.mrf.mxu0  ;;  %15308 = vmatmul.mubr.msk.bf16.gmra.mxu0 %vm2785_vm2, %v15997_v48 }
 0x19a   :  { %21993 = vst [vmem:[#allocation58_spill] sm:$0xff] %v17283_v54  ;;  %15311 = vmatprep.mubr.msk.bf16.mxu0 %vm2785_vm2, %v15998_v42 }
 0x19b   :  { %v17287_v58 = vpop.f32.mrf.mxu0 }
 0x19c   :  { %21994 = vst [vmem:[#allocation59_spill] sm:$0xff] %v17287_v58  ;;  %v16002_v58 = vld [vmem:[%s21928_s0 + $0x350] sm:$0xff]  }
 0x19d   :  { %v17289_v6 = vpop.f32.mrf.mxu0 }
 0x19e   :  { %21995 = vst [vmem:[#allocation60_spill] sm:$0xff] %v17289_v6  ;;  %v16001_v6 = vld [vmem:[%s21928_s0 + $0x348] sm:$0xff]  }
 0x19f   :  { %v17297_v30 = vpop.f32.mrf.mxu0 }
 0x1a0   :  { %21996 = vst [vmem:[#allocation61_spill] sm:$0xff] %v17297_v30 }
 0x1a1   :  { %v17299_v50 = vpop.f32.mrf.mxu0  ;;  %15312 = vmatmul.mubr.msk.bf16.gmra.mxu0 %vm2785_vm2, %v15999_v24 }
 0x1a2   :  { %21997 = vst [vmem:[#allocation62_spill] sm:$0xff] %v17299_v50  ;;  %15315 = vmatprep.mubr.msk.bf16.mxu0 %vm2785_vm2, %v16000_v12 }
 0x1a3   :  { %v17303_v42 = vpop.f32.mrf.mxu0 }
 0x1a4   :  { %21998 = vst [vmem:[#allocation63_spill] sm:$0xff] %v17303_v42  ;;  %v16004_v42 = vld [vmem:[%s21928_s0 + $0x360] sm:$0xff]  }
 0x1a5   :  { %v17305_v48 = vpop.f32.mrf.mxu0 }
 0x1a6   :  { %21999 = vst [vmem:[#allocation64_spill] sm:$0xff] %v17305_v48  ;;  %v16003_v48 = vld [vmem:[%s21928_s0 + $0x358] sm:$0xff]  }
 0x1a7   :  { %v17313_v54 = vpop.f32.mrf.mxu0 }
 0x1a8   :  { %22000 = vst [vmem:[#allocation65_spill] sm:$0xff] %v17313_v54 }
 0x1a9   :  { %v17315_v30 = vpop.f32.mrf.mxu0  ;;  %15316 = vmatmul.mubr.msk.bf16.gmra.mxu0 %vm2785_vm2, %v16001_v6 }
 0x1aa   :  { %22001 = vst [vmem:[#allocation66_spill] sm:$0xff] %v17315_v30  ;;  %15319 = vmatprep.mubr.msk.bf16.mxu0 %vm2785_vm2, %v16002_v58 }
 0x1ab   :  { %v17319_v12 = vpop.f32.mrf.mxu0 }
 0x1ac   :  { %22002 = vst [vmem:[#allocation67_spill] sm:$0xff] %v17319_v12  ;;  %v16006_v12 = vld [vmem:[%s21928_s0 + $0x370] sm:$0xff]  }
 0x1ad   :  { %v17321_v24 = vpop.f32.mrf.mxu0 }
 0x1ae   :  { %22003 = vst [vmem:[#allocation68_spill] sm:$0xff] %v17321_v24  ;;  %v16005_v24 = vld [vmem:[%s21928_s0 + $0x368] sm:$0xff]  }
 0x1af   :  { %v17329_v50 = vpop.f32.mrf.mxu0 }
 0x1b0   :  { %22004 = vst [vmem:[#allocation69_spill] sm:$0xff] %v17329_v50 }
 0x1b1   :  { %v17331_v54 = vpop.f32.mrf.mxu0  ;;  %15320 = vmatmul.mubr.msk.bf16.gmra.mxu0 %vm2785_vm2, %v16003_v48 }
 0x1b2   :  { %22005 = vst [vmem:[#allocation70_spill] sm:$0xff] %v17331_v54  ;;  %15323 = vmatprep.mubr.msk.bf16.mxu0 %vm2785_vm2, %v16004_v42 }
 0x1b3   :  { %v17335_v58 = vpop.f32.mrf.mxu0 }
 0x1b4   :  { %22006 = vst [vmem:[#allocation71_spill] sm:$0xff] %v17335_v58  ;;  %v16008_v58 = vld [vmem:[%s21928_s0 + $0x380] sm:$0xff]  }
 0x1b5   :  { %v17337_v6 = vpop.f32.mrf.mxu0 }
 0x1b6   :  { %22007 = vst [vmem:[#allocation72_spill] sm:$0xff] %v17337_v6  ;;  %v16007_v6 = vld [vmem:[%s21928_s0 + $0x378] sm:$0xff]  }
 0x1b7   :  { %v17345_v30 = vpop.f32.mrf.mxu0 }
 0x1b8   :  { %22008 = vst [vmem:[#allocation73_spill] sm:$0xff] %v17345_v30 }
 0x1b9   :  { %v17347_v50 = vpop.f32.mrf.mxu0  ;;  %15324 = vmatmul.mubr.msk.bf16.gmra.mxu0 %vm2785_vm2, %v16005_v24 }
 0x1ba   :  { %22009 = vst [vmem:[#allocation74_spill] sm:$0xff] %v17347_v50  ;;  %15327 = vmatprep.mubr.msk.bf16.mxu0 %vm2785_vm2, %v16006_v12 }
 0x1bb   :  { %v17351_v42 = vpop.f32.mrf.mxu0 }
 0x1bc   :  { %22010 = vst [vmem:[#allocation75_spill] sm:$0xff] %v17351_v42  ;;  %v16010_v42 = vld [vmem:[%s21928_s0 + $0x390] sm:$0xff]  }
 0x1bd   :  { %v17353_v48 = vpop.f32.mrf.mxu0 }
 0x1be   :  { %22011 = vst [vmem:[#allocation76_spill] sm:$0xff] %v17353_v48  ;;  %v16009_v48 = vld [vmem:[%s21928_s0 + $0x388] sm:$0xff]  }
 0x1bf   :  { %v17361_v54 = vpop.f32.mrf.mxu0 }
 0x1c0   :  { %22012 = vst [vmem:[#allocation77_spill] sm:$0xff] %v17361_v54 }
 0x1c1   :  { %v17363_v30 = vpop.f32.mrf.mxu0  ;;  %15328 = vmatmul.mubr.msk.bf16.gmra.mxu0 %vm2785_vm2, %v16007_v6 }
 0x1c2   :  { %22013 = vst [vmem:[#allocation78_spill] sm:$0xff] %v17363_v30  ;;  %15331 = vmatprep.mubr.msk.bf16.mxu0 %vm2785_vm2, %v16008_v58 }
 0x1c3   :  { %v17367_v12 = vpop.f32.mrf.mxu0 }
 0x1c4   :  { %22014 = vst [vmem:[#allocation79_spill] sm:$0xff] %v17367_v12  ;;  %v16012_v12 = vld [vmem:[%s21928_s0 + $0x3a0] sm:$0xff]  }
 0x1c5   :  { %v17369_v24 = vpop.f32.mrf.mxu0 }
 0x1c6   :  { %22015 = vst [vmem:[#allocation80_spill] sm:$0xff] %v17369_v24  ;;  %v16011_v24 = vld [vmem:[%s21928_s0 + $0x398] sm:$0xff]  }
 0x1c7   :  { %v17377_v50 = vpop.f32.mrf.mxu0 }
 0x1c8   :  { %22016 = vst [vmem:[#allocation81_spill] sm:$0xff] %v17377_v50 }
 0x1c9   :  { %v17379_v54 = vpop.f32.mrf.mxu0  ;;  %15332 = vmatmul.mubr.msk.bf16.gmra.mxu0 %vm2785_vm2, %v16009_v48 }
 0x1ca   :  { %22017 = vst [vmem:[#allocation82_spill] sm:$0xff] %v17379_v54  ;;  %15335 = vmatprep.mubr.msk.bf16.mxu0 %vm2785_vm2, %v16010_v42 }
 0x1cb   :  { %v17383_v58 = vpop.f32.mrf.mxu0 }
 0x1cc   :  { %22018 = vst [vmem:[#allocation83_spill] sm:$0xff] %v17383_v58  ;;  %v16014_v58 = vld [vmem:[%s21928_s0 + $0x3b0] sm:$0xff]  }
 0x1cd   :  { %v17385_v6 = vpop.f32.mrf.mxu0 }
 0x1ce   :  { %22019 = vst [vmem:[#allocation84_spill] sm:$0xff] %v17385_v6  ;;  %v16013_v6 = vld [vmem:[%s21928_s0 + $0x3a8] sm:$0xff]  }
 0x1cf   :  { %v17393_v30 = vpop.f32.mrf.mxu0 }
 0x1d0   :  { %22020 = vst [vmem:[#allocation85_spill] sm:$0xff] %v17393_v30 }
 0x1d1   :  { %v17395_v50 = vpop.f32.mrf.mxu0  ;;  %15336 = vmatmul.mubr.msk.bf16.gmra.mxu0 %vm2785_vm2, %v16011_v24 }
 0x1d2   :  { %22021 = vst [vmem:[#allocation86_spill] sm:$0xff] %v17395_v50  ;;  %15339 = vmatprep.mubr.msk.bf16.mxu0 %vm2785_vm2, %v16012_v12 }
 0x1d3   :  { %v17399_v42 = vpop.f32.mrf.mxu0 }
 0x1d4   :  { %22022 = vst [vmem:[#allocation87_spill] sm:$0xff] %v17399_v42  ;;  %v16016_v42 = vld [vmem:[%s21928_s0 + $0x3c0] sm:$0xff]  }
 0x1d5   :  { %v17401_v48 = vpop.f32.mrf.mxu0 }
 0x1d6   :  { %22023 = vst [vmem:[#allocation88_spill] sm:$0xff] %v17401_v48  ;;  %v16015_v48 = vld [vmem:[%s21928_s0 + $0x3b8] sm:$0xff]  }
 0x1d7   :  { %v17409_v54 = vpop.f32.mrf.mxu0 }
 0x1d8   :  { %22024 = vst [vmem:[#allocation89_spill] sm:$0xff] %v17409_v54 }
 0x1d9   :  { %v17411_v30 = vpop.f32.mrf.mxu0  ;;  %15340 = vmatmul.mubr.msk.bf16.gmra.mxu0 %vm2785_vm2, %v16013_v6 }
 0x1da   :  { %22025 = vst [vmem:[#allocation90_spill] sm:$0xff] %v17411_v30  ;;  %15343 = vmatprep.mubr.msk.bf16.mxu0 %vm2785_vm2, %v16014_v58 }
 0x1db   :  { %v17415_v12 = vpop.f32.mrf.mxu0 }
 0x1dc   :  { %22026 = vst [vmem:[#allocation91_spill] sm:$0xff] %v17415_v12  ;;  %v16018_v12 = vld [vmem:[%s21928_s0 + $0x3d0] sm:$0xff]  }
 0x1dd   :  { %v17417_v24 = vpop.f32.mrf.mxu0 }
 0x1de   :  { %22027 = vst [vmem:[#allocation92_spill] sm:$0xff] %v17417_v24  ;;  %v16017_v24 = vld [vmem:[%s21928_s0 + $0x3c8] sm:$0xff]  }
 0x1df   :  { %v17425_v50 = vpop.f32.mrf.mxu0 }
 0x1e0   :  { %22028 = vst [vmem:[#allocation93_spill] sm:$0xff] %v17425_v50 }
 0x1e1   :  { %v17427_v54 = vpop.f32.mrf.mxu0  ;;  %15344 = vmatmul.mubr.msk.bf16.gmra.mxu0 %vm2785_vm2, %v16015_v48 }
 0x1e2   :  { %22029 = vst [vmem:[#allocation94_spill] sm:$0xff] %v17427_v54  ;;  %15347 = vmatprep.mubr.msk.bf16.mxu0 %vm2785_vm2, %v16016_v42 }
 0x1e3   :  { %v17431_v58 = vpop.f32.mrf.mxu0 }
 0x1e4   :  { %22030 = vst [vmem:[#allocation95_spill] sm:$0xff] %v17431_v58  ;;  %v16020_v58 = vld [vmem:[%s21928_s0 + $0x3e0] sm:$0xff]  }
 0x1e5   :  { %v17433_v6 = vpop.f32.mrf.mxu0 }
 0x1e6   :  { %22031 = vst [vmem:[#allocation96_spill] sm:$0xff] %v17433_v6  ;;  %v16019_v6 = vld [vmem:[%s21928_s0 + $0x3d8] sm:$0xff]  }
 0x1e7   :  { %v17441_v30 = vpop.f32.mrf.mxu0 }
 0x1e8   :  { %22032 = vst [vmem:[#allocation97_spill] sm:$0xff] %v17441_v30 }
 0x1e9   :  { %v17443_v50 = vpop.f32.mrf.mxu0  ;;  %15348 = vmatmul.mubr.msk.bf16.gmra.mxu0 %vm2785_vm2, %v16017_v24 }
 0x1ea   :  { %22033 = vst [vmem:[#allocation98_spill] sm:$0xff] %v17443_v50  ;;  %15351 = vmatprep.mubr.msk.bf16.mxu0 %vm2785_vm2, %v16018_v12 }
 0x1eb   :  { %v17447_v42 = vpop.f32.mrf.mxu0 }
 0x1ec   :  { %22034 = vst [vmem:[#allocation99_spill] sm:$0xff] %v17447_v42  ;;  %v16022_v42 = vld [vmem:[%s21928_s0 + $0x3f0] sm:$0xff]  }
 0x1ed   :  { %v17449_v48 = vpop.f32.mrf.mxu0 }
 0x1ee   :  { %22035 = vst [vmem:[#allocation100_spill] sm:$0xff] %v17449_v48  ;;  %v16021_v48 = vld [vmem:[%s21928_s0 + $0x3e8] sm:$0xff]  }
 0x1ef   :  { %v17457_v54 = vpop.f32.mrf.mxu0 }
 0x1f0   :  { %22036 = vst [vmem:[#allocation101_spill] sm:$0xff] %v17457_v54 }
 0x1f1   :  { %v17459_v30 = vpop.f32.mrf.mxu0  ;;  %15352 = vmatmul.mubr.msk.bf16.gmra.mxu0 %vm2785_vm2, %v16019_v6 }
 0x1f2   :  { %22037 = vst [vmem:[#allocation102_spill] sm:$0xff] %v17459_v30  ;;  %15355 = vmatprep.mubr.msk.bf16.mxu0 %vm2785_vm2, %v16020_v58 }
 0x1f3   :  { %v17463_v12 = vpop.f32.mrf.mxu0 }
 0x1f4   :  { %22038 = vst [vmem:[#allocation103_spill] sm:$0xff] %v17463_v12  ;;  %v16024_v12 = vld [vmem:[%s21928_s0 + $0x400] sm:$0xff]  }
 0x1f5   :  { %v17465_v24 = vpop.f32.mrf.mxu0 }
 0x1f6   :  { %22039 = vst [vmem:[#allocation104_spill] sm:$0xff] %v17465_v24  ;;  %v16023_v24 = vld [vmem:[%s21928_s0 + $0x3f8] sm:$0xff]  }
 0x1f7   :  { %v17473_v50 = vpop.f32.mrf.mxu0 }
 0x1f8   :  { %22040 = vst [vmem:[#allocation105_spill] sm:$0xff] %v17473_v50 }
 0x1f9   :  { %v17475_v54 = vpop.f32.mrf.mxu0  ;;  %15356 = vmatmul.mubr.msk.bf16.gmra.mxu0 %vm2785_vm2, %v16021_v48 }
 0x1fa   :  { %22041 = vst [vmem:[#allocation106_spill] sm:$0xff] %v17475_v54  ;;  %15359 = vmatprep.mubr.msk.bf16.mxu0 %vm2785_vm2, %v16022_v42 }
 0x1fb   :  { %v17479_v58 = vpop.f32.mrf.mxu0 }
 0x1fc   :  { %22042 = vst [vmem:[#allocation107_spill] sm:$0xff] %v17479_v58  ;;  %v16026_v58 = vld [vmem:[%s21928_s0 + $0x410] sm:$0xff]  }
 0x1fd   :  { %v17481_v6 = vpop.f32.mrf.mxu0 }
 0x1fe   :  { %22043 = vst [vmem:[#allocation108_spill] sm:$0xff] %v17481_v6  ;;  %v16025_v6 = vld [vmem:[%s21928_s0 + $0x408] sm:$0xff]  }
 0x1ff   :  { %v17489_v30 = vpop.f32.mrf.mxu0 }
 0x200   :  { %22044 = vst [vmem:[#allocation109_spill] sm:$0xff] %v17489_v30 }
 0x201   :  { %v17491_v50 = vpop.f32.mrf.mxu0  ;;  %15360 = vmatmul.mubr.msk.bf16.gmra.mxu0 %vm2785_vm2, %v16023_v24 }
 0x202   :  { %22045 = vst [vmem:[#allocation110_spill] sm:$0xff] %v17491_v50  ;;  %15363 = vmatprep.mubr.msk.bf16.mxu0 %vm2785_vm2, %v16024_v12 }
 0x203   :  { %v17495_v42 = vpop.f32.mrf.mxu0 }
 0x204   :  { %22046 = vst [vmem:[#allocation111_spill] sm:$0xff] %v17495_v42  ;;  %v16028_v42 = vld [vmem:[%s21928_s0 + $0x420] sm:$0xff]  }
 0x205   :  { %v17497_v48 = vpop.f32.mrf.mxu0 }
 0x206   :  { %22047 = vst [vmem:[#allocation112_spill] sm:$0xff] %v17497_v48  ;;  %v16027_v48 = vld [vmem:[%s21928_s0 + $0x418] sm:$0xff]  }
 0x207   :  { %v17505_v54 = vpop.f32.mrf.mxu0 }
 0x208   :  { %22048 = vst [vmem:[#allocation113_spill] sm:$0xff] %v17505_v54 }
 0x209   :  { %v17507_v30 = vpop.f32.mrf.mxu0  ;;  %15364 = vmatmul.mubr.msk.bf16.gmra.mxu0 %vm2785_vm2, %v16025_v6 }
 0x20a   :  { %22049 = vst [vmem:[#allocation114_spill] sm:$0xff] %v17507_v30  ;;  %15367 = vmatprep.mubr.msk.bf16.mxu0 %vm2785_vm2, %v16026_v58 }
 0x20b   :  { %v17511_v12 = vpop.f32.mrf.mxu0 }
 0x20c   :  { %22050 = vst [vmem:[#allocation115_spill] sm:$0xff] %v17511_v12  ;;  %v16030_v12 = vld [vmem:[%s21928_s0 + $0x430] sm:$0xff]  }
 0x20d   :  { %v17513_v24 = vpop.f32.mrf.mxu0 }
 0x20e   :  { %22051 = vst [vmem:[#allocation116_spill] sm:$0xff] %v17513_v24  ;;  %v16029_v24 = vld [vmem:[%s21928_s0 + $0x428] sm:$0xff]  }
 0x20f   :  { %v17521_v50 = vpop.f32.mrf.mxu0 }
 0x210   :  { %22052 = vst [vmem:[#allocation117_spill] sm:$0xff] %v17521_v50 }
 0x211   :  { %v17523_v54 = vpop.f32.mrf.mxu0  ;;  %15368 = vmatmul.mubr.msk.bf16.gmra.mxu0 %vm2785_vm2, %v16027_v48 }
 0x212   :  { %22053 = vst [vmem:[#allocation118_spill] sm:$0xff] %v17523_v54  ;;  %15371 = vmatprep.mubr.msk.bf16.mxu0 %vm2785_vm2, %v16028_v42 }
 0x213   :  { %v17527_v58 = vpop.f32.mrf.mxu0 }
 0x214   :  { %22054 = vst [vmem:[#allocation119_spill] sm:$0xff] %v17527_v58  ;;  %v16032_v58 = vld [vmem:[%s21928_s0 + $0x440] sm:$0xff]  }
 0x215   :  { %v17529_v6 = vpop.f32.mrf.mxu0 }
 0x216   :  { %22055 = vst [vmem:[#allocation120_spill] sm:$0xff] %v17529_v6  ;;  %v16031_v6 = vld [vmem:[%s21928_s0 + $0x438] sm:$0xff]  }
 0x217   :  { %v17537_v30 = vpop.f32.mrf.mxu0 }
 0x218   :  { %22056 = vst [vmem:[#allocation121_spill] sm:$0xff] %v17537_v30 }
 0x219   :  { %v17539_v50 = vpop.f32.mrf.mxu0  ;;  %15372 = vmatmul.mubr.msk.bf16.gmra.mxu0 %vm2785_vm2, %v16029_v24 }
 0x21a   :  { %22057 = vst [vmem:[#allocation122_spill] sm:$0xff] %v17539_v50  ;;  %15375 = vmatprep.mubr.msk.bf16.mxu0 %vm2785_vm2, %v16030_v12 }
 0x21b   :  { %v17543_v42 = vpop.f32.mrf.mxu0 }
 0x21c   :  { %22058 = vst [vmem:[#allocation123_spill] sm:$0xff] %v17543_v42  ;;  %v16034_v42 = vld [vmem:[%s21928_s0 + $0x450] sm:$0xff]  }
 0x21d   :  { %v17545_v48 = vpop.f32.mrf.mxu0 }
 0x21e   :  { %22059 = vst [vmem:[#allocation124_spill] sm:$0xff] %v17545_v48  ;;  %v16033_v48 = vld [vmem:[%s21928_s0 + $0x448] sm:$0xff]  }
 0x21f   :  { %v17553_v54 = vpop.f32.mrf.mxu0 }
 0x220   :  { %22060 = vst [vmem:[#allocation125_spill] sm:$0xff] %v17553_v54 }
 0x221   :  { %v17555_v30 = vpop.f32.mrf.mxu0  ;;  %15376 = vmatmul.mubr.msk.bf16.gmra.mxu0 %vm2785_vm2, %v16031_v6 }
 0x222   :  { %22061 = vst [vmem:[#allocation126_spill] sm:$0xff] %v17555_v30  ;;  %15379 = vmatprep.mubr.msk.bf16.mxu0 %vm2785_vm2, %v16032_v58 }
 0x223   :  { %v17559_v12 = vpop.f32.mrf.mxu0 }
 0x224   :  { %22062 = vst [vmem:[#allocation127_spill] sm:$0xff] %v17559_v12  ;;  %v16036_v12 = vld [vmem:[%s21928_s0 + $0x460] sm:$0xff]  }
 0x225   :  { %v17561_v24 = vpop.f32.mrf.mxu0 }
 0x226   :  { %22063 = vst [vmem:[#allocation128_spill] sm:$0xff] %v17561_v24  ;;  %v16035_v24 = vld [vmem:[%s21928_s0 + $0x458] sm:$0xff]  }
 0x227   :  { %v17569_v50 = vpop.f32.mrf.mxu0 }
 0x228   :  { %22064 = vst [vmem:[#allocation129_spill] sm:$0xff] %v17569_v50 }
 0x229   :  { %v17571_v54 = vpop.f32.mrf.mxu0  ;;  %15380 = vmatmul.mubr.msk.bf16.gmra.mxu0 %vm2785_vm2, %v16033_v48 }
 0x22a   :  { %22065 = vst [vmem:[#allocation130_spill] sm:$0xff] %v17571_v54  ;;  %15383 = vmatprep.mubr.msk.bf16.mxu0 %vm2785_vm2, %v16034_v42 }
 0x22b   :  { %v17575_v58 = vpop.f32.mrf.mxu0 }
 0x22c   :  { %22066 = vst [vmem:[#allocation131_spill] sm:$0xff] %v17575_v58  ;;  %v16038_v58 = vld [vmem:[%s21928_s0 + $0x470] sm:$0xff]  }
 0x22d   :  { %v17577_v6 = vpop.f32.mrf.mxu0 }
 0x22e   :  { %22067 = vst [vmem:[#allocation132_spill] sm:$0xff] %v17577_v6  ;;  %v16037_v6 = vld [vmem:[%s21928_s0 + $0x468] sm:$0xff]  }
 0x22f   :  { %v17585_v30 = vpop.f32.mrf.mxu0 }
 0x230   :  { %22068 = vst [vmem:[#allocation133_spill] sm:$0xff] %v17585_v30 }
 0x231   :  { %v17587_v50 = vpop.f32.mrf.mxu0  ;;  %15384 = vmatmul.mubr.msk.bf16.gmra.mxu0 %vm2785_vm2, %v16035_v24 }
 0x232   :  { %22069 = vst [vmem:[#allocation134_spill] sm:$0xff] %v17587_v50  ;;  %15387 = vmatprep.mubr.msk.bf16.mxu0 %vm2785_vm2, %v16036_v12 }
 0x233   :  { %v17591_v42 = vpop.f32.mrf.mxu0 }
 0x234   :  { %22070 = vst [vmem:[#allocation135_spill] sm:$0xff] %v17591_v42  ;;  %v16040_v42 = vld [vmem:[%s21928_s0 + $0x480] sm:$0xff]  }
 0x235   :  { %v17593_v48 = vpop.f32.mrf.mxu0 }
 0x236   :  { %22071 = vst [vmem:[#allocation136_spill] sm:$0xff] %v17593_v48  ;;  %v16039_v48 = vld [vmem:[%s21928_s0 + $0x478] sm:$0xff]  }
 0x237   :  { %v17601_v54 = vpop.f32.mrf.mxu0 }
 0x238   :  { %22072 = vst [vmem:[#allocation137_spill] sm:$0xff] %v17601_v54 }
 0x239   :  { %v17603_v30 = vpop.f32.mrf.mxu0  ;;  %15388 = vmatmul.mubr.msk.bf16.gmra.mxu0 %vm2785_vm2, %v16037_v6 }
 0x23a   :  { %22073 = vst [vmem:[#allocation138_spill] sm:$0xff] %v17603_v30  ;;  %15391 = vmatprep.mubr.msk.bf16.mxu0 %vm2785_vm2, %v16038_v58 }
 0x23b   :  { %v17607_v12 = vpop.f32.mrf.mxu0 }
 0x23c   :  { %22074 = vst [vmem:[#allocation139_spill] sm:$0xff] %v17607_v12  ;;  %v16042_v12 = vld [vmem:[%s21928_s0 + $0x490] sm:$0xff]  }
 0x23d   :  { %v17609_v24 = vpop.f32.mrf.mxu0 }
 0x23e   :  { %22075 = vst [vmem:[#allocation140_spill] sm:$0xff] %v17609_v24  ;;  %v16041_v24 = vld [vmem:[%s21928_s0 + $0x488] sm:$0xff]  }
 0x23f   :  { %v17617_v50 = vpop.f32.mrf.mxu0 }
 0x240   :  { %22076 = vst [vmem:[#allocation141_spill] sm:$0xff] %v17617_v50 }
 0x241   :  { %v17619_v54 = vpop.f32.mrf.mxu0  ;;  %15392 = vmatmul.mubr.msk.bf16.gmra.mxu0 %vm2785_vm2, %v16039_v48  ;;  %v17644_v48 = vld [vmem:[%s21929_s2] ss:$0 sm:$0xff] }
 0x242   :  { %22077 = vst [vmem:[#allocation142_spill] sm:$0xff] %v17619_v54  ;;  %15395 = vmatprep.mubr.msk.bf16.mxu0 %vm2785_vm2, %v16040_v42  ;;  %v4015_v38 = vadd.f32 %v16876_v59, %v17644_v48  ;;  %v16046_v59 = vld [vmem:[%s21928_s0 + $0x4b0] sm:$0xff]  }
 0x243   :  { %v17623_v58 = vpop.f32.mrf.mxu0 }
 0x244   :  { %22078 = vst [vmem:[#allocation143_spill] sm:$0xff] %v17623_v58  ;;  %v16043_v58 = vld [vmem:[%s21928_s0 + $0x498] sm:$0xff]  }
 0x245   :  { %v17625_v6 = vpop.f32.mrf.mxu0 }
 0x246   :  { %22079 = vst [vmem:[#allocation144_spill] sm:$0xff] %v17625_v6 }
 0x247   :  { %v17633_v30 = vpop.f32.mrf.mxu0 }
 0x248   :  { %22080 = vst [vmem:[#allocation145_spill] sm:$0xff] %v17633_v30 }
 0x249   :  { %v17635_v50 = vpop.f32.mrf.mxu0  ;;  %15396 = vmatmul.mubr.msk.bf16.gmra.mxu0 %vm2785_vm2, %v16041_v24 }
 0x24a   :  { %22081 = vst [vmem:[#allocation146_spill] sm:$0xff] %v17635_v50  ;;  %15399 = vmatprep.mubr.msk.bf16.mxu0 %vm2785_vm2, %v16042_v12  ;;  %v16044_v50 = vld [vmem:[%s21928_s0 + $0x4a0] sm:$0xff]   ;;  %v4012_v12 = vadd.f32 %v16867_v56, %v17644_v48 }
 0x24b   :  { %v17639_v42 = vpop.f32.mrf.mxu0 }
 0x24c   :  { %22082 = vst [vmem:[#allocation147_spill] sm:$0xff] %v17639_v42  ;;  %v4004_v42 = vadd.f32 %v17644_v48, %v16871_v57  ;;  %v7140_v44 = vmax.f32 %v4012_v12, 0.0  ;;  %v16045_v57 = vld [vmem:[%s21928_s0 + $0x4a8] sm:$0xff]  }
 0x24d   :  { %v17646_v6 = vpop.f32.mrf.mxu0 }
 0x24e   :  { %22083 = vst [vmem:[#allocation148_spill] sm:$0xff] %v17646_v6  ;;  %v7138_v32 = vmax.f32 %v4004_v42, 0.0  ;;  %v7141_v42 = vmax.f32 %v4015_v38, 0.0  ;;  %v4031_v38 = vadd.f32 %v16892_v1, %v17644_v48  ;;  %v16048_v1 = vld [vmem:[%s21928_s0 + $0x4c0] sm:$0xff]  }
 0x24f   :  { %v17654_v24 = vpop.f32.mrf.mxu0 }
 0x250   :  { %22084 = vst [vmem:[#allocation149_spill] sm:$0xff] %v17654_v24 }
 0x251   :  { %v15305_v30 = vpop.f32.mrf.mxu0  ;;  %15400 = vmatmul.mubr.msk.bf16.gmra.mxu0 %vm2785_vm2, %v16043_v58  ;;  %v4007_v58 = vadd.f32 %v17644_v48, %v16881_v61  ;;  %v4020_v61 = vadd.f32 %v17644_v48, %v16887_v63 }
 0x252   :  { %v4796_v6 = vadd.f32 %v15305_v30, %v17644_v48  ;;  %15403 = vmatprep.mubr.msk.bf16.mxu0 %vm2785_vm2, %v16044_v50 }
 0x253   :  { %v4787_v54 = vpop.f32.mrf.mxu0 }
 0x254   :  { %v7336_v36 = vmax.f32 %v4796_v6, 0.0  ;;  %v4788_v24 = vadd.f32 %v17644_v48, %v4787_v54  ;;  %v4028_v54 = vadd.f32 %v16883_v62, %v17644_v48 }
 0x255   :  { %v15306_v56 = vpop.f32.mrf.mxu0 }
 0x256   :  { %v17671_v30 = vmax.f32 %v7140_v44, %v7336_v36  ;;  %v7334_v50 = vmax.f32 %v4788_v24, 0.0  ;;  %v4799_v12 = vadd.f32 %v15306_v56, %v17644_v48  ;;  %v7139_v44 = vmax.f32 %v4007_v58, 0.0 }
 0x257   :  { %v4790_v6 = vpop.f32.mrf.mxu0  ;;  %v7144_v62 = vmax.f32 %v4028_v54, 0.0 }
 0x258   :  { %22085 = vst [vmem:[#allocation150_spill] sm:$0xff] %v17671_v30  ;;  %v17679_v26 = vmax.f32 %v7138_v32, %v7334_v50  ;;  %v7337_v20 = vmax.f32 %v4799_v12, 0.0  ;;  %v4791_v18 = vadd.f32 %v17644_v48, %v4790_v6  ;;  %v7142_v6 = vmax.f32 %v4020_v61, 0.0 }
 0x259   :  { %v15309_v36 = vpop.f32.mrf.mxu0  ;;  %15404 = vmatmul.mubr.msk.bf16.gmra.mxu0 %vm2785_vm2, %v16045_v57  ;;  %v7145_v61 = vmax.f32 %v4031_v38, 0.0 }
 0x25a   :  { %22086 = vst [vmem:[#allocation151_spill] sm:$0xff] %v17679_v26  ;;  %v17685_v24 = vmax.f32 %v7141_v42, %v7337_v20  ;;  %v7335_v56 = vmax.f32 %v4791_v18, 0.0  ;;  %v4812_v30 = vadd.f32 %v15309_v36, %v17644_v48  ;;  %15407 = vmatprep.mubr.msk.bf16.mxu0 %vm2785_vm2, %v16046_v59  ;;  %v16047_v18 = vld [vmem:[%s21928_s0 + $0x4b8] sm:$0xff]   ;;  %v4023_v20 = vadd.f32 %v17644_v48, %v16897_v3 }
 0x25b   :  { %v4803_v32 = vpop.f32.mrf.mxu0  ;;  %v4036_v3 = vadd.f32 %v17644_v48, %v16903_v5 }
 0x25c   :  { %22087 = vst [vmem:[#allocation152_spill] sm:$0xff] %v17685_v24  ;;  %v17691_v50 = vmax.f32 %v7139_v44, %v7335_v56  ;;  %v7340_v12 = vmax.f32 %v4812_v30, 0.0  ;;  %v4804_v63 = vadd.f32 %v17644_v48, %v4803_v32  ;;  %v4044_v30 = vadd.f32 %v16899_v4, %v17644_v48 }
 0x25d   :  { %v15310_v57 = vpop.f32.mrf.mxu0  ;;  %v7143_v32 = vmax.f32 %v4023_v20, 0.0  ;;  %v16049_v20 = vld [vmem:[%s21928_s0 + $0x4c8] sm:$0xff]  }
 0x25e   :  { %22088 = vst [vmem:[#allocation153_spill] sm:$0xff] %v17691_v50  ;;  %v17699_v58 = vmax.f32 %v7144_v62, %v7340_v12  ;;  %v7338_v59 = vmax.f32 %v4804_v63, 0.0  ;;  %v4815_v54 = vadd.f32 %v15310_v57, %v17644_v48  ;;  %v7148_v4 = vmax.f32 %v4044_v30, 0.0 }
 0x25f   :  { %v4806_v42 = vpop.f32.mrf.mxu0 }
 0x260   :  { %22089 = vst [vmem:[#allocation154_spill] sm:$0xff] %v17699_v58  ;;  %v17707_v36 = vmax.f32 %v7142_v6, %v7338_v59  ;;  %v7341_v44 = vmax.f32 %v4815_v54, 0.0  ;;  %v4807_v56 = vadd.f32 %v17644_v48, %v4806_v42  ;;  %v4047_v6 = vadd.f32 %v16908_v7, %v17644_v48  ;;  %v16050_v7 = vld [vmem:[%s21928_s0 + $0x4d0] sm:$0xff]  }
 0x261   :  { %v15313_v62 = vpop.f32.mrf.mxu0  ;;  %15408 = vmatmul.mubr.msk.bf16.gmra.mxu0 %vm2785_vm2, %v16047_v18  ;;  %v7146_v42 = vmax.f32 %v4036_v3, 0.0 }
 0x262   :  { %22090 = vst [vmem:[#allocation155_spill] sm:$0xff] %v17707_v36  ;;  %v17713_v12 = vmax.f32 %v7145_v61, %v7341_v44  ;;  %v7339_v63 = vmax.f32 %v4807_v56, 0.0  ;;  %v4828_v57 = vadd.f32 %v15313_v62, %v17644_v48  ;;  %15411 = vmatprep.mubr.msk.bf16.mxu0 %vm2785_vm2, %v16048_v1  ;;  %v4039_v61 = vadd.f32 %v17644_v48, %v16913_v9 }
 0x263   :  { %v4819_v38 = vpop.f32.mrf.mxu0  ;;  %v4060_v56 = vadd.f32 %v16915_v10, %v17644_v48  ;;  %v7149_v62 = vmax.f32 %v4047_v6, 0.0  ;;  %v4052_v9 = vadd.f32 %v17644_v48, %v16919_v11 }
 0x264   :  { %22091 = vst [vmem:[#allocation156_spill] sm:$0xff] %v17713_v12  ;;  %v17719_v59 = vmax.f32 %v7143_v32, %v7339_v63  ;;  %v7344_v54 = vmax.f32 %v4828_v57, 0.0  ;;  %v4820_v5 = vadd.f32 %v17644_v48, %v4819_v38  ;;  %v7147_v38 = vmax.f32 %v4039_v61, 0.0  ;;  %v16051_v61 = vld [vmem:[%s21928_s0 + $0x4d8] sm:$0xff]  }
 0x265   :  { %v15314_v18 = vpop.f32.mrf.mxu0  ;;  %v7152_v10 = vmax.f32 %v4060_v56, 0.0 }
 0x266   :  { %22092 = vst [vmem:[#allocation157_spill] sm:$0xff] %v17719_v59  ;;  %v17727_v1 = vmax.f32 %v7148_v4, %v7344_v54  ;;  %v7342_v30 = vmax.f32 %v4820_v5, 0.0  ;;  %v4831_v44 = vadd.f32 %v15314_v18, %v17644_v48 }
 0x267   :  { %v4822_v3 = vpop.f32.mrf.mxu0 }
 0x268   :  { %v17735_v32 = vmax.f32 %v7146_v42, %v7342_v30  ;;  %v7345_v63 = vmax.f32 %v4831_v44, 0.0  ;;  %v4823_v57 = vadd.f32 %v17644_v48, %v4822_v3  ;;  %v4063_v42 = vadd.f32 %v16924_v13, %v17644_v48  ;;  %v16052_v13 = vld [vmem:[%s21928_s0 + $0x4e0] sm:$0xff]  }
 0x269   :  { %v15317_v4 = vpop.f32.mrf.mxu0  ;;  %15412 = vmatmul.mubr.msk.bf16.gmra.mxu0 %vm2785_vm2, %v16049_v20  ;;  %v7150_v3 = vmax.f32 %v4052_v9, 0.0 }
 0x26a   :  { %v17741_v54 = vmax.f32 %v7149_v62, %v7345_v63  ;;  %v7343_v5 = vmax.f32 %v4823_v57, 0.0  ;;  %v4844_v18 = vadd.f32 %v15317_v4, %v17644_v48  ;;  %15415 = vmatprep.mubr.msk.bf16.mxu0 %vm2785_vm2, %v16050_v7  ;;  %v4055_v62 = vadd.f32 %v17644_v48, %v16929_v15 }
 0x26b   :  { %v4835_v6 = vpop.f32.mrf.mxu0  ;;  %v4076_v57 = vadd.f32 %v16931_v16, %v17644_v48  ;;  %v7153_v4 = vmax.f32 %v4063_v42, 0.0  ;;  %v4068_v15 = vadd.f32 %v17644_v48, %v16935_v17 }
 0x26c   :  { %v17747_v30 = vmax.f32 %v7147_v38, %v7343_v5  ;;  %v7348_v44 = vmax.f32 %v4844_v18, 0.0  ;;  %v4836_v11 = vadd.f32 %v17644_v48, %v4835_v6  ;;  %v7151_v6 = vmax.f32 %v4055_v62, 0.0  ;;  %v16053_v62 = vld [vmem:[%s21928_s0 + $0x4e8] sm:$0xff]  }
 0x26d   :  { %v15318_v20 = vpop.f32.mrf.mxu0  ;;  %v7156_v16 = vmax.f32 %v4076_v57, 0.0 }
 0x26e   :  { %v17755_v7 = vmax.f32 %v7152_v10, %v7348_v44  ;;  %v7346_v56 = vmax.f32 %v4836_v11, 0.0  ;;  %v4847_v63 = vadd.f32 %v15318_v20, %v17644_v48 }
 0x26f   :  { %v4838_v9 = vpop.f32.mrf.mxu0 }
 0x270   :  { %v17763_v38 = vmax.f32 %v7150_v3, %v7346_v56  ;;  %v7349_v5 = vmax.f32 %v4847_v63, 0.0  ;;  %v4839_v18 = vadd.f32 %v17644_v48, %v4838_v9  ;;  %v4079_v3 = vadd.f32 %v16940_v19, %v17644_v48  ;;  %v16054_v19 = vld [vmem:[%s21928_s0 + $0x4f0] sm:$0xff]  }
 0x271   :  { %v15321_v10 = vpop.f32.mrf.mxu0  ;;  %15416 = vmatmul.mubr.msk.bf16.gmra.mxu0 %vm2785_vm2, %v16051_v61  ;;  %v7154_v9 = vmax.f32 %v4068_v15, 0.0 }
 0x272   :  { %v17769_v44 = vmax.f32 %v7153_v4, %v7349_v5  ;;  %v7347_v11 = vmax.f32 %v4839_v18, 0.0  ;;  %v4860_v20 = vadd.f32 %v15321_v10, %v17644_v48  ;;  %15419 = vmatprep.mubr.msk.bf16.mxu0 %vm2785_vm2, %v16052_v13  ;;  %v4071_v4 = vadd.f32 %v17644_v48, %v16945_v21 }
 0x273   :  { %v4851_v42 = vpop.f32.mrf.mxu0  ;;  %v4092_v18 = vadd.f32 %v16947_v22, %v17644_v48  ;;  %v7157_v10 = vmax.f32 %v4079_v3, 0.0  ;;  %v4084_v21 = vadd.f32 %v17644_v48, %v16951_v23 }
 0x274   :  { %v17775_v56 = vmax.f32 %v7151_v6, %v7347_v11  ;;  %v7352_v63 = vmax.f32 %v4860_v20, 0.0  ;;  %v4852_v17 = vadd.f32 %v17644_v48, %v4851_v42  ;;  %v7155_v42 = vmax.f32 %v4071_v4, 0.0  ;;  %v16055_v4 = vld [vmem:[%s21928_s0 + $0x4f8] sm:$0xff]  }
 0x275   :  { %v15322_v61 = vpop.f32.mrf.mxu0  ;;  %v7160_v22 = vmax.f32 %v4092_v18, 0.0 }
 0x276   :  { %v17783_v13 = vmax.f32 %v7156_v16, %v7352_v63  ;;  %v7350_v57 = vmax.f32 %v4852_v17, 0.0  ;;  %v4863_v5 = vadd.f32 %v15322_v61, %v17644_v48 }
 0x277   :  { %v4854_v15 = vpop.f32.mrf.mxu0 }
 0x278   :  { %v17791_v6 = vmax.f32 %v7154_v9, %v7350_v57  ;;  %v7353_v11 = vmax.f32 %v4863_v5, 0.0  ;;  %v4855_v20 = vadd.f32 %v17644_v48, %v4854_v15  ;;  %v4095_v9 = vadd.f32 %v16956_v25, %v17644_v48  ;;  %v16056_v25 = vld [vmem:[%s21928_s0 + $0x500] sm:$0xff]  }
 0x279   :  { %v15325_v16 = vpop.f32.mrf.mxu0  ;;  %15420 = vmatmul.mubr.msk.bf16.gmra.mxu0 %vm2785_vm2, %v16053_v62  ;;  %v7158_v15 = vmax.f32 %v4084_v21, 0.0 }
 0x27a   :  { %v17797_v63 = vmax.f32 %v7157_v10, %v7353_v11  ;;  %v7351_v17 = vmax.f32 %v4855_v20, 0.0  ;;  %v4876_v61 = vadd.f32 %v15325_v16, %v17644_v48  ;;  %15423 = vmatprep.mubr.msk.bf16.mxu0 %vm2785_vm2, %v16054_v19  ;;  %v4087_v10 = vadd.f32 %v17644_v48, %v16961_v27 }
 0x27b   :  { %v4867_v3 = vpop.f32.mrf.mxu0  ;;  %v4108_v20 = vadd.f32 %v16963_v28, %v17644_v48  ;;  %v7161_v16 = vmax.f32 %v4095_v9, 0.0  ;;  %v4100_v27 = vadd.f32 %v17644_v48, %v16967_v29 }
 0x27c   :  { %v17803_v57 = vmax.f32 %v7155_v42, %v7351_v17  ;;  %v7356_v5 = vmax.f32 %v4876_v61, 0.0  ;;  %v4868_v23 = vadd.f32 %v17644_v48, %v4867_v3  ;;  %v7159_v3 = vmax.f32 %v4087_v10, 0.0  ;;  %v16057_v10 = vld [vmem:[%s21928_s0 + $0x508] sm:$0xff]  }
 0x27d   :  { %v15326_v62 = vpop.f32.mrf.mxu0  ;;  %v7164_v28 = vmax.f32 %v4108_v20, 0.0 }
 0x27e   :  { %v17811_v19 = vmax.f32 %v7160_v22, %v7356_v5  ;;  %v7354_v18 = vmax.f32 %v4868_v23, 0.0  ;;  %v4879_v11 = vadd.f32 %v15326_v62, %v17644_v48 }
 0x27f   :  { %v4870_v21 = vpop.f32.mrf.mxu0 }
 0x280   :  { %v17819_v42 = vmax.f32 %v7158_v15, %v7354_v18  ;;  %v7357_v17 = vmax.f32 %v4879_v11, 0.0  ;;  %v4871_v61 = vadd.f32 %v17644_v48, %v4870_v21  ;;  %v4111_v15 = vadd.f32 %v16972_v31, %v17644_v48  ;;  %v16058_v31 = vld [vmem:[%s21928_s0 + $0x510] sm:$0xff]  }
 0x281   :  { %v15329_v22 = vpop.f32.mrf.mxu0  ;;  %15424 = vmatmul.mubr.msk.bf16.gmra.mxu0 %vm2785_vm2, %v16055_v4  ;;  %v7162_v21 = vmax.f32 %v4100_v27, 0.0 }
 0x282   :  { %v17825_v5 = vmax.f32 %v7161_v16, %v7357_v17  ;;  %v7355_v23 = vmax.f32 %v4871_v61, 0.0  ;;  %v4892_v62 = vadd.f32 %v15329_v22, %v17644_v48  ;;  %15427 = vmatprep.mubr.msk.bf16.mxu0 %vm2785_vm2, %v16056_v25  ;;  %v4103_v16 = vadd.f32 %v17644_v48, %v16977_v33 }
 0x283   :  { %v4883_v9 = vpop.f32.mrf.mxu0  ;;  %v4124_v61 = vadd.f32 %v16979_v34, %v17644_v48  ;;  %v7165_v22 = vmax.f32 %v4111_v15, 0.0  ;;  %v4116_v33 = vadd.f32 %v17644_v48, %v16983_v35 }
 0x284   :  { %v17831_v18 = vmax.f32 %v7159_v3, %v7355_v23  ;;  %v7360_v11 = vmax.f32 %v4892_v62, 0.0  ;;  %v4884_v29 = vadd.f32 %v17644_v48, %v4883_v9  ;;  %v7163_v9 = vmax.f32 %v4103_v16, 0.0  ;;  %v16059_v16 = vld [vmem:[%s21928_s0 + $0x518] sm:$0xff]  }
 0x285   :  { %v15330_v4 = vpop.f32.mrf.mxu0  ;;  %v7168_v34 = vmax.f32 %v4124_v61, 0.0 }
 0x286   :  { %v17839_v25 = vmax.f32 %v7164_v28, %v7360_v11  ;;  %v7358_v20 = vmax.f32 %v4884_v29, 0.0  ;;  %v4895_v17 = vadd.f32 %v15330_v4, %v17644_v48 }
 0x287   :  { %v4886_v27 = vpop.f32.mrf.mxu0 }
 0x288   :  { %v17847_v3 = vmax.f32 %v7162_v21, %v7358_v20  ;;  %v7361_v23 = vmax.f32 %v4895_v17, 0.0  ;;  %v4887_v62 = vadd.f32 %v17644_v48, %v4886_v27  ;;  %v4127_v21 = vadd.f32 %v16988_v37, %v17644_v48  ;;  %v16060_v37 = vld [vmem:[%s21928_s0 + $0x520] sm:$0xff]  }
 0x289   :  { %v15333_v28 = vpop.f32.mrf.mxu0  ;;  %15428 = vmatmul.mubr.msk.bf16.gmra.mxu0 %vm2785_vm2, %v16057_v10  ;;  %v7166_v27 = vmax.f32 %v4116_v33, 0.0 }
 0x28a   :  { %v17853_v11 = vmax.f32 %v7165_v22, %v7361_v23  ;;  %v7359_v29 = vmax.f32 %v4887_v62, 0.0  ;;  %v4908_v4 = vadd.f32 %v15333_v28, %v17644_v48  ;;  %15431 = vmatprep.mubr.msk.bf16.mxu0 %vm2785_vm2, %v16058_v31  ;;  %v4119_v22 = vadd.f32 %v17644_v48, %v16993_v39 }
 0x28b   :  { %v4899_v15 = vpop.f32.mrf.mxu0  ;;  %v4140_v62 = vadd.f32 %v16995_v40, %v17644_v48  ;;  %v7169_v28 = vmax.f32 %v4127_v21, 0.0  ;;  %v4132_v39 = vadd.f32 %v17644_v48, %v16999_v41 }
 0x28c   :  { %v17859_v20 = vmax.f32 %v7163_v9, %v7359_v29  ;;  %v7364_v17 = vmax.f32 %v4908_v4, 0.0  ;;  %v4900_v35 = vadd.f32 %v17644_v48, %v4899_v15  ;;  %v7167_v15 = vmax.f32 %v4119_v22, 0.0  ;;  %v16061_v22 = vld [vmem:[%s21928_s0 + $0x528] sm:$0xff]  }
 0x28d   :  { %v15334_v10 = vpop.f32.mrf.mxu0  ;;  %v7172_v40 = vmax.f32 %v4140_v62, 0.0 }
 0x28e   :  { %22093 = vst [vmem:[#allocation158_spill] sm:$0xff] %v17859_v20  ;;  %v17867_v31 = vmax.f32 %v7168_v34, %v7364_v17  ;;  %v7362_v61 = vmax.f32 %v4900_v35, 0.0  ;;  %v4911_v23 = vadd.f32 %v15334_v10, %v17644_v48 }
 0x28f   :  { %v4902_v33 = vpop.f32.mrf.mxu0 }
 0x290   :  { %22094 = vst [vmem:[#allocation159_spill] sm:$0xff] %v17867_v31  ;;  %v17875_v9 = vmax.f32 %v7166_v27, %v7362_v61  ;;  %v7365_v29 = vmax.f32 %v4911_v23, 0.0  ;;  %v4903_v4 = vadd.f32 %v17644_v48, %v4902_v33  ;;  %v4143_v27 = vadd.f32 %v17004_v43, %v17644_v48  ;;  %v16062_v43 = vld [vmem:[%s21928_s0 + $0x530] sm:$0xff]  }
 0x291   :  { %v15337_v34 = vpop.f32.mrf.mxu0  ;;  %15432 = vmatmul.mubr.msk.bf16.gmra.mxu0 %vm2785_vm2, %v16059_v16  ;;  %v7170_v33 = vmax.f32 %v4132_v39, 0.0 }
 0x292   :  { %22095 = vst [vmem:[#allocation160_spill] sm:$0xff] %v17875_v9  ;;  %v17881_v17 = vmax.f32 %v7169_v28, %v7365_v29  ;;  %v7363_v35 = vmax.f32 %v4903_v4, 0.0  ;;  %v4924_v10 = vadd.f32 %v15337_v34, %v17644_v48  ;;  %15435 = vmatprep.mubr.msk.bf16.mxu0 %vm2785_vm2, %v16060_v37  ;;  %v4135_v28 = vadd.f32 %v17644_v48, %v17009_v45 }
 0x293   :  { %v4915_v21 = vpop.f32.mrf.mxu0  ;;  %v4156_v4 = vadd.f32 %v17011_v46, %v17644_v48  ;;  %v7173_v34 = vmax.f32 %v4143_v27, 0.0  ;;  %v4148_v45 = vadd.f32 %v17644_v48, %v17015_v47 }
 0x294   :  { %22096 = vst [vmem:[#allocation161_spill] sm:$0xff] %v17881_v17  ;;  %v17887_v61 = vmax.f32 %v7167_v15, %v7363_v35  ;;  %v7368_v23 = vmax.f32 %v4924_v10, 0.0  ;;  %v4916_v41 = vadd.f32 %v17644_v48, %v4915_v21  ;;  %v7171_v21 = vmax.f32 %v4135_v28, 0.0  ;;  %v16063_v28 = vld [vmem:[%s21928_s0 + $0x538] sm:$0xff]  }
 0x295   :  { %v15338_v16 = vpop.f32.mrf.mxu0  ;;  %v7176_v46 = vmax.f32 %v4156_v4, 0.0 }
 0x296   :  { %22097 = vst [vmem:[#allocation162_spill] sm:$0xff] %v17887_v61  ;;  %v17895_v37 = vmax.f32 %v7172_v40, %v7368_v23  ;;  %v7366_v62 = vmax.f32 %v4916_v41, 0.0  ;;  %v4927_v29 = vadd.f32 %v15338_v16, %v17644_v48 }
 0x297   :  { %v4918_v39 = vpop.f32.mrf.mxu0 }
 0x298   :  { %22098 = vst [vmem:[#allocation163_spill] sm:$0xff] %v17895_v37  ;;  %v17903_v15 = vmax.f32 %v7170_v33, %v7366_v62  ;;  %v7369_v35 = vmax.f32 %v4927_v29, 0.0  ;;  %v4919_v10 = vadd.f32 %v17644_v48, %v4918_v39  ;;  %v4159_v33 = vadd.f32 %v17020_v49, %v17644_v48  ;;  %v16064_v49 = vld [vmem:[%s21928_s0 + $0x540] sm:$0xff]  }
 0x299   :  { %v15341_v40 = vpop.f32.mrf.mxu0  ;;  %15436 = vmatmul.mubr.msk.bf16.gmra.mxu0 %vm2785_vm2, %v16061_v22  ;;  %v7174_v39 = vmax.f32 %v4148_v45, 0.0 }
 0x29a   :  { %22099 = vst [vmem:[#allocation164_spill] sm:$0xff] %v17903_v15  ;;  %v17909_v23 = vmax.f32 %v7173_v34, %v7369_v35  ;;  %v7367_v41 = vmax.f32 %v4919_v10, 0.0  ;;  %v4940_v16 = vadd.f32 %v15341_v40, %v17644_v48  ;;  %15439 = vmatprep.mubr.msk.bf16.mxu0 %vm2785_vm2, %v16062_v43  ;;  %v4151_v34 = vadd.f32 %v17644_v48, %v17025_v51 }
 0x29b   :  { %v4931_v27 = vpop.f32.mrf.mxu0  ;;  %v4172_v10 = vadd.f32 %v17027_v52, %v17644_v48  ;;  %v7177_v40 = vmax.f32 %v4159_v33, 0.0  ;;  %v4164_v51 = vadd.f32 %v17644_v48, %v17031_v53 }
 0x29c   :  { %22100 = vst [vmem:[#allocation165_spill] sm:$0xff] %v17909_v23  ;;  %v17915_v62 = vmax.f32 %v7171_v21, %v7367_v41  ;;  %v7372_v29 = vmax.f32 %v4940_v16, 0.0  ;;  %v4932_v47 = vadd.f32 %v17644_v48, %v4931_v27  ;;  %v7175_v27 = vmax.f32 %v4151_v34, 0.0  ;;  %v16065_v34 = vld [vmem:[%s21928_s0 + $0x548] sm:$0xff]  }
 0x29d   :  { %v15342_v22 = vpop.f32.mrf.mxu0  ;;  %v7180_v52 = vmax.f32 %v4172_v10, 0.0 }
 0x29e   :  { %22101 = vst [vmem:[#allocation166_spill] sm:$0xff] %v17915_v62  ;;  %v17923_v43 = vmax.f32 %v7176_v46, %v7372_v29  ;;  %v7370_v4 = vmax.f32 %v4932_v47, 0.0  ;;  %v4943_v35 = vadd.f32 %v15342_v22, %v17644_v48  ;;  %v22333_v62 = vld [vmem:[#allocation113_spill] sm:$0xff] }
 0x29f   :  { %v4934_v45 = vpop.f32.mrf.mxu0 }
 0x2a0   :  { %22102 = vst [vmem:[#allocation167_spill] sm:$0xff] %v17923_v43  ;;  %v17931_v21 = vmax.f32 %v7174_v39, %v7370_v4  ;;  %v7373_v41 = vmax.f32 %v4943_v35, 0.0  ;;  %v4935_v16 = vadd.f32 %v17644_v48, %v4934_v45  ;;  %v4175_v39 = vadd.f32 %v17036_v55, %v17644_v48  ;;  %v16066_v55 = vld [vmem:[%s21928_s0 + $0x550] sm:$0xff]  }
 0x2a1   :  { %v15345_v46 = vpop.f32.mrf.mxu0  ;;  %15440 = vmatmul.mubr.msk.bf16.gmra.mxu0 %vm2785_vm2, %v16063_v28  ;;  %v7178_v45 = vmax.f32 %v4164_v51, 0.0  ;;  %v4188_v51 = vadd.f32 %v17043_v0, %v17644_v48 }
 0x2a2   :  { %22103 = vst [vmem:[#allocation168_spill] sm:$0xff] %v17931_v21  ;;  %v17937_v29 = vmax.f32 %v7177_v40, %v7373_v41  ;;  %v7371_v47 = vmax.f32 %v4935_v16, 0.0  ;;  %v4956_v22 = vadd.f32 %v15345_v46, %v17644_v48  ;;  %15443 = vmatprep.mubr.msk.bf16.mxu0 %vm2785_vm2, %v16064_v49  ;;  %v4167_v40 = vadd.f32 %v17644_v48, %v17041_v60  ;;  %v16097_v16 = vld [vmem:[%s21928_s0 + $0x950] sm:$0xff]   ;;  %v16099_v60 = vld [vmem:[%s21928_s0 + $0x958] sm:$0xff]  }
 0x2a3   :  { %v4947_v33 = vpop.f32.mrf.mxu0  ;;  %15703 = vmatprep.mubr.msk.bf16.mxu1 %vm2785_vm2, %v16097_v16 }
 0x2a4   :  { %22104 = vst [vmem:[#allocation169_spill] sm:$0xff] %v17937_v29  ;;  %v17943_v4 = vmax.f32 %v7175_v27, %v7371_v47  ;;  %v7376_v35 = vmax.f32 %v4956_v22, 0.0  ;;  %v4948_v53 = vadd.f32 %v17644_v48, %v4947_v33  ;;  %v7181_v27 = vmax.f32 %v4175_v39, 0.0  ;;  %15704 = vmatmul.mubr.msk.bf16.vlgmr.msra.gmra.mxu1 %vm2785_vm2, %v16099_v60  ;;  %v22329_v29 = vld [vmem:[#allocation111_spill] sm:$0xff] }
 0x2a5   :  { %v15346_v28 = vpop.f32.mrf.mxu0  ;;  %v4180_v33 = vadd.f32 %v17644_v48, %v17047_v2  ;;  %v7179_v0 = vmax.f32 %v4167_v40, 0.0  ;;  %v16067_v40 = vld [vmem:[%s21928_s0 + $0x558] sm:$0xff]  }
 0x2a6   :  { %22105 = vst [vmem:[#allocation170_spill] sm:$0xff] %v17943_v4  ;;  %v17951_v49 = vmax.f32 %v7180_v52, %v7376_v35  ;;  %v7374_v10 = vmax.f32 %v4948_v53, 0.0  ;;  %v4959_v41 = vadd.f32 %v15346_v28, %v17644_v48 }
 0x2a7   :  { %v4950_v46 = vpop.f32.mrf.mxu0 }
 0x2a8   :  { %22106 = vst [vmem:[#allocation171_spill] sm:$0xff] %v17951_v49  ;;  %v17965_v47 = vmax.f32 %v7178_v45, %v7374_v10  ;;  %v7377_v22 = vmax.f32 %v4959_v41, 0.0  ;;  %v4951_v52 = vadd.f32 %v17644_v48, %v4950_v46  ;;  %v7184_v45 = vmax.f32 %v4188_v51, 0.0 }
 0x2a9   :  { %v15349_v35 = vpop.f32.mrf.mxu0  ;;  %15444 = vmatmul.mubr.msk.bf16.gmra.mxu0 %vm2785_vm2, %v16065_v34  ;;  %v4191_v41 = vadd.f32 %v17052_v8, %v17644_v48  ;;  %v7182_v46 = vmax.f32 %v4180_v33, 0.0  ;;  %v16068_v8 = vld [vmem:[%s21928_s0 + $0x560] sm:$0xff]   ;;  %v22111_v33 = vld [vmem:[#allocation2_spill] sm:$0xff] }
 0x2aa   :  { %22107 = vst [vmem:[#allocation172_spill] sm:$0xff] %v17965_v47  ;;  %v17973_v53 = vmax.f32 %v7181_v27, %v7377_v22  ;;  %v7375_v28 = vmax.f32 %v4951_v52, 0.0  ;;  %v4972_v39 = vadd.f32 %v15349_v35, %v17644_v48  ;;  %15447 = vmatprep.mubr.msk.bf16.mxu0 %vm2785_vm2, %v16066_v55  ;;  %v4183_v27 = vadd.f32 %v17644_v48, %v17057_v14  ;;  %v16101_v52 = vld [vmem:[%s21928_s0 + $0x960] sm:$0xff]   ;;  %v16103_v14 = vld [vmem:[%s21928_s0 + $0x968] sm:$0xff]  }
 0x2ab   :  { %v4963_v10 = vpop.f32.mrf.mxu0  ;;  %v4204_v35 = vadd.f32 %v22111_v33, %v17644_v48  ;;  %15707 = vmatprep.mubr.msk.bf16.mxu1 %vm2785_vm2, %v16101_v52 }
 0x2ac   :  { %22108 = vst [vmem:[#allocation173_spill] sm:$0xff] %v17973_v53  ;;  %v17979_v16 = vmax.f32 %v7179_v0, %v7375_v28  ;;  %v7380_v2 = vmax.f32 %v4972_v39, 0.0  ;;  %v4964_v34 = vadd.f32 %v17644_v48, %v4963_v10  ;;  %v7185_v28 = vmax.f32 %v4191_v41, 0.0  ;;  %15708 = vmatmul.mubr.msk.bf16.gmra.mxu1 %vm2785_vm2, %v16103_v14  ;;  %v22321_v53 = vld [vmem:[#allocation107_spill] sm:$0xff] }
 0x2ad   :  { %v15350_v60 = vpop.f32.mrf.mxu0  ;;  %v7183_v33 = vmax.f32 %v4183_v27, 0.0  ;;  %v16069_v27 = vld [vmem:[%s21928_s0 + $0x568] sm:$0xff]  }
 0x2ae   :  { %22109 = vst [vmem:[#allocation174_spill] sm:$0xff] %v17979_v16  ;;  %v17987_v55 = vmax.f32 %v7184_v45, %v7380_v2  ;;  %v7378_v51 = vmax.f32 %v4964_v34, 0.0  ;;  %v4975_v22 = vadd.f32 %v15350_v60, %v17644_v48  ;;  %v22113_v2 = vld [vmem:[#allocation3_spill] sm:$0xff] }
 0x2af   :  { %v4966_v0 = vpop.f32.mrf.mxu0  ;;  %v4196_v34 = vadd.f32 %v17644_v48, %v22113_v2 }
 0x2b0   :  { %22110 = vst [vmem:[#allocation175_spill] sm:$0xff] %v17987_v55  ;;  %v18001_v39 = vmax.f32 %v7182_v46, %v7378_v51  ;;  %v7381_v45 = vmax.f32 %v4975_v22, 0.0  ;;  %v4967_v10 = vadd.f32 %v17644_v48, %v4966_v0  ;;  %v7188_v46 = vmax.f32 %v4204_v35, 0.0  ;;  %v22115_v22 = vld [vmem:[#allocation4_spill] sm:$0xff] }
 0x2b1   :  { %v15353_v60 = vpop.f32.mrf.mxu0  ;;  %15448 = vmatmul.mubr.msk.bf16.gmra.mxu0 %vm2785_vm2, %v16067_v40  ;;  %v4207_v52 = vadd.f32 %v22115_v22, %v17644_v48  ;;  %v7186_v36 = vmax.f32 %v4196_v34, 0.0  ;;  %v16105_v34 = vld [vmem:[%s21928_s0 + $0x970] sm:$0xff]  }
 0x2b2   :  { %22112 = vst [vmem:[#allocation2_spill] sm:$0xff] %v18001_v39  ;;  %v18009_v59 = vmax.f32 %v7185_v28, %v7381_v45  ;;  %v7379_v12 = vmax.f32 %v4967_v10, 0.0  ;;  %v4988_v41 = vadd.f32 %v15353_v60, %v17644_v48  ;;  %15451 = vmatprep.mubr.msk.bf16.mxu0 %vm2785_vm2, %v16068_v8  ;;  %v22117_v28 = vld [vmem:[#allocation5_spill] sm:$0xff]  ;;  %v22119_v60 = vld [vmem:[#allocation6_spill] sm:$0xff]  ;;  %15711 = vmatprep.mubr.msk.bf16.mxu1 %vm2785_vm2, %v16105_v34 }
 0x2b3   :  { %v4979_v51 = vpop.f32.mrf.mxu0  ;;  %v4199_v45 = vadd.f32 %v17644_v48, %v22117_v28 }
 0x2b4   :  { %22114 = vst [vmem:[#allocation3_spill] sm:$0xff] %v18009_v59  ;;  %v18015_v0 = vmax.f32 %v7183_v33, %v7379_v12  ;;  %v7384_v2 = vmax.f32 %v4988_v41, 0.0  ;;  %v4980_v40 = vadd.f32 %v17644_v48, %v4979_v51  ;;  %v16070_v12 = vld [vmem:[%s21928_s0 + $0x570] sm:$0xff]   ;;  %v4220_v33 = vadd.f32 %v22119_v60, %v17644_v48 }
 0x2b5   :  { %v15354_v14 = vpop.f32.mrf.mxu0  ;;  %v7189_v51 = vmax.f32 %v4207_v52, 0.0  ;;  %v7187_v60 = vmax.f32 %v4199_v45, 0.0  ;;  %v16071_v45 = vld [vmem:[%s21928_s0 + $0x578] sm:$0xff]  }
 0x2b6   :  { %22116 = vst [vmem:[#allocation4_spill] sm:$0xff] %v18015_v0  ;;  %v18023_v8 = vmax.f32 %v7188_v46, %v7384_v2  ;;  %v7382_v35 = vmax.f32 %v4980_v40, 0.0  ;;  %v4991_v10 = vadd.f32 %v15354_v14, %v17644_v48  ;;  %v16107_v46 = vld [vmem:[%s21928_s0 + $0x978] sm:$0xff]   ;;  %v22121_v14 = vld [vmem:[#allocation7_spill] sm:$0xff]  ;;  %v7192_v52 = vmax.f32 %v4220_v33, 0.0 }
 0x2b7   :  { %v4982_v41 = vpop.f32.mrf.mxu0  ;;  %v4212_v28 = vadd.f32 %v17644_v48, %v22121_v14  ;;  %15712 = vmatmul.mubr.msk.bf16.gmra.mxu1 %vm2785_vm2, %v16107_v46 }
 0x2b8   :  { %22118 = vst [vmem:[#allocation5_spill] sm:$0xff] %v18023_v8  ;;  %v18037_v22 = vmax.f32 %v7186_v36, %v7382_v35  ;;  %v7385_v2 = vmax.f32 %v4991_v10, 0.0  ;;  %v4983_v40 = vadd.f32 %v17644_v48, %v4982_v41  ;;  %v22123_v10 = vld [vmem:[#allocation8_spill] sm:$0xff] }
 0x2b9   :  { %v15357_v58 = vpop.f32.mrf.mxu0  ;;  %15452 = vmatmul.mubr.msk.bf16.gmra.mxu0 %vm2785_vm2, %v16069_v27  ;;  %v4223_v34 = vadd.f32 %v22123_v10, %v17644_v48  ;;  %v7190_v26 = vmax.f32 %v4212_v28, 0.0  ;;  %v22127_v28 = vld [vmem:[#allocation10_spill] sm:$0xff] }
 0x2ba   :  { %22120 = vst [vmem:[#allocation6_spill] sm:$0xff] %v18037_v22  ;;  %v18045_v50 = vmax.f32 %v7189_v51, %v7385_v2  ;;  %v7383_v24 = vmax.f32 %v4983_v40, 0.0  ;;  %v5004_v36 = vadd.f32 %v15357_v58, %v17644_v48  ;;  %15455 = vmatprep.mubr.msk.bf16.mxu0 %vm2785_vm2, %v16070_v12  ;;  %v22125_v51 = vld [vmem:[#allocation9_spill] sm:$0xff]  ;;  %v16109_v40 = vld [vmem:[%s21928_s0 + $0x980] sm:$0xff]  }
 0x2bb   :  { %v4995_v35 = vpop.f32.mrf.mxu0  ;;  %v4215_v58 = vadd.f32 %v17644_v48, %v22125_v51  ;;  %15715 = vmatprep.mubr.msk.bf16.mxu1 %vm2785_vm2, %v16109_v40 }
 0x2bc   :  { %22122 = vst [vmem:[#allocation7_spill] sm:$0xff] %v18045_v50  ;;  %v18051_v41 = vmax.f32 %v7187_v60, %v7383_v24  ;;  %v7388_v14 = vmax.f32 %v5004_v36, 0.0  ;;  %v4996_v27 = vadd.f32 %v17644_v48, %v4995_v35  ;;  %v16072_v24 = vld [vmem:[%s21928_s0 + $0x580] sm:$0xff]   ;;  %v4236_v60 = vadd.f32 %v22127_v28, %v17644_v48 }
 0x2bd   :  { %v15358_v46 = vpop.f32.mrf.mxu0  ;;  %v7193_v35 = vmax.f32 %v4223_v34, 0.0  ;;  %v7191_v28 = vmax.f32 %v4215_v58, 0.0  ;;  %v16073_v58 = vld [vmem:[%s21928_s0 + $0x588] sm:$0xff]  }
 0x2be   :  { %22124 = vst [vmem:[#allocation8_spill] sm:$0xff] %v18051_v41  ;;  %v18059_v12 = vmax.f32 %v7192_v52, %v7388_v14  ;;  %v7386_v33 = vmax.f32 %v4996_v27, 0.0  ;;  %v5007_v2 = vadd.f32 %v15358_v46, %v17644_v48  ;;  %v16111_v52 = vld [vmem:[%s21928_s0 + $0x988] sm:$0xff]   ;;  %v22129_v46 = vld [vmem:[#allocation11_spill] sm:$0xff]  ;;  %v7196_v34 = vmax.f32 %v4236_v60, 0.0 }
 0x2bf   :  { %v4998_v36 = vpop.f32.mrf.mxu0  ;;  %v4228_v51 = vadd.f32 %v17644_v48, %v22129_v46  ;;  %15716 = vmatmul.mubr.msk.bf16.gmra.mxu1 %vm2785_vm2, %v16111_v52 }
 0x2c0   :  { %22126 = vst [vmem:[#allocation9_spill] sm:$0xff] %v18059_v12  ;;  %v18073_v10 = vmax.f32 %v7190_v26, %v7386_v33  ;;  %v7389_v14 = vmax.f32 %v5007_v2, 0.0  ;;  %v4999_v27 = vadd.f32 %v17644_v48, %v4998_v36  ;;  %v22131_v2 = vld [vmem:[#allocation12_spill] sm:$0xff] }
 0x2c1   :  { %v15361_v12 = vpop.f32.mrf.mxu0  ;;  %15456 = vmatmul.mubr.msk.bf16.gmra.mxu0 %vm2785_vm2, %v16071_v45  ;;  %v4239_v40 = vadd.f32 %v22131_v2, %v17644_v48 }
 0x2c2   :  { %22128 = vst [vmem:[#allocation10_spill] sm:$0xff] %v18073_v10  ;;  %v18081_v41 = vmax.f32 %v7193_v35, %v7389_v14  ;;  %v7387_v50 = vmax.f32 %v4999_v27, 0.0  ;;  %v5020_v26 = vadd.f32 %v15361_v12, %v17644_v48  ;;  %15459 = vmatprep.mubr.msk.bf16.mxu0 %vm2785_vm2, %v16072_v24  ;;  %v7194_v10 = vmax.f32 %v4228_v51, 0.0  ;;  %v22133_v35 = vld [vmem:[#allocation13_spill] sm:$0xff]  ;;  %v22135_v51 = vld [vmem:[#allocation14_spill] sm:$0xff] }
 0x2c3   :  { %v5011_v33 = vpop.f32.mrf.mxu0  ;;  %v4231_v12 = vadd.f32 %v17644_v48, %v22133_v35  ;;  %v16113_v27 = vld [vmem:[%s21928_s0 + $0x990] sm:$0xff]  }
 0x2c4   :  { %22130 = vst [vmem:[#allocation11_spill] sm:$0xff] %v18081_v41  ;;  %v18087_v36 = vmax.f32 %v7191_v28, %v7387_v50  ;;  %v7392_v46 = vmax.f32 %v5020_v26, 0.0  ;;  %v5012_v45 = vadd.f32 %v17644_v48, %v5011_v33  ;;  %v16074_v50 = vld [vmem:[%s21928_s0 + $0x590] sm:$0xff]   ;;  %v4252_v28 = vadd.f32 %v22135_v51, %v17644_v48  ;;  %15719 = vmatprep.mubr.msk.bf16.mxu1 %vm2785_vm2, %v16113_v27 }
 0x2c5   :  { %v15362_v52 = vpop.f32.mrf.mxu0  ;;  %v7197_v33 = vmax.f32 %v4239_v40, 0.0  ;;  %v7195_v51 = vmax.f32 %v4231_v12, 0.0  ;;  %v16075_v12 = vld [vmem:[%s21928_s0 + $0x598] sm:$0xff]  }
 0x2c6   :  { %22132 = vst [vmem:[#allocation12_spill] sm:$0xff] %v18087_v36  ;;  %v18095_v24 = vmax.f32 %v7196_v34, %v7392_v46  ;;  %v7390_v60 = vmax.f32 %v5012_v45, 0.0  ;;  %v5023_v14 = vadd.f32 %v15362_v52, %v17644_v48  ;;  %v16115_v34 = vld [vmem:[%s21928_s0 + $0x998] sm:$0xff]   ;;  %v22137_v52 = vld [vmem:[#allocation15_spill] sm:$0xff]  ;;  %v7200_v40 = vmax.f32 %v4252_v28, 0.0 }
 0x2c7   :  { %v5014_v26 = vpop.f32.mrf.mxu0  ;;  %v4244_v35 = vadd.f32 %v17644_v48, %v22137_v52  ;;  %15720 = vmatmul.mubr.msk.bf16.gmra.mxu1 %vm2785_vm2, %v16115_v34 }
 0x2c8   :  { %22134 = vst [vmem:[#allocation13_spill] sm:$0xff] %v18095_v24  ;;  %v18109_v2 = vmax.f32 %v7194_v10, %v7390_v60  ;;  %v7393_v46 = vmax.f32 %v5023_v14, 0.0  ;;  %v5015_v45 = vadd.f32 %v17644_v48, %v5014_v26  ;;  %v22139_v14 = vld [vmem:[#allocation16_spill] sm:$0xff] }
 0x2c9   :  { %v15365_v24 = vpop.f32.mrf.mxu0  ;;  %15460 = vmatmul.mubr.msk.bf16.gmra.mxu0 %vm2785_vm2, %v16073_v58  ;;  %v4255_v27 = vadd.f32 %v22139_v14, %v17644_v48 }
 0x2ca   :  { %22136 = vst [vmem:[#allocation14_spill] sm:$0xff] %v18109_v2  ;;  %v18117_v36 = vmax.f32 %v7197_v33, %v7393_v46  ;;  %v7391_v41 = vmax.f32 %v5015_v45, 0.0  ;;  %v5036_v10 = vadd.f32 %v15365_v24, %v17644_v48  ;;  %15463 = vmatprep.mubr.msk.bf16.mxu0 %vm2785_vm2, %v16074_v50  ;;  %v7198_v2 = vmax.f32 %v4244_v35, 0.0  ;;  %v22141_v33 = vld [vmem:[#allocation17_spill] sm:$0xff]  ;;  %v16117_v45 = vld [vmem:[%s21928_s0 + $0x9a0] sm:$0xff]   ;;  %v22143_v35 = vld [vmem:[#allocation18_spill] sm:$0xff] }
 0x2cb   :  { %v5027_v60 = vpop.f32.mrf.mxu0  ;;  %v4247_v24 = vadd.f32 %v17644_v48, %v22141_v33  ;;  %15723 = vmatprep.mubr.msk.bf16.mxu1 %vm2785_vm2, %v16117_v45 }
 0x2cc   :  { %22138 = vst [vmem:[#allocation15_spill] sm:$0xff] %v18117_v36  ;;  %v18123_v26 = vmax.f32 %v7195_v51, %v7391_v41  ;;  %v7396_v52 = vmax.f32 %v5036_v10, 0.0  ;;  %v5028_v58 = vadd.f32 %v17644_v48, %v5027_v60  ;;  %v16076_v41 = vld [vmem:[%s21928_s0 + $0x5a0] sm:$0xff]   ;;  %v4268_v51 = vadd.f32 %v22143_v35, %v17644_v48 }
 0x2cd   :  { %v15366_v34 = vpop.f32.mrf.mxu0  ;;  %v7201_v60 = vmax.f32 %v4255_v27, 0.0  ;;  %v7199_v35 = vmax.f32 %v4247_v24, 0.0  ;;  %v16077_v24 = vld [vmem:[%s21928_s0 + $0x5a8] sm:$0xff]  }
 0x2ce   :  { %22140 = vst [vmem:[#allocation16_spill] sm:$0xff] %v18123_v26  ;;  %v18131_v50 = vmax.f32 %v7200_v40, %v7396_v52  ;;  %v7394_v28 = vmax.f32 %v5028_v58, 0.0  ;;  %v5039_v46 = vadd.f32 %v15366_v34, %v17644_v48  ;;  %v16119_v40 = vld [vmem:[%s21928_s0 + $0x9a8] sm:$0xff]   ;;  %v22145_v34 = vld [vmem:[#allocation19_spill] sm:$0xff]  ;;  %v7204_v27 = vmax.f32 %v4268_v51, 0.0 }
 0x2cf   :  { %v5030_v10 = vpop.f32.mrf.mxu0  ;;  %v4260_v33 = vadd.f32 %v17644_v48, %v22145_v34  ;;  %15724 = vmatmul.mubr.msk.bf16.gmra.mxu1 %vm2785_vm2, %v16119_v40 }
 0x2d0   :  { %22142 = vst [vmem:[#allocation17_spill] sm:$0xff] %v18131_v50  ;;  %v18145_v14 = vmax.f32 %v7198_v2, %v7394_v28  ;;  %v7397_v52 = vmax.f32 %v5039_v46, 0.0  ;;  %v5031_v58 = vadd.f32 %v17644_v48, %v5030_v10  ;;  %v22147_v46 = vld [vmem:[#allocation20_spill] sm:$0xff] }
 0x2d1   :  { %v15369_v50 = vpop.f32.mrf.mxu0  ;;  %15464 = vmatmul.mubr.msk.bf16.gmra.mxu0 %vm2785_vm2, %v16075_v12  ;;  %v4271_v45 = vadd.f32 %v22147_v46, %v17644_v48 }
 0x2d2   :  { %22144 = vst [vmem:[#allocation18_spill] sm:$0xff] %v18145_v14  ;;  %v18153_v26 = vmax.f32 %v7201_v60, %v7397_v52  ;;  %v7395_v36 = vmax.f32 %v5031_v58, 0.0  ;;  %v5052_v2 = vadd.f32 %v15369_v50, %v17644_v48  ;;  %15467 = vmatprep.mubr.msk.bf16.mxu0 %vm2785_vm2, %v16076_v41  ;;  %v7202_v14 = vmax.f32 %v4260_v33, 0.0  ;;  %v22149_v60 = vld [vmem:[#allocation21_spill] sm:$0xff]  ;;  %v22151_v33 = vld [vmem:[#allocation22_spill] sm:$0xff] }
 0x2d3   :  { %v5043_v28 = vpop.f32.mrf.mxu0  ;;  %v4263_v50 = vadd.f32 %v17644_v48, %v22149_v60  ;;  %v16121_v58 = vld [vmem:[%s21928_s0 + $0x9b0] sm:$0xff]  }
 0x2d4   :  { %22146 = vst [vmem:[#allocation19_spill] sm:$0xff] %v18153_v26  ;;  %v18159_v10 = vmax.f32 %v7199_v35, %v7395_v36  ;;  %v7400_v34 = vmax.f32 %v5052_v2, 0.0  ;;  %v5044_v12 = vadd.f32 %v17644_v48, %v5043_v28  ;;  %v16078_v36 = vld [vmem:[%s21928_s0 + $0x5b0] sm:$0xff]   ;;  %v4284_v35 = vadd.f32 %v22151_v33, %v17644_v48  ;;  %15727 = vmatprep.mubr.msk.bf16.mxu1 %vm2785_vm2, %v16121_v58 }
 0x2d5   :  { %v15370_v40 = vpop.f32.mrf.mxu0  ;;  %v7205_v28 = vmax.f32 %v4271_v45, 0.0  ;;  %v7203_v33 = vmax.f32 %v4263_v50, 0.0 }
 0x2d6   :  { %22148 = vst [vmem:[#allocation20_spill] sm:$0xff] %v18159_v10  ;;  %v18167_v41 = vmax.f32 %v7204_v27, %v7400_v34  ;;  %v7398_v51 = vmax.f32 %v5044_v12, 0.0  ;;  %v5055_v52 = vadd.f32 %v15370_v40, %v17644_v48  ;;  %v16123_v27 = vld [vmem:[%s21928_s0 + $0x9b8] sm:$0xff]   ;;  %v22153_v40 = vld [vmem:[#allocation23_spill] sm:$0xff] }
 0x2d7   :  { %v5046_v2 = vpop.f32.mrf.mxu0  ;;  %v4276_v60 = vadd.f32 %v17644_v48, %v22153_v40  ;;  %15728 = vmatmul.mubr.msk.bf16.gmra.mxu1 %vm2785_vm2, %v16123_v27 }
 0x2d8   :  { %22150 = vst [vmem:[#allocation21_spill] sm:$0xff] %v18167_v41  ;;  %v18181_v46 = vmax.f32 %v7202_v14, %v7398_v51  ;;  %v7401_v34 = vmax.f32 %v5055_v52, 0.0  ;;  %v5047_v12 = vadd.f32 %v17644_v48, %v5046_v2  ;;  %v18194_v14 = vld [vmem:[%s21929_s2] ss:$0 sm:$0xff]  ;;  %v7208_v51 = vmax.f32 %v4284_v35, 0.0  ;;  %v22155_v52 = vld [vmem:[#allocation24_spill] sm:$0xff] }
 0x2d9   :  { %v15373_v41 = vpop.f32.mrf.mxu0  ;;  %15468 = vmatmul.mubr.msk.bf16.gmra.mxu0 %vm2785_vm2, %v16077_v24  ;;  %v4287_v24 = vadd.f32 %v18194_v14, %v22155_v52  ;;  %v7206_v27 = vmax.f32 %v4276_v60, 0.0  ;;  %v16125_v60 = vld [vmem:[%s21928_s0 + $0x9c0] sm:$0xff]  }
 0x2da   :  { %22152 = vst [vmem:[#allocation22_spill] sm:$0xff] %v18181_v46  ;;  %v18189_v10 = vmax.f32 %v7205_v28, %v7401_v34  ;;  %v7399_v26 = vmax.f32 %v5047_v12, 0.0  ;;  %v5068_v45 = vadd.f32 %v18194_v14, %v15373_v41  ;;  %15471 = vmatprep.mubr.msk.bf16.mxu0 %vm2785_vm2, %v16078_v36  ;;  %v16079_v34 = vld [vmem:[%s21928_s0 + $0x5b8] sm:$0xff]   ;;  %v22157_v12 = vld [vmem:[#allocation25_spill] sm:$0xff]  ;;  %15731 = vmatprep.mubr.msk.bf16.mxu1 %vm2785_vm2, %v16125_v60 }
 0x2db   :  { %v5059_v48 = vpop.f32.mrf.mxu0  ;;  %v4279_v41 = vadd.f32 %v18194_v14, %v22157_v12  ;;  %v7209_v52 = vmax.f32 %v4287_v24, 0.0  ;;  %v22161_v12 = vld [vmem:[#allocation27_spill] sm:$0xff] }
 0x2dc   :  { %22154 = vst [vmem:[#allocation23_spill] sm:$0xff] %v18189_v10  ;;  %v18200_v58 = vmax.f32 %v7203_v33, %v7399_v26  ;;  %v7404_v50 = vmax.f32 %v5068_v45, 0.0  ;;  %v5060_v2 = vadd.f32 %v18194_v14, %v5059_v48  ;;  %v16080_v26 = vld [vmem:[%s21928_s0 + $0x5c0] sm:$0xff]   ;;  %v22159_v33 = vld [vmem:[#allocation26_spill] sm:$0xff] }
 0x2dd   :  { %v15374_v28 = vpop.f32.mrf.mxu0  ;;  %v4300_v45 = vadd.f32 %v18194_v14, %v22159_v33  ;;  %v7207_v33 = vmax.f32 %v4279_v41, 0.0  ;;  %v16081_v41 = vld [vmem:[%s21928_s0 + $0x5c8] sm:$0xff]  }
 0x2de   :  { %22156 = vst [vmem:[#allocation24_spill] sm:$0xff] %v18200_v58  ;;  %v18208_v36 = vmax.f32 %v7208_v51, %v7404_v50  ;;  %v7402_v35 = vmax.f32 %v5060_v2, 0.0  ;;  %v5071_v40 = vadd.f32 %v18194_v14, %v15374_v28  ;;  %v16127_v51 = vld [vmem:[%s21928_s0 + $0x9c8] sm:$0xff]  }
 0x2df   :  { %v5062_v48 = vpop.f32.mrf.mxu0  ;;  %15732 = vmatmul.mubr.msk.bf16.gmra.mxu1 %vm2785_vm2, %v16127_v51 }
 0x2e0   :  { %22158 = vst [vmem:[#allocation25_spill] sm:$0xff] %v18208_v36  ;;  %v18222_v50 = vmax.f32 %v7206_v27, %v7402_v35  ;;  %v7405_v2 = vmax.f32 %v5071_v40, 0.0  ;;  %v5063_v28 = vadd.f32 %v18194_v14, %v5062_v48  ;;  %v4292_v36 = vadd.f32 %v18194_v14, %v22161_v12  ;;  %v22163_v40 = vld [vmem:[#allocation28_spill] sm:$0xff] }
 0x2e1   :  { %v15377_v58 = vpop.f32.mrf.mxu0  ;;  %15472 = vmatmul.mubr.msk.bf16.gmra.mxu0 %vm2785_vm2, %v16079_v34  ;;  %v7212_v27 = vmax.f32 %v4300_v45, 0.0  ;;  %v4303_v60 = vadd.f32 %v18194_v14, %v22163_v40 }
 0x2e2   :  { %22160 = vst [vmem:[#allocation26_spill] sm:$0xff] %v18222_v50  ;;  %v18230_v10 = vmax.f32 %v7209_v52, %v7405_v2  ;;  %v7403_v46 = vmax.f32 %v5063_v28, 0.0  ;;  %v5084_v24 = vadd.f32 %v18194_v14, %v15377_v58  ;;  %15475 = vmatprep.mubr.msk.bf16.mxu0 %vm2785_vm2, %v16080_v26  ;;  %v7210_v50 = vmax.f32 %v4292_v36, 0.0  ;;  %v22165_v52 = vld [vmem:[#allocation29_spill] sm:$0xff]  ;;  %v22167_v28 = vld [vmem:[#allocation30_spill] sm:$0xff] }
 0x2e3   :  { %v5075_v35 = vpop.f32.mrf.mxu0  ;;  %v4295_v58 = vadd.f32 %v18194_v14, %v22165_v52  ;;  %v16129_v36 = vld [vmem:[%s21928_s0 + $0x9d0] sm:$0xff]  }
 0x2e4   :  { %22162 = vst [vmem:[#allocation27_spill] sm:$0xff] %v18230_v10  ;;  %v18236_v48 = vmax.f32 %v7207_v33, %v7403_v46  ;;  %v7408_v12 = vmax.f32 %v5084_v24, 0.0  ;;  %v5076_v34 = vadd.f32 %v18194_v14, %v5075_v35  ;;  %v16082_v46 = vld [vmem:[%s21928_s0 + $0x5d0] sm:$0xff]   ;;  %v4316_v33 = vadd.f32 %v18194_v14, %v22167_v28  ;;  %15735 = vmatprep.mubr.msk.bf16.mxu1 %vm2785_vm2, %v16129_v36 }
 0x2e5   :  { %v15378_v51 = vpop.f32.mrf.mxu0  ;;  %v7213_v35 = vmax.f32 %v4303_v60, 0.0  ;;  %v7211_v28 = vmax.f32 %v4295_v58, 0.0  ;;  %v16083_v58 = vld [vmem:[%s21928_s0 + $0x5d8] sm:$0xff]  }
 0x2e6   :  { %22164 = vst [vmem:[#allocation28_spill] sm:$0xff] %v18236_v48  ;;  %v18244_v26 = vmax.f32 %v7212_v27, %v7408_v12  ;;  %v7406_v45 = vmax.f32 %v5076_v34, 0.0  ;;  %v5087_v2 = vadd.f32 %v18194_v14, %v15378_v51  ;;  %v16131_v27 = vld [vmem:[%s21928_s0 + $0x9d8] sm:$0xff]   ;;  %v22169_v51 = vld [vmem:[#allocation31_spill] sm:$0xff]  ;;  %v7216_v60 = vmax.f32 %v4316_v33, 0.0 }
 0x2e7   :  { %v5078_v24 = vpop.f32.mrf.mxu0  ;;  %v4308_v52 = vadd.f32 %v18194_v14, %v22169_v51  ;;  %15736 = vmatmul.mubr.msk.bf16.gmra.mxu1 %vm2785_vm2, %v16131_v27 }
 0x2e8   :  { %22166 = vst [vmem:[#allocation29_spill] sm:$0xff] %v18244_v26  ;;  %v18258_v40 = vmax.f32 %v7210_v50, %v7406_v45  ;;  %v7409_v12 = vmax.f32 %v5087_v2, 0.0  ;;  %v5079_v34 = vadd.f32 %v18194_v14, %v5078_v24  ;;  %v22171_v2 = vld [vmem:[#allocation32_spill] sm:$0xff] }
 0x2e9   :  { %v15381_v26 = vpop.f32.mrf.mxu0  ;;  %15476 = vmatmul.mubr.msk.bf16.gmra.mxu0 %vm2785_vm2, %v16081_v41  ;;  %v4319_v36 = vadd.f32 %v18194_v14, %v22171_v2 }
 0x2ea   :  { %22168 = vst [vmem:[#allocation30_spill] sm:$0xff] %v18258_v40  ;;  %v18266_v48 = vmax.f32 %v7213_v35, %v7409_v12  ;;  %v7407_v10 = vmax.f32 %v5079_v34, 0.0  ;;  %v5100_v50 = vadd.f32 %v18194_v14, %v15381_v26  ;;  %15479 = vmatprep.mubr.msk.bf16.mxu0 %vm2785_vm2, %v16082_v46  ;;  %v7214_v40 = vmax.f32 %v4308_v52, 0.0  ;;  %v22173_v35 = vld [vmem:[#allocation33_spill] sm:$0xff]  ;;  %v16133_v34 = vld [vmem:[%s21928_s0 + $0x9e0] sm:$0xff]   ;;  %v22175_v52 = vld [vmem:[#allocation34_spill] sm:$0xff] }
 0x2eb   :  { %v5091_v45 = vpop.f32.mrf.mxu0  ;;  %v4311_v26 = vadd.f32 %v18194_v14, %v22173_v35  ;;  %15739 = vmatprep.mubr.msk.bf16.mxu1 %vm2785_vm2, %v16133_v34 }
 0x2ec   :  { %22170 = vst [vmem:[#allocation31_spill] sm:$0xff] %v18266_v48  ;;  %v18272_v24 = vmax.f32 %v7211_v28, %v7407_v10  ;;  %v7412_v51 = vmax.f32 %v5100_v50, 0.0  ;;  %v5092_v41 = vadd.f32 %v18194_v14, %v5091_v45  ;;  %v16084_v10 = vld [vmem:[%s21928_s0 + $0x5e0] sm:$0xff]   ;;  %v4332_v28 = vadd.f32 %v18194_v14, %v22175_v52 }
 0x2ed   :  { %v15382_v27 = vpop.f32.mrf.mxu0  ;;  %v7217_v45 = vmax.f32 %v4319_v36, 0.0  ;;  %v7215_v52 = vmax.f32 %v4311_v26, 0.0  ;;  %v16085_v26 = vld [vmem:[%s21928_s0 + $0x5e8] sm:$0xff]  }
 0x2ee   :  { %22172 = vst [vmem:[#allocation32_spill] sm:$0xff] %v18272_v24  ;;  %v18280_v46 = vmax.f32 %v7216_v60, %v7412_v51  ;;  %v7410_v33 = vmax.f32 %v5092_v41, 0.0  ;;  %v5103_v12 = vadd.f32 %v18194_v14, %v15382_v27  ;;  %v16135_v60 = vld [vmem:[%s21928_s0 + $0x9e8] sm:$0xff]   ;;  %v22177_v27 = vld [vmem:[#allocation35_spill] sm:$0xff]  ;;  %v7220_v36 = vmax.f32 %v4332_v28, 0.0 }
 0x2ef   :  { %v5094_v50 = vpop.f32.mrf.mxu0  ;;  %v4324_v35 = vadd.f32 %v18194_v14, %v22177_v27  ;;  %15740 = vmatmul.mubr.msk.bf16.gmra.mxu1 %vm2785_vm2, %v16135_v60 }
 0x2f0   :  { %22174 = vst [vmem:[#allocation33_spill] sm:$0xff] %v18280_v46  ;;  %v18294_v2 = vmax.f32 %v7214_v40, %v7410_v33  ;;  %v7413_v51 = vmax.f32 %v5103_v12, 0.0  ;;  %v5095_v41 = vadd.f32 %v18194_v14, %v5094_v50  ;;  %v22179_v12 = vld [vmem:[#allocation36_spill] sm:$0xff] }
 0x2f1   :  { %v15385_v46 = vpop.f32.mrf.mxu0  ;;  %15480 = vmatmul.mubr.msk.bf16.gmra.mxu0 %vm2785_vm2, %v16083_v58  ;;  %v4335_v34 = vadd.f32 %v18194_v14, %v22179_v12 }
 0x2f2   :  { %22176 = vst [vmem:[#allocation34_spill] sm:$0xff] %v18294_v2  ;;  %v18302_v24 = vmax.f32 %v7217_v45, %v7413_v51  ;;  %v7411_v48 = vmax.f32 %v5095_v41, 0.0  ;;  %v5116_v40 = vadd.f32 %v18194_v14, %v15385_v46  ;;  %15483 = vmatprep.mubr.msk.bf16.mxu0 %vm2785_vm2, %v16084_v10  ;;  %v7218_v2 = vmax.f32 %v4324_v35, 0.0  ;;  %v22181_v45 = vld [vmem:[#allocation37_spill] sm:$0xff]  ;;  %v22183_v35 = vld [vmem:[#allocation38_spill] sm:$0xff] }
 0x2f3   :  { %v5107_v33 = vpop.f32.mrf.mxu0  ;;  %v4327_v46 = vadd.f32 %v18194_v14, %v22181_v45  ;;  %v16137_v41 = vld [vmem:[%s21928_s0 + $0x9f0] sm:$0xff]  }
 0x2f4   :  { %22178 = vst [vmem:[#allocation35_spill] sm:$0xff] %v18302_v24  ;;  %v18308_v50 = vmax.f32 %v7215_v52, %v7411_v48  ;;  %v7416_v27 = vmax.f32 %v5116_v40, 0.0  ;;  %v5108_v58 = vadd.f32 %v18194_v14, %v5107_v33  ;;  %v16086_v48 = vld [vmem:[%s21928_s0 + $0x5f0] sm:$0xff]   ;;  %v4348_v52 = vadd.f32 %v18194_v14, %v22183_v35  ;;  %15743 = vmatprep.mubr.msk.bf16.mxu1 %vm2785_vm2, %v16137_v41 }
 0x2f5   :  { %v15386_v60 = vpop.f32.mrf.mxu0  ;;  %v7221_v33 = vmax.f32 %v4335_v34, 0.0  ;;  %v7219_v35 = vmax.f32 %v4327_v46, 0.0  ;;  %v16087_v46 = vld [vmem:[%s21928_s0 + $0x5f8] sm:$0xff]  }
 0x2f6   :  { %22180 = vst [vmem:[#allocation36_spill] sm:$0xff] %v18308_v50  ;;  %v18316_v10 = vmax.f32 %v7220_v36, %v7416_v27  ;;  %v7414_v28 = vmax.f32 %v5108_v58, 0.0  ;;  %v5119_v51 = vadd.f32 %v18194_v14, %v15386_v60  ;;  %v16139_v36 = vld [vmem:[%s21928_s0 + $0x9f8] sm:$0xff]   ;;  %v22185_v60 = vld [vmem:[#allocation39_spill] sm:$0xff]  ;;  %v7224_v34 = vmax.f32 %v4348_v52, 0.0 }
 0x2f7   :  { %v5110_v40 = vpop.f32.mrf.mxu0  ;;  %v4340_v45 = vadd.f32 %v18194_v14, %v22185_v60  ;;  %15744 = vmatmul.mubr.msk.bf16.gmra.mxu1 %vm2785_vm2, %v16139_v36 }
 0x2f8   :  { %22182 = vst [vmem:[#allocation37_spill] sm:$0xff] %v18316_v10  ;;  %v18330_v12 = vmax.f32 %v7218_v2, %v7414_v28  ;;  %v7417_v27 = vmax.f32 %v5119_v51, 0.0  ;;  %v5111_v58 = vadd.f32 %v18194_v14, %v5110_v40  ;;  %v22187_v51 = vld [vmem:[#allocation40_spill] sm:$0xff] }
 0x2f9   :  { %v15389_v10 = vpop.f32.mrf.mxu0  ;;  %15484 = vmatmul.mubr.msk.bf16.gmra.mxu0 %vm2785_vm2, %v16085_v26  ;;  %v4351_v41 = vadd.f32 %v18194_v14, %v22187_v51 }
 0x2fa   :  { %22184 = vst [vmem:[#allocation38_spill] sm:$0xff] %v18330_v12  ;;  %v18338_v50 = vmax.f32 %v7221_v33, %v7417_v27  ;;  %v7415_v24 = vmax.f32 %v5111_v58, 0.0  ;;  %v5132_v2 = vadd.f32 %v18194_v14, %v15389_v10  ;;  %15487 = vmatprep.mubr.msk.bf16.mxu0 %vm2785_vm2, %v16086_v48  ;;  %v7222_v12 = vmax.f32 %v4340_v45, 0.0  ;;  %v22189_v33 = vld [vmem:[#allocation41_spill] sm:$0xff]  ;;  %v16141_v58 = vld [vmem:[%s21928_s0 + $0xa00] sm:$0xff]   ;;  %v22191_v45 = vld [vmem:[#allocation42_spill] sm:$0xff] }
 0x2fb   :  { %v5123_v28 = vpop.f32.mrf.mxu0  ;;  %v4343_v10 = vadd.f32 %v18194_v14, %v22189_v33  ;;  %15747 = vmatprep.mubr.msk.bf16.mxu1 %vm2785_vm2, %v16141_v58 }
 0x2fc   :  { %22186 = vst [vmem:[#allocation39_spill] sm:$0xff] %v18338_v50  ;;  %v18344_v40 = vmax.f32 %v7219_v35, %v7415_v24  ;;  %v7420_v60 = vmax.f32 %v5132_v2, 0.0  ;;  %v5124_v26 = vadd.f32 %v18194_v14, %v5123_v28  ;;  %v16088_v24 = vld [vmem:[%s21928_s0 + $0x600] sm:$0xff]   ;;  %v4364_v35 = vadd.f32 %v18194_v14, %v22191_v45 }
 0x2fd   :  { %v15390_v36 = vpop.f32.mrf.mxu0  ;;  %v7225_v28 = vmax.f32 %v4351_v41, 0.0  ;;  %v7223_v45 = vmax.f32 %v4343_v10, 0.0  ;;  %v16089_v10 = vld [vmem:[%s21928_s0 + $0x608] sm:$0xff]  }
 0x2fe   :  { %22188 = vst [vmem:[#allocation40_spill] sm:$0xff] %v18344_v40  ;;  %v18352_v48 = vmax.f32 %v7224_v34, %v7420_v60  ;;  %v7418_v52 = vmax.f32 %v5124_v26, 0.0  ;;  %v5135_v27 = vadd.f32 %v18194_v14, %v15390_v36  ;;  %v16143_v34 = vld [vmem:[%s21928_s0 + $0xa08] sm:$0xff]   ;;  %v22193_v36 = vld [vmem:[#allocation43_spill] sm:$0xff]  ;;  %v7228_v41 = vmax.f32 %v4364_v35, 0.0 }
 0x2ff   :  { %v5126_v2 = vpop.f32.mrf.mxu0  ;;  %v4356_v33 = vadd.f32 %v18194_v14, %v22193_v36  ;;  %15748 = vmatmul.mubr.msk.bf16.gmra.mxu1 %vm2785_vm2, %v16143_v34 }
 0x300   :  { %22190 = vst [vmem:[#allocation41_spill] sm:$0xff] %v18352_v48  ;;  %v18366_v51 = vmax.f32 %v7222_v12, %v7418_v52  ;;  %v7421_v60 = vmax.f32 %v5135_v27, 0.0  ;;  %v5127_v26 = vadd.f32 %v18194_v14, %v5126_v2  ;;  %v22195_v27 = vld [vmem:[#allocation44_spill] sm:$0xff] }
 0x301   :  { %v15393_v48 = vpop.f32.mrf.mxu0  ;;  %15488 = vmatmul.mubr.msk.bf16.gmra.mxu0 %vm2785_vm2, %v16087_v46  ;;  %v4367_v58 = vadd.f32 %v18194_v14, %v22195_v27 }
 0x302   :  { %22192 = vst [vmem:[#allocation42_spill] sm:$0xff] %v18366_v51  ;;  %v18374_v40 = vmax.f32 %v7225_v28, %v7421_v60  ;;  %v7419_v50 = vmax.f32 %v5127_v26, 0.0  ;;  %v5148_v12 = vadd.f32 %v18194_v14, %v15393_v48  ;;  %15491 = vmatprep.mubr.msk.bf16.mxu0 %vm2785_vm2, %v16088_v24  ;;  %v7226_v51 = vmax.f32 %v4356_v33, 0.0  ;;  %v22197_v28 = vld [vmem:[#allocation45_spill] sm:$0xff]  ;;  %v22199_v33 = vld [vmem:[#allocation46_spill] sm:$0xff] }
 0x303   :  { %v5139_v52 = vpop.f32.mrf.mxu0  ;;  %v4359_v48 = vadd.f32 %v18194_v14, %v22197_v28  ;;  %v16145_v26 = vld [vmem:[%s21928_s0 + $0xa10] sm:$0xff]  }
 0x304   :  { %22194 = vst [vmem:[#allocation43_spill] sm:$0xff] %v18374_v40  ;;  %v18380_v2 = vmax.f32 %v7223_v45, %v7419_v50  ;;  %v7424_v36 = vmax.f32 %v5148_v12, 0.0  ;;  %v5140_v46 = vadd.f32 %v18194_v14, %v5139_v52  ;;  %v16090_v50 = vld [vmem:[%s21928_s0 + $0x610] sm:$0xff]   ;;  %v4380_v45 = vadd.f32 %v18194_v14, %v22199_v33  ;;  %15751 = vmatprep.mubr.msk.bf16.mxu1 %vm2785_vm2, %v16145_v26 }
 0x305   :  { %v15394_v34 = vpop.f32.mrf.mxu0  ;;  %v7229_v52 = vmax.f32 %v4367_v58, 0.0  ;;  %v7227_v33 = vmax.f32 %v4359_v48, 0.0  ;;  %v16091_v48 = vld [vmem:[%s21928_s0 + $0x618] sm:$0xff]  }
 0x306   :  { %22196 = vst [vmem:[#allocation44_spill] sm:$0xff] %v18380_v2  ;;  %v18388_v24 = vmax.f32 %v7228_v41, %v7424_v36  ;;  %v7422_v35 = vmax.f32 %v5140_v46, 0.0  ;;  %v5151_v60 = vadd.f32 %v18194_v14, %v15394_v34  ;;  %v16147_v41 = vld [vmem:[%s21928_s0 + $0xa18] sm:$0xff]   ;;  %v22201_v34 = vld [vmem:[#allocation47_spill] sm:$0xff]  ;;  %v7232_v58 = vmax.f32 %v4380_v45, 0.0 }
 0x307   :  { %v5142_v12 = vpop.f32.mrf.mxu0  ;;  %v4372_v28 = vadd.f32 %v18194_v14, %v22201_v34  ;;  %15752 = vmatmul.mubr.msk.bf16.gmra.mxu1 %vm2785_vm2, %v16147_v41 }
 0x308   :  { %22198 = vst [vmem:[#allocation45_spill] sm:$0xff] %v18388_v24  ;;  %v18402_v27 = vmax.f32 %v7226_v51, %v7422_v35  ;;  %v7425_v36 = vmax.f32 %v5151_v60, 0.0  ;;  %v5143_v46 = vadd.f32 %v18194_v14, %v5142_v12  ;;  %v22203_v60 = vld [vmem:[#allocation48_spill] sm:$0xff] }
 0x309   :  { %v15397_v24 = vpop.f32.mrf.mxu0  ;;  %15492 = vmatmul.mubr.msk.bf16.gmra.mxu0 %vm2785_vm2, %v16089_v10  ;;  %v4383_v26 = vadd.f32 %v18194_v14, %v22203_v60 }
 0x30a   :  { %22200 = vst [vmem:[#allocation46_spill] sm:$0xff] %v18402_v27  ;;  %v18410_v2 = vmax.f32 %v7229_v52, %v7425_v36  ;;  %v7423_v40 = vmax.f32 %v5143_v46, 0.0  ;;  %v5164_v51 = vadd.f32 %v18194_v14, %v15397_v24  ;;  %15495 = vmatprep.mubr.msk.bf16.mxu0 %vm2785_vm2, %v16090_v50  ;;  %v7230_v27 = vmax.f32 %v4372_v28, 0.0  ;;  %v22205_v52 = vld [vmem:[#allocation49_spill] sm:$0xff]  ;;  %v16149_v46 = vld [vmem:[%s21928_s0 + $0xa20] sm:$0xff]   ;;  %v22207_v28 = vld [vmem:[#allocation50_spill] sm:$0xff] }
 0x30b   :  { %v5155_v35 = vpop.f32.mrf.mxu0  ;;  %v4375_v24 = vadd.f32 %v18194_v14, %v22205_v52  ;;  %15755 = vmatprep.mubr.msk.bf16.mxu1 %vm2785_vm2, %v16149_v46 }
 0x30c   :  { %22202 = vst [vmem:[#allocation47_spill] sm:$0xff] %v18410_v2  ;;  %v18416_v12 = vmax.f32 %v7227_v33, %v7423_v40  ;;  %v7428_v34 = vmax.f32 %v5164_v51, 0.0  ;;  %v5156_v10 = vadd.f32 %v18194_v14, %v5155_v35  ;;  %v16092_v40 = vld [vmem:[%s21928_s0 + $0x620] sm:$0xff]   ;;  %v4396_v33 = vadd.f32 %v18194_v14, %v22207_v28 }
 0x30d   :  { %v15398_v41 = vpop.f32.mrf.mxu0  ;;  %v7233_v35 = vmax.f32 %v4383_v26, 0.0  ;;  %v7231_v28 = vmax.f32 %v4375_v24, 0.0  ;;  %v16093_v24 = vld [vmem:[%s21928_s0 + $0x628] sm:$0xff]  }
 0x30e   :  { %22204 = vst [vmem:[#allocation48_spill] sm:$0xff] %v18416_v12  ;;  %v18424_v50 = vmax.f32 %v7232_v58, %v7428_v34  ;;  %v7426_v45 = vmax.f32 %v5156_v10, 0.0  ;;  %v5167_v36 = vadd.f32 %v18194_v14, %v15398_v41  ;;  %v16151_v58 = vld [vmem:[%s21928_s0 + $0xa28] sm:$0xff]   ;;  %v22209_v41 = vld [vmem:[#allocation51_spill] sm:$0xff]  ;;  %v7236_v26 = vmax.f32 %v4396_v33, 0.0 }
 0x30f   :  { %v5158_v51 = vpop.f32.mrf.mxu0  ;;  %v4388_v52 = vadd.f32 %v18194_v14, %v22209_v41  ;;  %15756 = vmatmul.mubr.msk.bf16.gmra.mxu1 %vm2785_vm2, %v16151_v58 }
 0x310   :  { %22206 = vst [vmem:[#allocation49_spill] sm:$0xff] %v18424_v50  ;;  %v18438_v60 = vmax.f32 %v7230_v27, %v7426_v45  ;;  %v7429_v34 = vmax.f32 %v5167_v36, 0.0  ;;  %v5159_v10 = vadd.f32 %v18194_v14, %v5158_v51  ;;  %v22211_v36 = vld [vmem:[#allocation52_spill] sm:$0xff] }
 0x311   :  { %v15401_v50 = vpop.f32.mrf.mxu0  ;;  %15496 = vmatmul.mubr.msk.bf16.gmra.mxu0 %vm2785_vm2, %v16091_v48  ;;  %v4399_v46 = vadd.f32 %v18194_v14, %v22211_v36 }
 0x312   :  { %22208 = vst [vmem:[#allocation50_spill] sm:$0xff] %v18438_v60  ;;  %v18446_v12 = vmax.f32 %v7233_v35, %v7429_v34  ;;  %v7427_v2 = vmax.f32 %v5159_v10, 0.0  ;;  %v5180_v27 = vadd.f32 %v18194_v14, %v15401_v50  ;;  %15499 = vmatprep.mubr.msk.bf16.mxu0 %vm2785_vm2, %v16092_v40  ;;  %v7234_v60 = vmax.f32 %v4388_v52, 0.0  ;;  %v22213_v35 = vld [vmem:[#allocation53_spill] sm:$0xff]  ;;  %v22215_v52 = vld [vmem:[#allocation54_spill] sm:$0xff] }
 0x313   :  { %v5171_v45 = vpop.f32.mrf.mxu0  ;;  %v4391_v50 = vadd.f32 %v18194_v14, %v22213_v35  ;;  %v16153_v10 = vld [vmem:[%s21928_s0 + $0xa30] sm:$0xff]  }
 0x314   :  { %22210 = vst [vmem:[#allocation51_spill] sm:$0xff] %v18446_v12  ;;  %v18452_v51 = vmax.f32 %v7231_v28, %v7427_v2  ;;  %v7432_v41 = vmax.f32 %v5180_v27, 0.0  ;;  %v5172_v48 = vadd.f32 %v18194_v14, %v5171_v45  ;;  %v16094_v2 = vld [vmem:[%s21928_s0 + $0x630] sm:$0xff]   ;;  %v4412_v28 = vadd.f32 %v18194_v14, %v22215_v52  ;;  %15759 = vmatprep.mubr.msk.bf16.mxu1 %vm2785_vm2, %v16153_v10 }
 0x315   :  { %v15402_v58 = vpop.f32.mrf.mxu0  ;;  %v7237_v45 = vmax.f32 %v4399_v46, 0.0  ;;  %v7235_v52 = vmax.f32 %v4391_v50, 0.0  ;;  %v16095_v50 = vld [vmem:[%s21928_s0 + $0x638] sm:$0xff]  }
 0x316   :  { %22212 = vst [vmem:[#allocation52_spill] sm:$0xff] %v18452_v51  ;;  %v18460_v40 = vmax.f32 %v7236_v26, %v7432_v41  ;;  %v7430_v33 = vmax.f32 %v5172_v48, 0.0  ;;  %v5183_v34 = vadd.f32 %v18194_v14, %v15402_v58  ;;  %v16155_v26 = vld [vmem:[%s21928_s0 + $0xa38] sm:$0xff]   ;;  %v22217_v58 = vld [vmem:[#allocation55_spill] sm:$0xff]  ;;  %v7240_v46 = vmax.f32 %v4412_v28, 0.0 }
 0x317   :  { %v5174_v27 = vpop.f32.mrf.mxu0  ;;  %v4404_v35 = vadd.f32 %v18194_v14, %v22217_v58  ;;  %15760 = vmatmul.mubr.msk.bf16.gmra.mxu1 %vm2785_vm2, %v16155_v26 }
 0x318   :  { %22214 = vst [vmem:[#allocation53_spill] sm:$0xff] %v18460_v40  ;;  %v18474_v36 = vmax.f32 %v7234_v60, %v7430_v33  ;;  %v7433_v41 = vmax.f32 %v5183_v34, 0.0  ;;  %v5175_v48 = vadd.f32 %v18194_v14, %v5174_v27  ;;  %v22219_v34 = vld [vmem:[#allocation56_spill] sm:$0xff] }
 0x319   :  { %v15405_v40 = vpop.f32.mrf.mxu0  ;;  %15500 = vmatmul.mubr.msk.bf16.gmra.mxu0 %vm2785_vm2, %v16093_v24  ;;  %v4415_v10 = vadd.f32 %v18194_v14, %v22219_v34 }
 0x31a   :  { %22216 = vst [vmem:[#allocation54_spill] sm:$0xff] %v18474_v36  ;;  %v18482_v51 = vmax.f32 %v7237_v45, %v7433_v41  ;;  %v7431_v12 = vmax.f32 %v5175_v48, 0.0  ;;  %v5196_v60 = vadd.f32 %v18194_v14, %v15405_v40  ;;  %15503 = vmatprep.mubr.msk.bf16.mxu0 %vm2785_vm2, %v16094_v2  ;;  %v7238_v36 = vmax.f32 %v4404_v35, 0.0  ;;  %v22221_v45 = vld [vmem:[#allocation57_spill] sm:$0xff]  ;;  %v16157_v48 = vld [vmem:[%s21928_s0 + $0xa40] sm:$0xff]   ;;  %v22223_v35 = vld [vmem:[#allocation58_spill] sm:$0xff] }
 0x31b   :  { %v5187_v33 = vpop.f32.mrf.mxu0  ;;  %v4407_v40 = vadd.f32 %v18194_v14, %v22221_v45  ;;  %15763 = vmatprep.mubr.msk.bf16.mxu1 %vm2785_vm2, %v16157_v48 }
 0x31c   :  { %22218 = vst [vmem:[#allocation55_spill] sm:$0xff] %v18482_v51  ;;  %v18488_v27 = vmax.f32 %v7235_v52, %v7431_v12  ;;  %v7436_v58 = vmax.f32 %v5196_v60, 0.0  ;;  %v5188_v24 = vadd.f32 %v18194_v14, %v5187_v33  ;;  %v16096_v12 = vld [vmem:[%s21928_s0 + $0x640] sm:$0xff]   ;;  %v4428_v52 = vadd.f32 %v18194_v14, %v22223_v35 }
 0x31d   :  { %v15406_v26 = vpop.f32.mrf.mxu0  ;;  %v7241_v33 = vmax.f32 %v4415_v10, 0.0  ;;  %v7239_v35 = vmax.f32 %v4407_v40, 0.0  ;;  %v16098_v40 = vld [vmem:[%s21928_s0 + $0x648] sm:$0xff]  }
 0x31e   :  { %22220 = vst [vmem:[#allocation56_spill] sm:$0xff] %v18488_v27  ;;  %v18496_v2 = vmax.f32 %v7240_v46, %v7436_v58  ;;  %v7434_v28 = vmax.f32 %v5188_v24, 0.0  ;;  %v5199_v41 = vadd.f32 %v18194_v14, %v15406_v26  ;;  %v16159_v46 = vld [vmem:[%s21928_s0 + $0xa48] sm:$0xff]   ;;  %v22225_v26 = vld [vmem:[#allocation59_spill] sm:$0xff]  ;;  %v7244_v10 = vmax.f32 %v4428_v52, 0.0 }
 0x31f   :  { %v5190_v60 = vpop.f32.mrf.mxu0  ;;  %v4420_v45 = vadd.f32 %v18194_v14, %v22225_v26  ;;  %15764 = vmatmul.mubr.msk.bf16.gmra.mxu1 %vm2785_vm2, %v16159_v46 }
 0x320   :  { %22222 = vst [vmem:[#allocation57_spill] sm:$0xff] %v18496_v2  ;;  %v18510_v34 = vmax.f32 %v7238_v36, %v7434_v28  ;;  %v7437_v58 = vmax.f32 %v5199_v41, 0.0  ;;  %v5191_v24 = vadd.f32 %v18194_v14, %v5190_v60  ;;  %v22227_v41 = vld [vmem:[#allocation60_spill] sm:$0xff] }
 0x321   :  { %v15409_v2 = vpop.f32.mrf.mxu0  ;;  %15504 = vmatmul.mubr.msk.bf16.gmra.mxu0 %vm2785_vm2, %v16095_v50  ;;  %v4431_v48 = vadd.f32 %v18194_v14, %v22227_v41 }
 0x322   :  { %22224 = vst [vmem:[#allocation58_spill] sm:$0xff] %v18510_v34  ;;  %v18518_v27 = vmax.f32 %v7241_v33, %v7437_v58  ;;  %v7435_v51 = vmax.f32 %v5191_v24, 0.0  ;;  %v5212_v36 = vadd.f32 %v18194_v14, %v15409_v2  ;;  %15507 = vmatprep.mubr.msk.bf16.mxu0 %vm2785_vm2, %v16096_v12  ;;  %v7242_v34 = vmax.f32 %v4420_v45, 0.0  ;;  %v22229_v33 = vld [vmem:[#allocation61_spill] sm:$0xff]  ;;  %v22231_v45 = vld [vmem:[#allocation62_spill] sm:$0xff] }
 0x323   :  { %v5203_v28 = vpop.f32.mrf.mxu0  ;;  %v4423_v2 = vadd.f32 %v18194_v14, %v22229_v33  ;;  %v16161_v24 = vld [vmem:[%s21928_s0 + $0xa50] sm:$0xff]  }
 0x324   :  { %22226 = vst [vmem:[#allocation59_spill] sm:$0xff] %v18518_v27  ;;  %v18524_v60 = vmax.f32 %v7239_v35, %v7435_v51  ;;  %v7440_v26 = vmax.f32 %v5212_v36, 0.0  ;;  %v5204_v50 = vadd.f32 %v18194_v14, %v5203_v28  ;;  %v16100_v51 = vld [vmem:[%s21928_s0 + $0x650] sm:$0xff]   ;;  %v4444_v35 = vadd.f32 %v18194_v14, %v22231_v45  ;;  %15767 = vmatprep.mubr.msk.bf16.mxu1 %vm2785_vm2, %v16161_v24 }
 0x325   :  { %v15410_v46 = vpop.f32.mrf.mxu0  ;;  %v7245_v28 = vmax.f32 %v4431_v48, 0.0  ;;  %v7243_v45 = vmax.f32 %v4423_v2, 0.0  ;;  %v16102_v2 = vld [vmem:[%s21928_s0 + $0x658] sm:$0xff]  }
 0x326   :  { %22228 = vst [vmem:[#allocation60_spill] sm:$0xff] %v18524_v60  ;;  %v18532_v12 = vmax.f32 %v7244_v10, %v7440_v26  ;;  %v7438_v52 = vmax.f32 %v5204_v50, 0.0  ;;  %v5215_v58 = vadd.f32 %v18194_v14, %v15410_v46  ;;  %v16163_v10 = vld [vmem:[%s21928_s0 + $0xa58] sm:$0xff]   ;;  %v22233_v46 = vld [vmem:[#allocation63_spill] sm:$0xff]  ;;  %v7248_v48 = vmax.f32 %v4444_v35, 0.0 }
 0x327   :  { %v5206_v36 = vpop.f32.mrf.mxu0  ;;  %v4436_v33 = vadd.f32 %v18194_v14, %v22233_v46  ;;  %15768 = vmatmul.mubr.msk.bf16.gmra.mxu1 %vm2785_vm2, %v16163_v10 }
 0x328   :  { %22230 = vst [vmem:[#allocation61_spill] sm:$0xff] %v18532_v12  ;;  %v18546_v41 = vmax.f32 %v7242_v34, %v7438_v52  ;;  %v7441_v26 = vmax.f32 %v5215_v58, 0.0  ;;  %v5207_v50 = vadd.f32 %v18194_v14, %v5206_v36  ;;  %v22235_v58 = vld [vmem:[#allocation64_spill] sm:$0xff] }
 0x329   :  { %v15413_v12 = vpop.f32.mrf.mxu0  ;;  %15508 = vmatmul.mubr.msk.bf16.gmra.mxu0 %vm2785_vm2, %v16098_v40  ;;  %v4447_v24 = vadd.f32 %v18194_v14, %v22235_v58 }
 0x32a   :  { %22232 = vst [vmem:[#allocation62_spill] sm:$0xff] %v18546_v41  ;;  %v18554_v60 = vmax.f32 %v7245_v28, %v7441_v26  ;;  %v7439_v27 = vmax.f32 %v5207_v50, 0.0  ;;  %v5228_v34 = vadd.f32 %v18194_v14, %v15413_v12  ;;  %15511 = vmatprep.mubr.msk.bf16.mxu0 %vm2785_vm2, %v16100_v51  ;;  %v7246_v41 = vmax.f32 %v4436_v33, 0.0  ;;  %v22237_v28 = vld [vmem:[#allocation65_spill] sm:$0xff]  ;;  %v16165_v50 = vld [vmem:[%s21928_s0 + $0xa60] sm:$0xff]   ;;  %v22239_v33 = vld [vmem:[#allocation66_spill] sm:$0xff] }
 0x32b   :  { %v5219_v52 = vpop.f32.mrf.mxu0  ;;  %v4439_v12 = vadd.f32 %v18194_v14, %v22237_v28  ;;  %15771 = vmatprep.mubr.msk.bf16.mxu1 %vm2785_vm2, %v16165_v50 }
 0x32c   :  { %22234 = vst [vmem:[#allocation63_spill] sm:$0xff] %v18554_v60  ;;  %v18560_v36 = vmax.f32 %v7243_v45, %v7439_v27  ;;  %v7444_v46 = vmax.f32 %v5228_v34, 0.0  ;;  %v5220_v40 = vadd.f32 %v18194_v14, %v5219_v52  ;;  %v16104_v27 = vld [vmem:[%s21928_s0 + $0x660] sm:$0xff]   ;;  %v4460_v45 = vadd.f32 %v18194_v14, %v22239_v33 }
 0x32d   :  { %v15414_v10 = vpop.f32.mrf.mxu0  ;;  %v7249_v52 = vmax.f32 %v4447_v24, 0.0  ;;  %v7247_v33 = vmax.f32 %v4439_v12, 0.0  ;;  %v16106_v12 = vld [vmem:[%s21928_s0 + $0x668] sm:$0xff]  }
 0x32e   :  { %22236 = vst [vmem:[#allocation64_spill] sm:$0xff] %v18560_v36  ;;  %v18568_v51 = vmax.f32 %v7248_v48, %v7444_v46  ;;  %v7442_v35 = vmax.f32 %v5220_v40, 0.0  ;;  %v5231_v26 = vadd.f32 %v18194_v14, %v15414_v10  ;;  %v16167_v48 = vld [vmem:[%s21928_s0 + $0xa68] sm:$0xff]   ;;  %v22241_v10 = vld [vmem:[#allocation67_spill] sm:$0xff]  ;;  %v7252_v24 = vmax.f32 %v4460_v45, 0.0 }
 0x32f   :  { %v5222_v34 = vpop.f32.mrf.mxu0  ;;  %v4452_v28 = vadd.f32 %v18194_v14, %v22241_v10  ;;  %15772 = vmatmul.mubr.msk.bf16.gmra.mxu1 %vm2785_vm2, %v16167_v48 }
 0x330   :  { %22238 = vst [vmem:[#allocation65_spill] sm:$0xff] %v18568_v51  ;;  %v18582_v58 = vmax.f32 %v7246_v41, %v7442_v35  ;;  %v7445_v46 = vmax.f32 %v5231_v26, 0.0  ;;  %v5223_v40 = vadd.f32 %v18194_v14, %v5222_v34  ;;  %v22243_v26 = vld [vmem:[#allocation68_spill] sm:$0xff] }
 0x331   :  { %v15417_v51 = vpop.f32.mrf.mxu0  ;;  %15512 = vmatmul.mubr.msk.bf16.gmra.mxu0 %vm2785_vm2, %v16102_v2  ;;  %v4463_v50 = vadd.f32 %v18194_v14, %v22243_v26 }
 0x332   :  { %22240 = vst [vmem:[#allocation66_spill] sm:$0xff] %v18582_v58  ;;  %v18590_v36 = vmax.f32 %v7249_v52, %v7445_v46  ;;  %v7443_v60 = vmax.f32 %v5223_v40, 0.0  ;;  %v5244_v41 = vadd.f32 %v18194_v14, %v15417_v51  ;;  %15515 = vmatprep.mubr.msk.bf16.mxu0 %vm2785_vm2, %v16104_v27  ;;  %v7250_v58 = vmax.f32 %v4452_v28, 0.0  ;;  %v22245_v52 = vld [vmem:[#allocation69_spill] sm:$0xff]  ;;  %v22247_v28 = vld [vmem:[#allocation70_spill] sm:$0xff] }
 0x333   :  { %v5235_v35 = vpop.f32.mrf.mxu0  ;;  %v4455_v51 = vadd.f32 %v18194_v14, %v22245_v52  ;;  %v16169_v40 = vld [vmem:[%s21928_s0 + $0xa70] sm:$0xff]  }
 0x334   :  { %22242 = vst [vmem:[#allocation67_spill] sm:$0xff] %v18590_v36  ;;  %v18596_v34 = vmax.f32 %v7247_v33, %v7443_v60  ;;  %v7448_v10 = vmax.f32 %v5244_v41, 0.0  ;;  %v5236_v2 = vadd.f32 %v18194_v14, %v5235_v35  ;;  %v16108_v60 = vld [vmem:[%s21928_s0 + $0x670] sm:$0xff]   ;;  %v4476_v33 = vadd.f32 %v18194_v14, %v22247_v28  ;;  %15775 = vmatprep.mubr.msk.bf16.mxu1 %vm2785_vm2, %v16169_v40 }
 0x335   :  { %v15418_v48 = vpop.f32.mrf.mxu0  ;;  %v7253_v35 = vmax.f32 %v4463_v50, 0.0  ;;  %v7251_v28 = vmax.f32 %v4455_v51, 0.0  ;;  %v16110_v51 = vld [vmem:[%s21928_s0 + $0x678] sm:$0xff]  }
 0x336   :  { %22244 = vst [vmem:[#allocation68_spill] sm:$0xff] %v18596_v34  ;;  %v18604_v27 = vmax.f32 %v7252_v24, %v7448_v10  ;;  %v7446_v45 = vmax.f32 %v5236_v2, 0.0  ;;  %v5247_v46 = vadd.f32 %v18194_v14, %v15418_v48  ;;  %v16171_v24 = vld [vmem:[%s21928_s0 + $0xa78] sm:$0xff]   ;;  %v22249_v48 = vld [vmem:[#allocation71_spill] sm:$0xff]  ;;  %v7256_v50 = vmax.f32 %v4476_v33, 0.0 }
 0x337   :  { %v5238_v41 = vpop.f32.mrf.mxu0  ;;  %v4468_v52 = vadd.f32 %v18194_v14, %v22249_v48  ;;  %15776 = vmatmul.mubr.msk.bf16.gmra.mxu1 %vm2785_vm2, %v16171_v24 }
 0x338   :  { %22246 = vst [vmem:[#allocation69_spill] sm:$0xff] %v18604_v27  ;;  %v18618_v26 = vmax.f32 %v7250_v58, %v7446_v45  ;;  %v7449_v10 = vmax.f32 %v5247_v46, 0.0  ;;  %v5239_v2 = vadd.f32 %v18194_v14, %v5238_v41  ;;  %v22251_v46 = vld [vmem:[#allocation72_spill] sm:$0xff] }
 0x339   :  { %v15421_v27 = vpop.f32.mrf.mxu0  ;;  %15516 = vmatmul.mubr.msk.bf16.gmra.mxu0 %vm2785_vm2, %v16106_v12  ;;  %v4479_v40 = vadd.f32 %v18194_v14, %v22251_v46 }
 0x33a   :  { %22248 = vst [vmem:[#allocation70_spill] sm:$0xff] %v18618_v26  ;;  %v18626_v34 = vmax.f32 %v7253_v35, %v7449_v10  ;;  %v7447_v36 = vmax.f32 %v5239_v2, 0.0  ;;  %v5260_v58 = vadd.f32 %v18194_v14, %v15421_v27  ;;  %15519 = vmatprep.mubr.msk.bf16.mxu0 %vm2785_vm2, %v16108_v60  ;;  %v7254_v26 = vmax.f32 %v4468_v52, 0.0  ;;  %v22253_v35 = vld [vmem:[#allocation73_spill] sm:$0xff]  ;;  %v16173_v2 = vld [vmem:[%s21928_s0 + $0xa80] sm:$0xff]   ;;  %v22255_v52 = vld [vmem:[#allocation74_spill] sm:$0xff] }
 0x33b   :  { %v5251_v45 = vpop.f32.mrf.mxu0  ;;  %v4471_v27 = vadd.f32 %v18194_v14, %v22253_v35  ;;  %15779 = vmatprep.mubr.msk.bf16.mxu1 %vm2785_vm2, %v16173_v2 }
 0x33c   :  { %22250 = vst [vmem:[#allocation71_spill] sm:$0xff] %v18626_v34  ;;  %v18632_v41 = vmax.f32 %v7251_v28, %v7447_v36  ;;  %v7452_v48 = vmax.f32 %v5260_v58, 0.0  ;;  %v5252_v12 = vadd.f32 %v18194_v14, %v5251_v45  ;;  %v16112_v36 = vld [vmem:[%s21928_s0 + $0x680] sm:$0xff]   ;;  %v4492_v28 = vadd.f32 %v18194_v14, %v22255_v52 }
 0x33d   :  { %v15422_v24 = vpop.f32.mrf.mxu0  ;;  %v7257_v45 = vmax.f32 %v4479_v40, 0.0  ;;  %v7255_v52 = vmax.f32 %v4471_v27, 0.0  ;;  %v16114_v27 = vld [vmem:[%s21928_s0 + $0x688] sm:$0xff]  }
 0x33e   :  { %22252 = vst [vmem:[#allocation72_spill] sm:$0xff] %v18632_v41  ;;  %v18640_v60 = vmax.f32 %v7256_v50, %v7452_v48  ;;  %v7450_v33 = vmax.f32 %v5252_v12, 0.0  ;;  %v5263_v10 = vadd.f32 %v18194_v14, %v15422_v24  ;;  %v16175_v50 = vld [vmem:[%s21928_s0 + $0xa88] sm:$0xff]   ;;  %v22257_v24 = vld [vmem:[#allocation75_spill] sm:$0xff]  ;;  %v7260_v40 = vmax.f32 %v4492_v28, 0.0 }
 0x33f   :  { %v5254_v58 = vpop.f32.mrf.mxu0  ;;  %v4484_v35 = vadd.f32 %v18194_v14, %v22257_v24  ;;  %15780 = vmatmul.mubr.msk.bf16.gmra.mxu1 %vm2785_vm2, %v16175_v50 }
 0x340   :  { %22254 = vst [vmem:[#allocation73_spill] sm:$0xff] %v18640_v60  ;;  %v18654_v46 = vmax.f32 %v7254_v26, %v7450_v33  ;;  %v7453_v48 = vmax.f32 %v5263_v10, 0.0  ;;  %v5255_v12 = vadd.f32 %v18194_v14, %v5254_v58  ;;  %v22259_v10 = vld [vmem:[#allocation76_spill] sm:$0xff] }
 0x341   :  { %v15425_v60 = vpop.f32.mrf.mxu0  ;;  %15520 = vmatmul.mubr.msk.bf16.gmra.mxu0 %vm2785_vm2, %v16110_v51  ;;  %v4495_v2 = vadd.f32 %v18194_v14, %v22259_v10 }
 0x342   :  { %22256 = vst [vmem:[#allocation74_spill] sm:$0xff] %v18654_v46  ;;  %v18662_v41 = vmax.f32 %v7257_v45, %v7453_v48  ;;  %v7451_v34 = vmax.f32 %v5255_v12, 0.0  ;;  %v5276_v26 = vadd.f32 %v18194_v14, %v15425_v60  ;;  %15523 = vmatprep.mubr.msk.bf16.mxu0 %vm2785_vm2, %v16112_v36  ;;  %v7258_v46 = vmax.f32 %v4484_v35, 0.0  ;;  %v22261_v45 = vld [vmem:[#allocation77_spill] sm:$0xff]  ;;  %v22263_v35 = vld [vmem:[#allocation78_spill] sm:$0xff] }
 0x343   :  { %v5267_v33 = vpop.f32.mrf.mxu0  ;;  %v4487_v60 = vadd.f32 %v18194_v14, %v22261_v45  ;;  %v16177_v12 = vld [vmem:[%s21928_s0 + $0xa90] sm:$0xff]  }
 0x344   :  { %22258 = vst [vmem:[#allocation75_spill] sm:$0xff] %v18662_v41  ;;  %v18668_v58 = vmax.f32 %v7255_v52, %v7451_v34  ;;  %v7456_v24 = vmax.f32 %v5276_v26, 0.0  ;;  %v5268_v51 = vadd.f32 %v18194_v14, %v5267_v33  ;;  %v16116_v34 = vld [vmem:[%s21928_s0 + $0x690] sm:$0xff]   ;;  %v4508_v52 = vadd.f32 %v18194_v14, %v22263_v35  ;;  %15783 = vmatprep.mubr.msk.bf16.mxu1 %vm2785_vm2, %v16177_v12 }
 0x345   :  { %v15426_v50 = vpop.f32.mrf.mxu0  ;;  %v7261_v33 = vmax.f32 %v4495_v2, 0.0  ;;  %v7259_v35 = vmax.f32 %v4487_v60, 0.0  ;;  %v16118_v60 = vld [vmem:[%s21928_s0 + $0x698] sm:$0xff]  }
 0x346   :  { %22260 = vst [vmem:[#allocation76_spill] sm:$0xff] %v18668_v58  ;;  %v18676_v36 = vmax.f32 %v7260_v40, %v7456_v24  ;;  %v7454_v28 = vmax.f32 %v5268_v51, 0.0  ;;  %v5279_v48 = vadd.f32 %v18194_v14, %v15426_v50  ;;  %v16179_v40 = vld [vmem:[%s21928_s0 + $0xa98] sm:$0xff]   ;;  %v22265_v50 = vld [vmem:[#allocation79_spill] sm:$0xff]  ;;  %v7264_v2 = vmax.f32 %v4508_v52, 0.0 }
 0x347   :  { %v5270_v26 = vpop.f32.mrf.mxu0  ;;  %v4500_v45 = vadd.f32 %v18194_v14, %v22265_v50  ;;  %15784 = vmatmul.mubr.msk.bf16.gmra.mxu1 %vm2785_vm2, %v16179_v40 }
 0x348   :  { %22262 = vst [vmem:[#allocation77_spill] sm:$0xff] %v18676_v36  ;;  %v18690_v10 = vmax.f32 %v7258_v46, %v7454_v28  ;;  %v7457_v24 = vmax.f32 %v5279_v48, 0.0  ;;  %v5271_v51 = vadd.f32 %v18194_v14, %v5270_v26  ;;  %v22267_v48 = vld [vmem:[#allocation80_spill] sm:$0xff] }
 0x349   :  { %v15429_v36 = vpop.f32.mrf.mxu0  ;;  %15524 = vmatmul.mubr.msk.bf16.gmra.mxu0 %vm2785_vm2, %v16114_v27  ;;  %v4511_v12 = vadd.f32 %v18194_v14, %v22267_v48 }
 0x34a   :  { %22264 = vst [vmem:[#allocation78_spill] sm:$0xff] %v18690_v10  ;;  %v18698_v58 = vmax.f32 %v7261_v33, %v7457_v24  ;;  %v7455_v41 = vmax.f32 %v5271_v51, 0.0  ;;  %v5292_v46 = vadd.f32 %v18194_v14, %v15429_v36  ;;  %15527 = vmatprep.mubr.msk.bf16.mxu0 %vm2785_vm2, %v16116_v34  ;;  %v7262_v10 = vmax.f32 %v4500_v45, 0.0  ;;  %v22269_v33 = vld [vmem:[#allocation81_spill] sm:$0xff]  ;;  %v16181_v51 = vld [vmem:[%s21928_s0 + $0xaa0] sm:$0xff]   ;;  %v22271_v45 = vld [vmem:[#allocation82_spill] sm:$0xff] }
 0x34b   :  { %v5283_v28 = vpop.f32.mrf.mxu0  ;;  %v4503_v36 = vadd.f32 %v18194_v14, %v22269_v33  ;;  %15787 = vmatprep.mubr.msk.bf16.mxu1 %vm2785_vm2, %v16181_v51 }
 0x34c   :  { %22266 = vst [vmem:[#allocation79_spill] sm:$0xff] %v18698_v58  ;;  %v18704_v26 = vmax.f32 %v7259_v35, %v7455_v41  ;;  %v7460_v50 = vmax.f32 %v5292_v46, 0.0  ;;  %v5284_v27 = vadd.f32 %v18194_v14, %v5283_v28  ;;  %v16120_v41 = vld [vmem:[%s21928_s0 + $0x6a0] sm:$0xff]   ;;  %v4524_v35 = vadd.f32 %v18194_v14, %v22271_v45 }
 0x34d   :  { %v15430_v40 = vpop.f32.mrf.mxu0  ;;  %v7265_v28 = vmax.f32 %v4511_v12, 0.0  ;;  %v7263_v45 = vmax.f32 %v4503_v36, 0.0  ;;  %v16122_v36 = vld [vmem:[%s21928_s0 + $0x6a8] sm:$0xff]  }
 0x34e   :  { %22268 = vst [vmem:[#allocation80_spill] sm:$0xff] %v18704_v26  ;;  %v18712_v34 = vmax.f32 %v7264_v2, %v7460_v50  ;;  %v7458_v52 = vmax.f32 %v5284_v27, 0.0  ;;  %v5295_v24 = vadd.f32 %v18194_v14, %v15430_v40  ;;  %v16183_v2 = vld [vmem:[%s21928_s0 + $0xaa8] sm:$0xff]   ;;  %v22273_v40 = vld [vmem:[#allocation83_spill] sm:$0xff]  ;;  %v7268_v12 = vmax.f32 %v4524_v35, 0.0 }
 0x34f   :  { %v5286_v46 = vpop.f32.mrf.mxu0  ;;  %v4516_v33 = vadd.f32 %v18194_v14, %v22273_v40  ;;  %15788 = vmatmul.mubr.msk.bf16.gmra.mxu1 %vm2785_vm2, %v16183_v2 }
 0x350   :  { %22270 = vst [vmem:[#allocation81_spill] sm:$0xff] %v18712_v34  ;;  %v18726_v48 = vmax.f32 %v7262_v10, %v7458_v52  ;;  %v7461_v50 = vmax.f32 %v5295_v24, 0.0  ;;  %v5287_v27 = vadd.f32 %v18194_v14, %v5286_v46  ;;  %v22275_v24 = vld [vmem:[#allocation84_spill] sm:$0xff] }
 0x351   :  { %v15433_v34 = vpop.f32.mrf.mxu0  ;;  %15528 = vmatmul.mubr.msk.bf16.gmra.mxu0 %vm2785_vm2, %v16118_v60  ;;  %v4527_v51 = vadd.f32 %v18194_v14, %v22275_v24 }
 0x352   :  { %22272 = vst [vmem:[#allocation82_spill] sm:$0xff] %v18726_v48  ;;  %v18734_v26 = vmax.f32 %v7265_v28, %v7461_v50  ;;  %v7459_v58 = vmax.f32 %v5287_v27, 0.0  ;;  %v5308_v10 = vadd.f32 %v18194_v14, %v15433_v34  ;;  %15531 = vmatprep.mubr.msk.bf16.mxu0 %vm2785_vm2, %v16120_v41  ;;  %v7266_v48 = vmax.f32 %v4516_v33, 0.0  ;;  %v22277_v28 = vld [vmem:[#allocation85_spill] sm:$0xff]  ;;  %v22279_v33 = vld [vmem:[#allocation86_spill] sm:$0xff] }
 0x353   :  { %v5299_v52 = vpop.f32.mrf.mxu0  ;;  %v4519_v34 = vadd.f32 %v18194_v14, %v22277_v28  ;;  %v16185_v27 = vld [vmem:[%s21928_s0 + $0xab0] sm:$0xff]  }
 0x354   :  { %22274 = vst [vmem:[#allocation83_spill] sm:$0xff] %v18734_v26  ;;  %v18740_v46 = vmax.f32 %v7263_v45, %v7459_v58  ;;  %v7464_v40 = vmax.f32 %v5308_v10, 0.0  ;;  %v5300_v60 = vadd.f32 %v18194_v14, %v5299_v52  ;;  %v16124_v58 = vld [vmem:[%s21928_s0 + $0x6b0] sm:$0xff]   ;;  %v4540_v45 = vadd.f32 %v18194_v14, %v22279_v33  ;;  %15791 = vmatprep.mubr.msk.bf16.mxu1 %vm2785_vm2, %v16185_v27 }
 0x355   :  { %v15434_v2 = vpop.f32.mrf.mxu0  ;;  %v7269_v52 = vmax.f32 %v4527_v51, 0.0  ;;  %v7267_v33 = vmax.f32 %v4519_v34, 0.0 }
 0x356   :  { %22276 = vst [vmem:[#allocation84_spill] sm:$0xff] %v18740_v46  ;;  %v18748_v41 = vmax.f32 %v7268_v12, %v7464_v40  ;;  %v7462_v35 = vmax.f32 %v5300_v60, 0.0  ;;  %v5311_v50 = vadd.f32 %v18194_v14, %v15434_v2  ;;  %v16187_v12 = vld [vmem:[%s21928_s0 + $0xab8] sm:$0xff]   ;;  %v22281_v2 = vld [vmem:[#allocation87_spill] sm:$0xff] }
 0x357   :  { %v5302_v10 = vpop.f32.mrf.mxu0  ;;  %v4532_v28 = vadd.f32 %v18194_v14, %v22281_v2  ;;  %15792 = vmatmul.mubr.msk.bf16.gmra.mxu1 %vm2785_vm2, %v16187_v12 }
 0x358   :  { %22278 = vst [vmem:[#allocation85_spill] sm:$0xff] %v18748_v41  ;;  %v18762_v24 = vmax.f32 %v7266_v48, %v7462_v35  ;;  %v7465_v40 = vmax.f32 %v5311_v50, 0.0  ;;  %v5303_v60 = vadd.f32 %v18194_v14, %v5302_v10  ;;  %v18775_v48 = vld [vmem:[%s21929_s2] ss:$0 sm:$0xff]  ;;  %v7272_v35 = vmax.f32 %v4540_v45, 0.0  ;;  %v22283_v50 = vld [vmem:[#allocation88_spill] sm:$0xff] }
 0x359   :  { %v15437_v41 = vpop.f32.mrf.mxu0  ;;  %15532 = vmatmul.mubr.msk.bf16.gmra.mxu0 %vm2785_vm2, %v16122_v36  ;;  %v4543_v36 = vadd.f32 %v18775_v48, %v22283_v50  ;;  %v7270_v12 = vmax.f32 %v4532_v28, 0.0  ;;  %v16189_v28 = vld [vmem:[%s21928_s0 + $0xac0] sm:$0xff]   ;;  %v4631_v23 = vadd.f32 %v18775_v48, %v22333_v62 }
 0x35a   :  { %22280 = vst [vmem:[#allocation86_spill] sm:$0xff] %v18762_v24  ;;  %v18770_v46 = vmax.f32 %v7269_v52, %v7465_v40  ;;  %v7463_v26 = vmax.f32 %v5303_v60, 0.0  ;;  %v5324_v51 = vadd.f32 %v18775_v48, %v15437_v41  ;;  %15535 = vmatprep.mubr.msk.bf16.mxu0 %vm2785_vm2, %v16124_v58  ;;  %v16126_v40 = vld [vmem:[%s21928_s0 + $0x6b8] sm:$0xff]   ;;  %v22285_v60 = vld [vmem:[#allocation89_spill] sm:$0xff]  ;;  %15795 = vmatprep.mubr.msk.bf16.mxu1 %vm2785_vm2, %v16189_v28 }
 0x35b   :  { %v5315_v14 = vpop.f32.mrf.mxu0  ;;  %v4535_v41 = vadd.f32 %v18775_v48, %v22285_v60  ;;  %v7273_v50 = vmax.f32 %v4543_v36, 0.0  ;;  %v22289_v60 = vld [vmem:[#allocation91_spill] sm:$0xff] }
 0x35c   :  { %22282 = vst [vmem:[#allocation87_spill] sm:$0xff] %v18770_v46  ;;  %v18781_v27 = vmax.f32 %v7267_v33, %v7463_v26  ;;  %v7468_v34 = vmax.f32 %v5324_v51, 0.0  ;;  %v5316_v10 = vadd.f32 %v18775_v48, %v5315_v14  ;;  %v16128_v26 = vld [vmem:[%s21928_s0 + $0x6c0] sm:$0xff]   ;;  %v22287_v33 = vld [vmem:[#allocation90_spill] sm:$0xff] }
 0x35d   :  { %v15438_v52 = vpop.f32.mrf.mxu0  ;;  %v4556_v51 = vadd.f32 %v18775_v48, %v22287_v33  ;;  %v7271_v33 = vmax.f32 %v4535_v41, 0.0  ;;  %v16130_v41 = vld [vmem:[%s21928_s0 + $0x6c8] sm:$0xff]  }
 0x35e   :  { %22284 = vst [vmem:[#allocation88_spill] sm:$0xff] %v18781_v27  ;;  %v18789_v58 = vmax.f32 %v7272_v35, %v7468_v34  ;;  %v7466_v45 = vmax.f32 %v5316_v10, 0.0  ;;  %v5327_v2 = vadd.f32 %v18775_v48, %v15438_v52  ;;  %v16191_v35 = vld [vmem:[%s21928_s0 + $0xac8] sm:$0xff]  }
 0x35f   :  { %v5318_v14 = vpop.f32.mrf.mxu0  ;;  %15796 = vmatmul.mubr.msk.bf16.gmra.mxu1 %vm2785_vm2, %v16191_v35 }
 0x360   :  { %22286 = vst [vmem:[#allocation89_spill] sm:$0xff] %v18789_v58  ;;  %v18803_v34 = vmax.f32 %v7270_v12, %v7466_v45  ;;  %v7469_v10 = vmax.f32 %v5327_v2, 0.0  ;;  %v5319_v52 = vadd.f32 %v18775_v48, %v5318_v14  ;;  %v4548_v58 = vadd.f32 %v18775_v48, %v22289_v60  ;;  %v22291_v2 = vld [vmem:[#allocation92_spill] sm:$0xff] }
 0x361   :  { %v15441_v27 = vpop.f32.mrf.mxu0  ;;  %15536 = vmatmul.mubr.msk.bf16.gmra.mxu0 %vm2785_vm2, %v16126_v40  ;;  %v7276_v12 = vmax.f32 %v4556_v51, 0.0  ;;  %v4559_v28 = vadd.f32 %v18775_v48, %v22291_v2 }
 0x362   :  { %22288 = vst [vmem:[#allocation90_spill] sm:$0xff] %v18803_v34  ;;  %v18811_v46 = vmax.f32 %v7273_v50, %v7469_v10  ;;  %v7467_v24 = vmax.f32 %v5319_v52, 0.0  ;;  %v5340_v36 = vadd.f32 %v18775_v48, %v15441_v27  ;;  %15539 = vmatprep.mubr.msk.bf16.mxu0 %vm2785_vm2, %v16128_v26  ;;  %v7274_v34 = vmax.f32 %v4548_v58, 0.0  ;;  %v22293_v50 = vld [vmem:[#allocation93_spill] sm:$0xff]  ;;  %v22295_v52 = vld [vmem:[#allocation94_spill] sm:$0xff] }
 0x363   :  { %v5331_v45 = vpop.f32.mrf.mxu0  ;;  %v4551_v27 = vadd.f32 %v18775_v48, %v22293_v50  ;;  %v16193_v58 = vld [vmem:[%s21928_s0 + $0xad0] sm:$0xff]  }
 0x364   :  { %22290 = vst [vmem:[#allocation91_spill] sm:$0xff] %v18811_v46  ;;  %v18817_v14 = vmax.f32 %v7271_v33, %v7467_v24  ;;  %v7472_v60 = vmax.f32 %v5340_v36, 0.0  ;;  %v5332_v40 = vadd.f32 %v18775_v48, %v5331_v45  ;;  %v16132_v24 = vld [vmem:[%s21928_s0 + $0x6d0] sm:$0xff]   ;;  %v4572_v33 = vadd.f32 %v18775_v48, %v22295_v52  ;;  %15799 = vmatprep.mubr.msk.bf16.mxu1 %vm2785_vm2, %v16193_v58  ;;  %v18846_v52 = vpop.f32.mrf.mxu1 }
 0x365   :  { %v15442_v35 = vpop.f32.mrf.mxu0  ;;  %v7277_v45 = vmax.f32 %v4559_v28, 0.0 }
 0x366   :  { %22292 = vst [vmem:[#allocation92_spill] sm:$0xff] %v18817_v14  ;;  %v18825_v26 = vmax.f32 %v7276_v12, %v7472_v60  ;;  %v7470_v51 = vmax.f32 %v5332_v40, 0.0  ;;  %v5343_v10 = vadd.f32 %v18775_v48, %v15442_v35  ;;  %v16195_v12 = vld [vmem:[%s21928_s0 + $0xad8] sm:$0xff]   ;;  %v22297_v35 = vld [vmem:[#allocation95_spill] sm:$0xff]  ;;  %v7275_v14 = vmax.f32 %v4551_v27, 0.0  ;;  %v18853_v58 = vpop.f32.mrf.mxu1 }
 0x367   :  { %v5334_v36 = vpop.f32.mrf.mxu0  ;;  %v4564_v50 = vadd.f32 %v18775_v48, %v22297_v35  ;;  %15800 = vmatmul.mubr.msk.bf16.gmra.mxu1 %vm2785_vm2, %v16195_v12 }
 0x368   :  { %22294 = vst [vmem:[#allocation93_spill] sm:$0xff] %v18825_v26  ;;  %v18839_v2 = vmax.f32 %v7274_v34, %v7470_v51  ;;  %v7473_v60 = vmax.f32 %v5343_v10, 0.0  ;;  %v5335_v40 = vadd.f32 %v18775_v48, %v5334_v36  ;;  %v7280_v51 = vmax.f32 %v4572_v33, 0.0  ;;  %v22299_v36 = vld [vmem:[#allocation96_spill] sm:$0xff] }
 0x369   :  { %v15445_v26 = vpop.f32.mrf.mxu0  ;;  %15540 = vmatmul.mubr.msk.bf16.gmra.mxu0 %vm2785_vm2, %v16130_v41  ;;  %v4575_v35 = vadd.f32 %v18775_v48, %v22299_v36  ;;  %v7278_v27 = vmax.f32 %v4564_v50, 0.0  ;;  %v16197_v50 = vld [vmem:[%s21928_s0 + $0xae0] sm:$0xff]  }
 0x36a   :  { %22296 = vst [vmem:[#allocation94_spill] sm:$0xff] %v18839_v2  ;;  %v18849_v46 = vmax.f32 %v7277_v45, %v7473_v60  ;;  %v7471_v34 = vmax.f32 %v5335_v40, 0.0  ;;  %v5356_v28 = vadd.f32 %v18775_v48, %v15445_v26  ;;  %15543 = vmatprep.mubr.msk.bf16.mxu0 %vm2785_vm2, %v16132_v24  ;;  %v16134_v26 = vld [vmem:[%s21928_s0 + $0x6d8] sm:$0xff]   ;;  %v18863_v60 = vpop.f32.mrf.mxu1  ;;  %v22301_v24 = vld [vmem:[#allocation97_spill] sm:$0xff]  ;;  %15803 = vmatprep.mubr.msk.bf16.mxu1 %vm2785_vm2, %v16197_v50 }
 0x36b   :  { %v5347_v10 = vpop.f32.mrf.mxu0  ;;  %v4567_v33 = vadd.f32 %v18775_v48, %v22301_v24 }
 0x36c   :  { %22298 = vst [vmem:[#allocation95_spill] sm:$0xff] %v18849_v46  ;;  %v18857_v41 = vmax.f32 %v7275_v14, %v7471_v34  ;;  %v7476_v2 = vmax.f32 %v5356_v28, 0.0  ;;  %v5348_v12 = vadd.f32 %v18775_v48, %v5347_v10  ;;  %v16136_v34 = vld [vmem:[%s21928_s0 + $0x6e0] sm:$0xff]   ;;  %v22303_v28 = vld [vmem:[#allocation98_spill] sm:$0xff] }
 0x36d   :  { %v15446_v45 = vpop.f32.mrf.mxu0  ;;  %v4588_v10 = vadd.f32 %v18775_v48, %v22303_v28  ;;  %v7279_v0 = vmax.f32 %v4567_v33, 0.0 }
 0x36e   :  { %22300 = vst [vmem:[#allocation96_spill] sm:$0xff] %v18857_v41  ;;  %v18867_v40 = vmax.f32 %v7280_v51, %v7476_v2  ;;  %v7474_v46 = vmax.f32 %v5348_v12, 0.0  ;;  %v5359_v14 = vadd.f32 %v18775_v48, %v15446_v45  ;;  %v18878_v41 = vpop.f32.mrf.mxu1  ;;  %v16199_v2 = vld [vmem:[%s21928_s0 + $0xae8] sm:$0xff]   ;;  %v7281_v51 = vmax.f32 %v4575_v35, 0.0 }
 0x36f   :  { %v5350_v36 = vpop.f32.mrf.mxu0  ;;  %15804 = vmatmul.mubr.msk.bf16.gmra.mxu1 %vm2785_vm2, %v16199_v2 }
 0x370   :  { %22302 = vst [vmem:[#allocation97_spill] sm:$0xff] %v18867_v40  ;;  %v18883_v12 = vmax.f32 %v7278_v27, %v7474_v46  ;;  %v7477_v45 = vmax.f32 %v5359_v14, 0.0  ;;  %v5351_v24 = vadd.f32 %v18775_v48, %v5350_v36  ;;  %v22305_v40 = vld [vmem:[#allocation99_spill] sm:$0xff]  ;;  %v18890_v28 = vpop.f32.mrf.mxu1  ;;  %v7284_v27 = vmax.f32 %v4588_v10, 0.0 }
 0x371   :  { %v4580_v22 = vadd.f32 %v18775_v48, %v22305_v40  ;;  %v15449_v8 = vpop.f32.mrf.mxu0  ;;  %15544 = vmatmul.mubr.msk.bf16.gmra.mxu0 %vm2785_vm2, %v16134_v26  ;;  %v22307_v40 = vld [vmem:[#allocation100_spill] sm:$0xff] }
 0x372   :  { %22304 = vst [vmem:[#allocation98_spill] sm:$0xff] %v18883_v12  ;;  %v18893_v59 = vmax.f32 %v7281_v51, %v7477_v45  ;;  %v7475_v46 = vmax.f32 %v5351_v24, 0.0  ;;  %v5372_v35 = vadd.f32 %v18775_v48, %v15449_v8  ;;  %15547 = vmatprep.mubr.msk.bf16.mxu0 %vm2785_vm2, %v16136_v34  ;;  %v18897_v50 = vpop.f32.mrf.mxu1  ;;  %v4591_v36 = vadd.f32 %v18775_v48, %v22307_v40  ;;  %v16138_v8 = vld [vmem:[%s21928_s0 + $0x6e8] sm:$0xff]   ;;  %v22309_v45 = vld [vmem:[#allocation101_spill] sm:$0xff] }
 0x373   :  { %v5363_v14 = vpop.f32.mrf.mxu0  ;;  %v7282_v33 = vmax.f32 %v4580_v22, 0.0  ;;  %v4583_v34 = vadd.f32 %v18775_v48, %v22309_v45  ;;  %v22311_v22 = vld [vmem:[#allocation102_spill] sm:$0xff]  ;;  %v16201_v40 = vld [vmem:[%s21928_s0 + $0xaf0] sm:$0xff]  }
 0x374   :  { %22306 = vst [vmem:[#allocation99_spill] sm:$0xff] %v18893_v59  ;;  %v18901_v26 = vmax.f32 %v7279_v0, %v7475_v46  ;;  %v7480_v12 = vmax.f32 %v5372_v35, 0.0  ;;  %v5364_v2 = vadd.f32 %v18775_v48, %v5363_v14  ;;  %v16140_v0 = vld [vmem:[%s21928_s0 + $0x6f0] sm:$0xff]   ;;  %v18915_v46 = vpop.f32.mrf.mxu1  ;;  %v4604_v35 = vadd.f32 %v18775_v48, %v22311_v22  ;;  %15807 = vmatprep.mubr.msk.bf16.mxu1 %vm2785_vm2, %v16201_v40 }
 0x375   :  { %v15450_v51 = vpop.f32.mrf.mxu0  ;;  %v7285_v45 = vmax.f32 %v4591_v36, 0.0  ;;  %v7283_v36 = vmax.f32 %v4583_v34, 0.0 }
 0x376   :  { %22308 = vst [vmem:[#allocation100_spill] sm:$0xff] %v18901_v26  ;;  %v18909_v10 = vmax.f32 %v7284_v27, %v7480_v12  ;;  %v7478_v24 = vmax.f32 %v5364_v2, 0.0  ;;  %v5375_v59 = vadd.f32 %v18775_v48, %v15450_v51  ;;  %v18925_v51 = vpop.f32.mrf.mxu1  ;;  %v22313_v26 = vld [vmem:[#allocation103_spill] sm:$0xff] }
 0x377   :  { %v5366_v14 = vpop.f32.mrf.mxu0  ;;  %v4596_v22 = vadd.f32 %v18775_v48, %v22313_v26  ;;  %v22315_v26 = vld [vmem:[#allocation104_spill] sm:$0xff] }
 0x378   :  { %22310 = vst [vmem:[#allocation101_spill] sm:$0xff] %v18909_v10  ;;  %v18922_v12 = vmax.f32 %v7282_v33, %v7478_v24  ;;  %v7481_v27 = vmax.f32 %v5375_v59, 0.0  ;;  %v5367_v2 = vadd.f32 %v18775_v48, %v5366_v14  ;;  %v16203_v10 = vld [vmem:[%s21928_s0 + $0xaf8] sm:$0xff]   ;;  %v18938_v14 = vpop.f32.mrf.mxu1  ;;  %v4607_v16 = vadd.f32 %v18775_v48, %v22315_v26 }
 0x379   :  { %v15453_v39 = vpop.f32.mrf.mxu0  ;;  %15548 = vmatmul.mubr.msk.bf16.gmra.mxu0 %vm2785_vm2, %v16138_v8  ;;  %15808 = vmatmul.mubr.msk.bf16.gmra.mxu1 %vm2785_vm2, %v16203_v10 }
 0x37a   :  { %22312 = vst [vmem:[#allocation102_spill] sm:$0xff] %v18922_v12  ;;  %v18934_v33 = vmax.f32 %v7285_v45, %v7481_v27  ;;  %v7479_v59 = vmax.f32 %v5367_v2, 0.0  ;;  %v5388_v24 = vadd.f32 %v18775_v48, %v15453_v39  ;;  %15551 = vmatprep.mubr.msk.bf16.mxu0 %vm2785_vm2, %v16140_v0  ;;  %v7288_v12 = vmax.f32 %v4604_v35, 0.0  ;;  %v18946_v45 = vpop.f32.mrf.mxu1  ;;  %v16142_v0 = vld [vmem:[%s21928_s0 + $0x6f8] sm:$0xff]   ;;  %v22317_v2 = vld [vmem:[#allocation105_spill] sm:$0xff] }
 0x37b   :  { %v5379_v55 = vpop.f32.mrf.mxu0  ;;  %v7286_v27 = vmax.f32 %v4596_v22, 0.0  ;;  %v4599_v10 = vadd.f32 %v18775_v48, %v22317_v2  ;;  %v22319_v22 = vld [vmem:[#allocation106_spill] sm:$0xff]  ;;  %v7289_v2 = vmax.f32 %v4607_v16, 0.0 }
 0x37c   :  { %22314 = vst [vmem:[#allocation103_spill] sm:$0xff] %v18934_v33  ;;  %v18943_v8 = vmax.f32 %v7283_v36, %v7479_v59  ;;  %v7484_v40 = vmax.f32 %v5388_v24, 0.0  ;;  %v5380_v34 = vadd.f32 %v18775_v48, %v5379_v55  ;;  %v16144_v55 = vld [vmem:[%s21928_s0 + $0x700] sm:$0xff]   ;;  %v18959_v59 = vpop.f32.mrf.mxu1  ;;  %v4620_v24 = vadd.f32 %v18775_v48, %v22319_v22 }
 0x37d   :  { %v15454_v39 = vpop.f32.mrf.mxu0  ;;  %v4612_v22 = vadd.f32 %v18775_v48, %v22321_v53  ;;  %v7287_v16 = vmax.f32 %v4599_v10, 0.0  ;;  %v22323_v53 = vld [vmem:[#allocation108_spill] sm:$0xff] }
 0x37e   :  { %22316 = vst [vmem:[#allocation104_spill] sm:$0xff] %v18943_v8  ;;  %v18953_v35 = vmax.f32 %v7288_v12, %v7484_v40  ;;  %v7482_v33 = vmax.f32 %v5380_v34, 0.0  ;;  %v5391_v36 = vadd.f32 %v18775_v48, %v15454_v39  ;;  %v16205_v8 = vld [vmem:[%s21928_s0 + $0xb00] sm:$0xff]   ;;  %v18969_v39 = vpop.f32.mrf.mxu1  ;;  %v4623_v4 = vadd.f32 %v18775_v48, %v22323_v53 }
 0x37f   :  { %v5382_v26 = vpop.f32.mrf.mxu0  ;;  %15811 = vmatprep.mubr.msk.bf16.mxu1 %vm2785_vm2, %v16205_v8 }
 0x380   :  { %22318 = vst [vmem:[#allocation105_spill] sm:$0xff] %v18953_v35  ;;  %v18966_v12 = vmax.f32 %v7286_v27, %v7482_v33  ;;  %v7485_v40 = vmax.f32 %v5391_v36, 0.0  ;;  %v5383_v34 = vadd.f32 %v18775_v48, %v5382_v26  ;;  %v16207_v35 = vld [vmem:[%s21928_s0 + $0xb08] sm:$0xff]   ;;  %v18982_v26 = vpop.f32.mrf.mxu1 }
 0x381   :  { %v15457_v47 = vpop.f32.mrf.mxu0  ;;  %15552 = vmatmul.mubr.msk.bf16.gmra.mxu0 %vm2785_vm2, %v16142_v0  ;;  %15812 = vmatmul.mubr.msk.bf16.gmra.mxu1 %vm2785_vm2, %v16207_v35 }
 0x382   :  { %22320 = vst [vmem:[#allocation106_spill] sm:$0xff] %v18966_v12  ;;  %v18978_v33 = vmax.f32 %v7289_v2, %v7485_v40  ;;  %v7483_v27 = vmax.f32 %v5383_v34, 0.0  ;;  %v5404_v36 = vadd.f32 %v18775_v48, %v15457_v47  ;;  %15555 = vmatprep.mubr.msk.bf16.mxu0 %vm2785_vm2, %v16144_v55  ;;  %v7292_v12 = vmax.f32 %v4620_v24, 0.0  ;;  %v18990_v2 = vpop.f32.mrf.mxu1  ;;  %v16146_v55 = vld [vmem:[%s21928_s0 + $0x708] sm:$0xff]   ;;  %v22325_v34 = vld [vmem:[#allocation109_spill] sm:$0xff] }
 0x383   :  { %v5395_v49 = vpop.f32.mrf.mxu0  ;;  %v7290_v40 = vmax.f32 %v4612_v22, 0.0  ;;  %v4615_v35 = vadd.f32 %v18775_v48, %v22325_v34  ;;  %v22327_v22 = vld [vmem:[#allocation110_spill] sm:$0xff]  ;;  %v7293_v34 = vmax.f32 %v4623_v4, 0.0 }
 0x384   :  { %22322 = vst [vmem:[#allocation107_spill] sm:$0xff] %v18978_v33  ;;  %v18987_v0 = vmax.f32 %v7287_v16, %v7483_v27  ;;  %v7488_v8 = vmax.f32 %v5404_v36, 0.0  ;;  %v5396_v10 = vadd.f32 %v18775_v48, %v5395_v49  ;;  %v16148_v49 = vld [vmem:[%s21928_s0 + $0x710] sm:$0xff]   ;;  %v19003_v27 = vpop.f32.mrf.mxu1  ;;  %v4636_v36 = vadd.f32 %v18775_v48, %v22327_v22 }
 0x385   :  { %v15458_v47 = vpop.f32.mrf.mxu0  ;;  %v4628_v22 = vadd.f32 %v18775_v48, %v22329_v29  ;;  %v7291_v4 = vmax.f32 %v4615_v35, 0.0  ;;  %v22331_v35 = vld [vmem:[#allocation112_spill] sm:$0xff] }
 0x386   :  { %22324 = vst [vmem:[#allocation108_spill] sm:$0xff] %v18987_v0  ;;  %v18997_v24 = vmax.f32 %v7292_v12, %v7488_v8  ;;  %v7486_v33 = vmax.f32 %v5396_v10, 0.0  ;;  %v5407_v16 = vadd.f32 %v18775_v48, %v15458_v47  ;;  %v16212_v0 = vld [vmem:[%s21928_s0 + $0xb10] sm:$0xff]   ;;  %v19013_v47 = vpop.f32.mrf.mxu1  ;;  %v7296_v29 = vmax.f32 %v4636_v36, 0.0 }
 0x387   :  { %v5398_v53 = vpop.f32.mrf.mxu0  ;;  %15815 = vmatprep.mubr.msk.bf16.mxu1 %vm2785_vm2, %v16212_v0  ;;  %v16150_v0 = vld [vmem:[%s21928_s0 + $0x718] sm:$0xff]  }
 0x388   :  { %22326 = vst [vmem:[#allocation109_spill] sm:$0xff] %v18997_v24  ;;  %v19010_v12 = vmax.f32 %v7290_v40, %v7486_v33  ;;  %v7489_v8 = vmax.f32 %v5407_v16, 0.0  ;;  %v5399_v10 = vadd.f32 %v18775_v48, %v5398_v53  ;;  %v16214_v24 = vld [vmem:[%s21928_s0 + $0xb18] sm:$0xff]  }
 0x389   :  { %v15461_v21 = vpop.f32.mrf.mxu0  ;;  %15556 = vmatmul.mubr.msk.bf16.gmra.mxu0 %vm2785_vm2, %v16146_v55  ;;  %v16208_v53 = vld [vmem:[%s21930_s3 + $0x30] ss:$8 sps:$4 sm:$0xff]   ;;  %15816 = vmatmul.mubr.msk.bf16.gmra.mxu1 %vm2785_vm2, %v16214_v24  ;;  %v16152_v24 = vld [vmem:[%s21928_s0 + $0x720] sm:$0xff]  }
 0x38a   :  { %22328 = vst [vmem:[#allocation110_spill] sm:$0xff] %v19010_v12  ;;  %v19022_v33 = vmax.f32 %v7293_v34, %v7489_v8  ;;  %v7487_v40 = vmax.f32 %v5399_v10, 0.0  ;;  %v5420_v16 = vadd.f32 %v18775_v48, %v15461_v21  ;;  %15559 = vmatprep.mubr.msk.bf16.mxu0 %vm2785_vm2, %v16148_v49  ;;  %v19029_v12 = vpop.f32.mrf.mxu1  ;;  %v16210_v21 = vld [vmem:[%s21930_s3 + $0x34] ss:$8 sps:$4 sm:$0xff]   ;;  %v4639_v49 = vadd.f32 %v18775_v48, %v22331_v35 }
 0x38b   :  { %v5411_v55 = vpop.f32.mrf.mxu0  ;;  %8562 = vmatprep.subr.bf16.mxu1 %v16210_v21 }
 0x38c   :  { %22330 = vst [vmem:[#allocation111_spill] sm:$0xff] %v19022_v33  ;;  %v19040_v34 = vmax.f32 %v7291_v4, %v7487_v40  ;;  %v7492_v8 = vmax.f32 %v5420_v16, 0.0  ;;  %v5412_v10 = vadd.f32 %v18775_v48, %v5411_v55  ;;  %v19046_v36 = vpop.f32.mrf.mxu1  ;;  %v7294_v33 = vmax.f32 %v4628_v22, 0.0  ;;  %8563 = vmatpush1.bf16.msra.mxu1 %v16208_v53  ;;  %v22335_v16 = vld [vmem:[#allocation114_spill] sm:$0xff]  ;;  %v16216_v22 = vld [vmem:[%s21928_s0 + $0xb20] sm:$0xff]  }
 0x38d   :  { %v15462_v43 = vpop.f32.mrf.mxu0  ;;  %v4652_v55 = vadd.f32 %v18775_v48, %v22335_v16  ;;  %v7297_v21 = vmax.f32 %v4639_v49, 0.0  ;;  %v22337_v53 = vld [vmem:[#allocation115_spill] sm:$0xff]  ;;  %15819 = vmatprep.mubr.msk.bf16.mxu1 %vm2785_vm2, %v16216_v22  ;;  %v7295_v49 = vmax.f32 %v4631_v23, 0.0 }
 0x38e   :  { %22332 = vst [vmem:[#allocation112_spill] sm:$0xff] %v19040_v34  ;;  %v19050_v15 = vmax.f32 %v7296_v29, %v7492_v8  ;;  %v7490_v35 = vmax.f32 %v5412_v10, 0.0  ;;  %v5423_v4 = vadd.f32 %v18775_v48, %v15462_v43  ;;  %v19053_v40 = vpop.f32.mrf.mxu1  ;;  %v16218_v43 = vld [vmem:[%s21928_s0 + $0xb28] sm:$0xff]   ;;  %v4644_v10 = vadd.f32 %v18775_v48, %v22337_v53 }
 0x38f   :  { %v5414_v34 = vpop.f32.mrf.mxu0  ;;  %v22339_v53 = vld [vmem:[#allocation116_spill] sm:$0xff] }
 0x390   :  { %22334 = vst [vmem:[#allocation113_spill] sm:$0xff] %v19050_v15  ;;  %v19060_v37 = vmax.f32 %v7294_v33, %v7490_v35  ;;  %v7493_v62 = vmax.f32 %v5423_v4, 0.0  ;;  %v5415_v29 = vadd.f32 %v18775_v48, %v5414_v34  ;;  %v19063_v8 = vpop.f32.mrf.mxu1  ;;  %v4655_v23 = vadd.f32 %v18775_v48, %v22339_v53 }
 0x391   :  { %v15465_v16 = vpop.f32.mrf.mxu0  ;;  %15560 = vmatmul.mubr.msk.bf16.gmra.mxu0 %vm2785_vm2, %v16150_v0  ;;  %15820 = vmatmul.mubr.msk.bf16.gmra.mxu1 %vm2785_vm2, %v16218_v43  ;;  %v16154_v0 = vld [vmem:[%s21928_s0 + $0x728] sm:$0xff]  }
 0x392   :  { %22336 = vst [vmem:[#allocation114_spill] sm:$0xff] %v19060_v37  ;;  %v19072_v33 = vmax.f32 %v7297_v21, %v7493_v62  ;;  %v7491_v35 = vmax.f32 %v5415_v29, 0.0  ;;  %v5436_v34 = vadd.f32 %v18775_v48, %v15465_v16  ;;  %15563 = vmatprep.mubr.msk.bf16.mxu0 %vm2785_vm2, %v16152_v24  ;;  %v19076_v4 = vpop.f32.mrf.mxu1  ;;  %v7300_v37 = vmax.f32 %v4652_v55, 0.0  ;;  %v16156_v24 = vld [vmem:[%s21928_s0 + $0x730] sm:$0xff]  }
 0x393   :  { %v5427_v15 = vpop.f32.mrf.mxu0  ;;  %v7298_v55 = vmax.f32 %v4644_v10, 0.0  ;;  %v22341_v16 = vld [vmem:[#allocation117_spill] sm:$0xff]  ;;  %v7301_v10 = vmax.f32 %v4655_v23, 0.0 }
 0x394   :  { %22338 = vst [vmem:[#allocation115_spill] sm:$0xff] %v19072_v33  ;;  %v19084_v22 = vmax.f32 %v7295_v49, %v7491_v35  ;;  %v7496_v21 = vmax.f32 %v5436_v34, 0.0  ;;  %v5428_v62 = vadd.f32 %v18775_v48, %v5427_v15  ;;  %v19090_v29 = vpop.f32.mrf.mxu1  ;;  %v4647_v33 = vadd.f32 %v18775_v48, %v22341_v16  ;;  %v22343_v34 = vld [vmem:[#allocation118_spill] sm:$0xff] }
 0x395   :  { %v15466_v43 = vpop.f32.mrf.mxu0  ;;  %v4668_v15 = vadd.f32 %v18775_v48, %v22343_v34 }
 0x396   :  { %22340 = vst [vmem:[#allocation116_spill] sm:$0xff] %v19084_v22  ;;  %v19094_v61 = vmax.f32 %v7300_v37, %v7496_v21  ;;  %v7494_v17 = vmax.f32 %v5428_v62, 0.0  ;;  %v5439_v49 = vadd.f32 %v18775_v48, %v15466_v43  ;;  %v19097_v35 = vpop.f32.mrf.mxu1  ;;  %v16220_v22 = vld [vmem:[%s21928_s0 + $0xb30] sm:$0xff]   ;;  %v16222_v62 = vld [vmem:[%s21928_s0 + $0xb38] sm:$0xff]   ;;  %v22346_v43 = vld [vmem:[#allocation119_spill] sm:$0xff]  ;;  %v7299_v23 = vmax.f32 %v4647_v33, 0.0 }
 0x397   :  { %v5430_v53 = vpop.f32.mrf.mxu0  ;;  %v4660_v16 = vadd.f32 %v18775_v48, %v22346_v43  ;;  %15823 = vmatprep.mubr.msk.bf16.mxu1 %vm2785_vm2, %v16220_v22  ;;  %v22349_v43 = vld [vmem:[#allocation120_spill] sm:$0xff] }
 0x398   :  { %22342 = vst [vmem:[#allocation117_spill] sm:$0xff] %v19094_v61  ;;  %v19104_v9 = vmax.f32 %v7298_v55, %v7494_v17  ;;  %v7497_v31 = vmax.f32 %v5439_v49, 0.0  ;;  %v5431_v37 = vadd.f32 %v18775_v48, %v5430_v53  ;;  %v19107_v21 = vpop.f32.mrf.mxu1  ;;  %v4671_v33 = vadd.f32 %v18775_v48, %v22349_v43 }
 0x399   :  { %22345 = vst [vmem:[#allocation176_spill] sm:$0xff] %v19107_v21  ;;  %v15469_v34 = vpop.f32.mrf.mxu0  ;;  %15564 = vmatmul.mubr.msk.bf16.gmra.mxu0 %vm2785_vm2, %v16154_v0  ;;  %15824 = vmatmul.mubr.msk.bf16.gmra.mxu1 %vm2785_vm2, %v16222_v62  ;;  %v16158_v0 = vld [vmem:[%s21928_s0 + $0x738] sm:$0xff]  }
 0x39a   :  { %22344 = vst [vmem:[#allocation118_spill] sm:$0xff] %v19104_v9  ;;  %v19116_v17 = vmax.f32 %v7301_v10, %v7497_v31  ;;  %v7495_v55 = vmax.f32 %v5431_v37, 0.0  ;;  %v5452_v49 = vadd.f32 %v18775_v48, %v15469_v34  ;;  %15567 = vmatprep.mubr.msk.bf16.mxu0 %vm2785_vm2, %v16156_v24  ;;  %v19120_v53 = vpop.f32.mrf.mxu1  ;;  %v7304_v9 = vmax.f32 %v4668_v15, 0.0  ;;  %v16160_v24 = vld [vmem:[%s21928_s0 + $0x740] sm:$0xff]   ;;  %v22352_v34 = vld [vmem:[#allocation121_spill] sm:$0xff] }
 0x39b   :  { %22348 = vst [vmem:[#allocation177_spill] sm:$0xff] %v19120_v53  ;;  %v5443_v61 = vpop.f32.mrf.mxu0  ;;  %v7302_v15 = vmax.f32 %v4660_v16, 0.0  ;;  %v7305_v16 = vmax.f32 %v4671_v33, 0.0 }
 0x39c   :  { %22347 = vst [vmem:[#allocation119_spill] sm:$0xff] %v19116_v17  ;;  %v19128_v31 = vmax.f32 %v7299_v23, %v7495_v55  ;;  %v7500_v22 = vmax.f32 %v5452_v49, 0.0  ;;  %v5444_v10 = vadd.f32 %v18775_v48, %v5443_v61  ;;  %v19134_v37 = vpop.f32.mrf.mxu1  ;;  %v4663_v17 = vadd.f32 %v18775_v48, %v22352_v34  ;;  %v22355_v49 = vld [vmem:[#allocation122_spill] sm:$0xff] }
 0x39d   :  { %22351 = vst [vmem:[#allocation178_spill] sm:$0xff] %v19134_v37  ;;  %v15470_v62 = vpop.f32.mrf.mxu0  ;;  %v4684_v61 = vadd.f32 %v18775_v48, %v22355_v49 }
 0x39e   :  { %22350 = vst [vmem:[#allocation120_spill] sm:$0xff] %v19128_v31  ;;  %v19138_v20 = vmax.f32 %v7304_v9, %v7500_v22  ;;  %v7498_v53 = vmax.f32 %v5444_v10, 0.0  ;;  %v5455_v23 = vadd.f32 %v18775_v48, %v15470_v62  ;;  %v19141_v55 = vpop.f32.mrf.mxu1  ;;  %v16224_v31 = vld [vmem:[%s21928_s0 + $0xb40] sm:$0xff]   ;;  %v16226_v10 = vld [vmem:[%s21928_s0 + $0xb48] sm:$0xff]   ;;  %v7303_v33 = vmax.f32 %v4663_v17, 0.0 }
 0x39f   :  { %22354 = vst [vmem:[#allocation179_spill] sm:$0xff] %v19141_v55  ;;  %v5446_v43 = vpop.f32.mrf.mxu0  ;;  %v22358_v62 = vld [vmem:[#allocation123_spill] sm:$0xff]  ;;  %15827 = vmatprep.mubr.msk.bf16.mxu1 %vm2785_vm2, %v16224_v31 }
 0x3a0   :  { %22353 = vst [vmem:[#allocation121_spill] sm:$0xff] %v19138_v20  ;;  %v19148_v37 = vmax.f32 %v7302_v15, %v7498_v53  ;;  %v7501_v21 = vmax.f32 %v5455_v23, 0.0  ;;  %v5447_v9 = vadd.f32 %v18775_v48, %v5446_v43  ;;  %v19151_v22 = vpop.f32.mrf.mxu1  ;;  %v4676_v34 = vadd.f32 %v18775_v48, %v22358_v62  ;;  %v22361_v62 = vld [vmem:[#allocation124_spill] sm:$0xff] }
 0x3a1   :  { %22357 = vst [vmem:[#allocation180_spill] sm:$0xff] %v19151_v22  ;;  %v15473_v49 = vpop.f32.mrf.mxu0  ;;  %15568 = vmatmul.mubr.msk.bf16.gmra.mxu0 %vm2785_vm2, %v16158_v0  ;;  %15828 = vmatmul.mubr.msk.bf16.gmra.mxu1 %vm2785_vm2, %v16226_v10  ;;  %v16162_v0 = vld [vmem:[%s21928_s0 + $0x748] sm:$0xff]   ;;  %v4687_v17 = vadd.f32 %v18775_v48, %v22361_v62 }
 0x3a2   :  { %22356 = vst [vmem:[#allocation122_spill] sm:$0xff] %v19148_v37  ;;  %v19160_v53 = vmax.f32 %v7305_v16, %v7501_v21  ;;  %v7499_v15 = vmax.f32 %v5447_v9, 0.0  ;;  %v5468_v23 = vadd.f32 %v18775_v48, %v15473_v49  ;;  %15571 = vmatprep.mubr.msk.bf16.mxu0 %vm2785_vm2, %v16160_v24  ;;  %v19164_v43 = vpop.f32.mrf.mxu1  ;;  %v7308_v37 = vmax.f32 %v4684_v61, 0.0  ;;  %v16164_v24 = vld [vmem:[%s21928_s0 + $0x750] sm:$0xff]  }
 0x3a3   :  { %22360 = vst [vmem:[#allocation181_spill] sm:$0xff] %v19164_v43  ;;  %v5459_v20 = vpop.f32.mrf.mxu0  ;;  %v7306_v61 = vmax.f32 %v4676_v34, 0.0  ;;  %v22364_v49 = vld [vmem:[#allocation125_spill] sm:$0xff]  ;;  %v7309_v34 = vmax.f32 %v4687_v17, 0.0 }
 0x3a4   :  { %22359 = vst [vmem:[#allocation123_spill] sm:$0xff] %v19160_v53  ;;  %v19172_v21 = vmax.f32 %v7303_v33, %v7499_v15  ;;  %v7504_v31 = vmax.f32 %v5468_v23, 0.0  ;;  %v5460_v16 = vadd.f32 %v18775_v48, %v5459_v20  ;;  %v19178_v9 = vpop.f32.mrf.mxu1  ;;  %v4679_v53 = vadd.f32 %v18775_v48, %v22364_v49  ;;  %v22367_v23 = vld [vmem:[#allocation126_spill] sm:$0xff] }
 0x3a5   :  { %22363 = vst [vmem:[#allocation182_spill] sm:$0xff] %v19178_v9  ;;  %v15474_v10 = vpop.f32.mrf.mxu0  ;;  %v4700_v20 = vadd.f32 %v18775_v48, %v22367_v23 }
 0x3a6   :  { %22362 = vst [vmem:[#allocation124_spill] sm:$0xff] %v19172_v21  ;;  %v19182_v43 = vmax.f32 %v7308_v37, %v7504_v31  ;;  %v7502_v22 = vmax.f32 %v5460_v16, 0.0  ;;  %v5471_v33 = vadd.f32 %v18775_v48, %v15474_v10  ;;  %v19185_v15 = vpop.f32.mrf.mxu1  ;;  %v16228_v21 = vld [vmem:[%s21928_s0 + $0xb50] sm:$0xff]   ;;  %v16230_v16 = vld [vmem:[%s21928_s0 + $0xb58] sm:$0xff]   ;;  %v22370_v10 = vld [vmem:[#allocation127_spill] sm:$0xff]  ;;  %v7307_v17 = vmax.f32 %v4679_v53, 0.0 }
 0x3a7   :  { %22366 = vst [vmem:[#allocation183_spill] sm:$0xff] %v19185_v15  ;;  %v5462_v62 = vpop.f32.mrf.mxu0  ;;  %v4692_v49 = vadd.f32 %v18775_v48, %v22370_v10  ;;  %15831 = vmatprep.mubr.msk.bf16.mxu1 %vm2785_vm2, %v16228_v21  ;;  %v22373_v10 = vld [vmem:[#allocation128_spill] sm:$0xff] }
 0x3a8   :  { %22365 = vst [vmem:[#allocation125_spill] sm:$0xff] %v19182_v43  ;;  %v19192_v9 = vmax.f32 %v7306_v61, %v7502_v22  ;;  %v7505_v55 = vmax.f32 %v5471_v33, 0.0  ;;  %v5463_v37 = vadd.f32 %v18775_v48, %v5462_v62  ;;  %v19195_v31 = vpop.f32.mrf.mxu1  ;;  %v4703_v53 = vadd.f32 %v18775_v48, %v22373_v10 }
 0x3a9   :  { %22369 = vst [vmem:[#allocation184_spill] sm:$0xff] %v19195_v31  ;;  %v15477_v23 = vpop.f32.mrf.mxu0  ;;  %15572 = vmatmul.mubr.msk.bf16.gmra.mxu0 %vm2785_vm2, %v16162_v0  ;;  %15832 = vmatmul.mubr.msk.bf16.gmra.mxu1 %vm2785_vm2, %v16230_v16  ;;  %v16166_v0 = vld [vmem:[%s21928_s0 + $0x758] sm:$0xff]  }
 0x3aa   :  { %22368 = vst [vmem:[#allocation126_spill] sm:$0xff] %v19192_v9  ;;  %v19204_v22 = vmax.f32 %v7309_v34, %v7505_v55  ;;  %v7503_v61 = vmax.f32 %v5463_v37, 0.0  ;;  %v5484_v33 = vadd.f32 %v18775_v48, %v15477_v23  ;;  %15575 = vmatprep.mubr.msk.bf16.mxu0 %vm2785_vm2, %v16164_v24  ;;  %v19208_v62 = vpop.f32.mrf.mxu1  ;;  %v7312_v9 = vmax.f32 %v4700_v20, 0.0  ;;  %v16168_v24 = vld [vmem:[%s21928_s0 + $0x760] sm:$0xff]   ;;  %v22376_v23 = vld [vmem:[#allocation129_spill] sm:$0xff] }
 0x3ab   :  { %22372 = vst [vmem:[#allocation185_spill] sm:$0xff] %v19208_v62  ;;  %v5475_v43 = vpop.f32.mrf.mxu0  ;;  %v7310_v20 = vmax.f32 %v4692_v49, 0.0  ;;  %v7313_v49 = vmax.f32 %v4703_v53, 0.0 }
 0x3ac   :  { %22371 = vst [vmem:[#allocation127_spill] sm:$0xff] %v19204_v22  ;;  %v19216_v55 = vmax.f32 %v7307_v17, %v7503_v61  ;;  %v7508_v21 = vmax.f32 %v5484_v33, 0.0  ;;  %v5476_v34 = vadd.f32 %v18775_v48, %v5475_v43  ;;  %v19222_v37 = vpop.f32.mrf.mxu1  ;;  %v4695_v22 = vadd.f32 %v18775_v48, %v22376_v23  ;;  %v22379_v33 = vld [vmem:[#allocation130_spill] sm:$0xff] }
 0x3ad   :  { %22375 = vst [vmem:[#allocation186_spill] sm:$0xff] %v19222_v37  ;;  %v15478_v16 = vpop.f32.mrf.mxu0  ;;  %v4716_v43 = vadd.f32 %v18775_v48, %v22379_v33 }
 0x3ae   :  { %22374 = vst [vmem:[#allocation128_spill] sm:$0xff] %v19216_v55  ;;  %v19226_v62 = vmax.f32 %v7312_v9, %v7508_v21  ;;  %v7506_v31 = vmax.f32 %v5476_v34, 0.0  ;;  %v5487_v17 = vadd.f32 %v18775_v48, %v15478_v16  ;;  %v19229_v61 = vpop.f32.mrf.mxu1  ;;  %v16232_v55 = vld [vmem:[%s21928_s0 + $0xb60] sm:$0xff]   ;;  %v16234_v34 = vld [vmem:[%s21928_s0 + $0xb68] sm:$0xff]   ;;  %v7311_v53 = vmax.f32 %v4695_v22, 0.0 }
 0x3af   :  { %22378 = vst [vmem:[#allocation187_spill] sm:$0xff] %v19229_v61  ;;  %v5478_v10 = vpop.f32.mrf.mxu0  ;;  %v22382_v16 = vld [vmem:[#allocation131_spill] sm:$0xff]  ;;  %15835 = vmatprep.mubr.msk.bf16.mxu1 %vm2785_vm2, %v16232_v55 }
 0x3b0   :  { %22377 = vst [vmem:[#allocation129_spill] sm:$0xff] %v19226_v62  ;;  %v19236_v37 = vmax.f32 %v7310_v20, %v7506_v31  ;;  %v7509_v15 = vmax.f32 %v5487_v17, 0.0  ;;  %v5479_v9 = vadd.f32 %v18775_v48, %v5478_v10  ;;  %v19239_v21 = vpop.f32.mrf.mxu1  ;;  %v4708_v23 = vadd.f32 %v18775_v48, %v22382_v16  ;;  %v22385_v16 = vld [vmem:[#allocation132_spill] sm:$0xff] }
 0x3b1   :  { %22381 = vst [vmem:[#allocation188_spill] sm:$0xff] %v19239_v21  ;;  %v15481_v33 = vpop.f32.mrf.mxu0  ;;  %15576 = vmatmul.mubr.msk.bf16.gmra.mxu0 %vm2785_vm2, %v16166_v0  ;;  %15836 = vmatmul.mubr.msk.bf16.gmra.mxu1 %vm2785_vm2, %v16234_v34  ;;  %v16170_v0 = vld [vmem:[%s21928_s0 + $0x768] sm:$0xff]   ;;  %v4719_v22 = vadd.f32 %v18775_v48, %v22385_v16  ;;  %v22391_v16 = vld [vmem:[#allocation134_spill] sm:$0xff] }
 0x3b2   :  { %22380 = vst [vmem:[#allocation130_spill] sm:$0xff] %v19236_v37  ;;  %v19248_v31 = vmax.f32 %v7313_v49, %v7509_v15  ;;  %v7507_v20 = vmax.f32 %v5479_v9, 0.0  ;;  %v5500_v17 = vadd.f32 %v18775_v48, %v15481_v33  ;;  %15579 = vmatprep.mubr.msk.bf16.mxu0 %vm2785_vm2, %v16168_v24  ;;  %v19252_v10 = vpop.f32.mrf.mxu1  ;;  %v7316_v37 = vmax.f32 %v4716_v43, 0.0  ;;  %v16172_v24 = vld [vmem:[%s21928_s0 + $0x770] sm:$0xff]   ;;  %v19271_v33 = vld [vmem:[%s21929_s2] ss:$0 sm:$0xff] }
 0x3b3   :  { %22384 = vst [vmem:[#allocation189_spill] sm:$0xff] %v19252_v10  ;;  %v5491_v62 = vpop.f32.mrf.mxu0  ;;  %v7314_v43 = vmax.f32 %v4708_v23, 0.0  ;;  %v7317_v10 = vmax.f32 %v4719_v22, 0.0 }
 0x3b4   :  { %22383 = vst [vmem:[#allocation131_spill] sm:$0xff] %v19248_v31  ;;  %v19260_v15 = vmax.f32 %v7311_v53, %v7507_v20  ;;  %v7512_v55 = vmax.f32 %v5500_v17, 0.0  ;;  %v5492_v49 = vadd.f32 %v18775_v48, %v5491_v62  ;;  %v19266_v9 = vpop.f32.mrf.mxu1  ;;  %v22388_v31 = vld [vmem:[#allocation133_spill] sm:$0xff] }
 0x3b5   :  { %22387 = vst [vmem:[#allocation190_spill] sm:$0xff] %v19266_v9  ;;  %v15482_v34 = vpop.f32.mrf.mxu0  ;;  %v4711_v53 = vadd.f32 %v19271_v33, %v22388_v31  ;;  %v16236_v9 = vld [vmem:[%s21928_s0 + $0xb70] sm:$0xff]  }
 0x3b6   :  { %22386 = vst [vmem:[#allocation132_spill] sm:$0xff] %v19260_v15  ;;  %v19275_v20 = vmax.f32 %v7316_v37, %v7512_v55  ;;  %v7510_v17 = vmax.f32 %v5492_v49, 0.0  ;;  %v5503_v48 = vadd.f32 %v19271_v33, %v15482_v34  ;;  %v19278_v62 = vpop.f32.mrf.mxu1  ;;  %v4732_v15 = vadd.f32 %v19271_v33, %v22391_v16  ;;  %v16238_v55 = vld [vmem:[%s21928_s0 + $0xb78] sm:$0xff]   ;;  %v22394_v49 = vld [vmem:[#allocation135_spill] sm:$0xff]  ;;  %15839 = vmatprep.mubr.msk.bf16.mxu1 %vm2785_vm2, %v16236_v9 }
 0x3b7   :  { %22390 = vst [vmem:[#allocation191_spill] sm:$0xff] %v19278_v62  ;;  %v5494_v23 = vpop.f32.mrf.mxu0  ;;  %v4724_v34 = vadd.f32 %v19271_v33, %v22394_v49  ;;  %v7315_v22 = vmax.f32 %v4711_v53, 0.0  ;;  %v22397_v49 = vld [vmem:[#allocation136_spill] sm:$0xff] }
 0x3b8   :  { %22389 = vst [vmem:[#allocation133_spill] sm:$0xff] %v19275_v20  ;;  %v19285_v21 = vmax.f32 %v7314_v43, %v7510_v17  ;;  %v7513_v61 = vmax.f32 %v5503_v48, 0.0  ;;  %v5495_v37 = vadd.f32 %v19271_v33, %v5494_v23  ;;  %v19288_v31 = vpop.f32.mrf.mxu1  ;;  %v4735_v9 = vadd.f32 %v19271_v33, %v22397_v49 }
 0x3b9   :  { %22393 = vst [vmem:[#allocation192_spill] sm:$0xff] %v19288_v31  ;;  %v15485_v16 = vpop.f32.mrf.mxu0  ;;  %15580 = vmatmul.mubr.msk.bf16.gmra.mxu0 %vm2785_vm2, %v16170_v0  ;;  %15840 = vmatmul.mubr.msk.bf16.gmra.mxu1 %vm2785_vm2, %v16238_v55  ;;  %v16174_v0 = vld [vmem:[%s21928_s0 + $0x778] sm:$0xff]  }
 0x3ba   :  { %22392 = vst [vmem:[#allocation134_spill] sm:$0xff] %v19285_v21  ;;  %v19297_v43 = vmax.f32 %v7317_v10, %v7513_v61  ;;  %v7511_v17 = vmax.f32 %v5495_v37, 0.0  ;;  %v5516_v48 = vadd.f32 %v19271_v33, %v15485_v16  ;;  %15583 = vmatprep.mubr.msk.bf16.mxu0 %vm2785_vm2, %v16172_v24  ;;  %v19301_v23 = vpop.f32.mrf.mxu1  ;;  %v7320_v21 = vmax.f32 %v4732_v15, 0.0  ;;  %v16176_v24 = vld [vmem:[%s21928_s0 + $0x780] sm:$0xff]   ;;  %v22400_v16 = vld [vmem:[#allocation137_spill] sm:$0xff] }
 0x3bb   :  { %22396 = vst [vmem:[#allocation193_spill] sm:$0xff] %v19301_v23  ;;  %v5507_v20 = vpop.f32.mrf.mxu0  ;;  %v7318_v15 = vmax.f32 %v4724_v34, 0.0  ;;  %v7321_v34 = vmax.f32 %v4735_v9, 0.0 }
 0x3bc   :  { %22395 = vst [vmem:[#allocation135_spill] sm:$0xff] %v19297_v43  ;;  %v19309_v61 = vmax.f32 %v7315_v22, %v7511_v17  ;;  %v7516_v10 = vmax.f32 %v5516_v48, 0.0  ;;  %v5508_v53 = vadd.f32 %v19271_v33, %v5507_v20  ;;  %v19315_v37 = vpop.f32.mrf.mxu1  ;;  %v4727_v43 = vadd.f32 %v19271_v33, %v22400_v16  ;;  %v22403_v48 = vld [vmem:[#allocation138_spill] sm:$0xff] }
 0x3bd   :  { %22399 = vst [vmem:[#allocation194_spill] sm:$0xff] %v19315_v37  ;;  %v15486_v55 = vpop.f32.mrf.mxu0  ;;  %v4748_v20 = vadd.f32 %v19271_v33, %v22403_v48 }
 0x3be   :  { %22398 = vst [vmem:[#allocation136_spill] sm:$0xff] %v19309_v61  ;;  %v19319_v23 = vmax.f32 %v7320_v21, %v7516_v10  ;;  %v7514_v31 = vmax.f32 %v5508_v53, 0.0  ;;  %v5519_v22 = vadd.f32 %v19271_v33, %v15486_v55  ;;  %v19322_v17 = vpop.f32.mrf.mxu1  ;;  %v16240_v61 = vld [vmem:[%s21928_s0 + $0xb80] sm:$0xff]   ;;  %v16242_v53 = vld [vmem:[%s21928_s0 + $0xb88] sm:$0xff]   ;;  %v7319_v9 = vmax.f32 %v4727_v43, 0.0 }
 0x3bf   :  { %22402 = vst [vmem:[#allocation195_spill] sm:$0xff] %v19322_v17  ;;  %v5510_v49 = vpop.f32.mrf.mxu0  ;;  %v22406_v55 = vld [vmem:[#allocation139_spill] sm:$0xff]  ;;  %15843 = vmatprep.mubr.msk.bf16.mxu1 %vm2785_vm2, %v16240_v61 }
 0x3c0   :  { %22401 = vst [vmem:[#allocation137_spill] sm:$0xff] %v19319_v23  ;;  %v19329_v37 = vmax.f32 %v7318_v15, %v7514_v31  ;;  %v7517_v62 = vmax.f32 %v5519_v22, 0.0  ;;  %v5511_v21 = vadd.f32 %v19271_v33, %v5510_v49  ;;  %v19332_v10 = vpop.f32.mrf.mxu1  ;;  %v4740_v16 = vadd.f32 %v19271_v33, %v22406_v55  ;;  %v22409_v55 = vld [vmem:[#allocation140_spill] sm:$0xff] }
 0x3c1   :  { %22405 = vst [vmem:[#allocation196_spill] sm:$0xff] %v19332_v10  ;;  %v15489_v48 = vpop.f32.mrf.mxu0  ;;  %15584 = vmatmul.mubr.msk.bf16.gmra.mxu0 %vm2785_vm2, %v16174_v0  ;;  %15844 = vmatmul.mubr.msk.bf16.gmra.mxu1 %vm2785_vm2, %v16242_v53  ;;  %v16178_v0 = vld [vmem:[%s21928_s0 + $0x788] sm:$0xff]   ;;  %v4751_v43 = vadd.f32 %v19271_v33, %v22409_v55 }
 0x3c2   :  { %22404 = vst [vmem:[#allocation138_spill] sm:$0xff] %v19329_v37  ;;  %v19341_v31 = vmax.f32 %v7321_v34, %v7517_v62  ;;  %v7515_v15 = vmax.f32 %v5511_v21, 0.0  ;;  %v5532_v22 = vadd.f32 %v19271_v33, %v15489_v48  ;;  %15587 = vmatprep.mubr.msk.bf16.mxu0 %vm2785_vm2, %v16176_v24  ;;  %v19345_v49 = vpop.f32.mrf.mxu1  ;;  %v7324_v37 = vmax.f32 %v4748_v20, 0.0  ;;  %v16180_v24 = vld [vmem:[%s21928_s0 + $0x790] sm:$0xff]  }
 0x3c3   :  { %22408 = vst [vmem:[#allocation197_spill] sm:$0xff] %v19345_v49  ;;  %v5523_v23 = vpop.f32.mrf.mxu0  ;;  %v7322_v20 = vmax.f32 %v4740_v16, 0.0  ;;  %v22412_v48 = vld [vmem:[#allocation141_spill] sm:$0xff]  ;;  %v7325_v16 = vmax.f32 %v4751_v43, 0.0 }
 0x3c4   :  { %22407 = vst [vmem:[#allocation139_spill] sm:$0xff] %v19341_v31  ;;  %v19353_v62 = vmax.f32 %v7319_v9, %v7515_v15  ;;  %v7520_v61 = vmax.f32 %v5532_v22, 0.0  ;;  %v5524_v34 = vadd.f32 %v19271_v33, %v5523_v23  ;;  %v19359_v21 = vpop.f32.mrf.mxu1  ;;  %v4743_v31 = vadd.f32 %v19271_v33, %v22412_v48  ;;  %v22415_v22 = vld [vmem:[#allocation142_spill] sm:$0xff] }
 0x3c5   :  { %22411 = vst [vmem:[#allocation198_spill] sm:$0xff] %v19359_v21  ;;  %v15490_v53 = vpop.f32.mrf.mxu0  ;;  %v4764_v23 = vadd.f32 %v19271_v33, %v22415_v22 }
 0x3c6   :  { %22410 = vst [vmem:[#allocation140_spill] sm:$0xff] %v19353_v62  ;;  %v19363_v49 = vmax.f32 %v7324_v37, %v7520_v61  ;;  %v7518_v10 = vmax.f32 %v5524_v34, 0.0  ;;  %v5535_v9 = vadd.f32 %v19271_v33, %v15490_v53  ;;  %v19366_v15 = vpop.f32.mrf.mxu1  ;;  %v16244_v62 = vld [vmem:[%s21928_s0 + $0xb90] sm:$0xff]   ;;  %v16246_v34 = vld [vmem:[%s21928_s0 + $0xb98] sm:$0xff]   ;;  %v22418_v53 = vld [vmem:[#allocation143_spill] sm:$0xff]  ;;  %v7323_v43 = vmax.f32 %v4743_v31, 0.0 }
 0x3c7   :  { %22414 = vst [vmem:[#allocation199_spill] sm:$0xff] %v19366_v15  ;;  %v5526_v55 = vpop.f32.mrf.mxu0  ;;  %v4756_v48 = vadd.f32 %v19271_v33, %v22418_v53  ;;  %15847 = vmatprep.mubr.msk.bf16.mxu1 %vm2785_vm2, %v16244_v62  ;;  %v22421_v53 = vld [vmem:[#allocation144_spill] sm:$0xff] }
 0x3c8   :  { %22413 = vst [vmem:[#allocation141_spill] sm:$0xff] %v19363_v49  ;;  %v19373_v21 = vmax.f32 %v7322_v20, %v7518_v10  ;;  %v7521_v17 = vmax.f32 %v5535_v9, 0.0  ;;  %v5527_v37 = vadd.f32 %v19271_v33, %v5526_v55  ;;  %v19376_v61 = vpop.f32.mrf.mxu1  ;;  %v4767_v31 = vadd.f32 %v19271_v33, %v22421_v53 }
 0x3c9   :  { %22417 = vst [vmem:[#allocation200_spill] sm:$0xff] %v19376_v61  ;;  %v15493_v22 = vpop.f32.mrf.mxu0  ;;  %15588 = vmatmul.mubr.msk.bf16.gmra.mxu0 %vm2785_vm2, %v16178_v0  ;;  %15848 = vmatmul.mubr.msk.bf16.gmra.mxu1 %vm2785_vm2, %v16246_v34  ;;  %v16182_v0 = vld [vmem:[%s21928_s0 + $0x798] sm:$0xff]  }
 0x3ca   :  { %22416 = vst [vmem:[#allocation142_spill] sm:$0xff] %v19373_v21  ;;  %v19385_v10 = vmax.f32 %v7325_v16, %v7521_v17  ;;  %v7519_v20 = vmax.f32 %v5527_v37, 0.0  ;;  %v5548_v9 = vadd.f32 %v19271_v33, %v15493_v22  ;;  %15591 = vmatprep.mubr.msk.bf16.mxu0 %vm2785_vm2, %v16180_v24  ;;  %v19389_v55 = vpop.f32.mrf.mxu1  ;;  %v7328_v21 = vmax.f32 %v4764_v23, 0.0  ;;  %v16184_v24 = vld [vmem:[%s21928_s0 + $0x7a0] sm:$0xff]   ;;  %v22424_v22 = vld [vmem:[#allocation145_spill] sm:$0xff] }
 0x3cb   :  { %22420 = vst [vmem:[#allocation201_spill] sm:$0xff] %v19389_v55  ;;  %v5539_v49 = vpop.f32.mrf.mxu0  ;;  %v7326_v23 = vmax.f32 %v4756_v48, 0.0  ;;  %v7329_v48 = vmax.f32 %v4767_v31, 0.0 }
 0x3cc   :  { %22419 = vst [vmem:[#allocation143_spill] sm:$0xff] %v19385_v10  ;;  %v19397_v17 = vmax.f32 %v7323_v43, %v7519_v20  ;;  %v7524_v62 = vmax.f32 %v5548_v9, 0.0  ;;  %v5540_v16 = vadd.f32 %v19271_v33, %v5539_v49  ;;  %v19403_v37 = vpop.f32.mrf.mxu1  ;;  %v4759_v10 = vadd.f32 %v19271_v33, %v22424_v22  ;;  %v22427_v9 = vld [vmem:[#allocation146_spill] sm:$0xff] }
 0x3cd   :  { %22423 = vst [vmem:[#allocation202_spill] sm:$0xff] %v19403_v37  ;;  %v15494_v34 = vpop.f32.mrf.mxu0  ;;  %v4780_v49 = vadd.f32 %v19271_v33, %v22427_v9 }
 0x3ce   :  { %22422 = vst [vmem:[#allocation144_spill] sm:$0xff] %v19397_v17  ;;  %v19407_v55 = vmax.f32 %v7328_v21, %v7524_v62  ;;  %v7522_v61 = vmax.f32 %v5540_v16, 0.0  ;;  %v5551_v43 = vadd.f32 %v19271_v33, %v15494_v34  ;;  %v19410_v20 = vpop.f32.mrf.mxu1  ;;  %v16248_v17 = vld [vmem:[%s21928_s0 + $0xba0] sm:$0xff]   ;;  %v16250_v16 = vld [vmem:[%s21928_s0 + $0xba8] sm:$0xff]   ;;  %v7327_v31 = vmax.f32 %v4759_v10, 0.0 }
 0x3cf   :  { %22426 = vst [vmem:[#allocation203_spill] sm:$0xff] %v19410_v20  ;;  %v5542_v53 = vpop.f32.mrf.mxu0  ;;  %v22430_v34 = vld [vmem:[#allocation147_spill] sm:$0xff]  ;;  %15851 = vmatprep.mubr.msk.bf16.mxu1 %vm2785_vm2, %v16248_v17 }
 0x3d0   :  { %22425 = vst [vmem:[#allocation145_spill] sm:$0xff] %v19407_v55  ;;  %v19417_v37 = vmax.f32 %v7326_v23, %v7522_v61  ;;  %v7525_v15 = vmax.f32 %v5551_v43, 0.0  ;;  %v5543_v21 = vadd.f32 %v19271_v33, %v5542_v53  ;;  %v19420_v62 = vpop.f32.mrf.mxu1  ;;  %v4772_v22 = vadd.f32 %v19271_v33, %v22430_v34  ;;  %v22433_v34 = vld [vmem:[#allocation148_spill] sm:$0xff] }
 0x3d1   :  { %22429 = vst [vmem:[#allocation204_spill] sm:$0xff] %v19420_v62  ;;  %v15497_v9 = vpop.f32.mrf.mxu0  ;;  %15592 = vmatmul.mubr.msk.bf16.gmra.mxu0 %vm2785_vm2, %v16182_v0  ;;  %15852 = vmatmul.mubr.msk.bf16.gmra.mxu1 %vm2785_vm2, %v16250_v16  ;;  %v16186_v0 = vld [vmem:[%s21928_s0 + $0x7a8] sm:$0xff]   ;;  %v4783_v10 = vadd.f32 %v19271_v33, %v22433_v34 }
 0x3d2   :  { %22428 = vst [vmem:[#allocation146_spill] sm:$0xff] %v19417_v37  ;;  %v19429_v61 = vmax.f32 %v7329_v48, %v7525_v15  ;;  %v7523_v23 = vmax.f32 %v5543_v21, 0.0  ;;  %v5564_v43 = vadd.f32 %v19271_v33, %v15497_v9  ;;  %15595 = vmatprep.mubr.msk.bf16.mxu0 %vm2785_vm2, %v16184_v24  ;;  %v19433_v53 = vpop.f32.mrf.mxu1  ;;  %v7332_v37 = vmax.f32 %v4780_v49, 0.0  ;;  %v16188_v24 = vld [vmem:[%s21928_s0 + $0x7b0] sm:$0xff]  }
 0x3d3   :  { %22432 = vst [vmem:[#allocation205_spill] sm:$0xff] %v19433_v53  ;;  %v5555_v55 = vpop.f32.mrf.mxu0  ;;  %v7330_v49 = vmax.f32 %v4772_v22, 0.0  ;;  %v22436_v9 = vld [vmem:[#allocation149_spill] sm:$0xff]  ;;  %v7333_v34 = vmax.f32 %v4783_v10, 0.0 }
 0x3d4   :  { %22431 = vst [vmem:[#allocation147_spill] sm:$0xff] %v19429_v61  ;;  %v19441_v15 = vmax.f32 %v7327_v31, %v7523_v23  ;;  %v7528_v17 = vmax.f32 %v5564_v43, 0.0  ;;  %v5556_v48 = vadd.f32 %v19271_v33, %v5555_v55  ;;  %v19447_v21 = vpop.f32.mrf.mxu1  ;;  %v4775_v61 = vadd.f32 %v19271_v33, %v22436_v9  ;;  %v16252_v55 = vld [vmem:[%s21928_s0 + $0xbb0] sm:$0xff]  }
 0x3d5   :  { %22435 = vst [vmem:[#allocation206_spill] sm:$0xff] %v19447_v21  ;;  %v15498_v16 = vpop.f32.mrf.mxu0  ;;  %15855 = vmatprep.mubr.msk.bf16.mxu1 %vm2785_vm2, %v16252_v55  ;;  %v16256_v55 = vld [vmem:[%s21928_s0 + $0xbc0] sm:$0xff]  }
 0x3d6   :  { %22434 = vst [vmem:[#allocation148_spill] sm:$0xff] %v19441_v15  ;;  %v19451_v53 = vmax.f32 %v7332_v37, %v7528_v17  ;;  %v7526_v62 = vmax.f32 %v5556_v48, 0.0  ;;  %v5567_v31 = vadd.f32 %v19271_v33, %v15498_v16  ;;  %v19454_v23 = vpop.f32.mrf.mxu1  ;;  %v16254_v37 = vld [vmem:[%s21928_s0 + $0xbb8] sm:$0xff]   ;;  %v7331_v48 = vmax.f32 %v4775_v61, 0.0 }
 0x3d7   :  { %v5558_v43 = vpop.f32.mrf.mxu0  ;;  %v16190_v61 = vld [vmem:[%s21928_s0 + $0x7b8] sm:$0xff]  }
 0x3d8   :  { %22437 = vst [vmem:[#allocation149_spill] sm:$0xff] %v19451_v53  ;;  %v19459_v15 = vmax.f32 %v7330_v49, %v7526_v62  ;;  %v7529_v22 = vmax.f32 %v5567_v31, 0.0  ;;  %v5559_v21 = vadd.f32 %v19271_v33, %v5558_v43  ;;  %v19462_v20 = vpop.f32.mrf.mxu1 }
 0x3d9   :  { %v19467_v17 = vpop.f32.mrf.mxu0  ;;  %15596 = vmatmul.mubr.msk.bf16.gmra.mxu0 %vm2785_vm2, %v16186_v0  ;;  %15856 = vmatmul.mubr.msk.bf16.gmra.mxu1 %vm2785_vm2, %v16254_v37  ;;  %v16192_v0 = vld [vmem:[%s21928_s0 + $0x7c0] sm:$0xff]  }
 0x3da   :  { %22438 = vst [vmem:[#allocation207_spill] sm:$0xff] %v19459_v15  ;;  %22439 = vst [vmem:[#allocation208_spill] sm:$0xff] %v19467_v17  ;;  %v19471_v16 = vmax.f32 %v7333_v34, %v7529_v22  ;;  %v7527_v62 = vmax.f32 %v5559_v21, 0.0  ;;  %15599 = vmatprep.mubr.msk.bf16.mxu0 %vm2785_vm2, %v16188_v24  ;;  %v19474_v10 = vpop.f32.mrf.mxu1  ;;  %v16258_v22 = vld [vmem:[%s21928_s0 + $0xbc8] sm:$0xff]   ;;  %15859 = vmatprep.mubr.msk.bf16.mxu1 %vm2785_vm2, %v16256_v55  ;;  %v6391_v17 = vadd.f32 %v19271_v33, %v18878_v41  ;;  %v16200_v41 = vld [vmem:[%s21928_s0 + $0x7e0] sm:$0xff]  }
 0x3db   :  { %v19477_v49 = vpop.f32.mrf.mxu0 }
 0x3dc   :  { %22440 = vst [vmem:[#allocation209_spill] sm:$0xff] %v19471_v16  ;;  %22441 = vst [vmem:[#allocation210_spill] sm:$0xff] %v19477_v49  ;;  %v19479_v9 = vmax.f32 %v7331_v48, %v7527_v62  ;;  %v19481_v31 = vpop.f32.mrf.mxu1  ;;  %v6399_v49 = vadd.f32 %v19271_v33, %v18863_v60  ;;  %v16198_v60 = vld [vmem:[%s21928_s0 + $0x7d8] sm:$0xff]  }
 0x3dd   :  { %v19483_v43 = vpop.f32.mrf.mxu0 }
 0x3de   :  { %22442 = vst [vmem:[#allocation211_spill] sm:$0xff] %v19479_v9  ;;  %22443 = vst [vmem:[#allocation212_spill] sm:$0xff] %v19483_v43  ;;  %v19491_v24 = vpop.f32.mrf.mxu1 }
 0x3df   :  { %v19493_v21 = vpop.f32.mrf.mxu0 }
 0x3e0   :  { %22444 = vst [vmem:[#allocation213_spill] sm:$0xff] %v19493_v21  ;;  %v19498_v34 = vpop.f32.mrf.mxu1 }
 0x3e1   :  { %22445 = vst [vmem:[#allocation214_spill] sm:$0xff] %v19498_v34  ;;  %v19503_v37 = vpop.f32.mrf.mxu0  ;;  %15600 = vmatmul.mubr.msk.bf16.gmra.mxu0 %vm2785_vm2, %v16190_v61  ;;  %15860 = vmatmul.mubr.msk.bf16.gmra.mxu1 %vm2785_vm2, %v16258_v22  ;;  %v6396_v61 = vadd.f32 %v19271_v33, %v18846_v52  ;;  %v16262_v52 = vld [vmem:[%s21928_s0 + $0xbd8] sm:$0xff]  }
 0x3e2   :  { %22446 = vst [vmem:[#allocation215_spill] sm:$0xff] %v19503_v37  ;;  %15603 = vmatprep.mubr.msk.bf16.mxu0 %vm2785_vm2, %v16192_v0  ;;  %v19508_v48 = vpop.f32.mrf.mxu1  ;;  %v16194_v37 = vld [vmem:[%s21928_s0 + $0x7c8] sm:$0xff]   ;;  %v16196_v0 = vld [vmem:[%s21928_s0 + $0x7d0] sm:$0xff]  }
 0x3e3   :  { %22447 = vst [vmem:[#allocation216_spill] sm:$0xff] %v19508_v48  ;;  %v19511_v62 = vpop.f32.mrf.mxu0  ;;  %v7736_v15 = vmax.f32 %v6396_v61, 0.0  ;;  %v6412_v61 = vadd.f32 %v19271_v33, %v18890_v28  ;;  %v16264_v28 = vld [vmem:[%s21928_s0 + $0xbe0] sm:$0xff]  }
 0x3e4   :  { %22448 = vst [vmem:[#allocation217_spill] sm:$0xff] %v19511_v62  ;;  %v19513_v21 = vpop.f32.mrf.mxu1  ;;  %v16260_v62 = vld [vmem:[%s21928_s0 + $0xbd0] sm:$0xff]  }
 0x3e5   :  { %22449 = vst [vmem:[#allocation218_spill] sm:$0xff] %v19513_v21  ;;  %v19515_v9 = vpop.f32.mrf.mxu0  ;;  %15863 = vmatprep.mubr.msk.bf16.mxu1 %vm2785_vm2, %v16260_v62  ;;  %v7737_v21 = vmax.f32 %v6399_v49, 0.0 }
 0x3e6   :  { %22450 = vst [vmem:[#allocation219_spill] sm:$0xff] %v19515_v9  ;;  %v19525_v55 = vpop.f32.mrf.mxu1  ;;  %v6388_v9 = vadd.f32 %v19271_v33, %v18853_v58 }
 0x3e7   :  { %22451 = vst [vmem:[#allocation220_spill] sm:$0xff] %v19525_v55  ;;  %v19527_v22 = vpop.f32.mrf.mxu0 }
 0x3e8   :  { %22452 = vst [vmem:[#allocation221_spill] sm:$0xff] %v19527_v22  ;;  %v19534_v16 = vpop.f32.mrf.mxu1  ;;  %v7734_v62 = vmax.f32 %v6388_v9, 0.0 }
 0x3e9   :  { %22453 = vst [vmem:[#allocation222_spill] sm:$0xff] %v19534_v16  ;;  %v15509_v43 = vpop.f32.mrf.mxu0  ;;  %15604 = vmatmul.mubr.msk.bf16.gmra.mxu0 %vm2785_vm2, %v16194_v37  ;;  %15864 = vmatmul.mubr.msk.bf16.gmra.mxu1 %vm2785_vm2, %v16262_v52 }
 0x3ea   :  { %v5612_v22 = vadd.f32 %v19271_v33, %v15509_v43  ;;  %15607 = vmatprep.mubr.msk.bf16.mxu0 %vm2785_vm2, %v16196_v0  ;;  %v19545_v58 = vpop.f32.mrf.mxu1  ;;  %15867 = vmatprep.mubr.msk.bf16.mxu1 %vm2785_vm2, %v16264_v28 }
 0x3eb   :  { %22454 = vst [vmem:[#allocation223_spill] sm:$0xff] %v19545_v58  ;;  %v5603_v53 = vpop.f32.mrf.mxu0 }
 0x3ec   :  { %v7540_v16 = vmax.f32 %v5612_v22, 0.0  ;;  %v5604_v37 = vadd.f32 %v19271_v33, %v5603_v53  ;;  %v19551_v55 = vpop.f32.mrf.mxu1  ;;  %v7735_v22 = vmax.f32 %v6391_v17, 0.0 }
 0x3ed   :  { %22455 = vst [vmem:[#allocation224_spill] sm:$0xff] %v19551_v55  ;;  %v15510_v43 = vpop.f32.mrf.mxu0  ;;  %v6404_v55 = vadd.f32 %v19271_v33, %v18897_v50  ;;  %v7740_v50 = vmax.f32 %v6412_v61, 0.0  ;;  %v6407_v61 = vadd.f32 %v19271_v33, %v18925_v51 }
 0x3ee   :  { %v8128_v0 = vmax.f32 %v7540_v16, %v7736_v15  ;;  %v7538_v52 = vmax.f32 %v5604_v37, 0.0  ;;  %v5615_v58 = vadd.f32 %v19271_v33, %v15510_v43  ;;  %v19562_v53 = vpop.f32.mrf.mxu1 }
 0x3ef   :  { %22456 = vst [vmem:[#allocation225_spill] sm:$0xff] %v19562_v53  ;;  %v5606_v9 = vpop.f32.mrf.mxu0  ;;  %v16266_v53 = vld [vmem:[%s21928_s0 + $0xbe8] sm:$0xff]  }
 0x3f0   :  { %v8324_v15 = vmax.f32 %v17727_v1, %v8128_v0  ;;  %v8126_v16 = vmax.f32 %v7538_v52, %v7734_v62  ;;  %v7541_v37 = vmax.f32 %v5615_v58, 0.0  ;;  %v5607_v49 = vadd.f32 %v19271_v33, %v5606_v9  ;;  %v19571_v43 = vpop.f32.mrf.mxu1 }
 0x3f1   :  { %v15513_v17 = vpop.f32.mrf.mxu0  ;;  %15608 = vmatmul.mubr.msk.bf16.gmra.mxu0 %vm2785_vm2, %v16198_v60  ;;  %15868 = vmatmul.mubr.msk.bf16.gmra.mxu1 %vm2785_vm2, %v16266_v53  ;;  %v7738_v52 = vmax.f32 %v6404_v55, 0.0  ;;  %v6415_v60 = vadd.f32 %v19271_v33, %v18915_v46  ;;  %v16202_v53 = vld [vmem:[%s21928_s0 + $0x7e8] sm:$0xff]   ;;  %v6428_v55 = vadd.f32 %v19271_v33, %v18938_v14  ;;  %v6420_v14 = vadd.f32 %v19271_v33, %v18946_v45 }
 0x3f2   :  { %v8322_v48 = vmax.f32 %v17735_v32, %v8126_v16  ;;  %v8129_v34 = vmax.f32 %v7541_v37, %v7737_v21  ;;  %v7539_v1 = vmax.f32 %v5607_v49, 0.0  ;;  %v5628_v58 = vadd.f32 %v19271_v33, %v15513_v17  ;;  %15611 = vmatprep.mubr.msk.bf16.mxu0 %vm2785_vm2, %v16200_v41  ;;  %v19581_v62 = vpop.f32.mrf.mxu1 }
 0x3f3   :  { %v5619_v0 = vpop.f32.mrf.mxu0  ;;  %v7741_v17 = vmax.f32 %v6415_v60, 0.0  ;;  %v16270_v60 = vld [vmem:[%s21928_s0 + $0xbf8] sm:$0xff]   ;;  %v6431_v45 = vadd.f32 %v19271_v33, %v18959_v59 }
 0x3f4   :  { %v8325_v32 = vmax.f32 %v17741_v54, %v8129_v34  ;;  %v8127_v21 = vmax.f32 %v7539_v1, %v7735_v22  ;;  %v7544_v9 = vmax.f32 %v5628_v58, 0.0  ;;  %v5620_v28 = vadd.f32 %v19271_v33, %v5619_v0  ;;  %v19590_v16 = vpop.f32.mrf.mxu1  ;;  %v16204_v34 = vld [vmem:[%s21928_s0 + $0x7f0] sm:$0xff]  }
 0x3f5   :  { %v15514_v41 = vpop.f32.mrf.mxu0  ;;  %v7739_v58 = vmax.f32 %v6407_v61, 0.0 }
 0x3f6   :  { %v19597_v46 = vpack.c.bf16 %v8325_v32, %v8324_v15  ;;  %v8323_v51 = vmax.f32 %v17747_v30, %v8127_v21  ;;  %v8132_v37 = vmax.f32 %v7544_v9, %v7740_v50  ;;  %v7542_v54 = vmax.f32 %v5620_v28, 0.0  ;;  %v19603_v22 = vpop.f32.mrf.mxu1  ;;  %v16268_v30 = vld [vmem:[%s21928_s0 + $0xbf0] sm:$0xff]  }
 0x3f7   :  { %v5631_v49 = vadd.f32 %v19271_v33, %v15514_v41  ;;  %v5622_v1 = vpop.f32.mrf.mxu0  ;;  %15871 = vmatprep.mubr.msk.bf16.mxu1 %vm2785_vm2, %v16268_v30  ;;  %v7744_v28 = vmax.f32 %v6428_v55, 0.0  ;;  %v6423_v55 = vadd.f32 %v19271_v33, %v18969_v39 }
 0x3f8   :  { %22457 = vst [vmem:[#allocation226_spill] sm:$0xff] %v19597_v46  ;;  %v19611_v15 = vpack.c.bf16 %v8323_v51, %v8322_v48  ;;  %v8328_v50 = vmax.f32 %v17755_v7, %v8132_v37  ;;  %v8130_v0 = vmax.f32 %v7542_v54, %v7738_v52  ;;  %v5623_v32 = vadd.f32 %v19271_v33, %v5622_v1  ;;  %v19615_v21 = vpop.f32.mrf.mxu1 }
 0x3f9   :  { %v7545_v61 = vmax.f32 %v5631_v49, 0.0  ;;  %v15517_v9 = vpop.f32.mrf.mxu0  ;;  %15612 = vmatmul.mubr.msk.bf16.gmra.mxu0 %vm2785_vm2, %v16202_v53  ;;  %15872 = vmatmul.mubr.msk.bf16.gmra.mxu1 %vm2785_vm2, %v16270_v60  ;;  %v7742_v49 = vmax.f32 %v6420_v14, 0.0 }
 0x3fa   :  { %22458 = vst [vmem:[#allocation227_spill] sm:$0xff] %v19611_v15  ;;  %v8326_v7 = vmax.f32 %v17763_v38, %v8130_v0  ;;  %v7543_v48 = vmax.f32 %v5623_v32, 0.0  ;;  %v5644_v52 = vadd.f32 %v19271_v33, %v15517_v9  ;;  %15615 = vmatprep.mubr.msk.bf16.mxu0 %vm2785_vm2, %v16204_v34  ;;  %v19627_v41 = vpop.f32.mrf.mxu1  ;;  %v7745_v0 = vmax.f32 %v6431_v45, 0.0  ;;  %v16206_v34 = vld [vmem:[%s21928_s0 + $0x7f8] sm:$0xff]  }
 0x3fb   :  { %v8133_v51 = vmax.f32 %v7545_v61, %v7741_v17  ;;  %v5635_v37 = vpop.f32.mrf.mxu0  ;;  %v6444_v17 = vadd.f32 %v19271_v33, %v18982_v26  ;;  %v6436_v45 = vadd.f32 %v19271_v33, %v18990_v2 }
 0x3fc   :  { %v8131_v53 = vmax.f32 %v7543_v48, %v7739_v58  ;;  %v7548_v54 = vmax.f32 %v5644_v52, 0.0  ;;  %v5636_v59 = vadd.f32 %v19271_v33, %v5635_v37  ;;  %v19631_v1 = vpop.f32.mrf.mxu1 }
 0x3fd   :  { %v8329_v38 = vmax.f32 %v17769_v44, %v8133_v51  ;;  %v15518_v30 = vpop.f32.mrf.mxu0  ;;  %v16211_v44 = vld [vmem:[%s21928_s0 + $0x800] sm:$0xff]  }
 0x3fe   :  { %v8327_v58 = vmax.f32 %v17775_v56, %v8131_v53  ;;  %v8136_v32 = vmax.f32 %v7548_v54, %v7744_v28  ;;  %v7546_v14 = vmax.f32 %v5636_v59, 0.0  ;;  %v5647_v60 = vadd.f32 %v19271_v33, %v15518_v30  ;;  %v19646_v61 = vpop.f32.mrf.mxu1  ;;  %v16272_v56 = vld [vmem:[%s21928_s0 + $0xc00] sm:$0xff]  }
 0x3ff   :  { %v19648_v39 = vpack.c.bf16 %v8329_v38, %v8328_v50  ;;  %v5638_v9 = vpop.f32.mrf.mxu0  ;;  %v16274_v50 = vld [vmem:[%s21928_s0 + $0xc08] sm:$0xff]   ;;  %v7743_v53 = vmax.f32 %v6423_v55, 0.0  ;;  %15875 = vmatprep.mubr.msk.bf16.mxu1 %vm2785_vm2, %v16272_v56 }
 0x400   :  { %v19655_v26 = vpack.c.bf16 %v8327_v58, %v8326_v7  ;;  %v8332_v48 = vmax.f32 %v17783_v13, %v8136_v32  ;;  %v8134_v52 = vmax.f32 %v7546_v14, %v7742_v49  ;;  %v7549_v28 = vmax.f32 %v5647_v60, 0.0  ;;  %v19658_v51 = vpop.f32.mrf.mxu1 }
 0x401   :  { %22459 = vst [vmem:[#allocation228_spill] sm:$0xff] %v19648_v39  ;;  %v5639_v37 = vadd.f32 %v19271_v33, %v5638_v9  ;;  %v15521_v2 = vpop.f32.mrf.mxu0  ;;  %15616 = vmatmul.mubr.msk.bf16.gmra.mxu0 %vm2785_vm2, %v16206_v34  ;;  %v6447_v7 = vadd.f32 %v19271_v33, %v19003_v27  ;;  %v7748_v49 = vmax.f32 %v6444_v17, 0.0  ;;  %15876 = vmatmul.mubr.msk.bf16.gmra.mxu1 %vm2785_vm2, %v16274_v50 }
 0x402   :  { %22460 = vst [vmem:[#allocation229_spill] sm:$0xff] %v19655_v26  ;;  %v8330_v13 = vmax.f32 %v17791_v6, %v8134_v52  ;;  %v8137_v54 = vmax.f32 %v7549_v28, %v7745_v0  ;;  %v5660_v59 = vadd.f32 %v19271_v33, %v15521_v2  ;;  %15619 = vmatprep.mubr.msk.bf16.mxu0 %vm2785_vm2, %v16211_v44  ;;  %v19671_v38 = vpop.f32.mrf.mxu1  ;;  %v7746_v0 = vmax.f32 %v6436_v45, 0.0  ;;  %v16213_v44 = vld [vmem:[%s21928_s0 + $0x808] sm:$0xff]   ;;  %v16215_v45 = vld [vmem:[%s21928_s0 + $0x810] sm:$0xff]  }
 0x403   :  { %v7547_v30 = vmax.f32 %v5639_v37, 0.0  ;;  %v5651_v55 = vpop.f32.mrf.mxu0  ;;  %v6439_v34 = vadd.f32 %v19271_v33, %v19013_v47  ;;  %v7749_v60 = vmax.f32 %v6447_v7, 0.0  ;;  %v6460_v9 = vadd.f32 %v19271_v33, %v19029_v12  ;;  %v16276_v12 = vld [vmem:[%s21928_s0 + $0xc10] sm:$0xff]  }
 0x404   :  { %v8333_v27 = vmax.f32 %v17797_v63, %v8137_v54  ;;  %v7552_v58 = vmax.f32 %v5660_v59, 0.0  ;;  %v5652_v6 = vadd.f32 %v19271_v33, %v5651_v55  ;;  %v19678_v32 = vpop.f32.mrf.mxu1  ;;  %v6452_v2 = vadd.f32 %v19271_v33, %v19046_v36  ;;  %15879 = vmatprep.mubr.msk.bf16.mxu1 %vm2785_vm2, %v16276_v12 }
 0x405   :  { %v8135_v17 = vmax.f32 %v7547_v30, %v7743_v53  ;;  %v15522_v14 = vpop.f32.mrf.mxu0  ;;  %v7747_v53 = vmax.f32 %v6439_v34, 0.0  ;;  %v7752_v36 = vmax.f32 %v6460_v9, 0.0 }
 0x406   :  { %v19685_v56 = vpack.c.bf16 %v8333_v27, %v8332_v48  ;;  %v8140_v47 = vmax.f32 %v7552_v58, %v7748_v49  ;;  %v7550_v63 = vmax.f32 %v5652_v6, 0.0  ;;  %v5663_v52 = vadd.f32 %v19271_v33, %v15522_v14  ;;  %v19691_v28 = vpop.f32.mrf.mxu1 }
 0x407   :  { %v8331_v50 = vmax.f32 %v17803_v57, %v8135_v17  ;;  %v5654_v37 = vpop.f32.mrf.mxu0  ;;  %v16278_v57 = vld [vmem:[%s21928_s0 + $0xc18] sm:$0xff]   ;;  %v6463_v17 = vadd.f32 %v19271_v33, %v19053_v40  ;;  %v6455_v14 = vadd.f32 %v19271_v33, %v19063_v8 }
 0x408   :  { %22461 = vst [vmem:[#allocation230_spill] sm:$0xff] %v19685_v56  ;;  %v8336_v48 = vmax.f32 %v17811_v19, %v8140_v47  ;;  %v8138_v7 = vmax.f32 %v7550_v63, %v7746_v0  ;;  %v7553_v54 = vmax.f32 %v5663_v52, 0.0  ;;  %v5655_v59 = vadd.f32 %v19271_v33, %v5654_v37  ;;  %v19701_v49 = vpop.f32.mrf.mxu1  ;;  %v16217_v52 = vld [vmem:[%s21928_s0 + $0x818] sm:$0xff]   ;;  %v16219_v37 = vld [vmem:[%s21928_s0 + $0x820] sm:$0xff]  }
 0x409   :  { %v19706_v30 = vpack.c.bf16 %v8331_v50, %v8330_v13  ;;  %v15525_v55 = vpop.f32.mrf.mxu0  ;;  %15620 = vmatmul.mubr.msk.bf16.gmra.mxu0 %vm2785_vm2, %v16213_v44  ;;  %15880 = vmatmul.mubr.msk.bf16.gmra.mxu1 %vm2785_vm2, %v16278_v57  ;;  %v7750_v0 = vmax.f32 %v6452_v2, 0.0  ;;  %v7753_v12 = vmax.f32 %v6463_v17, 0.0  ;;  %v22489_v56 = vld [vmem:[#allocation186_spill] sm:$0xff] }
 0x40a   :  { %v8334_v19 = vmax.f32 %v17819_v42, %v8138_v7  ;;  %v8141_v34 = vmax.f32 %v7553_v54, %v7749_v60  ;;  %v7551_v27 = vmax.f32 %v5655_v59, 0.0  ;;  %v5676_v58 = vadd.f32 %v19271_v33, %v15525_v55  ;;  %15623 = vmatprep.mubr.msk.bf16.mxu0 %vm2785_vm2, %v16215_v45  ;;  %v19713_v6 = vpop.f32.mrf.mxu1 }
 0x40b   :  { %22462 = vst [vmem:[#allocation231_spill] sm:$0xff] %v19706_v30  ;;  %v5667_v13 = vpop.f32.mrf.mxu0  ;;  %v6476_v45 = vadd.f32 %v19271_v33, %v19076_v4  ;;  %v7751_v54 = vmax.f32 %v6455_v14, 0.0  ;;  %v6468_v4 = vadd.f32 %v19271_v33, %v19090_v29  ;;  %v6479_v29 = vadd.f32 %v19271_v33, %v19097_v35 }
 0x40c   :  { %v8337_v42 = vmax.f32 %v17825_v5, %v8141_v34  ;;  %v8139_v60 = vmax.f32 %v7551_v27, %v7747_v53  ;;  %v7556_v44 = vmax.f32 %v5676_v58, 0.0  ;;  %v5668_v9 = vadd.f32 %v19271_v33, %v5667_v13  ;;  %v19722_v47 = vpop.f32.mrf.mxu1  ;;  %v16282_v34 = vld [vmem:[%s21928_s0 + $0xc28] sm:$0xff]  }
 0x40d   :  { %v15526_v63 = vpop.f32.mrf.mxu0 }
 0x40e   :  { %v19729_v40 = vpack.c.bf16 %v8337_v42, %v8336_v48  ;;  %v8335_v8 = vmax.f32 %v17831_v18, %v8139_v60  ;;  %v8144_v50 = vmax.f32 %v7556_v44, %v7752_v36  ;;  %v7554_v5 = vmax.f32 %v5668_v9, 0.0  ;;  %v19735_v53 = vpop.f32.mrf.mxu1  ;;  %v16280_v18 = vld [vmem:[%s21928_s0 + $0xc20] sm:$0xff]  }
 0x40f   :  { %v5679_v2 = vadd.f32 %v19271_v33, %v15526_v63  ;;  %v5670_v7 = vpop.f32.mrf.mxu0  ;;  %15883 = vmatprep.mubr.msk.bf16.mxu1 %vm2785_vm2, %v16280_v18  ;;  %v7754_v9 = vmax.f32 %v6468_v4, 0.0 }
 0x410   :  { %22463 = vst [vmem:[#allocation232_spill] sm:$0xff] %v19729_v40  ;;  %v19743_v48 = vpack.c.bf16 %v8335_v8, %v8334_v19  ;;  %v8340_v59 = vmax.f32 %v17839_v25, %v8144_v50  ;;  %v8142_v57 = vmax.f32 %v7554_v5, %v7750_v0  ;;  %v5671_v55 = vadd.f32 %v19271_v33, %v5670_v7  ;;  %v19747_v36 = vpop.f32.mrf.mxu1  ;;  %v16221_v5 = vld [vmem:[%s21928_s0 + $0x828] sm:$0xff]  }
 0x411   :  { %v7557_v27 = vmax.f32 %v5679_v2, 0.0  ;;  %v15529_v58 = vpop.f32.mrf.mxu0  ;;  %15624 = vmatmul.mubr.msk.bf16.gmra.mxu0 %vm2785_vm2, %v16217_v52  ;;  %v7756_v0 = vmax.f32 %v6476_v45, 0.0  ;;  %15884 = vmatmul.mubr.msk.bf16.gmra.mxu1 %vm2785_vm2, %v16282_v34  ;;  %v7757_v8 = vmax.f32 %v6479_v29, 0.0  ;;  %v22465_v45 = vld [vmem:[#allocation176_spill] sm:$0xff] }
 0x412   :  { %22464 = vst [vmem:[#allocation233_spill] sm:$0xff] %v19743_v48  ;;  %v8338_v25 = vmax.f32 %v17847_v3, %v8142_v57  ;;  %v7555_v19 = vmax.f32 %v5671_v55, 0.0  ;;  %v5692_v13 = vadd.f32 %v19271_v33, %v15529_v58  ;;  %15627 = vmatprep.mubr.msk.bf16.mxu0 %vm2785_vm2, %v16219_v37  ;;  %v19759_v17 = vpop.f32.mrf.mxu1  ;;  %v6471_v50 = vadd.f32 %v19271_v33, %v22465_v45  ;;  %v22466_v37 = vld [vmem:[#allocation177_spill] sm:$0xff]  ;;  %v22469_v58 = vld [vmem:[#allocation178_spill] sm:$0xff]  ;;  %v22473_v45 = vld [vmem:[#allocation160_spill] sm:$0xff] }
 0x413   :  { %v8145_v14 = vmax.f32 %v7557_v27, %v7753_v12  ;;  %v5683_v42 = vpop.f32.mrf.mxu0  ;;  %v6492_v2 = vadd.f32 %v19271_v33, %v22466_v37  ;;  %v22467_v12 = vld [vmem:[#allocation158_spill] sm:$0xff]  ;;  %v19785_v27 = vld [vmem:[%s21929_s2] ss:$0 sm:$0xff] }
 0x414   :  { %v8143_v60 = vmax.f32 %v7555_v19, %v7751_v54  ;;  %v7560_v44 = vmax.f32 %v5692_v13, 0.0  ;;  %v5684_v35 = vadd.f32 %v19271_v33, %v5683_v42  ;;  %v19763_v63 = vpop.f32.mrf.mxu1  ;;  %v6484_v29 = vadd.f32 %v19785_v27, %v22469_v58  ;;  %v22471_v13 = vld [vmem:[#allocation159_spill] sm:$0xff] }
 0x415   :  { %v8341_v3 = vmax.f32 %v17853_v11, %v8145_v14  ;;  %v15530_v52 = vpop.f32.mrf.mxu0  ;;  %v16223_v11 = vld [vmem:[%s21928_s0 + $0x830] sm:$0xff]  }
 0x416   :  { %v8339_v7 = vmax.f32 %v22467_v12, %v8143_v60  ;;  %v8148_v54 = vmax.f32 %v7560_v44, %v7756_v0  ;;  %v7558_v4 = vmax.f32 %v5684_v35, 0.0  ;;  %v5695_v18 = vadd.f32 %v19271_v33, %v15530_v52  ;;  %v19778_v57 = vpop.f32.mrf.mxu1  ;;  %v16284_v33 = vld [vmem:[%s21928_s0 + $0xc30] sm:$0xff]   ;;  %v16286_v60 = vld [vmem:[%s21928_s0 + $0xc38] sm:$0xff]   ;;  %v22472_v52 = vld [vmem:[#allocation179_spill] sm:$0xff] }
 0x417   :  { %v19780_v55 = vpack.c.bf16 %v8341_v3, %v8340_v59  ;;  %v5686_v34 = vpop.f32.mrf.mxu0  ;;  %v7755_v35 = vmax.f32 %v6471_v50, 0.0  ;;  %15887 = vmatprep.mubr.msk.bf16.mxu1 %vm2785_vm2, %v16284_v33 }
 0x418   :  { %v19792_v19 = vpack.c.bf16 %v8339_v7, %v8338_v25  ;;  %v8344_v0 = vmax.f32 %v22471_v13, %v8148_v54  ;;  %v8146_v14 = vmax.f32 %v7558_v4, %v7754_v9  ;;  %v7561_v59 = vmax.f32 %v5695_v18, 0.0  ;;  %v19795_v42 = vpop.f32.mrf.mxu1 }
 0x419   :  { %22468 = vst [vmem:[#allocation176_spill] sm:$0xff] %v19780_v55  ;;  %v5687_v44 = vadd.f32 %v19785_v27, %v5686_v34  ;;  %v15533_v3 = vpop.f32.mrf.mxu0  ;;  %15628 = vmatmul.mubr.msk.bf16.gmra.mxu0 %vm2785_vm2, %v16221_v5  ;;  %v6495_v25 = vadd.f32 %v19785_v27, %v22472_v52  ;;  %v7760_v7 = vmax.f32 %v6492_v2, 0.0  ;;  %15888 = vmatmul.mubr.msk.bf16.gmra.mxu1 %vm2785_vm2, %v16286_v60  ;;  %v22474_v5 = vld [vmem:[#allocation180_spill] sm:$0xff]  ;;  %v22475_v34 = vld [vmem:[#allocation161_spill] sm:$0xff]  ;;  %v16225_v60 = vld [vmem:[%s21928_s0 + $0x838] sm:$0xff]  }
 0x41a   :  { %22470 = vst [vmem:[#allocation177_spill] sm:$0xff] %v19792_v19  ;;  %v8342_v9 = vmax.f32 %v22473_v45, %v8146_v14  ;;  %v8149_v37 = vmax.f32 %v7561_v59, %v7757_v8  ;;  %v5708_v12 = vadd.f32 %v19785_v27, %v15533_v3  ;;  %15631 = vmatprep.mubr.msk.bf16.mxu0 %vm2785_vm2, %v16223_v11  ;;  %v19808_v54 = vpop.f32.mrf.mxu1  ;;  %v7758_v8 = vmax.f32 %v6484_v29, 0.0  ;;  %v16227_v29 = vld [vmem:[%s21928_s0 + $0x840] sm:$0xff]  }
 0x41b   :  { %v7559_v50 = vmax.f32 %v5687_v44, 0.0  ;;  %v5699_v4 = vpop.f32.mrf.mxu0  ;;  %v6487_v18 = vadd.f32 %v19785_v27, %v22474_v5  ;;  %v7761_v11 = vmax.f32 %v6495_v25, 0.0  ;;  %v22476_v44 = vld [vmem:[#allocation181_spill] sm:$0xff]  ;;  %v22478_v25 = vld [vmem:[#allocation162_spill] sm:$0xff] }
 0x41c   :  { %v8345_v58 = vmax.f32 %v22475_v34, %v8149_v37  ;;  %v7564_v33 = vmax.f32 %v5708_v12, 0.0  ;;  %v5700_v13 = vadd.f32 %v19785_v27, %v5699_v4  ;;  %v19815_v14 = vpop.f32.mrf.mxu1  ;;  %v6508_v3 = vadd.f32 %v19785_v27, %v22476_v44  ;;  %v22479_v34 = vld [vmem:[#allocation182_spill] sm:$0xff]  ;;  %v22480_v44 = vld [vmem:[#allocation163_spill] sm:$0xff] }
 0x41d   :  { %v8147_v2 = vmax.f32 %v7559_v50, %v7755_v35  ;;  %v15534_v59 = vpop.f32.mrf.mxu0  ;;  %v7759_v5 = vmax.f32 %v6487_v18, 0.0  ;;  %v6500_v55 = vadd.f32 %v19785_v27, %v22479_v34 }
 0x41e   :  { %v19822_v52 = vpack.c.bf16 %v8345_v58, %v8344_v0  ;;  %v8152_v45 = vmax.f32 %v7564_v33, %v7760_v7  ;;  %v7562_v37 = vmax.f32 %v5700_v13, 0.0  ;;  %v5711_v12 = vadd.f32 %v19785_v27, %v15534_v59  ;;  %v19828_v35 = vpop.f32.mrf.mxu1 }
 0x41f   :  { %v8343_v50 = vmax.f32 %v22478_v25, %v8147_v2  ;;  %v5702_v4 = vpop.f32.mrf.mxu0  ;;  %v7764_v19 = vmax.f32 %v6508_v3, 0.0  ;;  %v22482_v2 = vld [vmem:[#allocation164_spill] sm:$0xff] }
 0x420   :  { %22477 = vst [vmem:[#allocation158_spill] sm:$0xff] %v19822_v52  ;;  %v8348_v0 = vmax.f32 %v22480_v44, %v8152_v45  ;;  %v8150_v58 = vmax.f32 %v7562_v37, %v7758_v8  ;;  %v7565_v7 = vmax.f32 %v5711_v12, 0.0  ;;  %v5703_v33 = vadd.f32 %v19785_v27, %v5702_v4  ;;  %v19835_v13 = vpop.f32.mrf.mxu1  ;;  %v22483_v12 = vld [vmem:[#allocation183_spill] sm:$0xff] }
 0x421   :  { %v19837_v59 = vpack.c.bf16 %v8343_v50, %v8342_v9  ;;  %v15537_v52 = vpop.f32.mrf.mxu0  ;;  %15632 = vmatmul.mubr.msk.bf16.gmra.mxu0 %vm2785_vm2, %v16225_v60  ;;  %v7762_v37 = vmax.f32 %v6500_v55, 0.0  ;;  %v6511_v9 = vadd.f32 %v19785_v27, %v22483_v12  ;;  %v22484_v50 = vld [vmem:[#allocation184_spill] sm:$0xff]  ;;  %v22485_v60 = vld [vmem:[#allocation165_spill] sm:$0xff]  ;;  %v22488_v12 = vld [vmem:[#allocation166_spill] sm:$0xff] }
 0x422   :  { %v8346_v25 = vmax.f32 %v22482_v2, %v8150_v58  ;;  %v8153_v18 = vmax.f32 %v7565_v7, %v7761_v11  ;;  %v7563_v40 = vmax.f32 %v5703_v33, 0.0  ;;  %v5724_v34 = vadd.f32 %v19785_v27, %v15537_v52  ;;  %15635 = vmatprep.mubr.msk.bf16.mxu0 %vm2785_vm2, %v16227_v29  ;;  %v19843_v8 = vpop.f32.mrf.mxu1  ;;  %v16229_v29 = vld [vmem:[%s21928_s0 + $0x848] sm:$0xff]   ;;  %v22486_v55 = vld [vmem:[#allocation185_spill] sm:$0xff] }
 0x423   :  { %22481 = vst [vmem:[#allocation178_spill] sm:$0xff] %v19837_v59  ;;  %v5715_v45 = vpop.f32.mrf.mxu0  ;;  %v6503_v4 = vadd.f32 %v19785_v27, %v22484_v50  ;;  %v6524_v33 = vadd.f32 %v19785_v27, %v22486_v55  ;;  %v6516_v55 = vadd.f32 %v19785_v27, %v22489_v56 }
 0x424   :  { %v8349_v3 = vmax.f32 %v22485_v60, %v8153_v18  ;;  %v8151_v44 = vmax.f32 %v7563_v40, %v7759_v5  ;;  %v7568_v58 = vmax.f32 %v5724_v34, 0.0  ;;  %v5716_v11 = vadd.f32 %v19785_v27, %v5715_v45  ;;  %v19851_v7 = vpop.f32.mrf.mxu1  ;;  %v16231_v40 = vld [vmem:[%s21928_s0 + $0x850] sm:$0xff]  }
 0x425   :  { %v15538_v52 = vpop.f32.mrf.mxu0  ;;  %v7765_v45 = vmax.f32 %v6511_v9, 0.0  ;;  %v7763_v48 = vmax.f32 %v6503_v4, 0.0  ;;  %v22493_v4 = vld [vmem:[#allocation168_spill] sm:$0xff] }
 0x426   :  { %v19858_v2 = vpack.c.bf16 %v8349_v3, %v8348_v0  ;;  %v8347_v50 = vmax.f32 %v22488_v12, %v8151_v44  ;;  %v8156_v59 = vmax.f32 %v7568_v58, %v7764_v19  ;;  %v7566_v18 = vmax.f32 %v5716_v11, 0.0  ;;  %v19864_v5 = vpop.f32.mrf.mxu1  ;;  %v22491_v3 = vld [vmem:[#allocation167_spill] sm:$0xff] }
 0x427   :  { %v5727_v34 = vadd.f32 %v19785_v27, %v15538_v52  ;;  %v5718_v60 = vpop.f32.mrf.mxu0  ;;  %v22492_v52 = vld [vmem:[#allocation187_spill] sm:$0xff] }
 0x428   :  { %22487 = vst [vmem:[#allocation159_spill] sm:$0xff] %v19858_v2  ;;  %v19869_v0 = vpack.c.bf16 %v8347_v50, %v8346_v25  ;;  %v8352_v44 = vmax.f32 %v22491_v3, %v8156_v59  ;;  %v8154_v19 = vmax.f32 %v7566_v18, %v7762_v37  ;;  %v5719_v58 = vadd.f32 %v19785_v27, %v5718_v60  ;;  %v19873_v11 = vpop.f32.mrf.mxu1 }
 0x429   :  { %v7569_v12 = vmax.f32 %v5727_v34, 0.0  ;;  %v15541_v2 = vpop.f32.mrf.mxu0  ;;  %15636 = vmatmul.mubr.msk.bf16.gmra.mxu0 %vm2785_vm2, %v16229_v29  ;;  %v6527_v9 = vadd.f32 %v19785_v27, %v22492_v52  ;;  %v7768_v25 = vmax.f32 %v6524_v33, 0.0  ;;  %v7766_v29 = vmax.f32 %v6516_v55, 0.0  ;;  %v22496_v52 = vld [vmem:[#allocation169_spill] sm:$0xff] }
 0x42a   :  { %22490 = vst [vmem:[#allocation179_spill] sm:$0xff] %v19869_v0  ;;  %v8350_v30 = vmax.f32 %v22493_v4, %v8154_v19  ;;  %v7567_v39 = vmax.f32 %v5719_v58, 0.0  ;;  %v5740_v56 = vadd.f32 %v19785_v27, %v15541_v2  ;;  %15639 = vmatprep.mubr.msk.bf16.mxu0 %vm2785_vm2, %v16231_v40  ;;  %v19881_v59 = vpop.f32.mrf.mxu1  ;;  %v22497_v4 = vld [vmem:[#allocation188_spill] sm:$0xff]  ;;  %v16233_v2 = vld [vmem:[%s21928_s0 + $0x858] sm:$0xff]   ;;  %v22498_v40 = vld [vmem:[#allocation189_spill] sm:$0xff] }
 0x42b   :  { %22494 = vst [vmem:[#allocation160_spill] sm:$0xff] %v19881_v59  ;;  %v8157_v37 = vmax.f32 %v7569_v12, %v7765_v45  ;;  %v5731_v50 = vpop.f32.mrf.mxu0  ;;  %v7769_v58 = vmax.f32 %v6527_v9, 0.0  ;;  %v6519_v33 = vadd.f32 %v19785_v27, %v22497_v4  ;;  %v16235_v9 = vld [vmem:[%s21928_s0 + $0x860] sm:$0xff]   ;;  %v22502_v4 = vld [vmem:[#allocation190_spill] sm:$0xff] }
 0x42c   :  { %v8155_v18 = vmax.f32 %v7567_v39, %v7763_v48  ;;  %v7572_v34 = vmax.f32 %v5740_v56, 0.0  ;;  %v5732_v60 = vadd.f32 %v19785_v27, %v5731_v50  ;;  %v19884_v3 = vpop.f32.mrf.mxu1  ;;  %v6540_v39 = vadd.f32 %v19785_v27, %v22498_v40  ;;  %v22499_v48 = vld [vmem:[#allocation170_spill] sm:$0xff]  ;;  %v22504_v40 = vld [vmem:[#allocation171_spill] sm:$0xff] }
 0x42d   :  { %22495 = vst [vmem:[#allocation180_spill] sm:$0xff] %v19884_v3  ;;  %v8353_v0 = vmax.f32 %v22496_v52, %v8157_v37  ;;  %v15542_v19 = vpop.f32.mrf.mxu0  ;;  %v6532_v26 = vadd.f32 %v19785_v27, %v22502_v4 }
 0x42e   :  { %v8351_v45 = vmax.f32 %v22499_v48, %v8155_v18  ;;  %v8160_v12 = vmax.f32 %v7572_v34, %v7768_v25  ;;  %v7570_v55 = vmax.f32 %v5732_v60, 0.0  ;;  %v5743_v56 = vadd.f32 %v19785_v27, %v15542_v19  ;;  %v19899_v37 = vpop.f32.mrf.mxu1 }
 0x42f   :  { %22500 = vst [vmem:[#allocation161_spill] sm:$0xff] %v19899_v37  ;;  %v19901_v50 = vpack.c.bf16 %v8353_v0, %v8352_v44  ;;  %v5734_v52 = vpop.f32.mrf.mxu0  ;;  %v7767_v48 = vmax.f32 %v6519_v33, 0.0  ;;  %v22506_v0 = vld [vmem:[#allocation191_spill] sm:$0xff] }
 0x430   :  { %v19905_v46 = vpack.c.bf16 %v8351_v45, %v8350_v30  ;;  %v8356_v18 = vmax.f32 %v22504_v40, %v8160_v12  ;;  %v8158_v25 = vmax.f32 %v7570_v55, %v7766_v29  ;;  %v7573_v34 = vmax.f32 %v5743_v56, 0.0  ;;  %v19908_v60 = vpop.f32.mrf.mxu1  ;;  %v22509_v56 = vld [vmem:[#allocation192_spill] sm:$0xff] }
 0x431   :  { %22501 = vst [vmem:[#allocation181_spill] sm:$0xff] %v19901_v50  ;;  %22505 = vst [vmem:[#allocation182_spill] sm:$0xff] %v19908_v60  ;;  %v5735_v19 = vadd.f32 %v19785_v27, %v5734_v52  ;;  %v15545_v15 = vpop.f32.mrf.mxu0  ;;  %15640 = vmatmul.mubr.msk.bf16.gmra.mxu0 %vm2785_vm2, %v16233_v2  ;;  %v6543_v44 = vadd.f32 %v19785_v27, %v22506_v0  ;;  %v22507_v50 = vld [vmem:[#allocation172_spill] sm:$0xff]  ;;  %v7772_v45 = vmax.f32 %v6540_v39, 0.0  ;;  %v22510_v52 = vld [vmem:[#allocation173_spill] sm:$0xff] }
 0x432   :  { %22503 = vst [vmem:[#allocation162_spill] sm:$0xff] %v19905_v46  ;;  %v8354_v37 = vmax.f32 %v22507_v50, %v8158_v25  ;;  %v8161_v4 = vmax.f32 %v7573_v34, %v7769_v58  ;;  %v5756_v30 = vadd.f32 %v19785_v27, %v15545_v15  ;;  %15643 = vmatprep.mubr.msk.bf16.mxu0 %vm2785_vm2, %v16235_v9  ;;  %v19917_v29 = vpop.f32.mrf.mxu1  ;;  %v7770_v46 = vmax.f32 %v6532_v26, 0.0  ;;  %v16237_v9 = vld [vmem:[%s21928_s0 + $0x868] sm:$0xff]   ;;  %v22512_v25 = vld [vmem:[#allocation193_spill] sm:$0xff] }
 0x433   :  { %22508 = vst [vmem:[#allocation163_spill] sm:$0xff] %v19917_v29  ;;  %v7571_v12 = vmax.f32 %v5735_v19, 0.0  ;;  %v5747_v55 = vpop.f32.mrf.mxu0  ;;  %v6535_v33 = vadd.f32 %v19785_v27, %v22509_v56  ;;  %v7773_v39 = vmax.f32 %v6543_v44, 0.0  ;;  %v6556_v34 = vadd.f32 %v19785_v27, %v22512_v25  ;;  %v16239_v26 = vld [vmem:[%s21928_s0 + $0x870] sm:$0xff]   ;;  %v22515_v44 = vld [vmem:[#allocation174_spill] sm:$0xff]  ;;  %v22517_v25 = vld [vmem:[#allocation175_spill] sm:$0xff] }
 0x434   :  { %v8357_v2 = vmax.f32 %v22510_v52, %v8161_v4  ;;  %v7576_v40 = vmax.f32 %v5756_v30, 0.0  ;;  %v5748_v0 = vadd.f32 %v19785_v27, %v5747_v55  ;;  %v19923_v50 = vpop.f32.mrf.mxu1 }
 0x435   :  { %22511 = vst [vmem:[#allocation164_spill] sm:$0xff] %v19923_v50  ;;  %v8159_v58 = vmax.f32 %v7571_v12, %v7767_v48  ;;  %v15546_v15 = vpop.f32.mrf.mxu0  ;;  %v7771_v52 = vmax.f32 %v6535_v33, 0.0  ;;  %v22516_v50 = vld [vmem:[#allocation194_spill] sm:$0xff] }
 0x436   :  { %v19930_v19 = vpack.c.bf16 %v8357_v2, %v8356_v18  ;;  %v8164_v56 = vmax.f32 %v7576_v40, %v7772_v45  ;;  %v7574_v4 = vmax.f32 %v5748_v0, 0.0  ;;  %v5759_v30 = vadd.f32 %v19785_v27, %v15546_v15  ;;  %v19936_v48 = vpop.f32.mrf.mxu1 }
 0x437   :  { %22514 = vst [vmem:[#allocation184_spill] sm:$0xff] %v19936_v48  ;;  %v8355_v12 = vmax.f32 %v22515_v44, %v8159_v58  ;;  %v5750_v55 = vpop.f32.mrf.mxu0  ;;  %v6548_v29 = vadd.f32 %v19785_v27, %v22516_v50  ;;  %v7776_v48 = vmax.f32 %v6556_v34, 0.0  ;;  %v22520_v58 = vld [vmem:[#allocation2_spill] sm:$0xff] }
 0x438   :  { %22513 = vst [vmem:[#allocation183_spill] sm:$0xff] %v19930_v19  ;;  %v8360_v18 = vmax.f32 %v22517_v25, %v8164_v56  ;;  %v8162_v2 = vmax.f32 %v7574_v4, %v7770_v46  ;;  %v7577_v45 = vmax.f32 %v5759_v30, 0.0  ;;  %v5751_v40 = vadd.f32 %v19785_v27, %v5750_v55  ;;  %v19943_v0 = vpop.f32.mrf.mxu1  ;;  %v22522_v30 = vld [vmem:[#allocation195_spill] sm:$0xff] }
 0x439   :  { %22518 = vst [vmem:[#allocation165_spill] sm:$0xff] %v19943_v0  ;;  %v19945_v15 = vpack.c.bf16 %v8355_v12, %v8354_v37  ;;  %v15549_v19 = vpop.f32.mrf.mxu0  ;;  %15644 = vmatmul.mubr.msk.bf16.gmra.mxu0 %vm2785_vm2, %v16237_v9  ;;  %v7774_v4 = vmax.f32 %v6548_v29, 0.0  ;;  %v6559_v37 = vadd.f32 %v19785_v27, %v22522_v30  ;;  %v22523_v12 = vld [vmem:[#allocation196_spill] sm:$0xff]  ;;  %v22524_v9 = vld [vmem:[#allocation3_spill] sm:$0xff]  ;;  %v22526_v29 = vld [vmem:[#allocation197_spill] sm:$0xff] }
 0x43a   :  { %v8358_v44 = vmax.f32 %v22520_v58, %v8162_v2  ;;  %v8165_v33 = vmax.f32 %v7577_v45, %v7773_v39  ;;  %v7575_v60 = vmax.f32 %v5751_v40, 0.0  ;;  %v5772_v50 = vadd.f32 %v19785_v27, %v15549_v19  ;;  %15647 = vmatprep.mubr.msk.bf16.mxu0 %vm2785_vm2, %v16239_v26  ;;  %v19951_v46 = vpop.f32.mrf.mxu1  ;;  %v16241_v26 = vld [vmem:[%s21928_s0 + $0x878] sm:$0xff]   ;;  %v22528_v30 = vld [vmem:[#allocation4_spill] sm:$0xff] }
 0x43b   :  { %22519 = vst [vmem:[#allocation185_spill] sm:$0xff] %v19945_v15  ;;  %22521 = vst [vmem:[#allocation166_spill] sm:$0xff] %v19951_v46  ;;  %v5763_v56 = vpop.f32.mrf.mxu0  ;;  %v6551_v55 = vadd.f32 %v19785_v27, %v22523_v12  ;;  %v6572_v40 = vadd.f32 %v19785_v27, %v22526_v29  ;;  %v22530_v46 = vld [vmem:[#allocation198_spill] sm:$0xff] }
 0x43c   :  { %v8361_v34 = vmax.f32 %v22524_v9, %v8165_v33  ;;  %v8163_v25 = vmax.f32 %v7575_v60, %v7771_v52  ;;  %v7580_v2 = vmax.f32 %v5772_v50, 0.0  ;;  %v5764_v39 = vadd.f32 %v19785_v27, %v5763_v56  ;;  %v19959_v45 = vpop.f32.mrf.mxu1  ;;  %v16243_v60 = vld [vmem:[%s21928_s0 + $0x880] sm:$0xff]  }
 0x43d   :  { %22525 = vst [vmem:[#allocation186_spill] sm:$0xff] %v19959_v45  ;;  %v15550_v19 = vpop.f32.mrf.mxu0  ;;  %v7777_v56 = vmax.f32 %v6559_v37, 0.0  ;;  %v7775_v45 = vmax.f32 %v6551_v55, 0.0  ;;  %v6564_v29 = vadd.f32 %v19785_v27, %v22530_v46  ;;  %v22535_v55 = vld [vmem:[#allocation6_spill] sm:$0xff]  ;;  %v7780_v46 = vmax.f32 %v6572_v40, 0.0 }
 0x43e   :  { %v19966_v58 = vpack.c.bf16 %v8361_v34, %v8360_v18  ;;  %v8359_v12 = vmax.f32 %v22528_v30, %v8163_v25  ;;  %v8168_v15 = vmax.f32 %v7580_v2, %v7776_v48  ;;  %v7578_v33 = vmax.f32 %v5764_v39, 0.0  ;;  %v19972_v52 = vpop.f32.mrf.mxu1  ;;  %v22532_v34 = vld [vmem:[#allocation5_spill] sm:$0xff] }
 0x43f   :  { %22529 = vst [vmem:[#allocation187_spill] sm:$0xff] %v19972_v52  ;;  %v5775_v50 = vadd.f32 %v19785_v27, %v15550_v19  ;;  %v5766_v9 = vpop.f32.mrf.mxu0  ;;  %v22534_v19 = vld [vmem:[#allocation199_spill] sm:$0xff] }
 0x440   :  { %22527 = vst [vmem:[#allocation167_spill] sm:$0xff] %v19966_v58  ;;  %v19977_v18 = vpack.c.bf16 %v8359_v12, %v8358_v44  ;;  %v8364_v25 = vmax.f32 %v22532_v34, %v8168_v15  ;;  %v8166_v48 = vmax.f32 %v7578_v33, %v7774_v4  ;;  %v5767_v2 = vadd.f32 %v19785_v27, %v5766_v9  ;;  %v19981_v39 = vpop.f32.mrf.mxu1 }
 0x441   :  { %22533 = vst [vmem:[#allocation169_spill] sm:$0xff] %v19981_v39  ;;  %v7581_v30 = vmax.f32 %v5775_v50, 0.0  ;;  %v15553_v58 = vpop.f32.mrf.mxu0  ;;  %15648 = vmatmul.mubr.msk.bf16.gmra.mxu0 %vm2785_vm2, %v16241_v26  ;;  %v6575_v37 = vadd.f32 %v19785_v27, %v22534_v19  ;;  %v7778_v26 = vmax.f32 %v6564_v29, 0.0  ;;  %v22538_v19 = vld [vmem:[#allocation7_spill] sm:$0xff] }
 0x442   :  { %22531 = vst [vmem:[#allocation168_spill] sm:$0xff] %v19977_v18  ;;  %v8362_v52 = vmax.f32 %v22535_v55, %v8166_v48  ;;  %v7579_v0 = vmax.f32 %v5767_v2, 0.0  ;;  %v5788_v44 = vadd.f32 %v19785_v27, %v15553_v58  ;;  %15651 = vmatprep.mubr.msk.bf16.mxu0 %vm2785_vm2, %v16243_v60  ;;  %v19989_v15 = vpop.f32.mrf.mxu1  ;;  %v22539_v55 = vld [vmem:[#allocation200_spill] sm:$0xff]  ;;  %v22540_v60 = vld [vmem:[#allocation201_spill] sm:$0xff] }
 0x443   :  { %22536 = vst [vmem:[#allocation188_spill] sm:$0xff] %v19989_v15  ;;  %v8169_v4 = vmax.f32 %v7581_v30, %v7777_v56  ;;  %v5779_v12 = vpop.f32.mrf.mxu0  ;;  %v7781_v2 = vmax.f32 %v6575_v37, 0.0  ;;  %v6567_v40 = vadd.f32 %v19785_v27, %v22539_v55  ;;  %v16245_v58 = vld [vmem:[%s21928_s0 + $0x888] sm:$0xff]   ;;  %v16247_v37 = vld [vmem:[%s21928_s0 + $0x890] sm:$0xff]  }
 0x444   :  { %v8167_v33 = vmax.f32 %v7579_v0, %v7775_v45  ;;  %v7584_v50 = vmax.f32 %v5788_v44, 0.0  ;;  %v5780_v9 = vadd.f32 %v19785_v27, %v5779_v12  ;;  %v19992_v34 = vpop.f32.mrf.mxu1  ;;  %v6588_v0 = vadd.f32 %v19785_v27, %v22540_v60  ;;  %v22541_v45 = vld [vmem:[#allocation8_spill] sm:$0xff] }
 0x445   :  { %22537 = vst [vmem:[#allocation189_spill] sm:$0xff] %v19992_v34  ;;  %v8365_v18 = vmax.f32 %v22538_v19, %v8169_v4  ;;  %v15554_v48 = vpop.f32.mrf.mxu0  ;;  %v16291_v4 = vld [vmem:[%s21930_s3 + $0x20] ss:$8 sps:$4 sm:$0xff]   ;;  %v16293_v12 = vld [vmem:[%s21930_s3 + $0x24] ss:$8 sps:$4 sm:$0xff]   ;;  %v7779_v3 = vmax.f32 %v6567_v40, 0.0 }
 0x446   :  { %v8363_v56 = vmax.f32 %v22541_v45, %v8167_v33  ;;  %v8172_v30 = vmax.f32 %v7584_v50, %v7780_v46  ;;  %v7582_v29 = vmax.f32 %v5780_v9, 0.0  ;;  %v5791_v44 = vadd.f32 %v19785_v27, %v15554_v48  ;;  %v20013_v19 = vpop.f32.mrf.mxu1  ;;  %v22543_v33 = vld [vmem:[#allocation202_spill] sm:$0xff]  ;;  %v22545_v48 = vld [vmem:[#allocation9_spill] sm:$0xff]  ;;  %8564 = vmatprep.subr.bf16.mxu1 %v16293_v12  ;;  %v22549_v40 = vld [vmem:[#allocation204_spill] sm:$0xff] }
 0x447   :  { %v20015_v55 = vpack.c.bf16 %v8365_v18, %v8364_v25  ;;  %v5782_v46 = vpop.f32.mrf.mxu0  ;;  %v6580_v50 = vadd.f32 %v19785_v27, %v22543_v33  ;;  %v22546_v18 = vld [vmem:[#allocation203_spill] sm:$0xff]  ;;  %8565 = vmatpush1.bf16.msra.mxu1 %v16291_v4  ;;  %v22547_v33 = vld [vmem:[#allocation10_spill] sm:$0xff] }
 0x448   :  { %v20019_v9 = vpack.c.bf16 %v8363_v56, %v8362_v52  ;;  %v8368_v60 = vmax.f32 %v22545_v48, %v8172_v30  ;;  %v8170_v45 = vmax.f32 %v7582_v29, %v7778_v26  ;;  %v7585_v34 = vmax.f32 %v5791_v44, 0.0  ;;  %v20022_v15 = vpop.f32.mrf.mxu1 }
 0x449   :  { %22542 = vst [vmem:[#allocation170_spill] sm:$0xff] %v20015_v55  ;;  %v5783_v39 = vadd.f32 %v19785_v27, %v5782_v46  ;;  %v15557_v59 = vpop.f32.mrf.mxu0  ;;  %15652 = vmatmul.mubr.msk.bf16.gmra.mxu0 %vm2785_vm2, %v16245_v58  ;;  %v6591_v25 = vadd.f32 %v19785_v27, %v22546_v18  ;;  %v7784_v26 = vmax.f32 %v6588_v0, 0.0  ;;  %v6583_v46 = vadd.f32 %v19785_v27, %v22549_v40  ;;  %v22550_v58 = vld [vmem:[#allocation11_spill] sm:$0xff]  ;;  %v16249_v0 = vld [vmem:[%s21928_s0 + $0x898] sm:$0xff]  }
 0x44a   :  { %22544 = vst [vmem:[#allocation190_spill] sm:$0xff] %v20019_v9  ;;  %v8366_v52 = vmax.f32 %v22547_v33, %v8170_v45  ;;  %v8173_v56 = vmax.f32 %v7585_v34, %v7781_v2  ;;  %v5804_v30 = vadd.f32 %v19785_v27, %v15557_v59  ;;  %15655 = vmatprep.mubr.msk.bf16.mxu0 %vm2785_vm2, %v16247_v37  ;;  %v20031_v29 = vpop.f32.mrf.mxu1  ;;  %v7782_v18 = vmax.f32 %v6580_v50, 0.0  ;;  %v16251_v50 = vld [vmem:[%s21928_s0 + $0x8a0] sm:$0xff]   ;;  %v22556_v9 = vld [vmem:[#allocation206_spill] sm:$0xff] }
 0x44b   :  { %22548 = vst [vmem:[#allocation171_spill] sm:$0xff] %v20031_v29  ;;  %v7583_v44 = vmax.f32 %v5783_v39, 0.0  ;;  %v5795_v12 = vpop.f32.mrf.mxu0  ;;  %v7785_v2 = vmax.f32 %v6591_v25, 0.0  ;;  %v22552_v39 = vld [vmem:[#allocation205_spill] sm:$0xff]  ;;  %v22555_v25 = vld [vmem:[#allocation12_spill] sm:$0xff] }
 0x44c   :  { %v8369_v48 = vmax.f32 %v22550_v58, %v8173_v56  ;;  %v7588_v55 = vmax.f32 %v5804_v30, 0.0  ;;  %v5796_v4 = vadd.f32 %v19785_v27, %v5795_v12  ;;  %v20037_v45 = vpop.f32.mrf.mxu1  ;;  %v6604_v37 = vadd.f32 %v19785_v27, %v22552_v39  ;;  %v22557_v39 = vld [vmem:[#allocation13_spill] sm:$0xff] }
 0x44d   :  { %22551 = vst [vmem:[#allocation191_spill] sm:$0xff] %v20037_v45  ;;  %v8171_v34 = vmax.f32 %v7583_v44, %v7779_v3  ;;  %v15558_v59 = vpop.f32.mrf.mxu0  ;;  %v7783_v58 = vmax.f32 %v6583_v46, 0.0  ;;  %v6596_v45 = vadd.f32 %v19785_v27, %v22556_v9 }
 0x44e   :  { %v20044_v33 = vpack.c.bf16 %v8369_v48, %v8368_v60  ;;  %v8176_v40 = vmax.f32 %v7588_v55, %v7784_v26  ;;  %v7586_v56 = vmax.f32 %v5796_v4, 0.0  ;;  %v5807_v30 = vadd.f32 %v19785_v27, %v15558_v59  ;;  %v20050_v3 = vpop.f32.mrf.mxu1 }
 0x44f   :  { %22554 = vst [vmem:[#allocation192_spill] sm:$0xff] %v20050_v3  ;;  %v8367_v44 = vmax.f32 %v22555_v25, %v8171_v34  ;;  %v5798_v12 = vpop.f32.mrf.mxu0  ;;  %v7788_v3 = vmax.f32 %v6604_v37, 0.0  ;;  %v22559_v34 = vld [vmem:[#allocation14_spill] sm:$0xff] }
 0x450   :  { %22553 = vst [vmem:[#allocation172_spill] sm:$0xff] %v20044_v33  ;;  %v8372_v60 = vmax.f32 %v22557_v39, %v8176_v40  ;;  %v8174_v48 = vmax.f32 %v7586_v56, %v7782_v18  ;;  %v7589_v55 = vmax.f32 %v5807_v30, 0.0  ;;  %v5799_v26 = vadd.f32 %v19785_v27, %v5798_v12  ;;  %v20057_v4 = vpop.f32.mrf.mxu1 }
 0x451   :  { %v20059_v59 = vpack.c.bf16 %v8367_v44, %v8366_v52  ;;  %v15561_v33 = vpop.f32.mrf.mxu0  ;;  %15656 = vmatmul.mubr.msk.bf16.gmra.mxu0 %vm2785_vm2, %v16249_v0  ;;  %v7786_v56 = vmax.f32 %v6596_v45, 0.0  ;;  %v6607_v52 = vadd.f32 %v19785_v27, %v19454_v23  ;;  %v6599_v30 = vadd.f32 %v19785_v27, %v19462_v20  ;;  %v22560_v0 = vld [vmem:[#allocation15_spill] sm:$0xff] }
 0x452   :  { %v8370_v25 = vmax.f32 %v22559_v34, %v8174_v48  ;;  %v8177_v46 = vmax.f32 %v7589_v55, %v7785_v2  ;;  %v7587_v29 = vmax.f32 %v5799_v26, 0.0  ;;  %v5820_v9 = vadd.f32 %v19785_v27, %v15561_v33  ;;  %15659 = vmatprep.mubr.msk.bf16.mxu0 %vm2785_vm2, %v16251_v50  ;;  %v20065_v18 = vpop.f32.mrf.mxu1  ;;  %v16253_v50 = vld [vmem:[%s21928_s0 + $0x8a8] sm:$0xff]  }
 0x453   :  { %22558 = vst [vmem:[#allocation173_spill] sm:$0xff] %v20059_v59  ;;  %v5811_v40 = vpop.f32.mrf.mxu0  ;;  %v6620_v45 = vadd.f32 %v19785_v27, %v19474_v10  ;;  %v22562_v48 = vld [vmem:[#allocation16_spill] sm:$0xff]  ;;  %v6612_v10 = vadd.f32 %v19785_v27, %v19481_v31 }
 0x454   :  { %v8373_v37 = vmax.f32 %v22560_v0, %v8177_v46  ;;  %v8175_v44 = vmax.f32 %v7587_v29, %v7783_v58  ;;  %v7592_v12 = vmax.f32 %v5820_v9, 0.0  ;;  %v5812_v2 = vadd.f32 %v19785_v27, %v5811_v40  ;;  %v20073_v39 = vpop.f32.mrf.mxu1  ;;  %v16255_v29 = vld [vmem:[%s21928_s0 + $0x8b0] sm:$0xff]  }
 0x455   :  { %v15562_v33 = vpop.f32.mrf.mxu0  ;;  %v7789_v46 = vmax.f32 %v6607_v52, 0.0  ;;  %v7787_v40 = vmax.f32 %v6599_v30, 0.0  ;;  %v22564_v0 = vld [vmem:[#allocation17_spill] sm:$0xff]  ;;  %v6623_v52 = vadd.f32 %v19785_v27, %v19491_v24  ;;  %v22565_v30 = vld [vmem:[#allocation18_spill] sm:$0xff]  ;;  %v22568_v24 = vld [vmem:[#allocation19_spill] sm:$0xff] }
 0x456   :  { %v20080_v23 = vpack.c.bf16 %v8373_v37, %v8372_v60  ;;  %v8371_v20 = vmax.f32 %v22562_v48, %v8175_v44  ;;  %v8180_v55 = vmax.f32 %v7592_v12, %v7788_v3  ;;  %v7590_v26 = vmax.f32 %v5812_v2, 0.0  ;;  %v20086_v58 = vpop.f32.mrf.mxu1 }
 0x457   :  { %v5823_v34 = vadd.f32 %v19785_v27, %v15562_v33  ;;  %v5814_v9 = vpop.f32.mrf.mxu0 }
 0x458   :  { %22561 = vst [vmem:[#allocation193_spill] sm:$0xff] %v20080_v23  ;;  %v20091_v60 = vpack.c.bf16 %v8371_v20, %v8370_v25  ;;  %v8376_v37 = vmax.f32 %v22564_v0, %v8180_v55  ;;  %v8178_v3 = vmax.f32 %v7590_v26, %v7786_v56  ;;  %v5815_v44 = vadd.f32 %v19785_v27, %v5814_v9  ;;  %v20095_v12 = vpop.f32.mrf.mxu1 }
 0x459   :  { %v7593_v2 = vmax.f32 %v5823_v34, 0.0  ;;  %v15565_v48 = vpop.f32.mrf.mxu0  ;;  %15660 = vmatmul.mubr.msk.bf16.gmra.mxu0 %vm2785_vm2, %v16253_v50  ;;  %v7792_v25 = vmax.f32 %v6620_v45, 0.0  ;;  %v7790_v50 = vmax.f32 %v6612_v10, 0.0 }
 0x45a   :  { %22563 = vst [vmem:[#allocation174_spill] sm:$0xff] %v20091_v60  ;;  %v8374_v33 = vmax.f32 %v22565_v30, %v8178_v3  ;;  %v7591_v23 = vmax.f32 %v5815_v44, 0.0  ;;  %v5836_v31 = vadd.f32 %v19785_v27, %v15565_v48  ;;  %15663 = vmatprep.mubr.msk.bf16.mxu0 %vm2785_vm2, %v16255_v29  ;;  %v20103_v56 = vpop.f32.mrf.mxu1  ;;  %v7793_v44 = vmax.f32 %v6623_v52, 0.0  ;;  %v22569_v30 = vld [vmem:[#allocation214_spill] sm:$0xff]  ;;  %v16259_v52 = vld [vmem:[%s21928_s0 + $0x8c0] sm:$0xff]  }
 0x45b   :  { %22566 = vst [vmem:[#allocation194_spill] sm:$0xff] %v20103_v56  ;;  %v8181_v20 = vmax.f32 %v7593_v2, %v7789_v46  ;;  %v5827_v55 = vpop.f32.mrf.mxu0  ;;  %v6615_v45 = vadd.f32 %v19785_v27, %v22569_v30  ;;  %v16257_v29 = vld [vmem:[%s21928_s0 + $0x8b8] sm:$0xff]   ;;  %v22570_v46 = vld [vmem:[#allocation216_spill] sm:$0xff] }
 0x45c   :  { %v8179_v26 = vmax.f32 %v7591_v23, %v7787_v40  ;;  %v7596_v34 = vmax.f32 %v5836_v31, 0.0  ;;  %v5828_v9 = vadd.f32 %v19785_v27, %v5827_v55  ;;  %v20106_v0 = vpop.f32.mrf.mxu1  ;;  %v6636_v23 = vadd.f32 %v19785_v27, %v22570_v46  ;;  %v22571_v40 = vld [vmem:[#allocation20_spill] sm:$0xff]  ;;  %v22574_v30 = vld [vmem:[#allocation218_spill] sm:$0xff]  ;;  %v22576_v46 = vld [vmem:[#allocation21_spill] sm:$0xff] }
 0x45d   :  { %22567 = vst [vmem:[#allocation175_spill] sm:$0xff] %v20106_v0  ;;  %v8377_v60 = vmax.f32 %v22568_v24, %v8181_v20  ;;  %v15566_v3 = vpop.f32.mrf.mxu0  ;;  %v6628_v59 = vadd.f32 %v19785_v27, %v22574_v30 }
 0x45e   :  { %v8375_v2 = vmax.f32 %v22571_v40, %v8179_v26  ;;  %v8184_v48 = vmax.f32 %v7596_v34, %v7792_v25  ;;  %v7594_v10 = vmax.f32 %v5828_v9, 0.0  ;;  %v5839_v31 = vadd.f32 %v19785_v27, %v15566_v3  ;;  %v20121_v20 = vpop.f32.mrf.mxu1 }
 0x45f   :  { %22572 = vst [vmem:[#allocation2_spill] sm:$0xff] %v20121_v20  ;;  %v20123_v55 = vpack.c.bf16 %v8377_v60, %v8376_v37  ;;  %v5830_v24 = vpop.f32.mrf.mxu0  ;;  %v7791_v40 = vmax.f32 %v6615_v45, 0.0  ;;  %v22578_v60 = vld [vmem:[#allocation220_spill] sm:$0xff] }
 0x460   :  { %v20127_v0 = vpack.c.bf16 %v8375_v2, %v8374_v33  ;;  %v8380_v26 = vmax.f32 %v22576_v46, %v8184_v48  ;;  %v8182_v25 = vmax.f32 %v7594_v10, %v7790_v50  ;;  %v7597_v34 = vmax.f32 %v5839_v31, 0.0  ;;  %v20130_v9 = vpop.f32.mrf.mxu1  ;;  %v22581_v31 = vld [vmem:[#allocation222_spill] sm:$0xff] }
 0x461   :  { %22573 = vst [vmem:[#allocation195_spill] sm:$0xff] %v20123_v55  ;;  %22577 = vst [vmem:[#allocation3_spill] sm:$0xff] %v20130_v9  ;;  %v5831_v3 = vadd.f32 %v19785_v27, %v5830_v24  ;;  %v15569_v56 = vpop.f32.mrf.mxu0  ;;  %15664 = vmatmul.mubr.msk.bf16.gmra.mxu0 %vm2785_vm2, %v16257_v29  ;;  %v6639_v37 = vadd.f32 %v19785_v27, %v22578_v60  ;;  %v22579_v55 = vld [vmem:[#allocation22_spill] sm:$0xff]  ;;  %v7796_v2 = vmax.f32 %v6636_v23, 0.0  ;;  %v22582_v24 = vld [vmem:[#allocation23_spill] sm:$0xff] }
 0x462   :  { %22575 = vst [vmem:[#allocation196_spill] sm:$0xff] %v20127_v0  ;;  %v8378_v20 = vmax.f32 %v22579_v55, %v8182_v25  ;;  %v8185_v30 = vmax.f32 %v7597_v34, %v7793_v44  ;;  %v5852_v33 = vadd.f32 %v19785_v27, %v15569_v56  ;;  %15667 = vmatprep.mubr.msk.bf16.mxu0 %vm2785_vm2, %v16259_v52  ;;  %v20139_v50 = vpop.f32.mrf.mxu1  ;;  %v7794_v0 = vmax.f32 %v6628_v59, 0.0  ;;  %v16261_v52 = vld [vmem:[%s21928_s0 + $0x8c8] sm:$0xff]   ;;  %v22584_v25 = vld [vmem:[#allocation223_spill] sm:$0xff]  ;;  %v16263_v59 = vld [vmem:[%s21928_s0 + $0x8d0] sm:$0xff]  }
 0x463   :  { %22580 = vst [vmem:[#allocation197_spill] sm:$0xff] %v20139_v50  ;;  %v7595_v48 = vmax.f32 %v5831_v3, 0.0  ;;  %v5843_v10 = vpop.f32.mrf.mxu0  ;;  %v6631_v45 = vadd.f32 %v19785_v27, %v22581_v31  ;;  %v7797_v23 = vmax.f32 %v6639_v37, 0.0  ;;  %v6652_v34 = vadd.f32 %v19785_v27, %v22584_v25  ;;  %v22587_v37 = vld [vmem:[#allocation24_spill] sm:$0xff]  ;;  %v22589_v25 = vld [vmem:[#allocation25_spill] sm:$0xff] }
 0x464   :  { %v8381_v29 = vmax.f32 %v22582_v24, %v8185_v30  ;;  %v7600_v46 = vmax.f32 %v5852_v33, 0.0  ;;  %v5844_v60 = vadd.f32 %v19785_v27, %v5843_v10  ;;  %v20145_v55 = vpop.f32.mrf.mxu1 }
 0x465   :  { %22583 = vst [vmem:[#allocation4_spill] sm:$0xff] %v20145_v55  ;;  %v8183_v44 = vmax.f32 %v7595_v48, %v7791_v40  ;;  %v15570_v56 = vpop.f32.mrf.mxu0  ;;  %v7795_v24 = vmax.f32 %v6631_v45, 0.0  ;;  %v22588_v55 = vld [vmem:[#allocation224_spill] sm:$0xff] }
 0x466   :  { %v20152_v3 = vpack.c.bf16 %v8381_v29, %v8380_v26  ;;  %v8188_v31 = vmax.f32 %v7600_v46, %v7796_v2  ;;  %v7598_v30 = vmax.f32 %v5844_v60, 0.0  ;;  %v5855_v33 = vadd.f32 %v19785_v27, %v15570_v56  ;;  %v20158_v40 = vpop.f32.mrf.mxu1 }
 0x467   :  { %22586 = vst [vmem:[#allocation5_spill] sm:$0xff] %v20158_v40  ;;  %v8379_v48 = vmax.f32 %v22587_v37, %v8183_v44  ;;  %v5846_v10 = vpop.f32.mrf.mxu0  ;;  %v6644_v50 = vadd.f32 %v19785_v27, %v22588_v55  ;;  %v7800_v40 = vmax.f32 %v6652_v34, 0.0  ;;  %v22590_v44 = vld [vmem:[#allocation26_spill] sm:$0xff] }
 0x468   :  { %22585 = vst [vmem:[#allocation198_spill] sm:$0xff] %v20152_v3  ;;  %v8384_v26 = vmax.f32 %v22589_v25, %v8188_v31  ;;  %v8186_v29 = vmax.f32 %v7598_v30, %v7794_v0  ;;  %v7601_v2 = vmax.f32 %v5855_v33, 0.0  ;;  %v5847_v46 = vadd.f32 %v19785_v27, %v5846_v10  ;;  %v20165_v60 = vpop.f32.mrf.mxu1  ;;  %v22591_v30 = vld [vmem:[#allocation225_spill] sm:$0xff] }
 0x469   :  { %v20167_v56 = vpack.c.bf16 %v8379_v48, %v8378_v20  ;;  %v15573_v3 = vpop.f32.mrf.mxu0  ;;  %15668 = vmatmul.mubr.msk.bf16.gmra.mxu0 %vm2785_vm2, %v16261_v52  ;;  %v7798_v31 = vmax.f32 %v6644_v50, 0.0  ;;  %v6655_v33 = vadd.f32 %v19785_v27, %v22591_v30  ;;  %v6647_v20 = vadd.f32 %v19785_v27, %v19571_v43  ;;  %v22592_v48 = vld [vmem:[#allocation27_spill] sm:$0xff] }
 0x46a   :  { %v8382_v37 = vmax.f32 %v22590_v44, %v8186_v29  ;;  %v8189_v45 = vmax.f32 %v7601_v2, %v7797_v23  ;;  %v7599_v9 = vmax.f32 %v5847_v46, 0.0  ;;  %v5868_v55 = vadd.f32 %v19785_v27, %v15573_v3  ;;  %15671 = vmatprep.mubr.msk.bf16.mxu0 %vm2785_vm2, %v16263_v59  ;;  %v20179_v23 = vpop.f32.mrf.mxu1  ;;  %v16265_v3 = vld [vmem:[%s21928_s0 + $0x8d8] sm:$0xff]   ;;  %v22594_v2 = vld [vmem:[#allocation28_spill] sm:$0xff] }
 0x46b   :  { %v5859_v0 = vpop.f32.mrf.mxu0  ;;  %v6668_v50 = vadd.f32 %v19785_v27, %v19581_v62  ;;  %v6660_v30 = vadd.f32 %v19785_v27, %v19590_v16  ;;  %v22596_v62 = vld [vmem:[#allocation29_spill] sm:$0xff] }
 0x46c   :  { %v8385_v10 = vmax.f32 %v22592_v48, %v8189_v45  ;;  %v8187_v52 = vmax.f32 %v7599_v9, %v7795_v24  ;;  %v7604_v34 = vmax.f32 %v5868_v55, 0.0  ;;  %v5860_v25 = vadd.f32 %v19785_v27, %v5859_v0  ;;  %v16267_v9 = vld [vmem:[%s21928_s0 + $0x8e0] sm:$0xff]  }
 0x46d   :  { %v15574_v29 = vpop.f32.mrf.mxu0  ;;  %v7801_v45 = vmax.f32 %v6655_v33, 0.0  ;;  %v7799_v0 = vmax.f32 %v6647_v20, 0.0  ;;  %v6671_v33 = vadd.f32 %v19785_v27, %v19603_v22  ;;  %v22597_v20 = vld [vmem:[#allocation30_spill] sm:$0xff] }
 0x46e   :  { %v20186_v59 = vpack.c.bf16 %v8385_v10, %v8384_v26  ;;  %v8383_v43 = vmax.f32 %v22594_v2, %v8187_v52  ;;  %v8192_v46 = vmax.f32 %v7604_v34, %v7800_v40  ;;  %v7602_v44 = vmax.f32 %v5860_v25, 0.0  ;;  %v20199_v52 = vpop.f32.mrf.mxu1 }
 0x46f   :  { %v5871_v24 = vadd.f32 %v19785_v27, %v15574_v29  ;;  %v5862_v55 = vpop.f32.mrf.mxu0 }
 0x470   :  { %22593 = vst [vmem:[#allocation199_spill] sm:$0xff] %v20186_v59  ;;  %v20195_v48 = vpack.c.bf16 %v8383_v43, %v8382_v37  ;;  %v8388_v26 = vmax.f32 %v22596_v62, %v8192_v46  ;;  %v8190_v10 = vmax.f32 %v7602_v44, %v7798_v31  ;;  %v5863_v40 = vadd.f32 %v19785_v27, %v5862_v55  ;;  %v20208_v62 = vpop.f32.mrf.mxu1 }
 0x471   :  { %v7605_v34 = vmax.f32 %v5871_v24, 0.0  ;;  %v15577_v25 = vpop.f32.mrf.mxu0  ;;  %15672 = vmatmul.mubr.msk.bf16.gmra.mxu0 %vm2785_vm2, %v16265_v3  ;;  %v7804_v37 = vmax.f32 %v6668_v50, 0.0  ;;  %v7802_v55 = vmax.f32 %v6660_v30, 0.0  ;;  %v22598_v3 = vld [vmem:[#allocation31_spill] sm:$0xff]  ;;  %v16269_v50 = vld [vmem:[%s21928_s0 + $0x8e8] sm:$0xff]  }
 0x472   :  { %22595 = vst [vmem:[#allocation6_spill] sm:$0xff] %v20195_v48  ;;  %v8386_v29 = vmax.f32 %v22597_v20, %v8190_v10  ;;  %v7603_v2 = vmax.f32 %v5863_v40, 0.0  ;;  %v5884_v16 = vadd.f32 %v19785_v27, %v15577_v25  ;;  %15675 = vmatprep.mubr.msk.bf16.mxu0 %vm2785_vm2, %v16267_v9  ;;  %v7805_v48 = vmax.f32 %v6671_v33, 0.0  ;;  %v16271_v25 = vld [vmem:[%s21928_s0 + $0x8f0] sm:$0xff]  }
 0x473   :  { %v8193_v31 = vmax.f32 %v7605_v34, %v7801_v45  ;;  %v5875_v43 = vpop.f32.mrf.mxu0  ;;  %v6663_v10 = vadd.f32 %v19785_v27, %v19615_v21  ;;  %v6684_v9 = vadd.f32 %v19785_v27, %v19627_v41  ;;  %v22599_v45 = vld [vmem:[#allocation32_spill] sm:$0xff]  ;;  %v6676_v20 = vadd.f32 %v19785_v27, %v19631_v1 }
 0x474   :  { %v8191_v46 = vmax.f32 %v7603_v2, %v7799_v0  ;;  %v7608_v44 = vmax.f32 %v5884_v16, 0.0  ;;  %v5876_v24 = vadd.f32 %v19785_v27, %v5875_v43  ;;  %v22600_v16 = vld [vmem:[#allocation33_spill] sm:$0xff] }
 0x475   :  { %v8389_v59 = vmax.f32 %v22598_v3, %v8193_v31  ;;  %v15578_v22 = vpop.f32.mrf.mxu0 }
 0x476   :  { %v8387_v0 = vmax.f32 %v22599_v45, %v8191_v46  ;;  %v8196_v40 = vmax.f32 %v7608_v44, %v7804_v37  ;;  %v7606_v30 = vmax.f32 %v5876_v24, 0.0  ;;  %v5887_v34 = vadd.f32 %v19785_v27, %v15578_v22  ;;  %v20230_v37 = vpop.f32.mrf.mxu1 }
 0x477   :  { %v20223_v33 = vpack.c.bf16 %v8389_v59, %v8388_v26  ;;  %v5878_v21 = vpop.f32.mrf.mxu0  ;;  %v7803_v44 = vmax.f32 %v6663_v10, 0.0  ;;  %v6687_v59 = vadd.f32 %v19785_v27, %v19646_v61  ;;  %v22601_v26 = vld [vmem:[#allocation34_spill] sm:$0xff]  ;;  %v7808_v22 = vmax.f32 %v6684_v9, 0.0  ;;  %v22602_v10 = vld [vmem:[#allocation35_spill] sm:$0xff] }
 0x478   :  { %v20227_v2 = vpack.c.bf16 %v8387_v0, %v8386_v29  ;;  %v8392_v41 = vmax.f32 %v22600_v16, %v8196_v40  ;;  %v8194_v31 = vmax.f32 %v7606_v30, %v7802_v55  ;;  %v7609_v43 = vmax.f32 %v5887_v34, 0.0  ;;  %v20243_v61 = vpop.f32.mrf.mxu1  ;;  %v16273_v9 = vld [vmem:[%s21928_s0 + $0x8f8] sm:$0xff]  }
 0x479   :  { %v5879_v46 = vadd.f32 %v19785_v27, %v5878_v21  ;;  %v15581_v24 = vpop.f32.mrf.mxu0  ;;  %15676 = vmatmul.mubr.msk.bf16.gmra.mxu0 %vm2785_vm2, %v16269_v50  ;;  %v6679_v0 = vadd.f32 %v19785_v27, %v19658_v51  ;;  %v7806_v34 = vmax.f32 %v6676_v20, 0.0  ;;  %v7809_v16 = vmax.f32 %v6687_v59, 0.0  ;;  %v16275_v20 = vld [vmem:[%s21928_s0 + $0x900] sm:$0xff]  }
 0x47a   :  { %v8390_v3 = vmax.f32 %v22601_v26, %v8194_v31  ;;  %v8197_v1 = vmax.f32 %v7609_v43, %v7805_v48  ;;  %v5900_v29 = vadd.f32 %v19785_v27, %v15581_v24  ;;  %15679 = vmatprep.mubr.msk.bf16.mxu0 %vm2785_vm2, %v16271_v25  ;;  %v6700_v25 = vadd.f32 %v19785_v27, %v19671_v38 }
 0x47b   :  { %v7607_v55 = vmax.f32 %v5879_v46, 0.0  ;;  %v5891_v45 = vpop.f32.mrf.mxu0  ;;  %v7807_v26 = vmax.f32 %v6679_v0, 0.0 }
 0x47c   :  { %v8393_v40 = vmax.f32 %v22602_v10, %v8197_v1  ;;  %v7612_v30 = vmax.f32 %v5900_v29, 0.0  ;;  %v5892_v50 = vadd.f32 %v19785_v27, %v5891_v45  ;;  %v6692_v1 = vadd.f32 %v19785_v27, %v19678_v32  ;;  %v22604_v29 = vld [vmem:[#allocation37_spill] sm:$0xff]  ;;  %v20261_v45 = vpop.f32.mrf.mxu1 }
 0x47d   :  { %v8195_v21 = vmax.f32 %v7607_v55, %v7803_v44  ;;  %v15582_v48 = vpop.f32.mrf.mxu0  ;;  %v22603_v44 = vld [vmem:[#allocation36_spill] sm:$0xff] }
 0x47e   :  { %v20250_v31 = vpack.c.bf16 %v8393_v40, %v8392_v41  ;;  %v8200_v51 = vmax.f32 %v7612_v30, %v7808_v22  ;;  %v7610_v43 = vmax.f32 %v5892_v50, 0.0  ;;  %v5903_v46 = vadd.f32 %v19785_v27, %v15582_v48  ;;  %v22605_v50 = vld [vmem:[#allocation38_spill] sm:$0xff] }
 0x47f   :  { %v8391_v24 = vmax.f32 %v22603_v44, %v8195_v21  ;;  %v5894_v59 = vpop.f32.mrf.mxu0  ;;  %v7812_v30 = vmax.f32 %v6700_v25, 0.0  ;;  %v22606_v25 = vld [vmem:[#allocation39_spill] sm:$0xff] }
 0x480   :  { %v8396_v55 = vmax.f32 %v22604_v29, %v8200_v51  ;;  %v8198_v38 = vmax.f32 %v7610_v43, %v7806_v34  ;;  %v7613_v41 = vmax.f32 %v5903_v46, 0.0  ;;  %v5895_v22 = vadd.f32 %v19785_v27, %v5894_v59  ;;  %v20272_v43 = vld [vmem:[%s21929_s2] ss:$0 sm:$0xff]  ;;  %v16277_v59 = vld [vmem:[%s21928_s0 + $0x908] sm:$0xff]  }
 0x481   :  { %v20263_v10 = vpack.c.bf16 %v8391_v24, %v8390_v3  ;;  %v15585_v40 = vpop.f32.mrf.mxu0  ;;  %15680 = vmatmul.mubr.msk.bf16.gmra.mxu0 %vm2785_vm2, %v16273_v9  ;;  %v7810_v51 = vmax.f32 %v6692_v1, 0.0  ;;  %v6703_v3 = vadd.f32 %v20272_v43, %v19691_v28  ;;  %v6695_v9 = vadd.f32 %v20272_v43, %v19701_v49  ;;  %v22608_v29 = vld [vmem:[#allocation40_spill] sm:$0xff] }
 0x482   :  { %v8394_v21 = vmax.f32 %v22605_v50, %v8198_v38  ;;  %v8201_v0 = vmax.f32 %v7613_v41, %v7809_v16  ;;  %v7611_v48 = vmax.f32 %v5895_v22, 0.0  ;;  %v5916_v32 = vadd.f32 %v19785_v27, %v15585_v40  ;;  %15683 = vmatprep.mubr.msk.bf16.mxu0 %vm2785_vm2, %v16275_v20  ;;  %v20280_v20 = vpop.f32.mrf.mxu1 }
 0x483   :  { %v5907_v34 = vpop.f32.mrf.mxu0  ;;  %v6716_v1 = vadd.f32 %v20272_v43, %v19713_v6  ;;  %v7813_v40 = vmax.f32 %v6703_v3, 0.0  ;;  %v22610_v6 = vld [vmem:[#allocation41_spill] sm:$0xff]  ;;  %v6719_v3 = vadd.f32 %v20272_v43, %v19735_v53 }
 0x484   :  { %v8397_v16 = vmax.f32 %v22606_v25, %v8201_v0  ;;  %v8199_v46 = vmax.f32 %v7611_v48, %v7807_v26  ;;  %v7616_v44 = vmax.f32 %v5916_v32, 0.0  ;;  %v5908_v27 = vadd.f32 %v20272_v43, %v5907_v34  ;;  %v16279_v26 = vld [vmem:[%s21928_s0 + $0x910] sm:$0xff]   ;;  %v20300_v25 = vpop.f32.mrf.mxu1 }
 0x485   :  { %v15586_v24 = vpop.f32.mrf.mxu0  ;;  %v7811_v0 = vmax.f32 %v6695_v9, 0.0  ;;  %v6708_v48 = vadd.f32 %v20272_v43, %v19722_v47  ;;  %v22611_v9 = vld [vmem:[#allocation42_spill] sm:$0xff] }
 0x486   :  { %v20287_v28 = vpack.c.bf16 %v8397_v16, %v8396_v55  ;;  %v8395_v49 = vmax.f32 %v22608_v29, %v8199_v46  ;;  %v8204_v38 = vmax.f32 %v7616_v44, %v7812_v30  ;;  %v7614_v41 = vmax.f32 %v5908_v27, 0.0 }
 0x487   :  { %v5919_v22 = vadd.f32 %v20272_v43, %v15586_v24  ;;  %v5910_v50 = vpop.f32.mrf.mxu0 }
 0x488   :  { %22607 = vst [vmem:[#allocation7_spill] sm:$0xff] %v20287_v28  ;;  %v20296_v32 = vpack.c.bf16 %v8395_v49, %v8394_v21  ;;  %v8400_v55 = vmax.f32 %v22610_v6, %v8204_v38  ;;  %v8202_v34 = vmax.f32 %v7614_v41, %v7810_v51  ;;  %v5911_v30 = vadd.f32 %v20272_v43, %v5910_v50 }
 0x489   :  { %v7617_v16 = vmax.f32 %v5919_v22, 0.0  ;;  %v15589_v46 = vpop.f32.mrf.mxu0  ;;  %15684 = vmatmul.mubr.msk.bf16.gmra.mxu0 %vm2785_vm2, %v16277_v59  ;;  %v7816_v21 = vmax.f32 %v6716_v1, 0.0  ;;  %v7814_v41 = vmax.f32 %v6708_v48, 0.0  ;;  %v20309_v22 = vpop.f32.mrf.mxu1  ;;  %v22612_v59 = vld [vmem:[#allocation43_spill] sm:$0xff]  ;;  %v7817_v6 = vmax.f32 %v6719_v3, 0.0  ;;  %v16281_v1 = vld [vmem:[%s21928_s0 + $0x918] sm:$0xff]  }
 0x48a   :  { %22609 = vst [vmem:[#allocation200_spill] sm:$0xff] %v20296_v32  ;;  %v8398_v44 = vmax.f32 %v22611_v9, %v8202_v34  ;;  %v7615_v27 = vmax.f32 %v5911_v30, 0.0  ;;  %v5932_v47 = vadd.f32 %v20272_v43, %v15589_v46  ;;  %15687 = vmatprep.mubr.msk.bf16.mxu0 %vm2785_vm2, %v16279_v26  ;;  %v6711_v34 = vadd.f32 %v20272_v43, %v19747_v36  ;;  %v16283_v46 = vld [vmem:[%s21928_s0 + $0x920] sm:$0xff]  }
 0x48b   :  { %v8205_v51 = vmax.f32 %v7617_v16, %v7813_v40  ;;  %v5923_v24 = vpop.f32.mrf.mxu0  ;;  %v6732_v26 = vadd.f32 %v20272_v43, %v19759_v17  ;;  %v22613_v40 = vld [vmem:[#allocation44_spill] sm:$0xff]  ;;  %v6724_v9 = vadd.f32 %v20272_v43, %v19763_v63 }
 0x48c   :  { %v8203_v29 = vmax.f32 %v7615_v27, %v7811_v0  ;;  %v7620_v49 = vmax.f32 %v5932_v47, 0.0  ;;  %v5924_v38 = vadd.f32 %v20272_v43, %v5923_v24  ;;  %v22616_v47 = vld [vmem:[#allocation45_spill] sm:$0xff] }
 0x48d   :  { %v8401_v50 = vmax.f32 %v22612_v59, %v8205_v51  ;;  %v15590_v53 = vpop.f32.mrf.mxu0  ;;  %v22617_v59 = vld [vmem:[#allocation46_spill] sm:$0xff] }
 0x48e   :  { %v8399_v0 = vmax.f32 %v22613_v40, %v8203_v29  ;;  %v8208_v30 = vmax.f32 %v7620_v49, %v7816_v21  ;;  %v7618_v48 = vmax.f32 %v5924_v38, 0.0  ;;  %v5935_v16 = vadd.f32 %v20272_v43, %v15590_v53  ;;  %v20331_v21 = vpop.f32.mrf.mxu1 }
 0x48f   :  { %v20324_v3 = vpack.c.bf16 %v8401_v50, %v8400_v55  ;;  %v5926_v36 = vpop.f32.mrf.mxu0  ;;  %v7815_v49 = vmax.f32 %v6711_v34, 0.0  ;;  %v6735_v55 = vadd.f32 %v20272_v43, %v19778_v57  ;;  %v7820_v53 = vmax.f32 %v6732_v26, 0.0  ;;  %v22618_v34 = vld [vmem:[#allocation47_spill] sm:$0xff]  ;;  %v16285_v26 = vld [vmem:[%s21928_s0 + $0x928] sm:$0xff]  }
 0x490   :  { %v20328_v27 = vpack.c.bf16 %v8399_v0, %v8398_v44  ;;  %v8404_v17 = vmax.f32 %v22616_v47, %v8208_v30  ;;  %v8206_v51 = vmax.f32 %v7618_v48, %v7814_v41  ;;  %v7621_v24 = vmax.f32 %v5935_v16, 0.0  ;;  %v20344_v57 = vpop.f32.mrf.mxu1 }
 0x491   :  { %22614 = vst [vmem:[#allocation201_spill] sm:$0xff] %v20324_v3  ;;  %v5927_v29 = vadd.f32 %v20272_v43, %v5926_v36  ;;  %v15593_v38 = vpop.f32.mrf.mxu0  ;;  %15688 = vmatmul.mubr.msk.bf16.gmra.mxu0 %vm2785_vm2, %v16281_v1  ;;  %v6727_v0 = vadd.f32 %v20272_v43, %v19795_v42  ;;  %v7818_v16 = vmax.f32 %v6724_v9, 0.0  ;;  %v7821_v47 = vmax.f32 %v6735_v55, 0.0  ;;  %v16287_v9 = vld [vmem:[%s21928_s0 + $0x930] sm:$0xff]  }
 0x492   :  { %22615 = vst [vmem:[#allocation8_spill] sm:$0xff] %v20328_v27  ;;  %v8402_v50 = vmax.f32 %v22617_v59, %v8206_v51  ;;  %v8209_v63 = vmax.f32 %v7621_v24, %v7817_v6  ;;  %v5948_v44 = vadd.f32 %v20272_v43, %v15593_v38  ;;  %15691 = vmatprep.mubr.msk.bf16.mxu0 %vm2785_vm2, %v16283_v46 }
 0x493   :  { %v7619_v41 = vmax.f32 %v5927_v29, 0.0  ;;  %v5939_v40 = vpop.f32.mrf.mxu0  ;;  %v6748_v46 = vadd.f32 %v20272_v43, %v19808_v54  ;;  %v7819_v59 = vmax.f32 %v6727_v0, 0.0 }
 0x494   :  { %v8405_v30 = vmax.f32 %v22618_v34, %v8209_v63  ;;  %v7624_v48 = vmax.f32 %v5948_v44, 0.0  ;;  %v5940_v1 = vadd.f32 %v20272_v43, %v5939_v40  ;;  %v6740_v63 = vadd.f32 %v20272_v43, %v19815_v14  ;;  %v22621_v44 = vld [vmem:[#allocation49_spill] sm:$0xff]  ;;  %v20362_v40 = vpop.f32.mrf.mxu1 }
 0x495   :  { %v8207_v36 = vmax.f32 %v7619_v41, %v7815_v49  ;;  %v15594_v6 = vpop.f32.mrf.mxu0  ;;  %v22620_v49 = vld [vmem:[#allocation48_spill] sm:$0xff] }
 0x496   :  { %v20351_v51 = vpack.c.bf16 %v8405_v30, %v8404_v17  ;;  %v8212_v42 = vmax.f32 %v7624_v48, %v7820_v53  ;;  %v7622_v24 = vmax.f32 %v5940_v1, 0.0  ;;  %v5951_v29 = vadd.f32 %v20272_v43, %v15594_v6  ;;  %v22623_v1 = vld [vmem:[#allocation50_spill] sm:$0xff] }
 0x497   :  { %v8403_v38 = vmax.f32 %v22620_v49, %v8207_v36  ;;  %v5942_v55 = vpop.f32.mrf.mxu0  ;;  %v7824_v48 = vmax.f32 %v6748_v46, 0.0 }
 0x498   :  { %22619 = vst [vmem:[#allocation202_spill] sm:$0xff] %v20351_v51  ;;  %v8408_v41 = vmax.f32 %v22621_v44, %v8212_v42  ;;  %v8210_v54 = vmax.f32 %v7622_v24, %v7818_v16  ;;  %v7625_v17 = vmax.f32 %v5951_v29, 0.0  ;;  %v5943_v53 = vadd.f32 %v20272_v43, %v5942_v55  ;;  %v22624_v29 = vld [vmem:[#allocation51_spill] sm:$0xff]  ;;  %v22626_v44 = vld [vmem:[#allocation52_spill] sm:$0xff] }
 0x499   :  { %v20364_v34 = vpack.c.bf16 %v8403_v38, %v8402_v50  ;;  %v15597_v30 = vpop.f32.mrf.mxu0  ;;  %15692 = vmatmul.mubr.msk.bf16.gmra.mxu0 %vm2785_vm2, %v16285_v26  ;;  %v7822_v42 = vmax.f32 %v6740_v63, 0.0  ;;  %v6751_v24 = vadd.f32 %v20272_v43, %v19828_v35  ;;  %v6743_v50 = vadd.f32 %v20272_v43, %v19835_v13 }
 0x49a   :  { %v8406_v36 = vmax.f32 %v22623_v1, %v8210_v54  ;;  %v8213_v0 = vmax.f32 %v7625_v17, %v7821_v47  ;;  %v7623_v6 = vmax.f32 %v5943_v53, 0.0  ;;  %v5964_v14 = vadd.f32 %v20272_v43, %v15597_v30  ;;  %15695 = vmatprep.mubr.msk.bf16.mxu0 %vm2785_vm2, %v16287_v9  ;;  %v20376_v47 = vpop.f32.mrf.mxu1  ;;  %v16288_v9 = vld [vmem:[%s21928_s0 + $0x938] sm:$0xff]  }
 0x49b   :  { %22622 = vst [vmem:[#allocation9_spill] sm:$0xff] %v20364_v34  ;;  %v5955_v16 = vpop.f32.mrf.mxu0  ;;  %v6764_v63 = vadd.f32 %v20272_v43, %v19843_v8  ;;  %v7825_v30 = vmax.f32 %v6751_v24, 0.0  ;;  %v22628_v8 = vld [vmem:[#allocation53_spill] sm:$0xff]  ;;  %v6767_v24 = vadd.f32 %v20272_v43, %v19864_v5 }
 0x49c   :  { %v8409_v49 = vmax.f32 %v22624_v29, %v8213_v0  ;;  %v8211_v26 = vmax.f32 %v7623_v6, %v7819_v59  ;;  %v7628_v46 = vmax.f32 %v5964_v14, 0.0  ;;  %v5956_v38 = vadd.f32 %v20272_v43, %v5955_v16  ;;  %v16289_v59 = vld [vmem:[%s21928_s0 + $0x940] sm:$0xff]   ;;  %v20396_v29 = vpop.f32.mrf.mxu1 }
 0x49d   :  { %v15598_v55 = vpop.f32.mrf.mxu0  ;;  %v7823_v0 = vmax.f32 %v6743_v50, 0.0  ;;  %v6756_v6 = vadd.f32 %v20272_v43, %v19851_v7  ;;  %v22629_v50 = vld [vmem:[#allocation54_spill] sm:$0xff] }
 0x49e   :  { %v20383_v35 = vpack.c.bf16 %v8409_v49, %v8408_v41  ;;  %v8407_v13 = vmax.f32 %v22626_v44, %v8211_v26  ;;  %v8216_v54 = vmax.f32 %v7628_v46, %v7824_v48  ;;  %v7626_v17 = vmax.f32 %v5956_v38, 0.0 }
 0x49f   :  { %v5967_v53 = vadd.f32 %v20272_v43, %v15598_v55  ;;  %v5958_v1 = vpop.f32.mrf.mxu0 }
 0x4a0   :  { %22625 = vst [vmem:[#allocation203_spill] sm:$0xff] %v20383_v35  ;;  %v20392_v14 = vpack.c.bf16 %v8407_v13, %v8406_v36  ;;  %v8412_v41 = vmax.f32 %v22628_v8, %v8216_v54  ;;  %v8214_v16 = vmax.f32 %v7626_v17, %v7822_v42  ;;  %v5959_v48 = vadd.f32 %v20272_v43, %v5958_v1 }
 0x4a1   :  { %v7629_v49 = vmax.f32 %v5967_v53, 0.0  ;;  %v15601_v26 = vpop.f32.mrf.mxu0  ;;  %15696 = vmatmul.mubr.msk.bf16.gmra.mxu0 %vm2785_vm2, %v16288_v9  ;;  %v7828_v36 = vmax.f32 %v6764_v63, 0.0  ;;  %v7826_v17 = vmax.f32 %v6756_v6, 0.0  ;;  %v20405_v53 = vpop.f32.mrf.mxu1  ;;  %v22630_v9 = vld [vmem:[#allocation55_spill] sm:$0xff]  ;;  %v7829_v8 = vmax.f32 %v6767_v24, 0.0  ;;  %v16290_v63 = vld [vmem:[%s21928_s0 + $0x948] sm:$0xff]  }
 0x4a2   :  { %22627 = vst [vmem:[#allocation10_spill] sm:$0xff] %v20392_v14  ;;  %v8410_v46 = vmax.f32 %v22629_v50, %v8214_v16  ;;  %v7627_v38 = vmax.f32 %v5959_v48, 0.0  ;;  %v5980_v7 = vadd.f32 %v20272_v43, %v15601_v26  ;;  %15699 = vmatprep.mubr.msk.bf16.mxu0 %vm2785_vm2, %v16289_v59  ;;  %v6759_v16 = vadd.f32 %v20272_v43, %v19873_v11  ;;  %v22631_v59 = vld [vmem:[#allocation160_spill] sm:$0xff] }
 0x4a3   :  { %v8217_v42 = vmax.f32 %v7629_v49, %v7825_v30  ;;  %v5971_v55 = vpop.f32.mrf.mxu0  ;;  %v6780_v30 = vadd.f32 %v20272_v43, %v22631_v59  ;;  %v22634_v24 = vld [vmem:[#allocation180_spill] sm:$0xff]  ;;  %v20424_v14 = vpop.f32.mrf.mxu1 }
 0x4a4   :  { %v8215_v44 = vmax.f32 %v7627_v38, %v7823_v0  ;;  %v7632_v13 = vmax.f32 %v5980_v7, 0.0  ;;  %v5972_v54 = vadd.f32 %v20272_v43, %v5971_v55  ;;  %v22632_v0 = vld [vmem:[#allocation56_spill] sm:$0xff]  ;;  %v6772_v7 = vadd.f32 %v20272_v43, %v22634_v24 }
 0x4a5   :  { %v8413_v1 = vmax.f32 %v22630_v9, %v8217_v42  ;;  %v15602_v5 = vpop.f32.mrf.mxu0  ;;  %v22636_v42 = vld [vmem:[#allocation57_spill] sm:$0xff] }
 0x4a6   :  { %v8411_v48 = vmax.f32 %v22632_v0, %v8215_v44  ;;  %v8220_v49 = vmax.f32 %v7632_v13, %v7828_v36  ;;  %v7630_v6 = vmax.f32 %v5972_v54, 0.0  ;;  %v5983_v26 = vadd.f32 %v20272_v43, %v15602_v5 }
 0x4a7   :  { %v20417_v50 = vpack.c.bf16 %v8413_v1, %v8412_v41  ;;  %v5974_v38 = vpop.f32.mrf.mxu0  ;;  %v7827_v36 = vmax.f32 %v6759_v16, 0.0  ;;  %v22637_v41 = vld [vmem:[#allocation161_spill] sm:$0xff]  ;;  %v22638_v1 = vld [vmem:[#allocation58_spill] sm:$0xff]  ;;  %v7832_v0 = vmax.f32 %v6780_v30, 0.0 }
 0x4a8   :  { %v20421_v11 = vpack.c.bf16 %v8411_v48, %v8410_v46  ;;  %v8416_v55 = vmax.f32 %v22636_v42, %v8220_v49  ;;  %v8218_v9 = vmax.f32 %v7630_v6, %v7826_v17  ;;  %v7633_v35 = vmax.f32 %v5983_v26, 0.0  ;;  %v22639_v49 = vld [vmem:[#allocation182_spill] sm:$0xff]  ;;  %v22640_v26 = vld [vmem:[#allocation59_spill] sm:$0xff]  ;;  %v20436_v42 = vpop.f32.mrf.mxu1 }
 0x4a9   :  { %22633 = vst [vmem:[#allocation204_spill] sm:$0xff] %v20417_v50  ;;  %v5975_v44 = vadd.f32 %v20272_v43, %v5974_v38  ;;  %v15605_v13 = vpop.f32.mrf.mxu0  ;;  %15700 = vmatmul.mubr.msk.bf16.gmra.mxu0 %vm2785_vm2, %v16290_v63  ;;  %v6783_v54 = vadd.f32 %v20272_v43, %v22637_v41  ;;  %v6775_v6 = vadd.f32 %v20272_v43, %v22639_v49  ;;  %v7830_v63 = vmax.f32 %v6772_v7, 0.0  ;;  %v22643_v49 = vld [vmem:[#allocation60_spill] sm:$0xff] }
 0x4aa   :  { %22635 = vst [vmem:[#allocation11_spill] sm:$0xff] %v20421_v11  ;;  %v8414_v5 = vmax.f32 %v22638_v1, %v8218_v9  ;;  %v8221_v59 = vmax.f32 %v7633_v35, %v7829_v8  ;;  %v5996_v46 = vadd.f32 %v20272_v43, %v15605_v13  ;;  %v22641_v35 = vld [vmem:[#allocation163_spill] sm:$0xff]  ;;  %v22645_v11 = vld [vmem:[#allocation61_spill] sm:$0xff] }
 0x4ab   :  { %v7631_v48 = vmax.f32 %v5975_v44, 0.0  ;;  %v5987_v17 = vpop.f32.mrf.mxu0  ;;  %v7833_v9 = vmax.f32 %v6783_v54, 0.0  ;;  %v6796_v8 = vadd.f32 %v20272_v43, %v22641_v35  ;;  %v20448_v35 = vpop.f32.mrf.mxu1 }
 0x4ac   :  { %v8417_v38 = vmax.f32 %v22640_v26, %v8221_v59  ;;  %v7636_v16 = vmax.f32 %v5996_v46, 0.0  ;;  %v5988_v24 = vadd.f32 %v20272_v43, %v5987_v17  ;;  %v7831_v26 = vmax.f32 %v6775_v6, 0.0  ;;  %v22644_v17 = vld [vmem:[#allocation164_spill] sm:$0xff] }
 0x4ad   :  { %v8219_v41 = vmax.f32 %v7631_v48, %v7827_v36  ;;  %v15606_v50 = vpop.f32.mrf.mxu0  ;;  %v6788_v7 = vadd.f32 %v20272_v43, %v22644_v17 }
 0x4ae   :  { %v20440_v30 = vpack.c.bf16 %v8417_v38, %v8416_v55  ;;  %v8224_v44 = vmax.f32 %v7636_v16, %v7832_v0  ;;  %v7634_v13 = vmax.f32 %v5988_v24, 0.0  ;;  %v5999_v1 = vadd.f32 %v20272_v43, %v15606_v50  ;;  %v22647_v50 = vld [vmem:[#allocation62_spill] sm:$0xff] }
 0x4af   :  { %v8415_v59 = vmax.f32 %v22643_v49, %v8219_v41  ;;  %v5990_v46 = vpop.f32.mrf.mxu0  ;;  %v7836_v38 = vmax.f32 %v6796_v8, 0.0  ;;  %v7834_v17 = vmax.f32 %v6788_v7, 0.0  ;;  %v22653_v7 = vld [vmem:[#allocation64_spill] sm:$0xff] }
 0x4b0   :  { %22642 = vst [vmem:[#allocation205_spill] sm:$0xff] %v20440_v30  ;;  %v8420_v36 = vmax.f32 %v22645_v11, %v8224_v44  ;;  %v8222_v48 = vmax.f32 %v7634_v13, %v7830_v63  ;;  %v7637_v54 = vmax.f32 %v5999_v1, 0.0  ;;  %v5991_v51 = vadd.f32 %v20272_v43, %v5990_v46  ;;  %v22648_v30 = vld [vmem:[#allocation184_spill] sm:$0xff]  ;;  %v22649_v63 = vld [vmem:[#allocation165_spill] sm:$0xff]  ;;  %v22650_v13 = vld [vmem:[#allocation63_spill] sm:$0xff]  ;;  %v20460_v46 = vpop.f32.mrf.mxu1 }
 0x4b1   :  { %v20450_v55 = vpack.c.bf16 %v8415_v59, %v8414_v5  ;;  %v15609_v0 = vpop.f32.mrf.mxu0  ;;  %v6799_v11 = vadd.f32 %v20272_v43, %v22648_v30  ;;  %v6791_v44 = vadd.f32 %v20272_v43, %v22649_v63 }
 0x4b2   :  { %v8418_v16 = vmax.f32 %v22647_v50, %v8222_v48  ;;  %v8225_v24 = vmax.f32 %v7637_v54, %v7833_v9  ;;  %v7635_v41 = vmax.f32 %v5991_v51, 0.0  ;;  %v6012_v6 = vadd.f32 %v20272_v43, %v15609_v0  ;;  %v22651_v51 = vld [vmem:[#allocation166_spill] sm:$0xff] }
 0x4b3   :  { %22646 = vst [vmem:[#allocation12_spill] sm:$0xff] %v20450_v55  ;;  %v6003_v49 = vpop.f32.mrf.mxu0  ;;  %v6812_v48 = vadd.f32 %v20272_v43, %v22651_v51  ;;  %v7837_v55 = vmax.f32 %v6799_v11, 0.0  ;;  %v22658_v11 = vld [vmem:[#allocation66_spill] sm:$0xff] }
 0x4b4   :  { %v8421_v1 = vmax.f32 %v22650_v13, %v8225_v24  ;;  %v8223_v5 = vmax.f32 %v7635_v41, %v7831_v26  ;;  %v7640_v59 = vmax.f32 %v6012_v6, 0.0  ;;  %v6004_v8 = vadd.f32 %v20272_v43, %v6003_v49  ;;  %v22654_v41 = vld [vmem:[#allocation186_spill] sm:$0xff]  ;;  %v22656_v13 = vld [vmem:[#allocation65_spill] sm:$0xff] }
 0x4b5   :  { %v15610_v9 = vpop.f32.mrf.mxu0  ;;  %v7835_v26 = vmax.f32 %v6791_v44, 0.0  ;;  %v6804_v6 = vadd.f32 %v20272_v43, %v22654_v41 }
 0x4b6   :  { %v20464_v54 = vpack.c.bf16 %v8421_v1, %v8420_v36  ;;  %v8419_v0 = vmax.f32 %v22653_v7, %v8223_v5  ;;  %v8228_v30 = vmax.f32 %v7640_v59, %v7836_v38  ;;  %v7638_v50 = vmax.f32 %v6004_v8, 0.0  ;;  %v20474_v1 = vpop.f32.mrf.mxu1  ;;  %v22657_v59 = vld [vmem:[#allocation187_spill] sm:$0xff] }
 0x4b7   :  { %v6015_v63 = vadd.f32 %v20272_v43, %v15610_v9  ;;  %v6006_v24 = vpop.f32.mrf.mxu0  ;;  %v6815_v8 = vadd.f32 %v20272_v43, %v22657_v59  ;;  %v7840_v7 = vmax.f32 %v6812_v48, 0.0  ;;  %v22660_v59 = vld [vmem:[#allocation169_spill] sm:$0xff]  ;;  %v22662_v48 = vld [vmem:[#allocation68_spill] sm:$0xff] }
 0x4b8   :  { %22652 = vst [vmem:[#allocation206_spill] sm:$0xff] %v20464_v54  ;;  %v20470_v49 = vpack.c.bf16 %v8419_v0, %v8418_v16  ;;  %v8424_v34 = vmax.f32 %v22656_v13, %v8228_v30  ;;  %v8226_v3 = vmax.f32 %v7638_v50, %v7834_v17  ;;  %v6007_v36 = vadd.f32 %v20272_v43, %v6006_v24  ;;  %v20481_v24 = vpop.f32.mrf.mxu1 }
 0x4b9   :  { %v7641_v5 = vmax.f32 %v6015_v63, 0.0  ;;  %v15613_v38 = vpop.f32.mrf.mxu0  ;;  %v7838_v50 = vmax.f32 %v6804_v6, 0.0  ;;  %v22659_v63 = vld [vmem:[#allocation67_spill] sm:$0xff] }
 0x4ba   :  { %22655 = vst [vmem:[#allocation13_spill] sm:$0xff] %v20470_v49  ;;  %v8422_v9 = vmax.f32 %v22658_v11, %v8226_v3  ;;  %v7639_v44 = vmax.f32 %v6007_v36, 0.0  ;;  %v6028_v51 = vadd.f32 %v20272_v43, %v15613_v38  ;;  %v7841_v49 = vmax.f32 %v6815_v8, 0.0  ;;  %v22661_v36 = vld [vmem:[#allocation188_spill] sm:$0xff]  ;;  %v22666_v8 = vld [vmem:[#allocation69_spill] sm:$0xff]  ;;  %v20497_v28 = vpop.f32.mrf.mxu1 }
 0x4bb   :  { %v8229_v16 = vmax.f32 %v7641_v5, %v7837_v55  ;;  %v6019_v0 = vpop.f32.mrf.mxu0  ;;  %v6807_v3 = vadd.f32 %v20272_v43, %v22660_v59  ;;  %v6828_v38 = vadd.f32 %v20272_v43, %v22661_v36 }
 0x4bc   :  { %v8227_v41 = vmax.f32 %v7639_v44, %v7835_v26  ;;  %v7644_v30 = vmax.f32 %v6028_v51, 0.0  ;;  %v6020_v17 = vadd.f32 %v20272_v43, %v6019_v0  ;;  %v22664_v51 = vld [vmem:[#allocation189_spill] sm:$0xff] }
 0x4bd   :  { %v8425_v13 = vmax.f32 %v22659_v63, %v8229_v16  ;;  %v15614_v54 = vpop.f32.mrf.mxu0  ;;  %v6820_v16 = vadd.f32 %v20272_v43, %v22664_v51  ;;  %v20508_v51 = vpop.f32.mrf.mxu1 }
 0x4be   :  { %v8423_v55 = vmax.f32 %v22662_v48, %v8227_v41  ;;  %v8232_v5 = vmax.f32 %v7644_v30, %v7840_v7  ;;  %v7642_v26 = vmax.f32 %v6020_v17, 0.0  ;;  %v6031_v11 = vadd.f32 %v20272_v43, %v15614_v54  ;;  %v22667_v54 = vld [vmem:[#allocation70_spill] sm:$0xff] }
 0x4bf   :  { %v20490_v44 = vpack.c.bf16 %v8425_v13, %v8424_v34  ;;  %v6022_v6 = vpop.f32.mrf.mxu0  ;;  %v7839_v7 = vmax.f32 %v6807_v3, 0.0  ;;  %v6831_v34 = vadd.f32 %v20272_v43, %v20013_v19 }
 0x4c0   :  { %v20494_v0 = vpack.c.bf16 %v8423_v55, %v8422_v9  ;;  %v8428_v63 = vmax.f32 %v22666_v8, %v8232_v5  ;;  %v8230_v59 = vmax.f32 %v7642_v26, %v7838_v50  ;;  %v7645_v27 = vmax.f32 %v6031_v11, 0.0  ;;  %v22668_v5 = vld [vmem:[#allocation71_spill] sm:$0xff] }
 0x4c1   :  { %22663 = vst [vmem:[#allocation14_spill] sm:$0xff] %v20490_v44  ;;  %v6023_v41 = vadd.f32 %v20272_v43, %v6022_v6  ;;  %v15617_v30 = vpop.f32.mrf.mxu0  ;;  %v7844_v9 = vmax.f32 %v6828_v38, 0.0  ;;  %v6823_v50 = vadd.f32 %v20272_v43, %v20022_v15  ;;  %v7842_v6 = vmax.f32 %v6820_v16, 0.0  ;;  %v22673_v44 = vld [vmem:[#allocation73_spill] sm:$0xff] }
 0x4c2   :  { %22665 = vst [vmem:[#allocation15_spill] sm:$0xff] %v20494_v0  ;;  %v8426_v17 = vmax.f32 %v22667_v54, %v8230_v59  ;;  %v8233_v13 = vmax.f32 %v7645_v27, %v7841_v49  ;;  %v6044_v36 = vadd.f32 %v20272_v43, %v15617_v30  ;;  %v7845_v59 = vmax.f32 %v6831_v34, 0.0  ;;  %v22669_v27 = vld [vmem:[#allocation171_spill] sm:$0xff]  ;;  %v22671_v54 = vld [vmem:[#allocation72_spill] sm:$0xff] }
 0x4c3   :  { %v7643_v48 = vmax.f32 %v6023_v41, 0.0  ;;  %v6035_v55 = vpop.f32.mrf.mxu0  ;;  %v6844_v49 = vadd.f32 %v20272_v43, %v22669_v27  ;;  %v20520_v27 = vpop.f32.mrf.mxu1 }
 0x4c4   :  { %v8429_v26 = vmax.f32 %v22668_v5, %v8233_v13  ;;  %v7648_v11 = vmax.f32 %v6044_v36, 0.0  ;;  %v6036_v3 = vadd.f32 %v20272_v43, %v6035_v55  ;;  %v7843_v5 = vmax.f32 %v6823_v50, 0.0  ;;  %v22672_v55 = vld [vmem:[#allocation191_spill] sm:$0xff] }
 0x4c5   :  { %v8231_v19 = vmax.f32 %v7643_v48, %v7839_v7  ;;  %v15618_v8 = vpop.f32.mrf.mxu0  ;;  %v6836_v16 = vadd.f32 %v20272_v43, %v22672_v55 }
 0x4c6   :  { %v20512_v38 = vpack.c.bf16 %v8429_v26, %v8428_v63  ;;  %v8236_v41 = vmax.f32 %v7648_v11, %v7844_v9  ;;  %v7646_v30 = vmax.f32 %v6036_v3, 0.0  ;;  %v6047_v15 = vadd.f32 %v20272_v43, %v15618_v8  ;;  %v22675_v11 = vld [vmem:[#allocation74_spill] sm:$0xff] }
 0x4c7   :  { %v8427_v13 = vmax.f32 %v22671_v54, %v8231_v19  ;;  %v6038_v36 = vpop.f32.mrf.mxu0  ;;  %v7848_v26 = vmax.f32 %v6844_v49, 0.0  ;;  %v7846_v55 = vmax.f32 %v6836_v16, 0.0  ;;  %v22679_v16 = vld [vmem:[#allocation76_spill] sm:$0xff] }
 0x4c8   :  { %22670 = vst [vmem:[#allocation16_spill] sm:$0xff] %v20512_v38  ;;  %v8432_v7 = vmax.f32 %v22673_v44, %v8236_v41  ;;  %v8234_v48 = vmax.f32 %v7646_v30, %v7842_v6  ;;  %v7649_v34 = vmax.f32 %v6047_v15, 0.0  ;;  %v6039_v0 = vadd.f32 %v20272_v43, %v6038_v36  ;;  %v22676_v38 = vld [vmem:[#allocation192_spill] sm:$0xff]  ;;  %v22677_v41 = vld [vmem:[#allocation75_spill] sm:$0xff] }
 0x4c9   :  { %v20522_v63 = vpack.c.bf16 %v8427_v13, %v8426_v17  ;;  %v15621_v9 = vpop.f32.mrf.mxu0  ;;  %v6847_v44 = vadd.f32 %v20272_v43, %v22676_v38  ;;  %v6839_v6 = vadd.f32 %v20272_v43, %v20057_v4  ;;  %v20532_v13 = vpop.f32.mrf.mxu1 }
 0x4ca   :  { %v8430_v3 = vmax.f32 %v22675_v11, %v8234_v48  ;;  %v8237_v19 = vmax.f32 %v7649_v34, %v7845_v59  ;;  %v7647_v8 = vmax.f32 %v6039_v0, 0.0  ;;  %v6060_v50 = vadd.f32 %v20272_v43, %v15621_v9 }
 0x4cb   :  { %22674 = vst [vmem:[#allocation17_spill] sm:$0xff] %v20522_v63  ;;  %v6051_v54 = vpop.f32.mrf.mxu0  ;;  %v6860_v0 = vadd.f32 %v20272_v43, %v20065_v18  ;;  %v7849_v9 = vmax.f32 %v6847_v44, 0.0  ;;  %v22682_v44 = vld [vmem:[#allocation78_spill] sm:$0xff]  ;;  %v22698_v63 = vld [vmem:[#allocation85_spill] sm:$0xff] }
 0x4cc   :  { %v8433_v30 = vmax.f32 %v22677_v41, %v8237_v19  ;;  %v8235_v17 = vmax.f32 %v7647_v8, %v7843_v5  ;;  %v7652_v15 = vmax.f32 %v6060_v50, 0.0  ;;  %v6052_v49 = vadd.f32 %v20272_v43, %v6051_v54  ;;  %v22681_v50 = vld [vmem:[#allocation77_spill] sm:$0xff] }
 0x4cd   :  { %v15622_v59 = vpop.f32.mrf.mxu0  ;;  %v7847_v5 = vmax.f32 %v6839_v6, 0.0  ;;  %v6852_v19 = vadd.f32 %v20272_v43, %v20073_v39  ;;  %v7852_v39 = vmax.f32 %v6860_v0, 0.0  ;;  %v22685_v0 = vld [vmem:[#allocation80_spill] sm:$0xff] }
 0x4ce   :  { %v20536_v36 = vpack.c.bf16 %v8433_v30, %v8432_v7  ;;  %v8431_v48 = vmax.f32 %v22679_v16, %v8235_v17  ;;  %v8240_v38 = vmax.f32 %v7652_v15, %v7848_v26  ;;  %v7650_v34 = vmax.f32 %v6052_v49, 0.0  ;;  %v20546_v7 = vpop.f32.mrf.mxu1 }
 0x4cf   :  { %v6063_v4 = vadd.f32 %v20272_v43, %v15622_v59  ;;  %v6054_v11 = vpop.f32.mrf.mxu0  ;;  %v6863_v17 = vadd.f32 %v20272_v43, %v20086_v58  ;;  %v6855_v58 = vadd.f32 %v20272_v43, %v20095_v12 }
 0x4d0   :  { %22678 = vst [vmem:[#allocation18_spill] sm:$0xff] %v20536_v36  ;;  %v20542_v8 = vpack.c.bf16 %v8431_v48, %v8430_v3  ;;  %v8436_v54 = vmax.f32 %v22681_v50, %v8240_v38  ;;  %v8238_v41 = vmax.f32 %v7650_v34, %v7846_v55  ;;  %v6055_v18 = vadd.f32 %v20272_v43, %v6054_v11  ;;  %v20553_v34 = vpop.f32.mrf.mxu1 }
 0x4d1   :  { %v7653_v30 = vmax.f32 %v6063_v4, 0.0  ;;  %v15625_v26 = vpop.f32.mrf.mxu0  ;;  %v7850_v38 = vmax.f32 %v6852_v19, 0.0  ;;  %v22683_v4 = vld [vmem:[#allocation79_spill] sm:$0xff]  ;;  %v7853_v36 = vmax.f32 %v6863_v17, 0.0  ;;  %v22689_v17 = vld [vmem:[#allocation81_spill] sm:$0xff] }
 0x4d2   :  { %22680 = vst [vmem:[#allocation19_spill] sm:$0xff] %v20542_v8  ;;  %v8434_v15 = vmax.f32 %v22682_v44, %v8238_v41  ;;  %v7651_v6 = vmax.f32 %v6055_v18, 0.0  ;;  %v6076_v49 = vadd.f32 %v20272_v43, %v15625_v26  ;;  %v22684_v41 = vld [vmem:[#allocation194_spill] sm:$0xff]  ;;  %v20569_v8 = vpop.f32.mrf.mxu1 }
 0x4d3   :  { %v8241_v3 = vmax.f32 %v7653_v30, %v7849_v9  ;;  %v6067_v59 = vpop.f32.mrf.mxu0  ;;  %v6876_v18 = vadd.f32 %v20272_v43, %v22684_v41 }
 0x4d4   :  { %v8239_v16 = vmax.f32 %v7651_v6, %v7847_v5  ;;  %v7656_v48 = vmax.f32 %v6076_v49, 0.0  ;;  %v6068_v55 = vadd.f32 %v20272_v43, %v6067_v59  ;;  %v22687_v6 = vld [vmem:[#allocation175_spill] sm:$0xff] }
 0x4d5   :  { %v8437_v11 = vmax.f32 %v22683_v4, %v8241_v3  ;;  %v15626_v50 = vpop.f32.mrf.mxu0  ;;  %v6868_v49 = vadd.f32 %v20272_v43, %v22687_v6 }
 0x4d6   :  { %v8435_v9 = vmax.f32 %v22685_v0, %v8239_v16  ;;  %v8244_v30 = vmax.f32 %v7656_v48, %v7852_v39  ;;  %v7654_v5 = vmax.f32 %v6068_v55, 0.0  ;;  %v6079_v26 = vadd.f32 %v20272_v43, %v15626_v50  ;;  %v22690_v55 = vld [vmem:[#allocation2_spill] sm:$0xff] }
 0x4d7   :  { %v20562_v44 = vpack.c.bf16 %v8437_v11, %v8436_v54  ;;  %v6070_v19 = vpop.f32.mrf.mxu0  ;;  %v7851_v39 = vmax.f32 %v6855_v58, 0.0  ;;  %v6879_v54 = vadd.f32 %v20272_v43, %v22690_v55  ;;  %v22691_v11 = vld [vmem:[#allocation82_spill] sm:$0xff] }
 0x4d8   :  { %v20566_v3 = vpack.c.bf16 %v8435_v9, %v8434_v15  ;;  %v8440_v59 = vmax.f32 %v22689_v17, %v8244_v30  ;;  %v8242_v12 = vmax.f32 %v7654_v5, %v7850_v38  ;;  %v7657_v4 = vmax.f32 %v6079_v26, 0.0  ;;  %v22692_v30 = vld [vmem:[#allocation3_spill] sm:$0xff] }
 0x4d9   :  { %22686 = vst [vmem:[#allocation214_spill] sm:$0xff] %v20562_v44  ;;  %v6071_v16 = vadd.f32 %v20272_v43, %v6070_v19  ;;  %v15629_v48 = vpop.f32.mrf.mxu0  ;;  %v7856_v15 = vmax.f32 %v6876_v18, 0.0  ;;  %v6871_v38 = vadd.f32 %v20272_v43, %v22692_v30  ;;  %v22693_v5 = vld [vmem:[#allocation83_spill] sm:$0xff]  ;;  %v7854_v19 = vmax.f32 %v6868_v49, 0.0  ;;  %v20580_v44 = vpop.f32.mrf.mxu1  ;;  %v22696_v30 = vld [vmem:[#allocation84_spill] sm:$0xff] }
 0x4da   :  { %22688 = vst [vmem:[#allocation216_spill] sm:$0xff] %v20566_v3  ;;  %v8438_v50 = vmax.f32 %v22691_v11, %v8242_v12  ;;  %v8245_v41 = vmax.f32 %v7657_v4, %v7853_v36  ;;  %v6092_v0 = vadd.f32 %v20272_v43, %v15629_v48  ;;  %v7857_v12 = vmax.f32 %v6879_v54, 0.0  ;;  %v22694_v36 = vld [vmem:[#allocation197_spill] sm:$0xff] }
 0x4db   :  { %v7655_v9 = vmax.f32 %v6071_v16, 0.0  ;;  %v6083_v6 = vpop.f32.mrf.mxu0  ;;  %v6892_v4 = vadd.f32 %v20272_v43, %v22694_v36  ;;  %v20592_v36 = vpop.f32.mrf.mxu1 }
 0x4dc   :  { %v8441_v26 = vmax.f32 %v22693_v5, %v8245_v41  ;;  %v7660_v17 = vmax.f32 %v6092_v0, 0.0  ;;  %v6084_v58 = vadd.f32 %v20272_v43, %v6083_v6  ;;  %v7855_v5 = vmax.f32 %v6871_v38, 0.0  ;;  %v22697_v6 = vld [vmem:[#allocation4_spill] sm:$0xff] }
 0x4dd   :  { %v8243_v55 = vmax.f32 %v7655_v9, %v7851_v39  ;;  %v15630_v3 = vpop.f32.mrf.mxu0  ;;  %v6884_v49 = vadd.f32 %v20272_v43, %v22697_v6 }
 0x4de   :  { %v20584_v18 = vpack.c.bf16 %v8441_v26, %v8440_v59  ;;  %v8248_v16 = vmax.f32 %v7660_v17, %v7856_v15  ;;  %v7658_v48 = vmax.f32 %v6084_v58, 0.0  ;;  %v6095_v11 = vadd.f32 %v20272_v43, %v15630_v3  ;;  %v22699_v3 = vld [vmem:[#allocation86_spill] sm:$0xff] }
 0x4df   :  { %v8439_v41 = vmax.f32 %v22696_v30, %v8243_v55  ;;  %v6086_v0 = vpop.f32.mrf.mxu0  ;;  %v7860_v26 = vmax.f32 %v6892_v4, 0.0  ;;  %v7858_v6 = vmax.f32 %v6884_v49, 0.0  ;;  %v22703_v49 = vld [vmem:[#allocation88_spill] sm:$0xff] }
 0x4e0   :  { %22695 = vst [vmem:[#allocation20_spill] sm:$0xff] %v20584_v18  ;;  %v8444_v39 = vmax.f32 %v22698_v63, %v8248_v16  ;;  %v8246_v9 = vmax.f32 %v7658_v48, %v7854_v19  ;;  %v7661_v54 = vmax.f32 %v6095_v11, 0.0  ;;  %v6087_v32 = vadd.f32 %v20272_v43, %v6086_v0  ;;  %v22700_v18 = vld [vmem:[#allocation5_spill] sm:$0xff]  ;;  %v22701_v16 = vld [vmem:[#allocation87_spill] sm:$0xff] }
 0x4e1   :  { %v20594_v59 = vpack.c.bf16 %v8439_v41, %v8438_v50  ;;  %v15633_v15 = vpop.f32.mrf.mxu0  ;;  %v6895_v63 = vadd.f32 %v20272_v43, %v22700_v18  ;;  %v6887_v19 = vadd.f32 %v20272_v43, %v20165_v60  ;;  %v20604_v41 = vpop.f32.mrf.mxu1 }
 0x4e2   :  { %v8442_v17 = vmax.f32 %v22699_v3, %v8246_v9  ;;  %v8249_v58 = vmax.f32 %v7661_v54, %v7857_v12  ;;  %v7659_v55 = vmax.f32 %v6087_v32, 0.0  ;;  %v6108_v38 = vadd.f32 %v20272_v43, %v15633_v15 }
 0x4e3   :  { %v6099_v30 = vpop.f32.mrf.mxu0  ;;  %v6908_v32 = vadd.f32 %v20272_v43, %v20179_v23  ;;  %v7861_v15 = vmax.f32 %v6895_v63, 0.0  ;;  %v22705_v63 = vld [vmem:[#allocation90_spill] sm:$0xff] }
 0x4e4   :  { %v8445_v48 = vmax.f32 %v22701_v16, %v8249_v58  ;;  %v8247_v50 = vmax.f32 %v7659_v55, %v7855_v5  ;;  %v7664_v11 = vmax.f32 %v6108_v38, 0.0  ;;  %v6100_v4 = vadd.f32 %v20272_v43, %v6099_v30  ;;  %v22704_v38 = vld [vmem:[#allocation89_spill] sm:$0xff] }
 0x4e5   :  { %v15634_v12 = vpop.f32.mrf.mxu0  ;;  %v7859_v5 = vmax.f32 %v6887_v19, 0.0  ;;  %v6900_v58 = vadd.f32 %v20272_v43, %v20199_v52  ;;  %v7864_v52 = vmax.f32 %v6908_v32, 0.0  ;;  %v22707_v32 = vld [vmem:[#allocation92_spill] sm:$0xff] }
 0x4e6   :  { %v20608_v0 = vpack.c.bf16 %v8445_v48, %v8444_v39  ;;  %v8443_v9 = vmax.f32 %v22703_v49, %v8247_v50  ;;  %v8252_v18 = vmax.f32 %v7664_v11, %v7860_v26  ;;  %v7662_v54 = vmax.f32 %v6100_v4, 0.0  ;;  %v20618_v39 = vpop.f32.mrf.mxu1 }
 0x4e7   :  { %v6111_v60 = vadd.f32 %v20272_v43, %v15634_v12  ;;  %v6102_v3 = vpop.f32.mrf.mxu0  ;;  %v6911_v50 = vadd.f32 %v20272_v43, %v20208_v62  ;;  %v6903_v62 = vadd.f32 %v20272_v43, %v20230_v37 }
 0x4e8   :  { %22702 = vst [vmem:[#allocation218_spill] sm:$0xff] %v20608_v0  ;;  %v20614_v55 = vpack.c.bf16 %v8443_v9, %v8442_v17  ;;  %v8448_v30 = vmax.f32 %v22704_v38, %v8252_v18  ;;  %v8250_v16 = vmax.f32 %v7662_v54, %v7858_v6  ;;  %v6103_v23 = vadd.f32 %v20272_v43, %v6102_v3  ;;  %v20625_v54 = vpop.f32.mrf.mxu1 }
 0x4e9   :  { %v7665_v48 = vmax.f32 %v6111_v60, 0.0  ;;  %v15637_v26 = vpop.f32.mrf.mxu0  ;;  %v7862_v18 = vmax.f32 %v6900_v58, 0.0  ;;  %v22706_v60 = vld [vmem:[#allocation91_spill] sm:$0xff]  ;;  %v7865_v0 = vmax.f32 %v6911_v50, 0.0  ;;  %v22708_v50 = vld [vmem:[#allocation93_spill] sm:$0xff] }
 0x4ea   :  { %v8446_v11 = vmax.f32 %v22705_v63, %v8250_v16  ;;  %v7663_v19 = vmax.f32 %v6103_v23, 0.0  ;;  %v6124_v4 = vadd.f32 %v20272_v43, %v15637_v26  ;;  %v6924_v16 = vadd.f32 %v20272_v43, %v20243_v61 }
 0x4eb   :  { %v8253_v17 = vmax.f32 %v7665_v48, %v7861_v15  ;;  %v6115_v12 = vpop.f32.mrf.mxu0  ;;  %v6916_v63 = vadd.f32 %v20272_v43, %v20261_v45 }
 0x4ec   :  { %v8251_v49 = vmax.f32 %v7663_v19, %v7859_v5  ;;  %v7668_v9 = vmax.f32 %v6124_v4, 0.0  ;;  %v6116_v6 = vadd.f32 %v20272_v43, %v6115_v12  ;;  %v20641_v12 = vpop.f32.mrf.mxu1 }
 0x4ed   :  { %v8449_v3 = vmax.f32 %v22706_v60, %v8253_v17  ;;  %v15638_v38 = vpop.f32.mrf.mxu0 }
 0x4ee   :  { %v8447_v15 = vmax.f32 %v22707_v32, %v8251_v49  ;;  %v8256_v23 = vmax.f32 %v7668_v9, %v7864_v52  ;;  %v7666_v5 = vmax.f32 %v6116_v6, 0.0  ;;  %v6127_v48 = vadd.f32 %v20272_v43, %v15638_v38  ;;  %v22709_v9 = vld [vmem:[#allocation94_spill] sm:$0xff]  ;;  %v22710_v32 = vld [vmem:[#allocation95_spill] sm:$0xff] }
 0x4ef   :  { %v20634_v26 = vpack.c.bf16 %v8449_v3, %v8448_v30  ;;  %v6118_v58 = vpop.f32.mrf.mxu0  ;;  %v7863_v52 = vmax.f32 %v6903_v62, 0.0  ;;  %v6927_v30 = vadd.f32 %v20272_v43, %v20280_v20 }
 0x4f0   :  { %v20638_v19 = vpack.c.bf16 %v8447_v15, %v8446_v11  ;;  %v8452_v4 = vmax.f32 %v22708_v50, %v8256_v23  ;;  %v8254_v37 = vmax.f32 %v7666_v5, %v7862_v18  ;;  %v7669_v17 = vmax.f32 %v6127_v48, 0.0  ;;  %v20652_v48 = vpop.f32.mrf.mxu1 }
 0x4f1   :  { %v6119_v61 = vadd.f32 %v20272_v43, %v6118_v58  ;;  %v15641_v49 = vpop.f32.mrf.mxu0  ;;  %v7868_v11 = vmax.f32 %v6924_v16, 0.0  ;;  %v6919_v18 = vadd.f32 %v20272_v43, %v20300_v25  ;;  %v7866_v5 = vmax.f32 %v6916_v63, 0.0 }
 0x4f2   :  { %v8450_v6 = vmax.f32 %v22709_v9, %v8254_v37  ;;  %v8257_v60 = vmax.f32 %v7669_v17, %v7865_v0  ;;  %v6140_v45 = vadd.f32 %v20272_v43, %v15641_v49  ;;  %v7869_v50 = vmax.f32 %v6927_v30, 0.0 }
 0x4f3   :  { %v7667_v3 = vmax.f32 %v6119_v61, 0.0  ;;  %v6131_v38 = vpop.f32.mrf.mxu0  ;;  %v6940_v0 = vadd.f32 %v20272_v43, %v20309_v22  ;;  %v22711_v61 = vld [vmem:[#allocation96_spill] sm:$0xff]  ;;  %v6932_v63 = vadd.f32 %v20272_v43, %v20331_v21  ;;  %v20664_v22 = vpop.f32.mrf.mxu1 }
 0x4f4   :  { %v8453_v15 = vmax.f32 %v22710_v32, %v8257_v60  ;;  %v7672_v23 = vmax.f32 %v6140_v45, 0.0  ;;  %v6132_v62 = vadd.f32 %v20272_v43, %v6131_v38  ;;  %v7867_v60 = vmax.f32 %v6919_v18, 0.0  ;;  %v22712_v45 = vld [vmem:[#allocation97_spill] sm:$0xff]  ;;  %v22713_v18 = vld [vmem:[#allocation98_spill] sm:$0xff] }
 0x4f5   :  { %v8255_v20 = vmax.f32 %v7667_v3, %v7863_v52  ;;  %v15642_v58 = vpop.f32.mrf.mxu0 }
 0x4f6   :  { %v20656_v16 = vpack.c.bf16 %v8453_v15, %v8452_v4  ;;  %v8260_v37 = vmax.f32 %v7672_v23, %v7868_v11  ;;  %v7670_v17 = vmax.f32 %v6132_v62, 0.0  ;;  %v6143_v25 = vadd.f32 %v20272_v43, %v15642_v58  ;;  %v16296_v4 = vld [vmem:[%s21930_s3 + $0x14] ss:$8 sps:$4 sm:$0xff]  }
 0x4f7   :  { %v8451_v49 = vmax.f32 %v22711_v61, %v8255_v20  ;;  %v6134_v9 = vpop.f32.mrf.mxu0  ;;  %v7872_v15 = vmax.f32 %v6940_v0, 0.0  ;;  %8641 = vmatprep.subr.bf16.mxu1 %v16296_v4 }
 0x4f8   :  { %v8456_v52 = vmax.f32 %v22712_v45, %v8260_v37  ;;  %v8258_v3 = vmax.f32 %v7670_v17, %v7866_v5  ;;  %v7673_v30 = vmax.f32 %v6143_v25, 0.0  ;;  %v6135_v38 = vadd.f32 %v20272_v43, %v6134_v9  ;;  %v22714_v25 = vld [vmem:[#allocation99_spill] sm:$0xff]  ;;  %v20680_v9 = vpop.f32.mrf.mxu1 }
 0x4f9   :  { %v20669_v11 = vpack.c.bf16 %v8451_v49, %v8450_v6  ;;  %v15645_v32 = vpop.f32.mrf.mxu0  ;;  %v21935_v5 = vmov 0   ;;  %v7870_v37 = vmax.f32 %v6932_v63, 0.0  ;;  %v6943_v17 = vadd.f32 %v20272_v43, %v20344_v57  ;;  %v22715_v63 = vld [vmem:[#allocation100_spill] sm:$0xff] }
 0x4fa   :  { %v8454_v23 = vmax.f32 %v22713_v18, %v8258_v3  ;;  %v8261_v62 = vmax.f32 %v7673_v30, %v7869_v50  ;;  %v7671_v21 = vmax.f32 %v6135_v38, 0.0  ;;  %v6156_v20 = vadd.f32 %v20272_v43, %v15645_v32  ;;  %8582 = vmatprep.mubr.bf16.mxu1 %v21935_v5 }
 0x4fb   :  { %v6147_v58 = vpop.f32.mrf.mxu0  ;;  %v6935_v6 = vadd.f32 %v20272_v43, %v20362_v40  ;;  %v6956_v3 = vadd.f32 %v20272_v43, %v20376_v47  ;;  %v20690_v40 = vld [vmem:[%s21929_s2] ss:$0 sm:$0xff]  ;;  %v7873_v32 = vmax.f32 %v6943_v17, 0.0  ;;  %v22716_v47 = vld [vmem:[#allocation101_spill] sm:$0xff]  ;;  %v22717_v17 = vld [vmem:[#allocation102_spill] sm:$0xff] }
 0x4fc   :  { %v8457_v0 = vmax.f32 %v22714_v25, %v8261_v62  ;;  %v8259_v61 = vmax.f32 %v7671_v21, %v7867_v60  ;;  %v7676_v49 = vmax.f32 %v6156_v20, 0.0  ;;  %v6148_v50 = vadd.f32 %v20272_v43, %v6147_v58  ;;  %v20699_v58 = vpop.f32.mrf.mxu1 }
 0x4fd   :  { %v15646_v45 = vpop.f32.mrf.mxu0  ;;  %v7871_v62 = vmax.f32 %v6935_v6, 0.0  ;;  %v6948_v21 = vadd.f32 %v20690_v40, %v20396_v29  ;;  %v7876_v29 = vmax.f32 %v6956_v3, 0.0  ;;  %v22719_v3 = vld [vmem:[#allocation104_spill] sm:$0xff] }
 0x4fe   :  { %v20684_v30 = vpack.c.bf16 %v8457_v0, %v8456_v52  ;;  %v8455_v38 = vmax.f32 %v22715_v63, %v8259_v61  ;;  %v8264_v57 = vmax.f32 %v7676_v49, %v7872_v15  ;;  %v7674_v4 = vmax.f32 %v6148_v50, 0.0 }
 0x4ff   :  { %v6159_v60 = vadd.f32 %v20690_v40, %v15646_v45  ;;  %v6150_v18 = vpop.f32.mrf.mxu0  ;;  %v6959_v61 = vadd.f32 %v20690_v40, %v20405_v53  ;;  %v6951_v53 = vadd.f32 %v20690_v40, %v20424_v14 }
 0x500   :  { %v20695_v43 = vpack.c.bf16 %v8455_v38, %v8454_v23  ;;  %v8460_v52 = vmax.f32 %v22716_v47, %v8264_v57  ;;  %v8262_v20 = vmax.f32 %v7674_v4, %v7870_v37  ;;  %v6151_v15 = vadd.f32 %v20690_v40, %v6150_v18  ;;  %v20706_v4 = vpop.f32.mrf.mxu1 }
 0x501   :  { %v7677_v25 = vmax.f32 %v6159_v60, 0.0  ;;  %v15649_v0 = vpop.f32.mrf.mxu0  ;;  %v7874_v57 = vmax.f32 %v6948_v21, 0.0  ;;  %v22718_v60 = vld [vmem:[#allocation103_spill] sm:$0xff]  ;;  %v7877_v5 = vmax.f32 %v6959_v61, 0.0  ;;  %v22720_v61 = vld [vmem:[#allocation105_spill] sm:$0xff] }
 0x502   :  { %v8458_v49 = vmax.f32 %v22717_v17, %v8262_v20  ;;  %v7675_v6 = vmax.f32 %v6151_v15, 0.0  ;;  %v6172_v50 = vadd.f32 %v20690_v40, %v15649_v0  ;;  %v6972_v20 = vadd.f32 %v20690_v40, %v20436_v42 }
 0x503   :  { %v8265_v23 = vmax.f32 %v7677_v25, %v7873_v32  ;;  %v6163_v45 = vpop.f32.mrf.mxu0  ;;  %v6964_v17 = vadd.f32 %v20690_v40, %v20448_v35 }
 0x504   :  { %v8263_v63 = vmax.f32 %v7675_v6, %v7871_v62  ;;  %v7680_v38 = vmax.f32 %v6172_v50, 0.0  ;;  %v6164_v37 = vadd.f32 %v20690_v40, %v6163_v45  ;;  %v20722_v45 = vpop.f32.mrf.mxu1 }
 0x505   :  { %v8461_v18 = vmax.f32 %v22718_v60, %v8265_v23  ;;  %v15650_v47 = vpop.f32.mrf.mxu0 }
 0x506   :  { %v8459_v32 = vmax.f32 %v22719_v3, %v8263_v63  ;;  %v8268_v15 = vmax.f32 %v7680_v38, %v7876_v29  ;;  %v7678_v62 = vmax.f32 %v6164_v37, 0.0  ;;  %v6175_v25 = vadd.f32 %v20690_v40, %v15650_v47  ;;  %v22721_v38 = vld [vmem:[#allocation106_spill] sm:$0xff]  ;;  %v22722_v3 = vld [vmem:[#allocation107_spill] sm:$0xff] }
 0x507   :  { %v20715_v0 = vpack.c.bf16 %v8461_v18, %v8460_v52  ;;  %v6166_v21 = vpop.f32.mrf.mxu0  ;;  %v7875_v29 = vmax.f32 %v6951_v53, 0.0  ;;  %v6975_v52 = vadd.f32 %v20690_v40, %v20460_v46 }
 0x508   :  { %v20719_v6 = vpack.c.bf16 %v8459_v32, %v8458_v49  ;;  %v8464_v50 = vmax.f32 %v22720_v61, %v8268_v15  ;;  %v8266_v14 = vmax.f32 %v7678_v62, %v7874_v57  ;;  %v7681_v23 = vmax.f32 %v6175_v25, 0.0  ;;  %v20733_v25 = vpop.f32.mrf.mxu1 }
 0x509   :  { %v6167_v42 = vadd.f32 %v20690_v40, %v6166_v21  ;;  %v15653_v63 = vpop.f32.mrf.mxu0  ;;  %v7880_v49 = vmax.f32 %v6972_v20, 0.0  ;;  %v6967_v57 = vadd.f32 %v20690_v40, %v20474_v1  ;;  %v7878_v62 = vmax.f32 %v6964_v17, 0.0 }
 0x50a   :  { %v8462_v37 = vmax.f32 %v22721_v38, %v8266_v14  ;;  %v8269_v60 = vmax.f32 %v7681_v23, %v7877_v5  ;;  %v6188_v35 = vadd.f32 %v20690_v40, %v15653_v63  ;;  %v7881_v61 = vmax.f32 %v6975_v52, 0.0 }
 0x50b   :  { %v7679_v18 = vmax.f32 %v6167_v42, 0.0  ;;  %v6179_v47 = vpop.f32.mrf.mxu0  ;;  %v6988_v5 = vadd.f32 %v20690_v40, %v20481_v24  ;;  %v22723_v42 = vld [vmem:[#allocation108_spill] sm:$0xff]  ;;  %v6980_v17 = vadd.f32 %v20690_v40, %v20497_v28  ;;  %v20745_v24 = vpop.f32.mrf.mxu1 }
 0x50c   :  { %v8465_v32 = vmax.f32 %v22722_v3, %v8269_v60  ;;  %v7684_v15 = vmax.f32 %v6188_v35, 0.0  ;;  %v6180_v53 = vadd.f32 %v20690_v40, %v6179_v47  ;;  %v7879_v60 = vmax.f32 %v6967_v57, 0.0  ;;  %v22724_v35 = vld [vmem:[#allocation109_spill] sm:$0xff] }
 0x50d   :  { %v8267_v46 = vmax.f32 %v7679_v18, %v7875_v29  ;;  %v15654_v21 = vpop.f32.mrf.mxu0  ;;  %v7884_v3 = vmax.f32 %v6988_v5, 0.0  ;;  %v7882_v28 = vmax.f32 %v6980_v17, 0.0  ;;  %v22727_v17 = vld [vmem:[#allocation112_spill] sm:$0xff] }
 0x50e   :  { %v20737_v20 = vpack.c.bf16 %v8465_v32, %v8464_v50  ;;  %v8272_v14 = vmax.f32 %v7684_v15, %v7880_v49  ;;  %v7682_v23 = vmax.f32 %v6180_v53, 0.0  ;;  %v6191_v1 = vadd.f32 %v20690_v40, %v15654_v21  ;;  %v22725_v32 = vld [vmem:[#allocation110_spill] sm:$0xff] }
 0x50f   :  { %v8463_v63 = vmax.f32 %v22723_v42, %v8267_v46  ;;  %v6182_v38 = vpop.f32.mrf.mxu0 }
 0x510   :  { %v8468_v29 = vmax.f32 %v22724_v35, %v8272_v14  ;;  %v8270_v18 = vmax.f32 %v7682_v23, %v7878_v62  ;;  %v7685_v52 = vmax.f32 %v6191_v1, 0.0  ;;  %v6183_v47 = vadd.f32 %v20690_v40, %v6182_v38  ;;  %v22726_v23 = vld [vmem:[#allocation111_spill] sm:$0xff] }
 0x511   :  { %v20747_v50 = vpack.c.bf16 %v8463_v63, %v8462_v37  ;;  %v15657_v49 = vpop.f32.mrf.mxu0  ;;  %v6991_v62 = vadd.f32 %v20690_v40, %v20508_v51  ;;  %v6983_v14 = vadd.f32 %v20690_v40, %v20520_v27  ;;  %v20757_v63 = vpop.f32.mrf.mxu1  ;;  %v7004_v38 = vadd.f32 %v20690_v40, %v20532_v13 }
 0x512   :  { %v8466_v15 = vmax.f32 %v22725_v32, %v8270_v18  ;;  %v8273_v53 = vmax.f32 %v7685_v52, %v7881_v61  ;;  %v7683_v46 = vmax.f32 %v6183_v47, 0.0  ;;  %v6204_v57 = vadd.f32 %v20690_v40, %v15657_v49 }
 0x513   :  { %v6195_v21 = vpop.f32.mrf.mxu0  ;;  %v7885_v47 = vmax.f32 %v6991_v62, 0.0  ;;  %v6996_v32 = vadd.f32 %v20690_v40, %v20546_v7  ;;  %v22729_v62 = vld [vmem:[#allocation114_spill] sm:$0xff]  ;;  %v7888_v7 = vmax.f32 %v7004_v38, 0.0  ;;  %v22731_v38 = vld [vmem:[#allocation116_spill] sm:$0xff] }
 0x514   :  { %v8469_v1 = vmax.f32 %v22726_v23, %v8273_v53  ;;  %v8271_v37 = vmax.f32 %v7683_v46, %v7879_v60  ;;  %v7688_v42 = vmax.f32 %v6204_v57, 0.0  ;;  %v6196_v5 = vadd.f32 %v20690_v40, %v6195_v21  ;;  %v22728_v46 = vld [vmem:[#allocation113_spill] sm:$0xff] }
 0x515   :  { %v15658_v61 = vpop.f32.mrf.mxu0  ;;  %v7883_v60 = vmax.f32 %v6983_v14, 0.0 }
 0x516   :  { %v20761_v35 = vpack.c.bf16 %v8469_v1, %v8468_v29  ;;  %v8467_v18 = vmax.f32 %v22727_v17, %v8271_v37  ;;  %v8276_v51 = vmax.f32 %v7688_v42, %v7884_v3  ;;  %v7686_v52 = vmax.f32 %v6196_v5, 0.0  ;;  %v20771_v29 = vpop.f32.mrf.mxu1 }
 0x517   :  { %v6207_v27 = vadd.f32 %v20690_v40, %v15658_v61  ;;  %v6198_v49 = vpop.f32.mrf.mxu0  ;;  %v7007_v1 = vadd.f32 %v20690_v40, %v20553_v34  ;;  %v6999_v34 = vadd.f32 %v20690_v40, %v20569_v8 }
 0x518   :  { %v20767_v53 = vpack.c.bf16 %v8467_v18, %v8466_v15  ;;  %v8472_v57 = vmax.f32 %v22728_v46, %v8276_v51  ;;  %v8274_v21 = vmax.f32 %v7686_v52, %v7882_v28  ;;  %v6199_v13 = vadd.f32 %v20690_v40, %v6198_v49  ;;  %v20778_v51 = vpop.f32.mrf.mxu1  ;;  %v22730_v52 = vld [vmem:[#allocation115_spill] sm:$0xff] }
 0x519   :  { %v7689_v23 = vmax.f32 %v6207_v27, 0.0  ;;  %v15661_v3 = vpop.f32.mrf.mxu0  ;;  %v7886_v18 = vmax.f32 %v6996_v32, 0.0  ;;  %v7889_v46 = vmax.f32 %v7007_v1, 0.0  ;;  %v22732_v1 = vld [vmem:[#allocation117_spill] sm:$0xff] }
 0x51a   :  { %v8470_v37 = vmax.f32 %v22729_v62, %v8274_v21  ;;  %v7687_v14 = vmax.f32 %v6199_v13, 0.0  ;;  %v6220_v42 = vadd.f32 %v20690_v40, %v15661_v3  ;;  %v7020_v21 = vadd.f32 %v20690_v40, %v20580_v44 }
 0x51b   :  { %v8277_v15 = vmax.f32 %v7689_v23, %v7885_v47  ;;  %v6211_v5 = vpop.f32.mrf.mxu0  ;;  %v7012_v62 = vadd.f32 %v20690_v40, %v20592_v36 }
 0x51c   :  { %v8275_v61 = vmax.f32 %v7687_v14, %v7883_v60  ;;  %v7692_v17 = vmax.f32 %v6220_v42, 0.0  ;;  %v6212_v28 = vadd.f32 %v20690_v40, %v6211_v5  ;;  %v20794_v5 = vpop.f32.mrf.mxu1 }
 0x51d   :  { %v8473_v27 = vmax.f32 %v22730_v52, %v8277_v15  ;;  %v15662_v49 = vpop.f32.mrf.mxu0 }
 0x51e   :  { %v8471_v47 = vmax.f32 %v22731_v38, %v8275_v61  ;;  %v8280_v13 = vmax.f32 %v7692_v17, %v7888_v7  ;;  %v7690_v60 = vmax.f32 %v6212_v28, 0.0  ;;  %v6223_v23 = vadd.f32 %v20690_v40, %v15662_v49  ;;  %v22733_v17 = vld [vmem:[#allocation118_spill] sm:$0xff]  ;;  %v22734_v38 = vld [vmem:[#allocation119_spill] sm:$0xff] }
 0x51f   :  { %v20787_v3 = vpack.c.bf16 %v8473_v27, %v8472_v57  ;;  %v6214_v32 = vpop.f32.mrf.mxu0  ;;  %v7887_v7 = vmax.f32 %v6999_v34, 0.0  ;;  %v7023_v57 = vadd.f32 %v20690_v40, %v20604_v41 }
 0x520   :  { %v20791_v14 = vpack.c.bf16 %v8471_v47, %v8470_v37  ;;  %v8476_v42 = vmax.f32 %v22732_v1, %v8280_v13  ;;  %v8278_v8 = vmax.f32 %v7690_v60, %v7886_v18  ;;  %v7693_v15 = vmax.f32 %v6223_v23, 0.0  ;;  %v20805_v23 = vpop.f32.mrf.mxu1 }
 0x521   :  { %v6215_v44 = vadd.f32 %v20690_v40, %v6214_v32  ;;  %v15665_v61 = vpop.f32.mrf.mxu0  ;;  %v7892_v37 = vmax.f32 %v7020_v21, 0.0  ;;  %v7015_v18 = vadd.f32 %v20690_v40, %v20618_v39  ;;  %v7890_v60 = vmax.f32 %v7012_v62, 0.0 }
 0x522   :  { %v8474_v28 = vmax.f32 %v22733_v17, %v8278_v8  ;;  %v8281_v52 = vmax.f32 %v7693_v15, %v7889_v46  ;;  %v6236_v36 = vadd.f32 %v20690_v40, %v15665_v61  ;;  %v7893_v1 = vmax.f32 %v7023_v57, 0.0 }
 0x523   :  { %v7691_v27 = vmax.f32 %v6215_v44, 0.0  ;;  %v6227_v49 = vpop.f32.mrf.mxu0  ;;  %v7036_v46 = vadd.f32 %v20690_v40, %v20625_v54  ;;  %v22735_v44 = vld [vmem:[#allocation120_spill] sm:$0xff]  ;;  %v7028_v62 = vadd.f32 %v20690_v40, %v20641_v12  ;;  %v20817_v54 = vpop.f32.mrf.mxu1 }
 0x524   :  { %v8477_v47 = vmax.f32 %v22734_v38, %v8281_v52  ;;  %v7696_v13 = vmax.f32 %v6236_v36, 0.0  ;;  %v6228_v34 = vadd.f32 %v20690_v40, %v6227_v49  ;;  %v7891_v52 = vmax.f32 %v7015_v18, 0.0  ;;  %v22736_v36 = vld [vmem:[#allocation121_spill] sm:$0xff] }
 0x525   :  { %v8279_v41 = vmax.f32 %v7691_v27, %v7887_v7  ;;  %v15666_v32 = vpop.f32.mrf.mxu0  ;;  %v7896_v38 = vmax.f32 %v7036_v46, 0.0  ;;  %v7894_v12 = vmax.f32 %v7028_v62, 0.0  ;;  %v22739_v62 = vld [vmem:[#allocation124_spill] sm:$0xff] }
 0x526   :  { %v20809_v21 = vpack.c.bf16 %v8477_v47, %v8476_v42  ;;  %v8284_v8 = vmax.f32 %v7696_v13, %v7892_v37  ;;  %v7694_v15 = vmax.f32 %v6228_v34, 0.0  ;;  %v6239_v39 = vadd.f32 %v20690_v40, %v15666_v32  ;;  %v22737_v47 = vld [vmem:[#allocation122_spill] sm:$0xff] }
 0x527   :  { %v8475_v61 = vmax.f32 %v22735_v44, %v8279_v41  ;;  %v6230_v17 = vpop.f32.mrf.mxu0 }
 0x528   :  { %v8480_v7 = vmax.f32 %v22736_v36, %v8284_v8  ;;  %v8282_v27 = vmax.f32 %v7694_v15, %v7890_v60  ;;  %v7697_v57 = vmax.f32 %v6239_v39, 0.0  ;;  %v6231_v49 = vadd.f32 %v20690_v40, %v6230_v17  ;;  %v22738_v15 = vld [vmem:[#allocation123_spill] sm:$0xff] }
 0x529   :  { %v20819_v42 = vpack.c.bf16 %v8475_v61, %v8474_v28  ;;  %v15669_v37 = vpop.f32.mrf.mxu0  ;;  %v7039_v60 = vadd.f32 %v20690_v40, %v20652_v48  ;;  %v7031_v8 = vadd.f32 %v20690_v40, %v20664_v22  ;;  %v20829_v61 = vpop.f32.mrf.mxu1  ;;  %v7052_v17 = vadd.f32 %v20690_v40, %v20680_v9 }
 0x52a   :  { %v8478_v13 = vmax.f32 %v22737_v47, %v8282_v27  ;;  %v8285_v34 = vmax.f32 %v7697_v57, %v7893_v1  ;;  %v7695_v41 = vmax.f32 %v6231_v49, 0.0  ;;  %v6252_v18 = vadd.f32 %v20690_v40, %v15669_v37 }
 0x52b   :  { %v6243_v32 = vpop.f32.mrf.mxu0  ;;  %v7897_v49 = vmax.f32 %v7039_v60, 0.0  ;;  %v7044_v47 = vadd.f32 %v20690_v40, %v20699_v58  ;;  %v22741_v60 = vld [vmem:[#allocation126_spill] sm:$0xff]  ;;  %v7900_v58 = vmax.f32 %v7052_v17, 0.0  ;;  %v22743_v17 = vld [vmem:[#allocation128_spill] sm:$0xff] }
 0x52c   :  { %v8481_v39 = vmax.f32 %v22738_v15, %v8285_v34  ;;  %v8283_v28 = vmax.f32 %v7695_v41, %v7891_v52  ;;  %v7700_v44 = vmax.f32 %v6252_v18, 0.0  ;;  %v6244_v46 = vadd.f32 %v20690_v40, %v6243_v32  ;;  %v22740_v41 = vld [vmem:[#allocation125_spill] sm:$0xff] }
 0x52d   :  { %v15670_v1 = vpop.f32.mrf.mxu0  ;;  %v7895_v52 = vmax.f32 %v7031_v8, 0.0 }
 0x52e   :  { %v20833_v36 = vpack.c.bf16 %v8481_v39, %v8480_v7  ;;  %v8479_v27 = vmax.f32 %v22739_v62, %v8283_v28  ;;  %v8288_v48 = vmax.f32 %v7700_v44, %v7896_v38  ;;  %v7698_v57 = vmax.f32 %v6244_v46, 0.0  ;;  %v20843_v7 = vpop.f32.mrf.mxu1 }
 0x52f   :  { %v6255_v22 = vadd.f32 %v20690_v40, %v15670_v1  ;;  %v6246_v37 = vpop.f32.mrf.mxu0  ;;  %v7055_v39 = vadd.f32 %v20690_v40, %v20706_v4  ;;  %v7047_v4 = vadd.f32 %v20690_v40, %v20722_v45 }
 0x530   :  { %v20839_v34 = vpack.c.bf16 %v8479_v27, %v8478_v13  ;;  %v8484_v18 = vmax.f32 %v22740_v41, %v8288_v48  ;;  %v8286_v32 = vmax.f32 %v7698_v57, %v7894_v12  ;;  %v6247_v9 = vadd.f32 %v20690_v40, %v6246_v37  ;;  %v20850_v48 = vpop.f32.mrf.mxu1  ;;  %v22742_v57 = vld [vmem:[#allocation127_spill] sm:$0xff] }
 0x531   :  { %v7701_v15 = vmax.f32 %v6255_v22, 0.0  ;;  %v15673_v38 = vpop.f32.mrf.mxu0  ;;  %v7898_v27 = vmax.f32 %v7044_v47, 0.0  ;;  %v7901_v41 = vmax.f32 %v7055_v39, 0.0  ;;  %v22744_v39 = vld [vmem:[#allocation129_spill] sm:$0xff] }
 0x532   :  { %v8482_v28 = vmax.f32 %v22741_v60, %v8286_v32  ;;  %v7699_v8 = vmax.f32 %v6247_v9, 0.0  ;;  %v6268_v44 = vadd.f32 %v20690_v40, %v15673_v38  ;;  %v7068_v32 = vadd.f32 %v20690_v40, %v20733_v25 }
 0x533   :  { %v8289_v13 = vmax.f32 %v7701_v15, %v7897_v49  ;;  %v6259_v46 = vpop.f32.mrf.mxu0  ;;  %v7060_v60 = vadd.f32 %v20690_v40, %v20745_v24 }
 0x534   :  { %v8287_v1 = vmax.f32 %v7699_v8, %v7895_v52  ;;  %v7704_v62 = vmax.f32 %v6268_v44, 0.0  ;;  %v6260_v12 = vadd.f32 %v20690_v40, %v6259_v46  ;;  %v20866_v46 = vpop.f32.mrf.mxu1 }
 0x535   :  { %v8485_v22 = vmax.f32 %v22742_v57, %v8289_v13  ;;  %v15674_v37 = vpop.f32.mrf.mxu0 }
 0x536   :  { %v8483_v49 = vmax.f32 %v22743_v17, %v8287_v1  ;;  %v8292_v9 = vmax.f32 %v7704_v62, %v7900_v58  ;;  %v7702_v52 = vmax.f32 %v6260_v12, 0.0  ;;  %v6271_v15 = vadd.f32 %v20690_v40, %v15674_v37  ;;  %v22745_v62 = vld [vmem:[#allocation130_spill] sm:$0xff]  ;;  %v22746_v17 = vld [vmem:[#allocation131_spill] sm:$0xff] }
 0x537   :  { %v20859_v38 = vpack.c.bf16 %v8485_v22, %v8484_v18  ;;  %v6262_v47 = vpop.f32.mrf.mxu0  ;;  %v7899_v58 = vmax.f32 %v7047_v4, 0.0  ;;  %v7071_v18 = vadd.f32 %v20690_v40, %v20757_v63 }
 0x538   :  { %v20863_v8 = vpack.c.bf16 %v8483_v49, %v8482_v28  ;;  %v8488_v44 = vmax.f32 %v22744_v39, %v8292_v9  ;;  %v8290_v45 = vmax.f32 %v7702_v52, %v7898_v27  ;;  %v7705_v13 = vmax.f32 %v6271_v15, 0.0  ;;  %v20877_v15 = vpop.f32.mrf.mxu1 }
 0x539   :  { %v6263_v25 = vadd.f32 %v20690_v40, %v6262_v47  ;;  %v15677_v1 = vpop.f32.mrf.mxu0  ;;  %v7904_v28 = vmax.f32 %v7068_v32, 0.0  ;;  %v7063_v27 = vadd.f32 %v20690_v40, %v20771_v29  ;;  %v7902_v52 = vmax.f32 %v7060_v60, 0.0 }
 0x53a   :  { %v8486_v12 = vmax.f32 %v22745_v62, %v8290_v45  ;;  %v8293_v57 = vmax.f32 %v7705_v13, %v7901_v41  ;;  %v6284_v24 = vadd.f32 %v20690_v40, %v15677_v1  ;;  %v7905_v39 = vmax.f32 %v7071_v18, 0.0 }
 0x53b   :  { %v7703_v22 = vmax.f32 %v6263_v25, 0.0  ;;  %v6275_v37 = vpop.f32.mrf.mxu0  ;;  %v7084_v41 = vadd.f32 %v20690_v40, %v20778_v51  ;;  %v22747_v25 = vld [vmem:[#allocation132_spill] sm:$0xff]  ;;  %v7076_v60 = vadd.f32 %v20690_v40, %v20794_v5  ;;  %v7107_v51 = vpop.f32.mrf.mxu1  ;;  %v7087_v5 = vadd.f32 %v20690_v40, %v20805_v23 }
 0x53c   :  { %v8489_v49 = vmax.f32 %v22746_v17, %v8293_v57  ;;  %v7708_v9 = vmax.f32 %v6284_v24, 0.0  ;;  %v6276_v4 = vadd.f32 %v20690_v40, %v6275_v37  ;;  %v7903_v57 = vmax.f32 %v7063_v27, 0.0  ;;  %v22748_v24 = vld [vmem:[#allocation133_spill] sm:$0xff] }
 0x53d   :  { %v8291_v63 = vmax.f32 %v7703_v22, %v7899_v58  ;;  %v15678_v47 = vpop.f32.mrf.mxu0  ;;  %v7908_v17 = vmax.f32 %v7084_v41, 0.0 }
 0x53e   :  { %v20881_v32 = vpack.c.bf16 %v8489_v49, %v8488_v44  ;;  %v8296_v45 = vmax.f32 %v7708_v9, %v7904_v28  ;;  %v7706_v13 = vmax.f32 %v6276_v4, 0.0  ;;  %v6287_v29 = vadd.f32 %v20690_v40, %v15678_v47  ;;  %v22749_v49 = vld [vmem:[#allocation134_spill] sm:$0xff] }
 0x53f   :  { %v8487_v1 = vmax.f32 %v22747_v25, %v8291_v63  ;;  %v6278_v62 = vpop.f32.mrf.mxu0  ;;  %v7906_v25 = vmax.f32 %v7076_v60, 0.0  ;;  %v22751_v60 = vld [vmem:[#allocation136_spill] sm:$0xff] }
 0x540   :  { %v8492_v58 = vmax.f32 %v22748_v24, %v8296_v45  ;;  %v8294_v22 = vmax.f32 %v7706_v13, %v7902_v52  ;;  %v7709_v18 = vmax.f32 %v6287_v29, 0.0  ;;  %v6279_v37 = vadd.f32 %v20690_v40, %v6278_v62  ;;  %v22750_v45 = vld [vmem:[#allocation135_spill] sm:$0xff] }
 0x541   :  { %v20889_v44 = vpack.c.bf16 %v8487_v1, %v8486_v12  ;;  %v15681_v28 = vpop.f32.mrf.mxu0  ;;  %v7079_v52 = vadd.f32 %v20690_v40, %v20817_v54  ;;  %v15886_v1 = vpop.f32.mrf.mxu1  ;;  %v7909_v54 = vmax.f32 %v7087_v5, 0.0 }
 0x542   :  { %v8490_v9 = vmax.f32 %v22749_v49, %v8294_v22  ;;  %v8297_v4 = vmax.f32 %v7709_v18, %v7905_v39  ;;  %v7707_v63 = vmax.f32 %v6279_v37, 0.0  ;;  %v6300_v27 = vadd.f32 %v20690_v40, %v15681_v28 }
 0x543   :  { %v6291_v47 = vpop.f32.mrf.mxu0  ;;  %v7100_v39 = vadd.f32 %v20690_v40, %v20829_v61  ;;  %v7907_v49 = vmax.f32 %v7079_v52, 0.0 }
 0x544   :  { %v8493_v13 = vmax.f32 %v22750_v45, %v8297_v4  ;;  %v8295_v12 = vmax.f32 %v7707_v63, %v7903_v57  ;;  %v7712_v29 = vmax.f32 %v6300_v27, 0.0  ;;  %v6292_v41 = vadd.f32 %v20690_v40, %v6291_v47  ;;  %v22752_v63 = vld [vmem:[#allocation137_spill] sm:$0xff] }
 0x545   :  { %v15682_v62 = vpop.f32.mrf.mxu0  ;;  %v7092_v57 = vadd.f32 %v20690_v40, %v20843_v7 }
 0x546   :  { %v20901_v24 = vpack.c.bf16 %v8493_v13, %v8492_v58  ;;  %v8491_v22 = vmax.f32 %v22751_v60, %v8295_v12  ;;  %v8300_v18 = vmax.f32 %v7712_v29, %v7908_v17  ;;  %v7710_v23 = vmax.f32 %v6292_v41, 0.0  ;;  %v7110_v58 = vpop.f32.mrf.mxu1  ;;  %v22753_v12 = vld [vmem:[#allocation138_spill] sm:$0xff] }
 0x547   :  { %v6303_v37 = vadd.f32 %v20690_v40, %v15682_v62  ;;  %v6294_v28 = vpop.f32.mrf.mxu0  ;;  %v7103_v17 = vadd.f32 %v20690_v40, %v20850_v48  ;;  %v7912_v41 = vmax.f32 %v7100_v39, 0.0  ;;  %v7095_v48 = vadd.f32 %v20690_v40, %v20866_v46 }
 0x548   :  { %v20907_v4 = vpack.c.bf16 %v8491_v22, %v8490_v9  ;;  %v8496_v27 = vmax.f32 %v22752_v63, %v8300_v18  ;;  %v8298_v47 = vmax.f32 %v7710_v23, %v7906_v25  ;;  %v6295_v61 = vadd.f32 %v20690_v40, %v6294_v28  ;;  %v15889_v18 = vpop.f32.mrf.mxu1  ;;  %v22754_v23 = vld [vmem:[#allocation139_spill] sm:$0xff] }
 0x549   :  { %v7713_v45 = vmax.f32 %v6303_v37, 0.0  ;;  %v15685_v13 = vpop.f32.mrf.mxu0  ;;  %v7910_v22 = vmax.f32 %v7092_v57, 0.0  ;;  %v7913_v63 = vmax.f32 %v7103_v17, 0.0  ;;  %v22756_v17 = vld [vmem:[#allocation141_spill] sm:$0xff] }
 0x54a   :  { %v8494_v5 = vmax.f32 %v22753_v12, %v8298_v47  ;;  %v7711_v29 = vmax.f32 %v6295_v61, 0.0  ;;  %v6316_v52 = vadd.f32 %v20690_v40, %v15685_v13  ;;  %v7116_v47 = vadd.f32 %v20690_v40, %v20877_v15  ;;  %v22755_v61 = vld [vmem:[#allocation140_spill] sm:$0xff] }
 0x54b   :  { %v8301_v7 = vmax.f32 %v7713_v45, %v7909_v54  ;;  %v6307_v9 = vpop.f32.mrf.mxu0  ;;  %v7108_v12 = vadd.f32 %v20690_v40, %v7107_v51 }
 0x54c   :  { %v8299_v62 = vmax.f32 %v7711_v29, %v7907_v49  ;;  %v7716_v60 = vmax.f32 %v6316_v52, 0.0  ;;  %v6308_v25 = vadd.f32 %v20690_v40, %v6307_v9  ;;  %v7123_v9 = vpop.f32.mrf.mxu1 }
 0x54d   :  { %v8497_v37 = vmax.f32 %v22754_v23, %v8301_v7  ;;  %v15686_v28 = vpop.f32.mrf.mxu0  ;;  %v7911_v23 = vmax.f32 %v7095_v48, 0.0 }
 0x54e   :  { %v8495_v39 = vmax.f32 %v22755_v61, %v8299_v62  ;;  %v8304_v54 = vmax.f32 %v7716_v60, %v7912_v41  ;;  %v7714_v45 = vmax.f32 %v6308_v25, 0.0  ;;  %v6319_v49 = vadd.f32 %v20690_v40, %v15686_v28  ;;  %v22757_v60 = vld [vmem:[#allocation142_spill] sm:$0xff]  ;;  %v15890_v48 = vpop.f32.mrf.mxu1 }
 0x54f   :  { %v20923_v13 = vpack.c.bf16 %v8497_v37, %v8496_v27  ;;  %v6310_v57 = vpop.f32.mrf.mxu0  ;;  %v7119_v41 = vadd.f32 %v20690_v40, %v15886_v1  ;;  %v7916_v28 = vmax.f32 %v7116_v47, 0.0  ;;  %v7111_v61 = vadd.f32 %v20690_v40, %v7110_v58 }
 0x550   :  { %v20926_v29 = vpack.c.bf16 %v8495_v39, %v8494_v5  ;;  %v8500_v52 = vmax.f32 %v22756_v17, %v8304_v54  ;;  %v8302_v7 = vmax.f32 %v7714_v45, %v7910_v22  ;;  %v7717_v46 = vmax.f32 %v6319_v49, 0.0  ;;  %v22758_v39 = vld [vmem:[#allocation143_spill] sm:$0xff] }
 0x551   :  { %v6311_v15 = vadd.f32 %v20690_v40, %v6310_v57  ;;  %v15689_v62 = vpop.f32.mrf.mxu0  ;;  %v7914_v49 = vmax.f32 %v7108_v12, 0.0  ;;  %v7917_v1 = vmax.f32 %v7119_v41, 0.0 }
 0x552   :  { %v8498_v25 = vmax.f32 %v22757_v60, %v8302_v7  ;;  %v8305_v27 = vmax.f32 %v7717_v46, %v7913_v63  ;;  %v6332_v37 = vadd.f32 %v20690_v40, %v15689_v62  ;;  %v7132_v7 = vadd.f32 %v20690_v40, %v15889_v18  ;;  %v22760_v62 = vld [vmem:[#allocation144_spill] sm:$0xff] }
 0x553   :  { %v7715_v51 = vmax.f32 %v6311_v15, 0.0  ;;  %v6323_v5 = vpop.f32.mrf.mxu0 }
 0x554   :  { %v8501_v22 = vmax.f32 %v22758_v39, %v8305_v27  ;;  %v7720_v54 = vmax.f32 %v6332_v37, 0.0  ;;  %v6324_v45 = vadd.f32 %v20690_v40, %v6323_v5  ;;  %v7915_v27 = vmax.f32 %v7111_v61, 0.0  ;;  %v22761_v5 = vld [vmem:[#allocation145_spill] sm:$0xff] }
 0x555   :  { %v8303_v57 = vmax.f32 %v7715_v51, %v7911_v23  ;;  %v15690_v17 = vpop.f32.mrf.mxu0  ;;  %v7124_v37 = vadd.f32 %v20690_v40, %v7123_v9  ;;  %v7126_v51 = vpop.f32.mrf.mxu1  ;;  %v7135_v9 = vadd.f32 %v20690_v40, %v15890_v48 }
 0x556   :  { %v20937_v63 = vpack.c.bf16 %v8501_v22, %v8500_v52  ;;  %v8308_v46 = vmax.f32 %v7720_v54, %v7916_v28  ;;  %v7718_v47 = vmax.f32 %v6324_v45, 0.0  ;;  %v6335_v15 = vadd.f32 %v20690_v40, %v15690_v17  ;;  %v22762_v22 = vld [vmem:[#allocation146_spill] sm:$0xff] }
 0x557   :  { %v8499_v58 = vmax.f32 %v22760_v62, %v8303_v57  ;;  %v6326_v60 = vpop.f32.mrf.mxu0  ;;  %v7920_v28 = vmax.f32 %v7132_v7, 0.0  ;;  %v7918_v62 = vmax.f32 %v7124_v37, 0.0 }
 0x558   :  { %22759 = vst [vmem:[#allocation21_spill] sm:$0xff] %v20937_v63  ;;  %v8504_v12 = vmax.f32 %v22761_v5, %v8308_v46  ;;  %v8306_v39 = vmax.f32 %v7718_v47, %v7914_v49  ;;  %v7721_v23 = vmax.f32 %v6335_v15, 0.0  ;;  %v6327_v41 = vadd.f32 %v20690_v40, %v6326_v60  ;;  %v22763_v46 = vld [vmem:[#allocation147_spill] sm:$0xff]  ;;  %v22765_v5 = vld [vmem:[#allocation148_spill] sm:$0xff] }
 0x559   :  { %v20944_v18 = vpack.c.bf16 %v8499_v58, %v8498_v25  ;;  %v15693_v52 = vpop.f32.mrf.mxu0  ;;  %v7127_v49 = vadd.f32 %v20690_v40, %v7126_v51 }
 0x55a   :  { %v8502_v54 = vmax.f32 %v22762_v22, %v8306_v39  ;;  %v8309_v45 = vmax.f32 %v7721_v23, %v7917_v1  ;;  %v7719_v17 = vmax.f32 %v6327_v41, 0.0  ;;  %v6348_v57 = vadd.f32 %v20690_v40, %v15693_v52  ;;  %v22766_v41 = vld [vmem:[#allocation208_spill] sm:$0xff] }
 0x55b   :  { %v6339_v61 = vpop.f32.mrf.mxu0  ;;  %v5580_v37 = vadd.f32 %v20690_v40, %v22766_v41  ;;  %v7921_v52 = vmax.f32 %v7135_v9, 0.0  ;;  %v7919_v22 = vmax.f32 %v7127_v49, 0.0  ;;  %v22771_v9 = vld [vmem:[#allocation212_spill] sm:$0xff] }
 0x55c   :  { %v8505_v47 = vmax.f32 %v22763_v46, %v8309_v45  ;;  %v8307_v15 = vmax.f32 %v7719_v17, %v7915_v27  ;;  %v7724_v60 = vmax.f32 %v6348_v57, 0.0  ;;  %v6340_v25 = vadd.f32 %v20690_v40, %v6339_v61  ;;  %v22768_v27 = vld [vmem:[#allocation149_spill] sm:$0xff]  ;;  %v22769_v61 = vld [vmem:[#allocation210_spill] sm:$0xff] }
 0x55d   :  { %v15694_v58 = vpop.f32.mrf.mxu0  ;;  %v5572_v46 = vadd.f32 %v20690_v40, %v22769_v61  ;;  %v5583_v49 = vadd.f32 %v20690_v40, %v22771_v9  ;;  %v22773_v61 = vld [vmem:[#allocation211_spill] sm:$0xff] }
 0x55e   :  { %v20952_v7 = vpack.c.bf16 %v8505_v47, %v8504_v12  ;;  %v8503_v1 = vmax.f32 %v22765_v5, %v8307_v15  ;;  %v8312_v39 = vmax.f32 %v7724_v60, %v7920_v28  ;;  %v7722_v23 = vmax.f32 %v6340_v25, 0.0  ;;  %v22770_v15 = vld [vmem:[#allocation207_spill] sm:$0xff] }
 0x55f   :  { %v6351_v48 = vadd.f32 %v20690_v40, %v15694_v58  ;;  %v6342_v51 = vpop.f32.mrf.mxu0  ;;  %v7530_v41 = vmax.f32 %v5572_v46, 0.0 }
 0x560   :  { %22764 = vst [vmem:[#allocation220_spill] sm:$0xff] %v20952_v7  ;;  %v20958_v45 = vpack.c.bf16 %v8503_v1, %v8502_v54  ;;  %v8508_v17 = vmax.f32 %v22768_v27, %v8312_v39  ;;  %v8310_v57 = vmax.f32 %v7722_v23, %v7918_v62  ;;  %v6343_v12 = vadd.f32 %v20690_v40, %v6342_v51  ;;  %v22772_v51 = vld [vmem:[#allocation209_spill] sm:$0xff] }
 0x561   :  { %v7725_v28 = vmax.f32 %v6351_v48, 0.0  ;;  %v15697_v47 = vpop.f32.mrf.mxu0  ;;  %v7532_v1 = vmax.f32 %v5580_v37, 0.0 }
 0x562   :  { %22767 = vst [vmem:[#allocation22_spill] sm:$0xff] %v20958_v45  ;;  %v8506_v60 = vmax.f32 %v22770_v15, %v8310_v57  ;;  %v7723_v25 = vmax.f32 %v6343_v12, 0.0  ;;  %v6364_v58 = vadd.f32 %v20690_v40, %v15697_v47  ;;  %v7533_v15 = vmax.f32 %v5583_v49, 0.0  ;;  %v22774_v45 = vld [vmem:[#allocation213_spill] sm:$0xff] }
 0x563   :  { %v8313_v54 = vmax.f32 %v7725_v28, %v7921_v52  ;;  %v6355_v5 = vpop.f32.mrf.mxu0  ;;  %v5575_v52 = vadd.f32 %v20690_v40, %v22774_v45  ;;  %v22775_v28 = vld [vmem:[#allocation215_spill] sm:$0xff] }
 0x564   :  { %v8311_v39 = vmax.f32 %v7723_v25, %v7919_v22  ;;  %v7728_v62 = vmax.f32 %v6364_v58, 0.0  ;;  %v6356_v23 = vadd.f32 %v20690_v40, %v6355_v5  ;;  %v5596_v37 = vadd.f32 %v20690_v40, %v22775_v28  ;;  %v22778_v58 = vld [vmem:[#allocation150_spill] sm:$0xff] }
 0x565   :  { %v8509_v27 = vmax.f32 %v22772_v51, %v8313_v54  ;;  %v15698_v48 = vpop.f32.mrf.mxu0 }
 0x566   :  { %v8507_v7 = vmax.f32 %v22773_v61, %v8311_v39  ;;  %v8120_v57 = vmax.f32 %v7532_v1, %v7728_v62  ;;  %v7726_v12 = vmax.f32 %v6356_v23, 0.0  ;;  %v6367_v47 = vadd.f32 %v20690_v40, %v15698_v48  ;;  %v22779_v1 = vld [vmem:[#allocation217_spill] sm:$0xff]  ;;  %v22780_v23 = vld [vmem:[#allocation151_spill] sm:$0xff] }
 0x567   :  { %v20976_v22 = vpack.c.bf16 %v8509_v27, %v8508_v17  ;;  %v6358_v25 = vpop.f32.mrf.mxu0  ;;  %v5588_v39 = vadd.f32 %v20690_v40, %v22779_v1  ;;  %v7531_v17 = vmax.f32 %v5575_v52, 0.0  ;;  %v22781_v27 = vld [vmem:[#allocation219_spill] sm:$0xff] }
 0x568   :  { %v20978_v46 = vpack.c.bf16 %v8507_v7, %v8506_v60  ;;  %v8316_v9 = vmax.f32 %v22778_v58, %v8120_v57  ;;  %v8118_v54 = vmax.f32 %v7530_v41, %v7726_v12  ;;  %v7729_v5 = vmax.f32 %v6367_v47, 0.0  ;;  %v22782_v41 = vld [vmem:[#allocation152_spill] sm:$0xff] }
 0x569   :  { %22776 = vst [vmem:[#allocation222_spill] sm:$0xff] %v20976_v22  ;;  %v6359_v49 = vadd.f32 %v20690_v40, %v6358_v25  ;;  %v15701_v62 = vpop.f32.mrf.mxu0  ;;  %v5599_v7 = vadd.f32 %v20690_v40, %v22781_v27  ;;  %v7536_v57 = vmax.f32 %v5596_v37, 0.0  ;;  %v7534_v58 = vmax.f32 %v5588_v39, 0.0  ;;  %v22783_v25 = vld [vmem:[#allocation221_spill] sm:$0xff] }
 0x56a   :  { %22777 = vst [vmem:[#allocation23_spill] sm:$0xff] %v20978_v46  ;;  %v8314_v45 = vmax.f32 %v22780_v23, %v8118_v54  ;;  %v8121_v51 = vmax.f32 %v7533_v15, %v7729_v5  ;;  %v6380_v48 = vadd.f32 %v20690_v40, %v15701_v62  ;;  %v5591_v1 = vadd.f32 %v20690_v40, %v22783_v25  ;;  %v22785_v46 = vld [vmem:[#allocation154_spill] sm:$0xff]  ;;  %v22786_v25 = vld [vmem:[#allocation155_spill] sm:$0xff] }
 0x56b   :  { %v7727_v60 = vmax.f32 %v6359_v49, 0.0  ;;  %v6371_v61 = vpop.f32.mrf.mxu0  ;;  %v7537_v27 = vmax.f32 %v5599_v7, 0.0  ;;  %v22784_v49 = vld [vmem:[#allocation153_spill] sm:$0xff] }
 0x56c   :  { %v8317_v12 = vmax.f32 %v22782_v41, %v8121_v51  ;;  %v7732_v47 = vmax.f32 %v6380_v48, 0.0  ;;  %v6372_v28 = vadd.f32 %v20690_v40, %v6371_v61  ;;  %v7535_v63 = vmax.f32 %v5591_v1, 0.0  ;;  %v22788_v7 = vld [vmem:[#allocation157_spill] sm:$0xff] }
 0x56d   :  { %v8119_v54 = vmax.f32 %v7531_v17, %v7727_v60  ;;  %v15702_v15 = vpop.f32.mrf.mxu0  ;;  %v16300_v1 = vld [vmem:[%s21930_s3 + $0x50] ss:$8 sps:$4 sm:$0xff]  }
 0x56e   :  { %v8511_v5 = vpack.c.bf16 %v8317_v12, %v8316_v9  ;;  %v8124_v62 = vmax.f32 %v7536_v57, %v7732_v47  ;;  %v7730_v52 = vmax.f32 %v6372_v28, 0.0  ;;  %v6383_v23 = vadd.f32 %v20690_v40, %v15702_v15  ;;  %v22787_v57 = vld [vmem:[#allocation156_spill] sm:$0xff] }
 0x56f   :  { %v8315_v22 = vmax.f32 %v22784_v49, %v8119_v54  ;;  %v6374_v37 = vpop.f32.mrf.mxu0  ;;  %v16305_v54 = vld [vmem:[%s21930_s3 + $0x44] ss:$8 sps:$4 sm:$0xff]  }
 0x570   :  { %v8320_v51 = vmax.f32 %v22785_v46, %v8124_v62  ;;  %v8122_v48 = vmax.f32 %v7534_v58, %v7730_v52  ;;  %v7733_v41 = vmax.f32 %v6383_v23, 0.0  ;;  %v6375_v39 = vadd.f32 %v20690_v40, %v6374_v37  ;;  %v16294_v46 = vld [vmem:[%s21930_s3 + $0x10] ss:$8 sps:$4 sm:$0xff]   ;;  %v16299_v40 = vld [vmem:[%s21930_s3 + $0x4] ss:$8 sps:$4 sm:$0xff]  }
 0x571   :  { %v8510_v61 = vpack.c.bf16 %v8315_v22, %v8314_v45  ;;  %v22789_v22 = vmov 0   ;;  %v16302_v45 = vld [vmem:[%s21930_s3 + $0x54] ss:$8 sps:$4 sm:$0xff]   ;;  %v16303_v62 = vld [vmem:[%s21930_s3 + $0x40] ss:$8 sps:$4 sm:$0xff]  }
 0x572   :  { %v8318_v17 = vmax.f32 %v22786_v25, %v8122_v48  ;;  %v8125_v60 = vmax.f32 %v7537_v27, %v7733_v41  ;;  %v7731_v9 = vmax.f32 %v6375_v39, 0.0  ;;  %v16308_v52 = vld [vmem:[%s21930_s3 + $0x74] ss:$8 sps:$4 sm:$0xff]   ;;  %v16306_v23 = vld [vmem:[%s21930_s3 + $0x70] ss:$8 sps:$4 sm:$0xff]   ;;  %v22790_v49 = vld [vmem:[#allocation227_spill] sm:$0xff] }
 0x573   :  { %v16311_v27 = vld [vmem:[%s21930_s3 + $0x64] ss:$8 sps:$4 sm:$0xff]   ;;  %v16314_v37 = vld [vmem:[%s21930_s3 + $0x94] ss:$8 sps:$4 sm:$0xff]   ;;  %v16312_v48 = vld [vmem:[%s21930_s3 + $0x90] ss:$8 sps:$4 sm:$0xff]  }
 0x574   :  { %v8321_v12 = vmax.f32 %v22787_v57, %v8125_v60  ;;  %v8123_v47 = vmax.f32 %v7535_v63, %v7731_v9  ;;  %v16297_v63 = vld [vmem:[%s21930_s3] ss:$8 sps:$4 sm:$0xff]   ;;  %v16317_v41 = vld [vmem:[%s21930_s3 + $0x84] ss:$8 sps:$4 sm:$0xff]   ;;  %v22792_v39 = vld [vmem:[#allocation229_spill] sm:$0xff] }
 0x575   :  { %v16320_v25 = vld [vmem:[%s21930_s3 + $0xb4] ss:$8 sps:$4 sm:$0xff]   ;;  %v16318_v60 = vld [vmem:[%s21930_s3 + $0xb0] ss:$8 sps:$4 sm:$0xff]   ;;  %v16323_v9 = vld [vmem:[%s21930_s3 + $0xa4] ss:$8 sps:$4 sm:$0xff]  }
 0x576   :  { %v8517_v28 = vpack.c.bf16 %v8321_v12, %v8320_v51  ;;  %v8319_v15 = vmax.f32 %v22788_v7, %v8123_v47  ;;  %v22791_v51 = vld [vmem:[#allocation226_spill] sm:$0xff]  ;;  %v22794_v57 = vld [vmem:[#allocation231_spill] sm:$0xff] }
 0x577   :  { %v16321_v12 = vld [vmem:[%s21930_s3 + $0xa0] ss:$8 sps:$4 sm:$0xff]   ;;  %v16326_v47 = vld [vmem:[%s21930_s3 + $0xd4] ss:$8 sps:$4 sm:$0xff]   ;;  %v16324_v7 = vld [vmem:[%s21930_s3 + $0xd0] ss:$8 sps:$4 sm:$0xff]  }
 0x578   :  { %v8516_v58 = vpack.c.bf16 %v8319_v15, %v8318_v17  ;;  %v22793_v17 = vld [vmem:[#allocation228_spill] sm:$0xff] }
 0x579   :  { %v16329_v15 = vld [vmem:[%s21930_s3 + $0xc4] ss:$8 sps:$4 sm:$0xff]  }
 0x57a   :  { %14170 = vmatmul.mubr.msk.bf16.vlgmr.msra.gmra.mxu1 %vm8543_vm3, %v8516_v58  ;;  %v16327_v58 = vld [vmem:[%s21930_s3 + $0xc0] ss:$8 sps:$4 sm:$0xff]  }
 0x57b   :  { %8642 = vmatpush1.bf16.msra.mxu1 %v16294_v46  ;;  %8592 = vmatprep.mubr.bf16.mxu1 %v22789_v22  ;;  %v22796_v46 = vld [vmem:[#allocation233_spill] sm:$0xff] }
 0x57c   :  { %8643 = vmatprep.subr.bf16.mxu1 %v16299_v40  ;;  %v16332_v40 = vld [vmem:[%s21930_s3 + $0xf4] ss:$8 sps:$4 sm:$0xff]  }
 0x57f   :  { %8644 = vmatpush1.bf16.msra.mxu1 %v16297_v63  ;;  %v22797_v63 = vld [vmem:[#allocation232_spill] sm:$0xff] }
 0x580   :  { %8727 = vmatprep.subr.bf16.mxu1 %v16302_v45  ;;  %v16330_v45 = vld [vmem:[%s21930_s3 + $0xf0] ss:$8 sps:$4 sm:$0xff]  }
 0x582   :  { %14171 = vmatmul.mubr.msk.bf16.gmra.mxu1 %vm8543_vm3, %v8517_v28  ;;  %v22795_v28 = vld [vmem:[#allocation230_spill] sm:$0xff] }
 0x583   :  { %8661 = vmatprep.mubr.bf16.mxu1 %v22789_v22 }
 0x58a   :  { %14176 = vmatmul.mubr.msk.bf16.vlgmr.msra.gmra.mxu1 %vm8543_vm3, %v8510_v61  ;;  %v16315_v61 = vld [vmem:[%s21930_s3 + $0x80] ss:$8 sps:$4 sm:$0xff]  }
 0x58b   :  { %8728 = vmatpush1.bf16.msra.mxu1 %v16300_v1  ;;  %8671 = vmatprep.mubr.bf16.mxu1 %v22789_v22  ;;  %v16335_v1 = vld [vmem:[%s21930_s3 + $0xe4] ss:$8 sps:$4 sm:$0xff]  }
 0x58c   :  { %8729 = vmatprep.subr.bf16.mxu1 %v16305_v54  ;;  %v22798_v54 = vld [vmem:[#allocation177_spill] sm:$0xff] }
 0x58f   :  { %8730 = vmatpush1.bf16.msra.mxu1 %v16303_v62  ;;  %v16333_v62 = vld [vmem:[%s21930_s3 + $0xe0] ss:$8 sps:$4 sm:$0xff]  }
 0x590   :  { %8821 = vmatprep.subr.bf16.mxu1 %v16308_v52  ;;  %v16338_v52 = vld [vmem:[%s21930_s3 + $0x114] ss:$8 sps:$4 sm:$0xff]  }
 0x592   :  { %14177 = vmatmul.mubr.msk.bf16.gmra.mxu1 %vm8543_vm3, %v8511_v5  ;;  %v16309_v5 = vld [vmem:[%s21930_s3 + $0x60] ss:$8 sps:$4 sm:$0xff]  }
 0x593   :  { %8747 = vmatprep.mubr.bf16.mxu1 %v22789_v22 }
 0x59a   :  { %14186 = vmatmul.mubr.msk.bf16.vlgmr.msra.gmra.mxu1 %vm8543_vm3, %v22790_v49  ;;  %v16341_v49 = vld [vmem:[%s21930_s3 + $0x104] ss:$8 sps:$4 sm:$0xff]  }
 0x59b   :  { %8822 = vmatpush1.bf16.msra.mxu1 %v16306_v23  ;;  %8757 = vmatprep.mubr.bf16.mxu1 %v22789_v22  ;;  %v22799_v23 = vld [vmem:[#allocation176_spill] sm:$0xff] }
 0x59c   :  { %8823 = vmatprep.subr.bf16.mxu1 %v16311_v27  ;;  %v16336_v27 = vld [vmem:[%s21930_s3 + $0x110] ss:$8 sps:$4 sm:$0xff]  }
 0x59f   :  { %8824 = vmatpush1.bf16.msra.mxu1 %v16309_v5  ;;  %v22800_v5 = vld [vmem:[#allocation178_spill] sm:$0xff] }
 0x5a0   :  { %8915 = vmatprep.subr.bf16.mxu1 %v16314_v37  ;;  %v16339_v37 = vld [vmem:[%s21930_s3 + $0x100] ss:$8 sps:$4 sm:$0xff]  }
 0x5a2   :  { %14187 = vmatmul.mubr.msk.bf16.gmra.mxu1 %vm8543_vm3, %v22791_v51  ;;  %v16344_v51 = vld [vmem:[%s21930_s3 + $0x134] ss:$8 sps:$4 sm:$0xff]  }
 0x5a3   :  { %8841 = vmatprep.mubr.bf16.mxu1 %v22789_v22 }
 0x5aa   :  { %14196 = vmatmul.mubr.msk.bf16.vlgmr.msra.gmra.mxu1 %vm8543_vm3, %v22792_v39  ;;  %v16347_v39 = vld [vmem:[%s21930_s3 + $0x124] ss:$8 sps:$4 sm:$0xff]  }
 0x5ab   :  { %8916 = vmatpush1.bf16.msra.mxu1 %v16312_v48  ;;  %8851 = vmatprep.mubr.bf16.mxu1 %v22789_v22  ;;  %v22801_v48 = vld [vmem:[#allocation158_spill] sm:$0xff] }
 0x5ac   :  { %8917 = vmatprep.subr.bf16.mxu1 %v16317_v41  ;;  %v16342_v41 = vld [vmem:[%s21930_s3 + $0x130] ss:$8 sps:$4 sm:$0xff]  }
 0x5af   :  { %8918 = vmatpush1.bf16.msra.mxu1 %v16315_v61  ;;  %v22802_v61 = vld [vmem:[#allocation179_spill] sm:$0xff] }
 0x5b0   :  { %9009 = vmatprep.subr.bf16.mxu1 %v16320_v25  ;;  %v16345_v25 = vld [vmem:[%s21930_s3 + $0x120] ss:$8 sps:$4 sm:$0xff]  }
 0x5b2   :  { %14197 = vmatmul.mubr.msk.bf16.gmra.mxu1 %vm8543_vm3, %v22793_v17  ;;  %v16350_v17 = vld [vmem:[%s21930_s3 + $0x154] ss:$8 sps:$4 sm:$0xff]  }
 0x5b3   :  { %8935 = vmatprep.mubr.bf16.mxu1 %v22789_v22 }
 0x5ba   :  { %14206 = vmatmul.mubr.msk.bf16.vlgmr.msra.gmra.mxu1 %vm8543_vm3, %v22794_v57  ;;  %v16353_v57 = vld [vmem:[%s21930_s3 + $0x144] ss:$8 sps:$4 sm:$0xff]  }
 0x5bb   :  { %9010 = vmatpush1.bf16.msra.mxu1 %v16318_v60  ;;  %8945 = vmatprep.mubr.bf16.mxu1 %v22789_v22  ;;  %v22803_v60 = vld [vmem:[#allocation159_spill] sm:$0xff] }
 0x5bc   :  { %9011 = vmatprep.subr.bf16.mxu1 %v16323_v9  ;;  %v16348_v9 = vld [vmem:[%s21930_s3 + $0x150] ss:$8 sps:$4 sm:$0xff]  }
 0x5bf   :  { %9012 = vmatpush1.bf16.msra.mxu1 %v16321_v12  ;;  %v22804_v12 = vld [vmem:[#allocation162_spill] sm:$0xff] }
 0x5c0   :  { %9103 = vmatprep.subr.bf16.mxu1 %v16326_v47  ;;  %v16351_v47 = vld [vmem:[%s21930_s3 + $0x140] ss:$8 sps:$4 sm:$0xff]  }
 0x5c2   :  { %14207 = vmatmul.mubr.msk.bf16.gmra.mxu1 %vm8543_vm3, %v22795_v28  ;;  %v16356_v28 = vld [vmem:[%s21930_s3 + $0x174] ss:$8 sps:$4 sm:$0xff]  }
 0x5c3   :  { %9029 = vmatprep.mubr.bf16.mxu1 %v22789_v22 }
 0x5ca   :  { %14216 = vmatmul.mubr.msk.bf16.vlgmr.msra.gmra.mxu1 %vm8543_vm3, %v22796_v46  ;;  %v16359_v46 = vld [vmem:[%s21930_s3 + $0x164] ss:$8 sps:$4 sm:$0xff]  }
 0x5cb   :  { %9104 = vmatpush1.bf16.msra.mxu1 %v16324_v7  ;;  %9039 = vmatprep.mubr.bf16.mxu1 %v22789_v22  ;;  %v22805_v7 = vld [vmem:[#allocation181_spill] sm:$0xff] }
 0x5cc   :  { %9105 = vmatprep.subr.bf16.mxu1 %v16329_v15  ;;  %v16354_v15 = vld [vmem:[%s21930_s3 + $0x170] ss:$8 sps:$4 sm:$0xff]  }
 0x5cf   :  { %9106 = vmatpush1.bf16.msra.mxu1 %v16327_v58  ;;  %v22806_v58 = vld [vmem:[#allocation185_spill] sm:$0xff] }
 0x5d0   :  { %9197 = vmatprep.subr.bf16.mxu1 %v16332_v40  ;;  %v16357_v40 = vld [vmem:[%s21930_s3 + $0x160] ss:$8 sps:$4 sm:$0xff]  }
 0x5d2   :  { %14217 = vmatmul.mubr.msk.bf16.gmra.mxu1 %vm8543_vm3, %v22797_v63  ;;  %v16362_v63 = vld [vmem:[%s21930_s3 + $0x194] ss:$8 sps:$4 sm:$0xff]  }
 0x5d3   :  { %9123 = vmatprep.mubr.bf16.mxu1 %v22789_v22 }
 0x5da   :  { %14226 = vmatmul.mubr.msk.bf16.vlgmr.msra.gmra.mxu1 %vm8543_vm3, %v22798_v54  ;;  %v16365_v54 = vld [vmem:[%s21930_s3 + $0x184] ss:$8 sps:$4 sm:$0xff]  }
 0x5db   :  { %9198 = vmatpush1.bf16.msra.mxu1 %v16330_v45  ;;  %9133 = vmatprep.mubr.bf16.mxu1 %v22789_v22  ;;  %v22807_v45 = vld [vmem:[#allocation183_spill] sm:$0xff] }
 0x5dc   :  { %9199 = vmatprep.subr.bf16.mxu1 %v16335_v1  ;;  %v16360_v1 = vld [vmem:[%s21930_s3 + $0x190] ss:$8 sps:$4 sm:$0xff]  }
 0x5df   :  { %9200 = vmatpush1.bf16.msra.mxu1 %v16333_v62  ;;  %v22808_v62 = vld [vmem:[#allocation168_spill] sm:$0xff] }
 0x5e0   :  { %9291 = vmatprep.subr.bf16.mxu1 %v16338_v52  ;;  %v16363_v52 = vld [vmem:[%s21930_s3 + $0x180] ss:$8 sps:$4 sm:$0xff]  }
 0x5e2   :  { %14227 = vmatmul.mubr.msk.bf16.gmra.mxu1 %vm8543_vm3, %v22799_v23  ;;  %v16368_v23 = vld [vmem:[%s21930_s3 + $0x1b4] ss:$8 sps:$4 sm:$0xff]  }
 0x5e3   :  { %9217 = vmatprep.mubr.bf16.mxu1 %v22789_v22 }
 0x5ea   :  { %14236 = vmatmul.mubr.msk.bf16.vlgmr.msra.gmra.mxu1 %vm8543_vm3, %v22800_v5  ;;  %v16371_v5 = vld [vmem:[%s21930_s3 + $0x1a4] ss:$8 sps:$4 sm:$0xff]  }
 0x5eb   :  { %9292 = vmatpush1.bf16.msra.mxu1 %v16336_v27  ;;  %9227 = vmatprep.mubr.bf16.mxu1 %v22789_v22  ;;  %v22809_v27 = vld [vmem:[#allocation167_spill] sm:$0xff] }
 0x5ec   :  { %9293 = vmatprep.subr.bf16.mxu1 %v16341_v49  ;;  %v16366_v49 = vld [vmem:[%s21930_s3 + $0x1b0] ss:$8 sps:$4 sm:$0xff]  }
 0x5ef   :  { %9294 = vmatpush1.bf16.msra.mxu1 %v16339_v37 }
 0x5f0   :  { %9385 = vmatprep.subr.bf16.mxu1 %v16344_v51  ;;  %v22810_v51 = vld [vmem:[#allocation190_spill] sm:$0xff] }
 0x5f2   :  { %14237 = vmatmul.mubr.msk.bf16.gmra.mxu1 %vm8543_vm3, %v22801_v48  ;;  %v16369_v48 = vld [vmem:[%s21930_s3 + $0x1a0] ss:$8 sps:$4 sm:$0xff]  }
 0x5f3   :  { %9311 = vmatprep.mubr.bf16.mxu1 %v22789_v22 }
 0x5fa   :  { %14246 = vmatmul.mubr.msk.bf16.vlgmr.msra.gmra.mxu1 %vm8543_vm3, %v22802_v61 }
 0x5fb   :  { %9386 = vmatpush1.bf16.msra.mxu1 %v16342_v41  ;;  %9321 = vmatprep.mubr.bf16.mxu1 %v22789_v22 }
 0x5fc   :  { %9387 = vmatprep.subr.bf16.mxu1 %v16347_v39  ;;  %v16374_v39 = vld [vmem:[%s21930_s3 + $0x1d4] ss:$8 sps:$4 sm:$0xff]  }
 0x5ff   :  { %9388 = vmatpush1.bf16.msra.mxu1 %v16345_v25 }
 0x600   :  { %9479 = vmatprep.subr.bf16.mxu1 %v16350_v17 }
 0x602   :  { %14247 = vmatmul.mubr.msk.bf16.gmra.mxu1 %vm8543_vm3, %v22803_v60  ;;  %v22811_v60 = vld [vmem:[#allocation170_spill] sm:$0xff] }
 0x603   :  { %9405 = vmatprep.mubr.bf16.mxu1 %v22789_v22 }
 0x60a   :  { %14256 = vmatmul.mubr.msk.bf16.vlgmr.msra.gmra.mxu1 %vm8543_vm3, %v22804_v12  ;;  %v16372_v12 = vld [vmem:[%s21930_s3 + $0x1d0] ss:$8 sps:$4 sm:$0xff]  }
 0x60b   :  { %9480 = vmatpush1.bf16.msra.mxu1 %v16348_v9  ;;  %9415 = vmatprep.mubr.bf16.mxu1 %v22789_v22 }
 0x60c   :  { %9481 = vmatprep.subr.bf16.mxu1 %v16353_v57 }
 0x60f   :  { %9482 = vmatpush1.bf16.msra.mxu1 %v16351_v47 }
 0x610   :  { %9573 = vmatprep.subr.bf16.mxu1 %v16356_v28  ;;  %v16377_v28 = vld [vmem:[%s21930_s3 + $0x1c4] ss:$8 sps:$4 sm:$0xff]  }
 0x612   :  { %14257 = vmatmul.mubr.msk.bf16.gmra.mxu1 %vm8543_vm3, %v22805_v7 }
 0x613   :  { %9499 = vmatprep.mubr.bf16.mxu1 %v22789_v22 }
 0x61a   :  { %14266 = vmatmul.mubr.msk.bf16.vlgmr.msra.gmra.mxu1 %vm8543_vm3, %v22806_v58  ;;  %v16375_v58 = vld [vmem:[%s21930_s3 + $0x1c0] ss:$8 sps:$4 sm:$0xff]  }
 0x61b   :  { %9574 = vmatpush1.bf16.msra.mxu1 %v16354_v15  ;;  %9509 = vmatprep.mubr.bf16.mxu1 %v22789_v22  ;;  %v22812_v15 = vld [vmem:[#allocation173_spill] sm:$0xff] }
 0x61c   :  { %9575 = vmatprep.subr.bf16.mxu1 %v16359_v46 }
 0x61f   :  { %9576 = vmatpush1.bf16.msra.mxu1 %v16357_v40 }
 0x620   :  { %9667 = vmatprep.subr.bf16.mxu1 %v16362_v63  ;;  %v16380_v63 = vld [vmem:[%s21930_s3 + $0x1f4] ss:$8 sps:$4 sm:$0xff]  }
 0x622   :  { %14267 = vmatmul.mubr.msk.bf16.gmra.mxu1 %vm8543_vm3, %v22807_v45 }
 0x623   :  { %9593 = vmatprep.mubr.bf16.mxu1 %v22789_v22 }
 0x62a   :  { %14276 = vmatmul.mubr.msk.bf16.vlgmr.msra.gmra.mxu1 %vm8543_vm3, %v22808_v62 }
 0x62b   :  { %9668 = vmatpush1.bf16.msra.mxu1 %v16360_v1  ;;  %9603 = vmatprep.mubr.bf16.mxu1 %v22789_v22 }
 0x62c   :  { %9669 = vmatprep.subr.bf16.mxu1 %v16365_v54 }
 0x62f   :  { %9670 = vmatpush1.bf16.msra.mxu1 %v16363_v52 }
 0x630   :  { %9761 = vmatprep.subr.bf16.mxu1 %v16368_v23 }
 0x632   :  { %14277 = vmatmul.mubr.msk.bf16.gmra.mxu1 %vm8543_vm3, %v22809_v27  ;;  %v22813_v27 = vld [vmem:[#allocation172_spill] sm:$0xff] }
 0x633   :  { %9687 = vmatprep.mubr.bf16.mxu1 %v22789_v22 }
 0x63a   :  { %v8584_v37 = vpop.f32.mrf.mxu1  ;;  %14286 = vmatmul.mubr.msk.bf16.vlgmr.msra.gmra.mxu1 %vm8543_vm3, %v22810_v51 }
 0x63b   :  { %9762 = vmatpush1.bf16.msra.mxu1 %v16366_v49  ;;  %9697 = vmatprep.mubr.bf16.mxu1 %v22789_v22 }
 0x63c   :  { %v8586_v41 = vpop.f32.mrf.mxu1  ;;  %9763 = vmatprep.subr.bf16.mxu1 %v16371_v5 }
 0x63e   :  { %v8588_v61 = vpop.f32.mrf.mxu1 }
 0x63f   :  { %9764 = vmatpush1.bf16.msra.mxu1 %v16369_v48 }
 0x640   :  { %v8590_v25 = vpop.f32.mrf.mxu1  ;;  %9855 = vmatprep.subr.bf16.mxu1 %v16374_v39 }
 0x642   :  { %v8594_v17 = vpop.f32.mrf.mxu1  ;;  %14287 = vmatmul.mubr.msk.bf16.gmra.mxu1 %vm8543_vm3, %v22811_v60 }
 0x643   :  { %9781 = vmatprep.mubr.bf16.mxu1 %v22789_v22 }
 0x644   :  { %v8596_v9 = vpop.f32.mrf.mxu1 }
 0x646   :  { %v8598_v57 = vpop.f32.mrf.mxu1 }
 0x648   :  { %v8600_v47 = vpop.f32.mrf.mxu1 }
 0x64a   :  { %v8663_v7 = vpop.f32.mrf.mxu1  ;;  %14296 = vmatmul.mubr.msk.bf16.vlgmr.msra.gmra.mxu1 %vm8543_vm3, %v22812_v15 }
 0x64b   :  { %v8664_v46 = vadd.f32 %v8663_v7, %v8584_v37  ;;  %9856 = vmatpush1.bf16.msra.mxu1 %v16372_v12  ;;  %9791 = vmatprep.mubr.bf16.mxu1 %v22789_v22  ;;  %v22814_v12 = vld [vmem:[#allocation174_spill] sm:$0xff] }
 0x64c   :  { %v8665_v40 = vpop.f32.mrf.mxu1  ;;  %9857 = vmatprep.subr.bf16.mxu1 %v16377_v28  ;;  %v16386_v28 = vld [vmem:[%s21930_s3 + $0x214] ss:$8 sps:$4 sm:$0xff]  }
 0x64d   :  { %v8666_v45 = vadd.f32 %v8665_v40, %v8586_v41  ;;  %v16378_v41 = vld [vmem:[%s21930_s3 + $0x1f0] ss:$8 sps:$4 sm:$0xff]  }
 0x64e   :  { %v8667_v1 = vpop.f32.mrf.mxu1 }
 0x64f   :  { %v8668_v54 = vadd.f32 %v8667_v1, %v8588_v61  ;;  %9858 = vmatpush1.bf16.msra.mxu1 %v16375_v58  ;;  %v16383_v61 = vld [vmem:[%s21930_s3 + $0x1e4] ss:$8 sps:$4 sm:$0xff]  }
 0x650   :  { %v8669_v62 = vpop.f32.mrf.mxu1  ;;  %9949 = vmatprep.subr.bf16.mxu1 %v16380_v63  ;;  %v22815_v63 = vld [vmem:[#allocation193_spill] sm:$0xff] }
 0x651   :  { %v8670_v52 = vadd.f32 %v8669_v62, %v8590_v25 }
 0x652   :  { %v8673_v23 = vpop.f32.mrf.mxu1  ;;  %14297 = vmatmul.mubr.msk.bf16.gmra.mxu1 %vm8543_vm3, %v22813_v27 }
 0x653   :  { %v8674_v49 = vadd.f32 %v8673_v23, %v8594_v17  ;;  %9875 = vmatprep.mubr.bf16.mxu1 %v22789_v22 }
 0x654   :  { %v8675_v5 = vpop.f32.mrf.mxu1 }
 0x655   :  { %v8676_v37 = vadd.f32 %v8675_v5, %v8596_v9  ;;  %v16381_v9 = vld [vmem:[%s21930_s3 + $0x1e0] ss:$8 sps:$4 sm:$0xff]  }
 0x656   :  { %v8677_v51 = vpop.f32.mrf.mxu1 }
 0x657   :  { %v8678_v48 = vadd.f32 %v8677_v51, %v8598_v57 }
 0x658   :  { %v8679_v39 = vpop.f32.mrf.mxu1 }
 0x659   :  { %v8680_v25 = vadd.f32 %v8679_v39, %v8600_v47  ;;  %v22816_v39 = vld [vmem:[#allocation196_spill] sm:$0xff] }
 0x65a   :  { %v8749_v60 = vpop.f32.mrf.mxu1  ;;  %14306 = vmatmul.mubr.msk.bf16.vlgmr.msra.gmra.mxu1 %vm8543_vm3, %v22814_v12 }
 0x65b   :  { %v8768_v17 = vadd.f32 %v8749_v60, %v8664_v46  ;;  %9950 = vmatpush1.bf16.msra.mxu1 %v16378_v41  ;;  %9885 = vmatprep.mubr.bf16.mxu1 %v22789_v22 }
 0x65c   :  { %v8751_v57 = vpop.f32.mrf.mxu1  ;;  %9951 = vmatprep.subr.bf16.mxu1 %v16383_v61  ;;  %v16392_v61 = vld [vmem:[%s21930_s3 + $0x234] ss:$8 sps:$4 sm:$0xff]  }
 0x65d   :  { %v8769_v7 = vadd.f32 %v8751_v57, %v8666_v45  ;;  %v16384_v45 = vld [vmem:[%s21930_s3 + $0x210] ss:$8 sps:$4 sm:$0xff]  }
 0x65e   :  { %v8753_v47 = vpop.f32.mrf.mxu1 }
 0x65f   :  { %v8770_v15 = vadd.f32 %v8753_v47, %v8668_v54  ;;  %9952 = vmatpush1.bf16.msra.mxu1 %v16381_v9 }
 0x660   :  { %v8755_v58 = vpop.f32.mrf.mxu1  ;;  %10043 = vmatprep.subr.bf16.mxu1 %v16386_v28  ;;  %v22817_v28 = vld [vmem:[#allocation195_spill] sm:$0xff] }
 0x661   :  { %v8771_v46 = vadd.f32 %v8755_v58, %v8670_v52  ;;  %v16389_v52 = vld [vmem:[%s21930_s3 + $0x204] ss:$8 sps:$4 sm:$0xff]  }
 0x662   :  { %v8759_v40 = vpop.f32.mrf.mxu1  ;;  %14307 = vmatmul.mubr.msk.bf16.gmra.mxu1 %vm8543_vm3, %v22815_v63 }
 0x663   :  { %v8772_v1 = vadd.f32 %v8759_v40, %v8674_v49  ;;  %9969 = vmatprep.mubr.bf16.mxu1 %v22789_v22 }
 0x664   :  { %v8761_v62 = vpop.f32.mrf.mxu1 }
 0x665   :  { %v8773_v23 = vadd.f32 %v8761_v62, %v8676_v37  ;;  %v16387_v37 = vld [vmem:[%s21930_s3 + $0x200] ss:$8 sps:$4 sm:$0xff]  }
 0x666   :  { %v8763_v27 = vpop.f32.mrf.mxu1 }
 0x667   :  { %v8774_v5 = vadd.f32 %v8763_v27, %v8678_v48 }
 0x668   :  { %v8765_v54 = vpop.f32.mrf.mxu1 }
 0x669   :  { %v8775_v51 = vadd.f32 %v8765_v54, %v8680_v25  ;;  %v16398_v54 = vld [vmem:[%s21930_s3 + $0x254] ss:$8 sps:$4 sm:$0xff]  }
 0x66a   :  { %v8843_v41 = vpop.f32.mrf.mxu1  ;;  %14316 = vmatmul.mubr.msk.bf16.vlgmr.msra.gmra.mxu1 %vm8543_vm3, %v22816_v39 }
 0x66b   :  { %v8862_v49 = vadd.f32 %v8843_v41, %v8768_v17  ;;  %10044 = vmatpush1.bf16.msra.mxu1 %v16384_v45  ;;  %9979 = vmatprep.mubr.bf16.mxu1 %v22789_v22 }
 0x66c   :  { %v8845_v48 = vpop.f32.mrf.mxu1  ;;  %10045 = vmatprep.subr.bf16.mxu1 %v16389_v52 }
 0x66d   :  { %v8863_v60 = vadd.f32 %v8845_v48, %v8769_v7  ;;  %v16390_v7 = vld [vmem:[%s21930_s3 + $0x230] ss:$8 sps:$4 sm:$0xff]  }
 0x66e   :  { %v8847_v25 = vpop.f32.mrf.mxu1 }
 0x66f   :  { %v8864_v12 = vadd.f32 %v8847_v25, %v8770_v15  ;;  %10046 = vmatpush1.bf16.msra.mxu1 %v16387_v37  ;;  %v22818_v37 = vld [vmem:[#allocation198_spill] sm:$0xff] }
 0x670   :  { %v8849_v9 = vpop.f32.mrf.mxu1  ;;  %10137 = vmatprep.subr.bf16.mxu1 %v16392_v61 }
 0x671   :  { %v8865_v17 = vadd.f32 %v8849_v9, %v8771_v46  ;;  %v16395_v46 = vld [vmem:[%s21930_s3 + $0x224] ss:$8 sps:$4 sm:$0xff]  }
 0x672   :  { %v8853_v57 = vpop.f32.mrf.mxu1  ;;  %14317 = vmatmul.mubr.msk.bf16.gmra.mxu1 %vm8543_vm3, %v22817_v28 }
 0x673   :  { %v8866_v47 = vadd.f32 %v8853_v57, %v8772_v1  ;;  %10063 = vmatprep.mubr.bf16.mxu1 %v22789_v22 }
 0x674   :  { %v8855_v58 = vpop.f32.mrf.mxu1 }
 0x675   :  { %v8867_v40 = vadd.f32 %v8855_v58, %v8773_v23  ;;  %v16393_v23 = vld [vmem:[%s21930_s3 + $0x220] ss:$8 sps:$4 sm:$0xff]  }
 0x676   :  { %v8857_v63 = vpop.f32.mrf.mxu1 }
 0x677   :  { %v8868_v62 = vadd.f32 %v8857_v63, %v8774_v5  ;;  %v22819_v63 = vld [vmem:[#allocation6_spill] sm:$0xff] }
 0x678   :  { %v8859_v15 = vpop.f32.mrf.mxu1 }
 0x679   :  { %v8869_v27 = vadd.f32 %v8859_v15, %v8775_v51 }
 0x67a   :  { %v8937_v45 = vpop.f32.mrf.mxu1  ;;  %14326 = vmatmul.mubr.msk.bf16.vlgmr.msra.gmra.mxu1 %vm8543_vm3, %v20167_v56 }
 0x67b   :  { %v8956_v1 = vadd.f32 %v8937_v45, %v8862_v49  ;;  %10138 = vmatpush1.bf16.msra.mxu1 %v16390_v7  ;;  %10073 = vmatprep.mubr.bf16.mxu1 %v22789_v22  ;;  %v16404_v7 = vld [vmem:[%s21930_s3 + $0x274] ss:$8 sps:$4 sm:$0xff]  }
 0x67c   :  { %v8939_v5 = vpop.f32.mrf.mxu1  ;;  %10139 = vmatprep.subr.bf16.mxu1 %v16395_v46 }
 0x67d   :  { %v8957_v52 = vadd.f32 %v8939_v5, %v8863_v60  ;;  %v16396_v60 = vld [vmem:[%s21930_s3 + $0x250] ss:$8 sps:$4 sm:$0xff]   ;;  %v22820_v5 = vld [vmem:[#allocation199_spill] sm:$0xff] }
 0x67e   :  { %v8941_v51 = vpop.f32.mrf.mxu1 }
 0x67f   :  { %v8958_v41 = vadd.f32 %v8941_v51, %v8864_v12  ;;  %10140 = vmatpush1.bf16.msra.mxu1 %v16393_v23 }
 0x680   :  { %v8943_v39 = vpop.f32.mrf.mxu1  ;;  %10231 = vmatprep.subr.bf16.mxu1 %v16398_v54 }
 0x681   :  { %v8959_v56 = vadd.f32 %v8943_v39, %v8865_v17  ;;  %v16401_v17 = vld [vmem:[%s21930_s3 + $0x244] ss:$8 sps:$4 sm:$0xff]  }
 0x682   :  { %v8947_v49 = vpop.f32.mrf.mxu1  ;;  %14327 = vmatmul.mubr.msk.bf16.gmra.mxu1 %vm8543_vm3, %v22818_v37 }
 0x683   :  { %v8960_v48 = vadd.f32 %v8947_v49, %v8866_v47  ;;  %10157 = vmatprep.mubr.bf16.mxu1 %v22789_v22 }
 0x684   :  { %v8949_v61 = vpop.f32.mrf.mxu1 }
 0x685   :  { %v8961_v25 = vadd.f32 %v8949_v61, %v8867_v40  ;;  %v16399_v40 = vld [vmem:[%s21930_s3 + $0x240] ss:$8 sps:$4 sm:$0xff]  }
 0x686   :  { %v8951_v9 = vpop.f32.mrf.mxu1 }
 0x687   :  { %v8962_v57 = vadd.f32 %v8951_v9, %v8868_v62 }
 0x688   :  { %v8953_v12 = vpop.f32.mrf.mxu1 }
 0x689   :  { %v8963_v28 = vadd.f32 %v8953_v12, %v8869_v27 }
 0x68a   :  { %v9031_v58 = vpop.f32.mrf.mxu1  ;;  %14336 = vmatmul.mubr.msk.bf16.vlgmr.msra.gmra.mxu1 %vm8543_vm3, %v22819_v63 }
 0x68b   :  { %v9050_v47 = vadd.f32 %v9031_v58, %v8956_v1  ;;  %10232 = vmatpush1.bf16.msra.mxu1 %v16396_v60  ;;  %10167 = vmatprep.mubr.bf16.mxu1 %v22789_v22  ;;  %v16410_v60 = vld [vmem:[%s21930_s3 + $0x294] ss:$8 sps:$4 sm:$0xff]  }
 0x68c   :  { %v9033_v62 = vpop.f32.mrf.mxu1  ;;  %10233 = vmatprep.subr.bf16.mxu1 %v16401_v17 }
 0x68d   :  { %v9051_v15 = vadd.f32 %v9033_v62, %v8957_v52  ;;  %v16402_v52 = vld [vmem:[%s21930_s3 + $0x270] ss:$8 sps:$4 sm:$0xff]  }
 0x68e   :  { %v9035_v46 = vpop.f32.mrf.mxu1 }
 0x68f   :  { %v9052_v27 = vadd.f32 %v9035_v46, %v8958_v41  ;;  %10234 = vmatpush1.bf16.msra.mxu1 %v16399_v40 }
 0x690   :  { %v9037_v45 = vpop.f32.mrf.mxu1  ;;  %10325 = vmatprep.subr.bf16.mxu1 %v16404_v7 }
 0x691   :  { %v9053_v1 = vadd.f32 %v9037_v45, %v8959_v56  ;;  %v16407_v56 = vld [vmem:[%s21930_s3 + $0x264] ss:$8 sps:$4 sm:$0xff]  }
 0x692   :  { %v9041_v23 = vpop.f32.mrf.mxu1  ;;  %14337 = vmatmul.mubr.msk.bf16.gmra.mxu1 %vm8543_vm3, %v22820_v5  ;;  %v16413_v45 = vld [vmem:[%s21930_s3 + $0x284] ss:$8 sps:$4 sm:$0xff]   ;;  %v16411_v5 = vld [vmem:[%s21930_s3 + $0x280] ss:$8 sps:$4 sm:$0xff]  }
 0x693   :  { %v9054_v54 = vadd.f32 %v9041_v23, %v8960_v48  ;;  %10251 = vmatprep.mubr.bf16.mxu1 %v22789_v22 }
 0x694   :  { %v9043_v51 = vpop.f32.mrf.mxu1 }
 0x695   :  { %v9055_v39 = vadd.f32 %v9043_v51, %v8961_v25  ;;  %v16405_v25 = vld [vmem:[%s21930_s3 + $0x260] ss:$8 sps:$4 sm:$0xff]   ;;  %v16416_v51 = vld [vmem:[%s21930_s3 + $0x2b4] ss:$8 sps:$4 sm:$0xff]  }
 0x696   :  { %v9045_v49 = vpop.f32.mrf.mxu1 }
 0x697   :  { %v9056_v37 = vadd.f32 %v9045_v49, %v8962_v57 }
 0x698   :  { %v9047_v41 = vpop.f32.mrf.mxu1 }
 0x699   :  { %v9057_v61 = vadd.f32 %v9047_v41, %v8963_v28 }
 0x69a   :  { %v9125_v9 = vpop.f32.mrf.mxu1  ;;  %14346 = vmatmul.mubr.msk.bf16.vlgmr.msra.gmra.mxu1 %vm8543_vm3, %v20227_v2 }
 0x69b   :  { %v9144_v48 = vadd.f32 %v9125_v9, %v9050_v47  ;;  %10326 = vmatpush1.bf16.msra.mxu1 %v16402_v52  ;;  %10261 = vmatprep.mubr.bf16.mxu1 %v22789_v22 }
 0x69c   :  { %v9127_v57 = vpop.f32.mrf.mxu1  ;;  %10327 = vmatprep.subr.bf16.mxu1 %v16407_v56 }
 0x69d   :  { %v9145_v12 = vadd.f32 %v9127_v57, %v9051_v15  ;;  %v16408_v15 = vld [vmem:[%s21930_s3 + $0x290] ss:$8 sps:$4 sm:$0xff]  }
 0x69e   :  { %v9129_v17 = vpop.f32.mrf.mxu1  ;;  %v16414_v57 = vld [vmem:[%s21930_s3 + $0x2b0] ss:$8 sps:$4 sm:$0xff]  }
 0x69f   :  { %v9146_v28 = vadd.f32 %v9129_v17, %v9052_v27  ;;  %10328 = vmatpush1.bf16.msra.mxu1 %v16405_v25 }
 0x6a0   :  { %v9131_v58 = vpop.f32.mrf.mxu1  ;;  %10419 = vmatprep.subr.bf16.mxu1 %v16410_v60 }
 0x6a1   :  { %v9147_v2 = vadd.f32 %v9131_v58, %v9053_v1  ;;  %v22821_v58 = vld [vmem:[#allocation200_spill] sm:$0xff] }
 0x6a2   :  { %v9135_v63 = vpop.f32.mrf.mxu1  ;;  %14347 = vmatmul.mubr.msk.bf16.gmra.mxu1 %vm8543_vm3, %v20223_v33 }
 0x6a3   :  { %v9148_v47 = vadd.f32 %v9135_v63, %v9054_v54  ;;  %10345 = vmatprep.mubr.bf16.mxu1 %v22789_v22 }
 0x6a4   :  { %v9137_v40 = vpop.f32.mrf.mxu1 }
 0x6a5   :  { %v9149_v62 = vadd.f32 %v9137_v40, %v9055_v39 }
 0x6a6   :  { %v9139_v7 = vpop.f32.mrf.mxu1 }
 0x6a7   :  { %v9150_v46 = vadd.f32 %v9139_v7, %v9056_v37 }
 0x6a8   :  { %v9141_v27 = vpop.f32.mrf.mxu1 }
 0x6a9   :  { %v9151_v1 = vadd.f32 %v9141_v27, %v9057_v61 }
 0x6aa   :  { %v9219_v23 = vpop.f32.mrf.mxu1  ;;  %14356 = vmatmul.mubr.msk.bf16.vlgmr.msra.gmra.mxu1 %vm8543_vm3, %v20263_v10 }
 0x6ab   :  { %v9238_v33 = vadd.f32 %v9219_v23, %v9144_v48  ;;  %10420 = vmatpush1.bf16.msra.mxu1 %v16408_v15  ;;  %10355 = vmatprep.mubr.bf16.mxu1 %v22789_v22 }
 0x6ac   :  { %v9221_v54 = vpop.f32.mrf.mxu1  ;;  %10421 = vmatprep.subr.bf16.mxu1 %v16413_v45  ;;  %v22822_v45 = vld [vmem:[#allocation7_spill] sm:$0xff] }
 0x6ad   :  { %v9239_v39 = vadd.f32 %v9221_v54, %v9145_v12  ;;  %v16419_v12 = vld [vmem:[%s21930_s3 + $0x2a4] ss:$8 sps:$4 sm:$0xff]  }
 0x6ae   :  { %v9223_v49 = vpop.f32.mrf.mxu1 }
 0x6af   :  { %v9240_v37 = vadd.f32 %v9223_v49, %v9146_v28  ;;  %10422 = vmatpush1.bf16.msra.mxu1 %v16411_v5  ;;  %v16425_v49 = vld [vmem:[%s21930_s3 + $0x2c4] ss:$8 sps:$4 sm:$0xff]  }
 0x6b0   :  { %v9225_v52 = vpop.f32.mrf.mxu1  ;;  %10513 = vmatprep.subr.bf16.mxu1 %v16416_v51  ;;  %v16420_v51 = vld [vmem:[%s21930_s3 + $0x2d0] ss:$8 sps:$4 sm:$0xff]  }
 0x6b1   :  { %v9241_v10 = vadd.f32 %v9225_v52, %v9147_v2  ;;  %v16417_v2 = vld [vmem:[%s21930_s3 + $0x2a0] ss:$8 sps:$4 sm:$0xff]  }
 0x6b2   :  { %v9229_v41 = vpop.f32.mrf.mxu1  ;;  %14357 = vmatmul.mubr.msk.bf16.gmra.mxu1 %vm8543_vm3, %v20250_v31 }
 0x6b3   :  { %v9242_v56 = vadd.f32 %v9229_v41, %v9148_v47  ;;  %10439 = vmatprep.mubr.bf16.mxu1 %v22789_v22  ;;  %v16422_v47 = vld [vmem:[%s21930_s3 + $0x2d4] ss:$8 sps:$4 sm:$0xff]  }
 0x6b4   :  { %v9231_v61 = vpop.f32.mrf.mxu1 }
 0x6b5   :  { %v9243_v9 = vadd.f32 %v9231_v61, %v9149_v62 }
 0x6b6   :  { %v9233_v48 = vpop.f32.mrf.mxu1 }
 0x6b7   :  { %v9244_v25 = vadd.f32 %v9233_v48, %v9150_v46 }
 0x6b8   :  { %v9235_v60 = vpop.f32.mrf.mxu1 }
 0x6b9   :  { %v9245_v17 = vadd.f32 %v9235_v60, %v9151_v1 }
 0x6ba   :  { %v9313_v28 = vpop.f32.mrf.mxu1  ;;  %14366 = vmatmul.mubr.msk.bf16.vlgmr.msra.gmra.mxu1 %vm8543_vm3, %v22821_v58 }
 0x6bb   :  { %v9332_v31 = vadd.f32 %v9313_v28, %v9238_v33  ;;  %10514 = vmatpush1.bf16.msra.mxu1 %v16414_v57  ;;  %10449 = vmatprep.mubr.bf16.mxu1 %v22789_v22  ;;  %v22824_v28 = vld [vmem:[#allocation201_spill] sm:$0xff] }
 0x6bc   :  { %v9315_v63 = vpop.f32.mrf.mxu1  ;;  %10515 = vmatprep.subr.bf16.mxu1 %v16419_v12 }
 0x6bd   :  { %v9333_v40 = vadd.f32 %v9315_v63, %v9239_v39 }
 0x6be   :  { %v9317_v62 = vpop.f32.mrf.mxu1 }
 0x6bf   :  { %v9334_v7 = vadd.f32 %v9317_v62, %v9240_v37  ;;  %10516 = vmatpush1.bf16.msra.mxu1 %v16417_v2 }
 0x6c0   :  { %v9319_v46 = vpop.f32.mrf.mxu1  ;;  %10607 = vmatprep.subr.bf16.mxu1 %v16422_v47 }
 0x6c1   :  { %v9335_v15 = vadd.f32 %v9319_v46, %v9241_v10  ;;  %v22823_v10 = vld [vmem:[#allocation8_spill] sm:$0xff] }
 0x6c2   :  { %v9323_v27 = vpop.f32.mrf.mxu1  ;;  %14367 = vmatmul.mubr.msk.bf16.gmra.mxu1 %vm8543_vm3, %v22822_v45 }
 0x6c3   :  { %v9336_v1 = vadd.f32 %v9323_v27, %v9242_v56  ;;  %10533 = vmatprep.mubr.bf16.mxu1 %v22789_v22  ;;  %v16423_v56 = vld [vmem:[%s21930_s3 + $0x2c0] ss:$8 sps:$4 sm:$0xff]   ;;  %v22825_v27 = vld [vmem:[#allocation9_spill] sm:$0xff] }
 0x6c4   :  { %v9325_v23 = vpop.f32.mrf.mxu1 }
 0x6c5   :  { %v9337_v33 = vadd.f32 %v9325_v23, %v9243_v9  ;;  %v16428_v9 = vld [vmem:[%s21930_s3 + $0x2f4] ss:$8 sps:$4 sm:$0xff]  }
 0x6c6   :  { %v9327_v5 = vpop.f32.mrf.mxu1 }
 0x6c7   :  { %v9338_v54 = vadd.f32 %v9327_v5, %v9244_v25 }
 0x6c8   :  { %v9329_v39 = vpop.f32.mrf.mxu1 }
 0x6c9   :  { %v9339_v37 = vadd.f32 %v9329_v39, %v9245_v17 }
 0x6ca   :  { %v9407_v52 = vpop.f32.mrf.mxu1  ;;  %14376 = vmatmul.mubr.msk.bf16.vlgmr.msra.gmra.mxu1 %vm8543_vm3, %v22823_v10 }
 0x6cb   :  { %v9426_v41 = vadd.f32 %v9407_v52, %v9332_v31  ;;  %10608 = vmatpush1.bf16.msra.mxu1 %v16420_v51  ;;  %10543 = vmatprep.mubr.bf16.mxu1 %v22789_v22  ;;  %v22826_v52 = vld [vmem:[#allocation202_spill] sm:$0xff] }
 0x6cc   :  { %v9409_v61 = vpop.f32.mrf.mxu1  ;;  %10609 = vmatprep.subr.bf16.mxu1 %v16425_v49 }
 0x6cd   :  { %v9427_v48 = vadd.f32 %v9409_v61, %v9333_v40  ;;  %v16426_v40 = vld [vmem:[%s21930_s3 + $0x2f0] ss:$8 sps:$4 sm:$0xff]  }
 0x6ce   :  { %v9411_v25 = vpop.f32.mrf.mxu1 }
 0x6cf   :  { %v9428_v57 = vadd.f32 %v9411_v25, %v9334_v7  ;;  %10610 = vmatpush1.bf16.msra.mxu1 %v16423_v56  ;;  %v16431_v7 = vld [vmem:[%s21930_s3 + $0x2e4] ss:$8 sps:$4 sm:$0xff]  }
 0x6d0   :  { %v9413_v60 = vpop.f32.mrf.mxu1  ;;  %10701 = vmatprep.subr.bf16.mxu1 %v16428_v9 }
 0x6d1   :  { %v9429_v12 = vadd.f32 %v9413_v60, %v9335_v15 }
 0x6d2   :  { %v9417_v17 = vpop.f32.mrf.mxu1  ;;  %14377 = vmatmul.mubr.msk.bf16.gmra.mxu1 %vm8543_vm3, %v22824_v28 }
 0x6d3   :  { %v9430_v58 = vadd.f32 %v9417_v17, %v9336_v1  ;;  %10627 = vmatprep.mubr.bf16.mxu1 %v22789_v22  ;;  %v16429_v1 = vld [vmem:[%s21930_s3 + $0x2e0] ss:$8 sps:$4 sm:$0xff]   ;;  %v22827_v17 = vld [vmem:[#allocation10_spill] sm:$0xff] }
 0x6d4   :  { %v9419_v31 = vpop.f32.mrf.mxu1 }
 0x6d5   :  { %v9431_v2 = vadd.f32 %v9419_v31, %v9337_v33  ;;  %v16434_v33 = vld [vmem:[%s21930_s3 + $0x314] ss:$8 sps:$4 sm:$0xff]  }
 0x6d6   :  { %v9421_v63 = vpop.f32.mrf.mxu1 }
 0x6d7   :  { %v9432_v47 = vadd.f32 %v9421_v63, %v9338_v54 }
 0x6d8   :  { %v9423_v62 = vpop.f32.mrf.mxu1 }
 0x6d9   :  { %v9433_v46 = vadd.f32 %v9423_v62, %v9339_v37 }
 0x6da   :  { %v9501_v15 = vpop.f32.mrf.mxu1  ;;  %14386 = vmatmul.mubr.msk.bf16.vlgmr.msra.gmra.mxu1 %vm8543_vm3, %v22825_v27 }
 0x6db   :  { %v9520_v45 = vadd.f32 %v9501_v15, %v9426_v41  ;;  %10702 = vmatpush1.bf16.msra.mxu1 %v16426_v40  ;;  %10637 = vmatprep.mubr.bf16.mxu1 %v22789_v22  ;;  %v22828_v15 = vld [vmem:[#allocation203_spill] sm:$0xff] }
 0x6dc   :  { %v9503_v23 = vpop.f32.mrf.mxu1  ;;  %10703 = vmatprep.subr.bf16.mxu1 %v16431_v7 }
 0x6dd   :  { %v9521_v5 = vadd.f32 %v9503_v23, %v9427_v48  ;;  %v16432_v48 = vld [vmem:[%s21930_s3 + $0x310] ss:$8 sps:$4 sm:$0xff]  }
 0x6de   :  { %v9505_v54 = vpop.f32.mrf.mxu1 }
 0x6df   :  { %v9522_v51 = vadd.f32 %v9505_v54, %v9428_v57  ;;  %10704 = vmatpush1.bf16.msra.mxu1 %v16429_v1  ;;  %v16437_v57 = vld [vmem:[%s21930_s3 + $0x304] ss:$8 sps:$4 sm:$0xff]  }
 0x6e0   :  { %v9507_v39 = vpop.f32.mrf.mxu1  ;;  %10795 = vmatprep.subr.bf16.mxu1 %v16434_v33 }
 0x6e1   :  { %v9523_v49 = vadd.f32 %v9507_v39, %v9429_v12 }
 0x6e2   :  { %v9511_v37 = vpop.f32.mrf.mxu1  ;;  %14387 = vmatmul.mubr.msk.bf16.gmra.mxu1 %vm8543_vm3, %v22826_v52 }
 0x6e3   :  { %v9524_v10 = vadd.f32 %v9511_v37, %v9430_v58  ;;  %10721 = vmatprep.mubr.bf16.mxu1 %v22789_v22  ;;  %v16435_v58 = vld [vmem:[%s21930_s3 + $0x300] ss:$8 sps:$4 sm:$0xff]  }
 0x6e4   :  { %v9513_v41 = vpop.f32.mrf.mxu1  ;;  %v22829_v37 = vld [vmem:[#allocation11_spill] sm:$0xff] }
 0x6e5   :  { %v9525_v56 = vadd.f32 %v9513_v41, %v9431_v2  ;;  %v16440_v2 = vld [vmem:[%s21930_s3 + $0x334] ss:$8 sps:$4 sm:$0xff]  }
 0x6e6   :  { %v9515_v61 = vpop.f32.mrf.mxu1 }
 0x6e7   :  { %v9526_v9 = vadd.f32 %v9515_v61, %v9432_v47 }
 0x6e8   :  { %v9517_v25 = vpop.f32.mrf.mxu1 }
 0x6e9   :  { %v9527_v60 = vadd.f32 %v9517_v25, %v9433_v46 }
 0x6ea   :  { %v9595_v12 = vpop.f32.mrf.mxu1  ;;  %14396 = vmatmul.mubr.msk.bf16.vlgmr.msra.gmra.mxu1 %vm8543_vm3, %v22827_v17 }
 0x6eb   :  { %v9614_v28 = vadd.f32 %v9595_v12, %v9520_v45  ;;  %10796 = vmatpush1.bf16.msra.mxu1 %v16432_v48  ;;  %10731 = vmatprep.mubr.bf16.mxu1 %v22789_v22  ;;  %v22830_v12 = vld [vmem:[#allocation204_spill] sm:$0xff] }
 0x6ec   :  { %v9597_v31 = vpop.f32.mrf.mxu1  ;;  %10797 = vmatprep.subr.bf16.mxu1 %v16437_v57 }
 0x6ed   :  { %v9615_v63 = vadd.f32 %v9597_v31, %v9521_v5  ;;  %v16438_v5 = vld [vmem:[%s21930_s3 + $0x330] ss:$8 sps:$4 sm:$0xff]  }
 0x6ee   :  { %v9599_v47 = vpop.f32.mrf.mxu1 }
 0x6ef   :  { %v9616_v40 = vadd.f32 %v9599_v47, %v9522_v51  ;;  %10798 = vmatpush1.bf16.msra.mxu1 %v16435_v58  ;;  %v16443_v51 = vld [vmem:[%s21930_s3 + $0x324] ss:$8 sps:$4 sm:$0xff]  }
 0x6f0   :  { %v9601_v62 = vpop.f32.mrf.mxu1  ;;  %10889 = vmatprep.subr.bf16.mxu1 %v16440_v2 }
 0x6f1   :  { %v9617_v7 = vadd.f32 %v9601_v62, %v9523_v49 }
 0x6f2   :  { %v9605_v46 = vpop.f32.mrf.mxu1  ;;  %14397 = vmatmul.mubr.msk.bf16.gmra.mxu1 %vm8543_vm3, %v22828_v15 }
 0x6f3   :  { %v9618_v27 = vadd.f32 %v9605_v46, %v9524_v10  ;;  %10815 = vmatprep.mubr.bf16.mxu1 %v22789_v22  ;;  %v16441_v10 = vld [vmem:[%s21930_s3 + $0x320] ss:$8 sps:$4 sm:$0xff]  }
 0x6f4   :  { %v9607_v45 = vpop.f32.mrf.mxu1  ;;  %v22831_v46 = vld [vmem:[#allocation12_spill] sm:$0xff] }
 0x6f5   :  { %v9619_v1 = vadd.f32 %v9607_v45, %v9525_v56  ;;  %v16446_v56 = vld [vmem:[%s21930_s3 + $0x354] ss:$8 sps:$4 sm:$0xff]  }
 0x6f6   :  { %v9609_v23 = vpop.f32.mrf.mxu1 }
 0x6f7   :  { %v9620_v33 = vadd.f32 %v9609_v23, %v9526_v9 }
 0x6f8   :  { %v9611_v54 = vpop.f32.mrf.mxu1 }
 0x6f9   :  { %v9621_v39 = vadd.f32 %v9611_v54, %v9527_v60 }
 0x6fa   :  { %v9689_v49 = vpop.f32.mrf.mxu1  ;;  %14406 = vmatmul.mubr.msk.bf16.vlgmr.msra.gmra.mxu1 %vm8543_vm3, %v22829_v37 }
 0x6fb   :  { %v9708_v52 = vadd.f32 %v9689_v49, %v9614_v28  ;;  %10890 = vmatpush1.bf16.msra.mxu1 %v16438_v5  ;;  %10825 = vmatprep.mubr.bf16.mxu1 %v22789_v22  ;;  %v22832_v49 = vld [vmem:[#allocation205_spill] sm:$0xff] }
 0x6fc   :  { %v9691_v41 = vpop.f32.mrf.mxu1  ;;  %10891 = vmatprep.subr.bf16.mxu1 %v16443_v51 }
 0x6fd   :  { %v9709_v61 = vadd.f32 %v9691_v41, %v9615_v63  ;;  %v16444_v63 = vld [vmem:[%s21930_s3 + $0x350] ss:$8 sps:$4 sm:$0xff]  }
 0x6fe   :  { %v9693_v9 = vpop.f32.mrf.mxu1 }
 0x6ff   :  { %v9710_v48 = vadd.f32 %v9693_v9, %v9616_v40  ;;  %10892 = vmatpush1.bf16.msra.mxu1 %v16441_v10  ;;  %v16449_v40 = vld [vmem:[%s21930_s3 + $0x344] ss:$8 sps:$4 sm:$0xff]  }
 0x700   :  { %v9695_v25 = vpop.f32.mrf.mxu1  ;;  %10983 = vmatprep.subr.bf16.mxu1 %v16446_v56 }
 0x701   :  { %v9711_v57 = vadd.f32 %v9695_v25, %v9617_v7 }
 0x702   :  { %v9699_v60 = vpop.f32.mrf.mxu1  ;;  %14407 = vmatmul.mubr.msk.bf16.gmra.mxu1 %vm8543_vm3, %v22830_v12 }
 0x703   :  { %v9712_v17 = vadd.f32 %v9699_v60, %v9618_v27  ;;  %10909 = vmatprep.mubr.bf16.mxu1 %v22789_v22  ;;  %v16447_v27 = vld [vmem:[%s21930_s3 + $0x340] ss:$8 sps:$4 sm:$0xff]   ;;  %v22833_v60 = vld [vmem:[#allocation13_spill] sm:$0xff] }
 0x704   :  { %v9701_v28 = vpop.f32.mrf.mxu1 }
 0x705   :  { %v9713_v58 = vadd.f32 %v9701_v28, %v9619_v1  ;;  %v16452_v1 = vld [vmem:[%s21930_s3 + $0x374] ss:$8 sps:$4 sm:$0xff]  }
 0x706   :  { %v9703_v31 = vpop.f32.mrf.mxu1 }
 0x707   :  { %v9714_v2 = vadd.f32 %v9703_v31, %v9620_v33 }
 0x708   :  { %v9705_v47 = vpop.f32.mrf.mxu1 }
 0x709   :  { %v9715_v62 = vadd.f32 %v9705_v47, %v9621_v39 }
 0x70a   :  { %v9783_v7 = vpop.f32.mrf.mxu1  ;;  %14416 = vmatmul.mubr.msk.bf16.vlgmr.msra.gmra.mxu1 %vm8543_vm3, %v22831_v46 }
 0x70b   :  { %v9802_v15 = vadd.f32 %v9783_v7, %v9708_v52  ;;  %10984 = vmatpush1.bf16.msra.mxu1 %v16444_v63  ;;  %10919 = vmatprep.mubr.bf16.mxu1 %v22789_v22  ;;  %v22834_v7 = vld [vmem:[#allocation206_spill] sm:$0xff] }
 0x70c   :  { %v9785_v45 = vpop.f32.mrf.mxu1  ;;  %10985 = vmatprep.subr.bf16.mxu1 %v16449_v40 }
 0x70d   :  { %v9803_v23 = vadd.f32 %v9785_v45, %v9709_v61  ;;  %v16450_v61 = vld [vmem:[%s21930_s3 + $0x370] ss:$8 sps:$4 sm:$0xff]  }
 0x70e   :  { %v9787_v33 = vpop.f32.mrf.mxu1 }
 0x70f   :  { %v9804_v5 = vadd.f32 %v9787_v33, %v9710_v48  ;;  %10986 = vmatpush1.bf16.msra.mxu1 %v16447_v27  ;;  %v16455_v48 = vld [vmem:[%s21930_s3 + $0x364] ss:$8 sps:$4 sm:$0xff]  }
 0x710   :  { %v9789_v54 = vpop.f32.mrf.mxu1  ;;  %11077 = vmatprep.subr.bf16.mxu1 %v16452_v1 }
 0x711   :  { %v9805_v51 = vadd.f32 %v9789_v54, %v9711_v57 }
 0x712   :  { %v9793_v39 = vpop.f32.mrf.mxu1  ;;  %14417 = vmatmul.mubr.msk.bf16.gmra.mxu1 %vm8543_vm3, %v22832_v49 }
 0x713   :  { %v9806_v37 = vadd.f32 %v9793_v39, %v9712_v17  ;;  %11003 = vmatprep.mubr.bf16.mxu1 %v22789_v22  ;;  %v16453_v17 = vld [vmem:[%s21930_s3 + $0x360] ss:$8 sps:$4 sm:$0xff]  }
 0x714   :  { %v9795_v52 = vpop.f32.mrf.mxu1  ;;  %v22835_v39 = vld [vmem:[#allocation15_spill] sm:$0xff] }
 0x715   :  { %v9807_v10 = vadd.f32 %v9795_v52, %v9713_v58  ;;  %v16458_v58 = vld [vmem:[%s21930_s3 + $0x394] ss:$8 sps:$4 sm:$0xff]  }
 0x716   :  { %v9797_v41 = vpop.f32.mrf.mxu1 }
 0x717   :  { %v9808_v56 = vadd.f32 %v9797_v41, %v9714_v2 }
 0x718   :  { %v9799_v9 = vpop.f32.mrf.mxu1 }
 0x719   :  { %v9809_v25 = vadd.f32 %v9799_v9, %v9715_v62 }
 0x71a   :  { %v9877_v57 = vpop.f32.mrf.mxu1  ;;  %14426 = vmatmul.mubr.msk.bf16.vlgmr.msra.gmra.mxu1 %vm8543_vm3, %v22833_v60 }
 0x71b   :  { %v9896_v12 = vadd.f32 %v9877_v57, %v9802_v15  ;;  %11078 = vmatpush1.bf16.msra.mxu1 %v16450_v61  ;;  %11013 = vmatprep.mubr.bf16.mxu1 %v22789_v22  ;;  %v22836_v57 = vld [vmem:[#allocation14_spill] sm:$0xff] }
 0x71c   :  { %v9879_v28 = vpop.f32.mrf.mxu1  ;;  %11079 = vmatprep.subr.bf16.mxu1 %v16455_v48 }
 0x71d   :  { %v9897_v31 = vadd.f32 %v9879_v28, %v9803_v23  ;;  %v16456_v23 = vld [vmem:[%s21930_s3 + $0x390] ss:$8 sps:$4 sm:$0xff]  }
 0x71e   :  { %v9881_v2 = vpop.f32.mrf.mxu1 }
 0x71f   :  { %v9898_v63 = vadd.f32 %v9881_v2, %v9804_v5  ;;  %11080 = vmatpush1.bf16.msra.mxu1 %v16453_v17  ;;  %v16461_v5 = vld [vmem:[%s21930_s3 + $0x384] ss:$8 sps:$4 sm:$0xff]  }
 0x720   :  { %v9883_v47 = vpop.f32.mrf.mxu1  ;;  %11171 = vmatprep.subr.bf16.mxu1 %v16458_v58 }
 0x721   :  { %v9899_v40 = vadd.f32 %v9883_v47, %v9805_v51 }
 0x722   :  { %v9887_v62 = vpop.f32.mrf.mxu1  ;;  %14427 = vmatmul.mubr.msk.bf16.gmra.mxu1 %vm8543_vm3, %v22834_v7 }
 0x723   :  { %v9900_v46 = vadd.f32 %v9887_v62, %v9806_v37  ;;  %11097 = vmatprep.mubr.bf16.mxu1 %v22789_v22  ;;  %v16459_v37 = vld [vmem:[%s21930_s3 + $0x380] ss:$8 sps:$4 sm:$0xff]   ;;  %v22837_v62 = vld [vmem:[#allocation17_spill] sm:$0xff] }
 0x724   :  { %v9889_v15 = vpop.f32.mrf.mxu1 }
 0x725   :  { %v9901_v27 = vadd.f32 %v9889_v15, %v9807_v10  ;;  %v16464_v10 = vld [vmem:[%s21930_s3 + $0x3b4] ss:$8 sps:$4 sm:$0xff]  }
 0x726   :  { %v9891_v45 = vpop.f32.mrf.mxu1 }
 0x727   :  { %v9902_v1 = vadd.f32 %v9891_v45, %v9808_v56 }
 0x728   :  { %v9893_v33 = vpop.f32.mrf.mxu1 }
 0x729   :  { %v9903_v54 = vadd.f32 %v9893_v33, %v9809_v25 }
 0x72a   :  { %v9971_v51 = vpop.f32.mrf.mxu1  ;;  %14436 = vmatmul.mubr.msk.bf16.vlgmr.msra.gmra.mxu1 %vm8543_vm3, %v22835_v39 }
 0x72b   :  { %v9990_v49 = vadd.f32 %v9971_v51, %v9896_v12  ;;  %11172 = vmatpush1.bf16.msra.mxu1 %v16456_v23  ;;  %11107 = vmatprep.mubr.bf16.mxu1 %v22789_v22  ;;  %v22838_v51 = vld [vmem:[#allocation16_spill] sm:$0xff] }
 0x72c   :  { %v9973_v52 = vpop.f32.mrf.mxu1  ;;  %11173 = vmatprep.subr.bf16.mxu1 %v16461_v5 }
 0x72d   :  { %v9991_v41 = vadd.f32 %v9973_v52, %v9897_v31  ;;  %v16462_v31 = vld [vmem:[%s21930_s3 + $0x3b0] ss:$8 sps:$4 sm:$0xff]  }
 0x72e   :  { %v9975_v56 = vpop.f32.mrf.mxu1 }
 0x72f   :  { %v9992_v61 = vadd.f32 %v9975_v56, %v9898_v63  ;;  %11174 = vmatpush1.bf16.msra.mxu1 %v16459_v37  ;;  %v16467_v63 = vld [vmem:[%s21930_s3 + $0x3a4] ss:$8 sps:$4 sm:$0xff]  }
 0x730   :  { %v9977_v9 = vpop.f32.mrf.mxu1  ;;  %11265 = vmatprep.subr.bf16.mxu1 %v16464_v10 }
 0x731   :  { %v9993_v48 = vadd.f32 %v9977_v9, %v9899_v40 }
 0x732   :  { %v9981_v25 = vpop.f32.mrf.mxu1  ;;  %14437 = vmatmul.mubr.msk.bf16.gmra.mxu1 %vm8543_vm3, %v22836_v57 }
 0x733   :  { %v9994_v60 = vadd.f32 %v9981_v25, %v9900_v46  ;;  %11191 = vmatprep.mubr.bf16.mxu1 %v22789_v22  ;;  %v16465_v46 = vld [vmem:[%s21930_s3 + $0x3a0] ss:$8 sps:$4 sm:$0xff]  }
 0x734   :  { %v9983_v12 = vpop.f32.mrf.mxu1  ;;  %v22839_v25 = vld [vmem:[#allocation19_spill] sm:$0xff] }
 0x735   :  { %v9995_v17 = vadd.f32 %v9983_v12, %v9901_v27  ;;  %v16470_v27 = vld [vmem:[%s21930_s3 + $0x3d4] ss:$8 sps:$4 sm:$0xff]  }
 0x736   :  { %v9985_v28 = vpop.f32.mrf.mxu1 }
 0x737   :  { %v9996_v58 = vadd.f32 %v9985_v28, %v9902_v1 }
 0x738   :  { %v9987_v2 = vpop.f32.mrf.mxu1 }
 0x739   :  { %v9997_v47 = vadd.f32 %v9987_v2, %v9903_v54 }
 0x73a   :  { %v10065_v40 = vpop.f32.mrf.mxu1  ;;  %14446 = vmatmul.mubr.msk.bf16.vlgmr.msra.gmra.mxu1 %vm8543_vm3, %v22837_v62 }
 0x73b   :  { %v10084_v7 = vadd.f32 %v10065_v40, %v9990_v49  ;;  %11266 = vmatpush1.bf16.msra.mxu1 %v16462_v31  ;;  %11201 = vmatprep.mubr.bf16.mxu1 %v22789_v22  ;;  %v22840_v40 = vld [vmem:[#allocation18_spill] sm:$0xff] }
 0x73c   :  { %v10067_v15 = vpop.f32.mrf.mxu1  ;;  %11267 = vmatprep.subr.bf16.mxu1 %v16467_v63 }
 0x73d   :  { %v10085_v45 = vadd.f32 %v10067_v15, %v9991_v41  ;;  %v16468_v41 = vld [vmem:[%s21930_s3 + $0x3d0] ss:$8 sps:$4 sm:$0xff]  }
 0x73e   :  { %v10069_v1 = vpop.f32.mrf.mxu1 }
 0x73f   :  { %v10086_v23 = vadd.f32 %v10069_v1, %v9992_v61  ;;  %11268 = vmatpush1.bf16.msra.mxu1 %v16465_v46  ;;  %v16473_v61 = vld [vmem:[%s21930_s3 + $0x3c4] ss:$8 sps:$4 sm:$0xff]  }
 0x740   :  { %v10071_v33 = vpop.f32.mrf.mxu1  ;;  %11359 = vmatprep.subr.bf16.mxu1 %v16470_v27 }
 0x741   :  { %v10087_v5 = vadd.f32 %v10071_v33, %v9993_v48 }
 0x742   :  { %v10075_v54 = vpop.f32.mrf.mxu1  ;;  %14447 = vmatmul.mubr.msk.bf16.gmra.mxu1 %vm8543_vm3, %v22838_v51 }
 0x743   :  { %v10088_v39 = vadd.f32 %v10075_v54, %v9994_v60  ;;  %11285 = vmatprep.mubr.bf16.mxu1 %v22789_v22  ;;  %v16471_v60 = vld [vmem:[%s21930_s3 + $0x3c0] ss:$8 sps:$4 sm:$0xff]  }
 0x744   :  { %v10077_v49 = vpop.f32.mrf.mxu1  ;;  %v22841_v54 = vld [vmem:[#allocation216_spill] sm:$0xff] }
 0x745   :  { %v10089_v37 = vadd.f32 %v10077_v49, %v9995_v17  ;;  %v16476_v17 = vld [vmem:[%s21930_s3 + $0x3f4] ss:$8 sps:$4 sm:$0xff]  }
 0x746   :  { %v10079_v52 = vpop.f32.mrf.mxu1 }
 0x747   :  { %v10090_v10 = vadd.f32 %v10079_v52, %v9996_v58 }
 0x748   :  { %v10081_v56 = vpop.f32.mrf.mxu1 }
 0x749   :  { %v10091_v9 = vadd.f32 %v10081_v56, %v9997_v47 }
 0x74a   :  { %v10159_v48 = vpop.f32.mrf.mxu1  ;;  %14456 = vmatmul.mubr.msk.bf16.vlgmr.msra.gmra.mxu1 %vm8543_vm3, %v22839_v25 }
 0x74b   :  { %v10178_v57 = vadd.f32 %v10159_v48, %v10084_v7  ;;  %11360 = vmatpush1.bf16.msra.mxu1 %v16468_v41  ;;  %11295 = vmatprep.mubr.bf16.mxu1 %v22789_v22  ;;  %v22842_v48 = vld [vmem:[#allocation214_spill] sm:$0xff] }
 0x74c   :  { %v10161_v12 = vpop.f32.mrf.mxu1  ;;  %11361 = vmatprep.subr.bf16.mxu1 %v16473_v61 }
 0x74d   :  { %v10179_v28 = vadd.f32 %v10161_v12, %v10085_v45  ;;  %v16474_v45 = vld [vmem:[%s21930_s3 + $0x3f0] ss:$8 sps:$4 sm:$0xff]  }
 0x74e   :  { %v10163_v58 = vpop.f32.mrf.mxu1 }
 0x74f   :  { %v10180_v31 = vadd.f32 %v10163_v58, %v10086_v23  ;;  %11362 = vmatpush1.bf16.msra.mxu1 %v16471_v60  ;;  %v16479_v23 = vld [vmem:[%s21930_s3 + $0x3e4] ss:$8 sps:$4 sm:$0xff]  }
 0x750   :  { %v10165_v2 = vpop.f32.mrf.mxu1  ;;  %11453 = vmatprep.subr.bf16.mxu1 %v16476_v17 }
 0x751   :  { %v10181_v63 = vadd.f32 %v10165_v2, %v10087_v5 }
 0x752   :  { %v10169_v47 = vpop.f32.mrf.mxu1  ;;  %14457 = vmatmul.mubr.msk.bf16.gmra.mxu1 %vm8543_vm3, %v22840_v40  ;;  %v16483_v40 = vld [vmem:[%s21930_s3 + $0x400] ss:$8 sps:$4 sm:$0xff]  }
 0x753   :  { %v10182_v62 = vadd.f32 %v10169_v47, %v10088_v39  ;;  %11379 = vmatprep.mubr.bf16.mxu1 %v22789_v22  ;;  %v16477_v39 = vld [vmem:[%s21930_s3 + $0x3e0] ss:$8 sps:$4 sm:$0xff]  }
 0x754   :  { %v10171_v7 = vpop.f32.mrf.mxu1 }
 0x755   :  { %v10183_v46 = vadd.f32 %v10171_v7, %v10089_v37  ;;  %v16482_v37 = vld [vmem:[%s21930_s3 + $0x414] ss:$8 sps:$4 sm:$0xff]  }
 0x756   :  { %v10173_v15 = vpop.f32.mrf.mxu1  ;;  %v16488_v7 = vld [vmem:[%s21930_s3 + $0x434] ss:$8 sps:$4 sm:$0xff]  }
 0x757   :  { %v10184_v27 = vadd.f32 %v10173_v15, %v10090_v10 }
 0x758   :  { %v10175_v1 = vpop.f32.mrf.mxu1 }
 0x759   :  { %v10185_v33 = vadd.f32 %v10175_v1, %v10091_v9 }
 0x75a   :  { %v10253_v5 = vpop.f32.mrf.mxu1  ;;  %14466 = vmatmul.mubr.msk.bf16.vlgmr.msra.gmra.mxu1 %vm8543_vm3, %v22841_v54 }
 0x75b   :  { %v10272_v51 = vadd.f32 %v10253_v5, %v10178_v57  ;;  %11454 = vmatpush1.bf16.msra.mxu1 %v16474_v45  ;;  %11389 = vmatprep.mubr.bf16.mxu1 %v22789_v22 }
 0x75c   :  { %v10255_v49 = vpop.f32.mrf.mxu1  ;;  %11455 = vmatprep.subr.bf16.mxu1 %v16479_v23  ;;  %v22843_v23 = vld [vmem:[#allocation20_spill] sm:$0xff] }
 0x75d   :  { %v10273_v52 = vadd.f32 %v10255_v49, %v10179_v28  ;;  %v16480_v28 = vld [vmem:[%s21930_s3 + $0x410] ss:$8 sps:$4 sm:$0xff]  }
 0x75e   :  { %v10257_v10 = vpop.f32.mrf.mxu1  ;;  %v16486_v49 = vld [vmem:[%s21930_s3 + $0x430] ss:$8 sps:$4 sm:$0xff]  }
 0x75f   :  { %v10274_v41 = vadd.f32 %v10257_v10, %v10180_v31  ;;  %11456 = vmatpush1.bf16.msra.mxu1 %v16477_v39  ;;  %v16485_v31 = vld [vmem:[%s21930_s3 + $0x404] ss:$8 sps:$4 sm:$0xff]  }
 0x760   :  { %v10259_v56 = vpop.f32.mrf.mxu1  ;;  %11547 = vmatprep.subr.bf16.mxu1 %v16482_v37 }
 0x761   :  { %v10275_v61 = vadd.f32 %v10259_v56, %v10181_v63 }
 0x762   :  { %v10263_v9 = vpop.f32.mrf.mxu1  ;;  %14467 = vmatmul.mubr.msk.bf16.gmra.mxu1 %vm8543_vm3, %v22842_v48  ;;  %v16494_v48 = vld [vmem:[%s21930_s3 + $0x454] ss:$8 sps:$4 sm:$0xff]  }
 0x763   :  { %v10276_v25 = vadd.f32 %v10263_v9, %v10182_v62  ;;  %11473 = vmatprep.mubr.bf16.mxu1 %v22789_v22 }
 0x764   :  { %v10265_v57 = vpop.f32.mrf.mxu1 }
 0x765   :  { %v10277_v60 = vadd.f32 %v10265_v57, %v10183_v46 }
 0x766   :  { %v10267_v12 = vpop.f32.mrf.mxu1 }
 0x767   :  { %v10278_v17 = vadd.f32 %v10267_v12, %v10184_v27 }
 0x768   :  { %v10269_v58 = vpop.f32.mrf.mxu1 }
 0x769   :  { %v10279_v2 = vadd.f32 %v10269_v58, %v10185_v33 }
 0x76a   :  { %v10347_v63 = vpop.f32.mrf.mxu1  ;;  %14476 = vmatmul.mubr.msk.bf16.vlgmr.msra.gmra.mxu1 %vm8543_vm3, %v20594_v59 }
 0x76b   :  { %v10366_v47 = vadd.f32 %v10347_v63, %v10272_v51  ;;  %11548 = vmatpush1.bf16.msra.mxu1 %v16480_v28  ;;  %11483 = vmatprep.mubr.bf16.mxu1 %v22789_v22  ;;  %v22844_v28 = vld [vmem:[#allocation218_spill] sm:$0xff] }
 0x76c   :  { %v10349_v62 = vpop.f32.mrf.mxu1  ;;  %11549 = vmatprep.subr.bf16.mxu1 %v16485_v31 }
 0x76d   :  { %v10367_v46 = vadd.f32 %v10349_v62, %v10273_v52  ;;  %v16491_v52 = vld [vmem:[%s21930_s3 + $0x424] ss:$8 sps:$4 sm:$0xff]  }
 0x76e   :  { %v10351_v15 = vpop.f32.mrf.mxu1 }
 0x76f   :  { %v10368_v27 = vadd.f32 %v10351_v15, %v10274_v41  ;;  %11550 = vmatpush1.bf16.msra.mxu1 %v16483_v40  ;;  %v16492_v40 = vld [vmem:[%s21930_s3 + $0x450] ss:$8 sps:$4 sm:$0xff]  }
 0x770   :  { %v10353_v45 = vpop.f32.mrf.mxu1  ;;  %11641 = vmatprep.subr.bf16.mxu1 %v16488_v7  ;;  %v16497_v7 = vld [vmem:[%s21930_s3 + $0x444] ss:$8 sps:$4 sm:$0xff]  }
 0x771   :  { %v10369_v59 = vadd.f32 %v10353_v45, %v10275_v61  ;;  %v16489_v61 = vld [vmem:[%s21930_s3 + $0x420] ss:$8 sps:$4 sm:$0xff]  }
 0x772   :  { %v10357_v1 = vpop.f32.mrf.mxu1  ;;  %14477 = vmatmul.mubr.msk.bf16.gmra.mxu1 %vm8543_vm3, %v22843_v23  ;;  %v16495_v45 = vld [vmem:[%s21930_s3 + $0x440] ss:$8 sps:$4 sm:$0xff]  }
 0x773   :  { %v10370_v33 = vadd.f32 %v10357_v1, %v10276_v25  ;;  %11567 = vmatprep.mubr.bf16.mxu1 %v22789_v22  ;;  %v16500_v1 = vld [vmem:[%s21930_s3 + $0x474] ss:$8 sps:$4 sm:$0xff]  }
 0x774   :  { %v10359_v5 = vpop.f32.mrf.mxu1 }
 0x775   :  { %v10371_v54 = vadd.f32 %v10359_v5, %v10277_v60 }
 0x776   :  { %v10361_v51 = vpop.f32.mrf.mxu1 }
 0x777   :  { %v10372_v39 = vadd.f32 %v10361_v51, %v10278_v17 }
 0x778   :  { %v10363_v37 = vpop.f32.mrf.mxu1 }
 0x779   :  { %v10373_v10 = vadd.f32 %v10363_v37, %v10279_v2 }
 0x77a   :  { %v10441_v41 = vpop.f32.mrf.mxu1  ;;  %14486 = vmatmul.mubr.msk.bf16.vlgmr.msra.gmra.mxu1 %vm8543_vm3, %v20614_v55 }
 0x77b   :  { %v10460_v56 = vadd.f32 %v10441_v41, %v10366_v47  ;;  %11642 = vmatpush1.bf16.msra.mxu1 %v16486_v49  ;;  %11577 = vmatprep.mubr.bf16.mxu1 %v22789_v22  ;;  %v16498_v41 = vld [vmem:[%s21930_s3 + $0x470] ss:$8 sps:$4 sm:$0xff]  }
 0x77c   :  { %v10443_v9 = vpop.f32.mrf.mxu1  ;;  %11643 = vmatprep.subr.bf16.mxu1 %v16491_v52 }
 0x77d   :  { %v10461_v25 = vadd.f32 %v10443_v9, %v10367_v46 }
 0x77e   :  { %v10445_v57 = vpop.f32.mrf.mxu1 }
 0x77f   :  { %v10462_v60 = vadd.f32 %v10445_v57, %v10368_v27  ;;  %11644 = vmatpush1.bf16.msra.mxu1 %v16489_v61  ;;  %v16503_v61 = vld [vmem:[%s21930_s3 + $0x464] ss:$8 sps:$4 sm:$0xff]  }
 0x780   :  { %v10447_v12 = vpop.f32.mrf.mxu1  ;;  %11735 = vmatprep.subr.bf16.mxu1 %v16494_v48 }
 0x781   :  { %v10463_v55 = vadd.f32 %v10447_v12, %v10369_v59 }
 0x782   :  { %v10451_v17 = vpop.f32.mrf.mxu1  ;;  %14487 = vmatmul.mubr.msk.bf16.gmra.mxu1 %vm8543_vm3, %v22844_v28 }
 0x783   :  { %v10464_v58 = vadd.f32 %v10451_v17, %v10370_v33  ;;  %11661 = vmatprep.mubr.bf16.mxu1 %v22789_v22 }
 0x784   :  { %v10453_v31 = vpop.f32.mrf.mxu1 }
 0x785   :  { %v10465_v2 = vadd.f32 %v10453_v31, %v10371_v54 }
 0x786   :  { %v10455_v63 = vpop.f32.mrf.mxu1 }
 0x787   :  { %v10466_v47 = vadd.f32 %v10455_v63, %v10372_v39 }
 0x788   :  { %v10457_v62 = vpop.f32.mrf.mxu1 }
 0x789   :  { %v10467_v46 = vadd.f32 %v10457_v62, %v10373_v10  ;;  %v16504_v62 = vld [vmem:[%s21930_s3 + $0x490] ss:$8 sps:$4 sm:$0xff]  }
 0x78a   :  { %v10535_v15 = vpop.f32.mrf.mxu1  ;;  %14496 = vmatmul.mubr.msk.bf16.vlgmr.msra.gmra.mxu1 %vm8543_vm3, %v20638_v19 }
 0x78b   :  { %v10554_v27 = vadd.f32 %v10535_v15, %v10460_v56  ;;  %11736 = vmatpush1.bf16.msra.mxu1 %v16492_v40  ;;  %11671 = vmatprep.mubr.bf16.mxu1 %v22789_v22 }
 0x78c   :  { %v10537_v59 = vpop.f32.mrf.mxu1  ;;  %11737 = vmatprep.subr.bf16.mxu1 %v16497_v7 }
 0x78d   :  { %v10555_v23 = vadd.f32 %v10537_v59, %v10461_v25  ;;  %v16501_v25 = vld [vmem:[%s21930_s3 + $0x460] ss:$8 sps:$4 sm:$0xff]  }
 0x78e   :  { %v10539_v33 = vpop.f32.mrf.mxu1 }
 0x78f   :  { %v10556_v5 = vadd.f32 %v10539_v33, %v10462_v60  ;;  %11738 = vmatpush1.bf16.msra.mxu1 %v16495_v45  ;;  %v16506_v60 = vld [vmem:[%s21930_s3 + $0x494] ss:$8 sps:$4 sm:$0xff]   ;;  %v16507_v45 = vld [vmem:[%s21930_s3 + $0x480] ss:$8 sps:$4 sm:$0xff]  }
 0x790   :  { %v10541_v54 = vpop.f32.mrf.mxu1  ;;  %11829 = vmatprep.subr.bf16.mxu1 %v16500_v1  ;;  %v16512_v1 = vld [vmem:[%s21930_s3 + $0x4b4] ss:$8 sps:$4 sm:$0xff]  }
 0x791   :  { %v10557_v19 = vadd.f32 %v10541_v54, %v10463_v55 }
 0x792   :  { %v10545_v51 = vpop.f32.mrf.mxu1  ;;  %14497 = vmatmul.mubr.msk.bf16.gmra.mxu1 %vm8543_vm3, %v20634_v26 }
 0x793   :  { %v10558_v39 = vadd.f32 %v10545_v51, %v10464_v58  ;;  %11755 = vmatprep.mubr.bf16.mxu1 %v22789_v22 }
 0x794   :  { %v10547_v49 = vpop.f32.mrf.mxu1 }
 0x795   :  { %v10559_v37 = vadd.f32 %v10547_v49, %v10465_v2 }
 0x796   :  { %v10549_v52 = vpop.f32.mrf.mxu1 }
 0x797   :  { %v10560_v10 = vadd.f32 %v10549_v52, %v10466_v47 }
 0x798   :  { %v10551_v56 = vpop.f32.mrf.mxu1 }
 0x799   :  { %v10561_v9 = vadd.f32 %v10551_v56, %v10467_v46  ;;  %v16509_v46 = vld [vmem:[%s21930_s3 + $0x484] ss:$8 sps:$4 sm:$0xff]  }
 0x79a   :  { %v10629_v48 = vpop.f32.mrf.mxu1  ;;  %14506 = vmatmul.mubr.msk.bf16.vlgmr.msra.gmra.mxu1 %vm8543_vm3, %v20669_v11  ;;  %v16515_v56 = vld [vmem:[%s21930_s3 + $0x4a4] ss:$8 sps:$4 sm:$0xff]  }
 0x79b   :  { %v10648_v26 = vadd.f32 %v10629_v48, %v10554_v27  ;;  %11830 = vmatpush1.bf16.msra.mxu1 %v16498_v41  ;;  %11765 = vmatprep.mubr.bf16.mxu1 %v22789_v22  ;;  %v16513_v48 = vld [vmem:[%s21930_s3 + $0x4a0] ss:$8 sps:$4 sm:$0xff]  }
 0x79c   :  { %v10631_v57 = vpop.f32.mrf.mxu1  ;;  %11831 = vmatprep.subr.bf16.mxu1 %v16503_v61 }
 0x79d   :  { %v10649_v12 = vadd.f32 %v10631_v57, %v10555_v23 }
 0x79e   :  { %v10633_v55 = vpop.f32.mrf.mxu1 }
 0x79f   :  { %v10650_v17 = vadd.f32 %v10633_v55, %v10556_v5  ;;  %11832 = vmatpush1.bf16.msra.mxu1 %v16501_v25  ;;  %v16518_v25 = vld [vmem:[%s21930_s3 + $0x4d4] ss:$8 sps:$4 sm:$0xff]  }
 0x7a0   :  { %v10635_v28 = vpop.f32.mrf.mxu1  ;;  %11923 = vmatprep.subr.bf16.mxu1 %v16506_v60 }
 0x7a1   :  { %v10651_v11 = vadd.f32 %v10635_v28, %v10557_v19 }
 0x7a2   :  { %v10639_v58 = vpop.f32.mrf.mxu1  ;;  %14507 = vmatmul.mubr.msk.bf16.gmra.mxu1 %vm8543_vm3, %v20656_v16 }
 0x7a3   :  { %v10652_v31 = vadd.f32 %v10639_v58, %v10558_v39  ;;  %11849 = vmatprep.mubr.bf16.mxu1 %v22789_v22 }
 0x7a4   :  { %v10641_v2 = vpop.f32.mrf.mxu1 }
 0x7a5   :  { %v10653_v63 = vadd.f32 %v10641_v2, %v10559_v37 }
 0x7a6   :  { %v10643_v47 = vpop.f32.mrf.mxu1 }
 0x7a7   :  { %v10654_v40 = vadd.f32 %v10643_v47, %v10560_v10  ;;  %v16510_v10 = vld [vmem:[%s21930_s3 + $0x4b0] ss:$8 sps:$4 sm:$0xff]  }
 0x7a8   :  { %v10645_v7 = vpop.f32.mrf.mxu1 }
 0x7a9   :  { %v10655_v15 = vadd.f32 %v10645_v7, %v10561_v9 }
 0x7aa   :  { %v10723_v27 = vpop.f32.mrf.mxu1  ;;  %14516 = vmatmul.mubr.msk.bf16.vlgmr.msra.gmra.mxu1 %vm8543_vm3, %v20695_v43 }
 0x7ab   :  { %v10742_v16 = vadd.f32 %v10723_v27, %v10648_v26  ;;  %11924 = vmatpush1.bf16.msra.mxu1 %v16504_v62  ;;  %11859 = vmatprep.mubr.bf16.mxu1 %v22789_v22  ;;  %v16524_v27 = vld [vmem:[%s21930_s3 + $0x4f4] ss:$8 sps:$4 sm:$0xff]  }
 0x7ac   :  { %v10725_v59 = vpop.f32.mrf.mxu1  ;;  %11925 = vmatprep.subr.bf16.mxu1 %v16509_v46  ;;  %v16519_v46 = vld [vmem:[%s21930_s3 + $0x4c0] ss:$8 sps:$4 sm:$0xff]  }
 0x7ad   :  { %v10743_v23 = vadd.f32 %v10725_v59, %v10649_v12 }
 0x7ae   :  { %v10727_v33 = vpop.f32.mrf.mxu1 }
 0x7af   :  { %v10744_v5 = vadd.f32 %v10727_v33, %v10650_v17  ;;  %11926 = vmatpush1.bf16.msra.mxu1 %v16507_v45 }
 0x7b0   :  { %v10729_v54 = vpop.f32.mrf.mxu1  ;;  %12017 = vmatprep.subr.bf16.mxu1 %v16512_v1 }
 0x7b1   :  { %v10745_v43 = vadd.f32 %v10729_v54, %v10651_v11 }
 0x7b2   :  { %v10733_v19 = vpop.f32.mrf.mxu1  ;;  %14517 = vmatmul.mubr.msk.bf16.gmra.mxu1 %vm8543_vm3, %v20684_v30 }
 0x7b3   :  { %v10746_v51 = vadd.f32 %v10733_v19, %v10652_v31  ;;  %11943 = vmatprep.mubr.bf16.mxu1 %v22789_v22 }
 0x7b4   :  { %v10735_v39 = vpop.f32.mrf.mxu1 }
 0x7b5   :  { %v10747_v49 = vadd.f32 %v10735_v39, %v10653_v63  ;;  %v16516_v63 = vld [vmem:[%s21930_s3 + $0x4d0] ss:$8 sps:$4 sm:$0xff]  }
 0x7b6   :  { %v10737_v37 = vpop.f32.mrf.mxu1 }
 0x7b7   :  { %v10748_v52 = vadd.f32 %v10737_v37, %v10654_v40  ;;  %v16521_v40 = vld [vmem:[%s21930_s3 + $0x4c4] ss:$8 sps:$4 sm:$0xff]  }
 0x7b8   :  { %v10739_v41 = vpop.f32.mrf.mxu1 }
 0x7b9   :  { %v10749_v61 = vadd.f32 %v10739_v41, %v10655_v15 }
 0x7ba   :  { %v10817_v9 = vpop.f32.mrf.mxu1  ;;  %14526 = vmatmul.mubr.msk.bf16.vlgmr.msra.gmra.mxu1 %vm8543_vm3, %v20719_v6 }
 0x7bb   :  { %v10836_v30 = vadd.f32 %v10817_v9, %v10742_v16  ;;  %12018 = vmatpush1.bf16.msra.mxu1 %v16510_v10  ;;  %11953 = vmatprep.mubr.bf16.mxu1 %v22789_v22  ;;  %v16525_v10 = vld [vmem:[%s21930_s3 + $0x4e0] ss:$8 sps:$4 sm:$0xff]  }
 0x7bc   :  { %v10819_v26 = vpop.f32.mrf.mxu1  ;;  %12019 = vmatprep.subr.bf16.mxu1 %v16515_v56  ;;  %v16530_v56 = vld [vmem:[%s21930_s3 + $0x514] ss:$8 sps:$4 sm:$0xff]  }
 0x7bd   :  { %v10837_v57 = vadd.f32 %v10819_v26, %v10743_v23 }
 0x7be   :  { %v10821_v60 = vpop.f32.mrf.mxu1 }
 0x7bf   :  { %v10838_v12 = vadd.f32 %v10821_v60, %v10744_v5  ;;  %12020 = vmatpush1.bf16.msra.mxu1 %v16513_v48 }
 0x7c0   :  { %v10823_v55 = vpop.f32.mrf.mxu1  ;;  %12111 = vmatprep.subr.bf16.mxu1 %v16518_v25 }
 0x7c1   :  { %v10839_v6 = vadd.f32 %v10823_v55, %v10745_v43 }
 0x7c2   :  { %v10827_v17 = vpop.f32.mrf.mxu1  ;;  %14527 = vmatmul.mubr.msk.bf16.gmra.mxu1 %vm8543_vm3, %v20715_v0 }
 0x7c3   :  { %v10840_v28 = vadd.f32 %v10827_v17, %v10746_v51  ;;  %12037 = vmatprep.mubr.bf16.mxu1 %v22789_v22  ;;  %v16522_v51 = vld [vmem:[%s21930_s3 + $0x4f0] ss:$8 sps:$4 sm:$0xff]  }
 0x7c4   :  { %v10829_v11 = vpop.f32.mrf.mxu1 }
 0x7c5   :  { %v10841_v58 = vadd.f32 %v10829_v11, %v10747_v49  ;;  %v16527_v49 = vld [vmem:[%s21930_s3 + $0x4e4] ss:$8 sps:$4 sm:$0xff]  }
 0x7c6   :  { %v10831_v31 = vpop.f32.mrf.mxu1 }
 0x7c7   :  { %v10842_v2 = vadd.f32 %v10831_v31, %v10748_v52  ;;  %v16531_v31 = vld [vmem:[%s21930_s3 + $0x500] ss:$8 sps:$4 sm:$0xff]  }
 0x7c8   :  { %v10833_v47 = vpop.f32.mrf.mxu1 }
 0x7c9   :  { %v10843_v62 = vadd.f32 %v10833_v47, %v10749_v61 }
 0x7ca   :  { %v10911_v7 = vpop.f32.mrf.mxu1  ;;  %14536 = vmatmul.mubr.msk.bf16.vlgmr.msra.gmra.mxu1 %vm8543_vm3, %v20747_v50 }
 0x7cb   :  { %v10930_v0 = vadd.f32 %v10911_v7, %v10836_v30  ;;  %12112 = vmatpush1.bf16.msra.mxu1 %v16516_v63  ;;  %12047 = vmatprep.mubr.bf16.mxu1 %v22789_v22  ;;  %v16536_v63 = vld [vmem:[%s21930_s3 + $0x534] ss:$8 sps:$4 sm:$0xff]  }
 0x7cc   :  { %v10913_v15 = vpop.f32.mrf.mxu1  ;;  %12113 = vmatprep.subr.bf16.mxu1 %v16521_v40 }
 0x7cd   :  { %v10931_v16 = vadd.f32 %v10913_v15, %v10837_v57 }
 0x7ce   :  { %v10915_v45 = vpop.f32.mrf.mxu1 }
 0x7cf   :  { %v10932_v59 = vadd.f32 %v10915_v45, %v10838_v12  ;;  %12114 = vmatpush1.bf16.msra.mxu1 %v16519_v46 }
 0x7d0   :  { %v10917_v1 = vpop.f32.mrf.mxu1  ;;  %12205 = vmatprep.subr.bf16.mxu1 %v16524_v27 }
 0x7d1   :  { %v10933_v50 = vadd.f32 %v10917_v1, %v10839_v6  ;;  %v16528_v6 = vld [vmem:[%s21930_s3 + $0x510] ss:$8 sps:$4 sm:$0xff]  }
 0x7d2   :  { %v10921_v23 = vpop.f32.mrf.mxu1  ;;  %14537 = vmatmul.mubr.msk.bf16.gmra.mxu1 %vm8543_vm3, %v20737_v20 }
 0x7d3   :  { %v10934_v33 = vadd.f32 %v10921_v23, %v10840_v28  ;;  %12131 = vmatprep.mubr.bf16.mxu1 %v22789_v22  ;;  %v16533_v28 = vld [vmem:[%s21930_s3 + $0x504] ss:$8 sps:$4 sm:$0xff]  }
 0x7d4   :  { %v10923_v5 = vpop.f32.mrf.mxu1 }
 0x7d5   :  { %v10935_v54 = vadd.f32 %v10923_v5, %v10841_v58  ;;  %v16537_v5 = vld [vmem:[%s21930_s3 + $0x520] ss:$8 sps:$4 sm:$0xff]  }
 0x7d6   :  { %v10925_v43 = vpop.f32.mrf.mxu1 }
 0x7d7   :  { %v10936_v19 = vadd.f32 %v10925_v43, %v10842_v2  ;;  %v16542_v43 = vld [vmem:[%s21930_s3 + $0x554] ss:$8 sps:$4 sm:$0xff]  }
 0x7d8   :  { %v10927_v39 = vpop.f32.mrf.mxu1 }
 0x7d9   :  { %v10937_v37 = vadd.f32 %v10927_v39, %v10843_v62 }
 0x7da   :  { %v11005_v52 = vpop.f32.mrf.mxu1  ;;  %14546 = vmatmul.mubr.msk.bf16.vlgmr.msra.gmra.mxu1 %vm8543_vm3, %v20767_v53 }
 0x7db   :  { %v11024_v20 = vadd.f32 %v11005_v52, %v10930_v0  ;;  %12206 = vmatpush1.bf16.msra.mxu1 %v16522_v51  ;;  %12141 = vmatprep.mubr.bf16.mxu1 %v22789_v22 }
 0x7dc   :  { %v11007_v41 = vpop.f32.mrf.mxu1  ;;  %12207 = vmatprep.subr.bf16.mxu1 %v16527_v49 }
 0x7dd   :  { %v11025_v61 = vadd.f32 %v11007_v41, %v10931_v16 }
 0x7de   :  { %v11009_v9 = vpop.f32.mrf.mxu1 }
 0x7df   :  { %v11026_v30 = vadd.f32 %v11009_v9, %v10932_v59  ;;  %12208 = vmatpush1.bf16.msra.mxu1 %v16525_v10  ;;  %v16534_v59 = vld [vmem:[%s21930_s3 + $0x530] ss:$8 sps:$4 sm:$0xff]  }
 0x7e0   :  { %v11011_v48 = vpop.f32.mrf.mxu1  ;;  %12299 = vmatprep.subr.bf16.mxu1 %v16530_v56 }
 0x7e1   :  { %v11027_v53 = vadd.f32 %v11011_v48, %v10933_v50  ;;  %v16539_v50 = vld [vmem:[%s21930_s3 + $0x524] ss:$8 sps:$4 sm:$0xff]  }
 0x7e2   :  { %v11015_v26 = vpop.f32.mrf.mxu1  ;;  %14547 = vmatmul.mubr.msk.bf16.gmra.mxu1 %vm8543_vm3, %v20761_v35 }
 0x7e3   :  { %v11028_v25 = vadd.f32 %v11015_v26, %v10934_v33  ;;  %12225 = vmatprep.mubr.bf16.mxu1 %v22789_v22  ;;  %v16543_v26 = vld [vmem:[%s21930_s3 + $0x540] ss:$8 sps:$4 sm:$0xff]  }
 0x7e4   :  { %v11017_v57 = vpop.f32.mrf.mxu1 }
 0x7e5   :  { %v11029_v60 = vadd.f32 %v11017_v57, %v10935_v54  ;;  %v16548_v57 = vld [vmem:[%s21930_s3 + $0x574] ss:$8 sps:$4 sm:$0xff]  }
 0x7e6   :  { %v11019_v12 = vpop.f32.mrf.mxu1 }
 0x7e7   :  { %v11030_v55 = vadd.f32 %v11019_v12, %v10936_v19 }
 0x7e8   :  { %v11021_v17 = vpop.f32.mrf.mxu1 }
 0x7e9   :  { %v11031_v11 = vadd.f32 %v11021_v17, %v10937_v37 }
 0x7ea   :  { %v11099_v58 = vpop.f32.mrf.mxu1  ;;  %14556 = vmatmul.mubr.msk.bf16.vlgmr.msra.gmra.mxu1 %vm8543_vm3, %v20791_v14 }
 0x7eb   :  { %v11118_v35 = vadd.f32 %v11099_v58, %v11024_v20  ;;  %12300 = vmatpush1.bf16.msra.mxu1 %v16528_v6  ;;  %12235 = vmatprep.mubr.bf16.mxu1 %v22789_v22 }
 0x7ec   :  { %v11101_v2 = vpop.f32.mrf.mxu1  ;;  %12301 = vmatprep.subr.bf16.mxu1 %v16533_v28 }
 0x7ed   :  { %v11119_v47 = vadd.f32 %v11101_v2, %v11025_v61  ;;  %v16540_v61 = vld [vmem:[%s21930_s3 + $0x550] ss:$8 sps:$4 sm:$0xff]  }
 0x7ee   :  { %v11103_v40 = vpop.f32.mrf.mxu1  ;;  %v16546_v2 = vld [vmem:[%s21930_s3 + $0x570] ss:$8 sps:$4 sm:$0xff]  }
 0x7ef   :  { %v11120_v62 = vadd.f32 %v11103_v40, %v11026_v30  ;;  %12302 = vmatpush1.bf16.msra.mxu1 %v16531_v31  ;;  %v16545_v30 = vld [vmem:[%s21930_s3 + $0x544] ss:$8 sps:$4 sm:$0xff]  }
 0x7f0   :  { %v11105_v7 = vpop.f32.mrf.mxu1  ;;  %12393 = vmatprep.subr.bf16.mxu1 %v16536_v63 }
 0x7f1   :  { %v11121_v14 = vadd.f32 %v11105_v7, %v11027_v53  ;;  %v16549_v7 = vld [vmem:[%s21930_s3 + $0x560] ss:$8 sps:$4 sm:$0xff]  }
 0x7f2   :  { %v11109_v0 = vpop.f32.mrf.mxu1  ;;  %14557 = vmatmul.mubr.msk.bf16.gmra.mxu1 %vm8543_vm3, %v20787_v3 }
 0x7f3   :  { %v11122_v46 = vadd.f32 %v11109_v0, %v11028_v25  ;;  %12319 = vmatprep.mubr.bf16.mxu1 %v22789_v22  ;;  %v16554_v0 = vld [vmem:[%s21930_s3 + $0x594] ss:$8 sps:$4 sm:$0xff]  }
 0x7f4   :  { %v11111_v15 = vpop.f32.mrf.mxu1 }
 0x7f5   :  { %v11123_v27 = vadd.f32 %v11111_v15, %v11029_v60 }
 0x7f6   :  { %v11113_v16 = vpop.f32.mrf.mxu1 }
 0x7f7   :  { %v11124_v45 = vadd.f32 %v11113_v16, %v11030_v55 }
 0x7f8   :  { %v11115_v1 = vpop.f32.mrf.mxu1 }
 0x7f9   :  { %v11125_v23 = vadd.f32 %v11115_v1, %v11031_v11 }
 0x7fa   :  { %v11193_v33 = vpop.f32.mrf.mxu1  ;;  %14566 = vmatmul.mubr.msk.bf16.vlgmr.msra.gmra.mxu1 %vm8543_vm3, %v20819_v42 }
 0x7fb   :  { %v11212_v3 = vadd.f32 %v11193_v33, %v11118_v35  ;;  %12394 = vmatpush1.bf16.msra.mxu1 %v16534_v59  ;;  %12329 = vmatprep.mubr.bf16.mxu1 %v22789_v22 }
 0x7fc   :  { %v11195_v54 = vpop.f32.mrf.mxu1  ;;  %12395 = vmatprep.subr.bf16.mxu1 %v16539_v50 }
 0x7fd   :  { %v11213_v19 = vadd.f32 %v11195_v54, %v11119_v47  ;;  %v16551_v47 = vld [vmem:[%s21930_s3 + $0x564] ss:$8 sps:$4 sm:$0xff]  }
 0x7fe   :  { %v11197_v51 = vpop.f32.mrf.mxu1  ;;  %v16557_v54 = vld [vmem:[%s21930_s3 + $0x584] ss:$8 sps:$4 sm:$0xff]  }
 0x7ff   :  { %v11214_v39 = vadd.f32 %v11197_v51, %v11120_v62  ;;  %12396 = vmatpush1.bf16.msra.mxu1 %v16537_v5  ;;  %v16555_v51 = vld [vmem:[%s21930_s3 + $0x580] ss:$8 sps:$4 sm:$0xff]  }
 0x800   :  { %v11199_v49 = vpop.f32.mrf.mxu1  ;;  %12487 = vmatprep.subr.bf16.mxu1 %v16542_v43 }
 0x801   :  { %v11215_v42 = vadd.f32 %v11199_v49, %v11121_v14  ;;  %v16560_v49 = vld [vmem:[%s21930_s3 + $0x5b4] ss:$8 sps:$4 sm:$0xff]  }
 0x802   :  { %v11203_v37 = vpop.f32.mrf.mxu1  ;;  %14567 = vmatmul.mubr.msk.bf16.gmra.mxu1 %vm8543_vm3, %v20809_v21 }
 0x803   :  { %v11216_v52 = vadd.f32 %v11203_v37, %v11122_v46  ;;  %12413 = vmatprep.mubr.bf16.mxu1 %v22789_v22 }
 0x804   :  { %v11205_v20 = vpop.f32.mrf.mxu1 }
 0x805   :  { %v11217_v10 = vadd.f32 %v11205_v20, %v11123_v27 }
 0x806   :  { %v11207_v41 = vpop.f32.mrf.mxu1 }
 0x807   :  { %v11218_v56 = vadd.f32 %v11207_v41, %v11124_v45 }
 0x808   :  { %v11209_v9 = vpop.f32.mrf.mxu1 }
 0x809   :  { %v11219_v48 = vadd.f32 %v11209_v9, %v11125_v23 }
 0x80a   :  { %v11287_v53 = vpop.f32.mrf.mxu1  ;;  %14576 = vmatmul.mubr.msk.bf16.vlgmr.msra.gmra.mxu1 %vm8543_vm3, %v20839_v34 }
 0x80b   :  { %v11306_v21 = vadd.f32 %v11287_v53, %v11212_v3  ;;  %12488 = vmatpush1.bf16.msra.mxu1 %v16540_v61  ;;  %12423 = vmatprep.mubr.bf16.mxu1 %v22789_v22  ;;  %v16552_v3 = vld [vmem:[%s21930_s3 + $0x590] ss:$8 sps:$4 sm:$0xff]  }
 0x80c   :  { %v11289_v25 = vpop.f32.mrf.mxu1  ;;  %12489 = vmatprep.subr.bf16.mxu1 %v16545_v30 }
 0x80d   :  { %v11307_v60 = vadd.f32 %v11289_v25, %v11213_v19 }
 0x80e   :  { %v11291_v12 = vpop.f32.mrf.mxu1 }
 0x80f   :  { %v11308_v55 = vadd.f32 %v11291_v12, %v11214_v39  ;;  %12490 = vmatpush1.bf16.msra.mxu1 %v16543_v26  ;;  %v16566_v12 = vld [vmem:[%s21930_s3 + $0x5d4] ss:$8 sps:$4 sm:$0xff]  }
 0x810   :  { %v11293_v6 = vpop.f32.mrf.mxu1  ;;  %12581 = vmatprep.subr.bf16.mxu1 %v16548_v57  ;;  %v16561_v57 = vld [vmem:[%s21930_s3 + $0x5a0] ss:$8 sps:$4 sm:$0xff]  }
 0x811   :  { %v11309_v34 = vadd.f32 %v11293_v6, %v11215_v42 }
 0x812   :  { %v11297_v17 = vpop.f32.mrf.mxu1  ;;  %14577 = vmatmul.mubr.msk.bf16.gmra.mxu1 %vm8543_vm3, %v20833_v36 }
 0x813   :  { %v11310_v28 = vadd.f32 %v11297_v17, %v11216_v52  ;;  %12507 = vmatprep.mubr.bf16.mxu1 %v22789_v22 }
 0x814   :  { %v11299_v11 = vpop.f32.mrf.mxu1 }
 0x815   :  { %v11311_v58 = vadd.f32 %v11299_v11, %v11217_v10 }
 0x816   :  { %v11301_v35 = vpop.f32.mrf.mxu1 }
 0x817   :  { %v11312_v31 = vadd.f32 %v11301_v35, %v11218_v56 }
 0x818   :  { %v11303_v63 = vpop.f32.mrf.mxu1 }
 0x819   :  { %v11313_v40 = vadd.f32 %v11303_v63, %v11219_v48  ;;  %v16558_v48 = vld [vmem:[%s21930_s3 + $0x5b0] ss:$8 sps:$4 sm:$0xff]  }
 0x81a   :  { %v11381_v62 = vpop.f32.mrf.mxu1  ;;  %14586 = vmatmul.mubr.msk.bf16.vlgmr.msra.gmra.mxu1 %vm8543_vm3, %v20863_v8  ;;  %v16564_v63 = vld [vmem:[%s21930_s3 + $0x5d0] ss:$8 sps:$4 sm:$0xff]  }
 0x81b   :  { %v11400_v36 = vadd.f32 %v11381_v62, %v11306_v21  ;;  %12582 = vmatpush1.bf16.msra.mxu1 %v16546_v2  ;;  %12517 = vmatprep.mubr.bf16.mxu1 %v22789_v22  ;;  %v16563_v21 = vld [vmem:[%s21930_s3 + $0x5a4] ss:$8 sps:$4 sm:$0xff]  }
 0x81c   :  { %v11383_v14 = vpop.f32.mrf.mxu1  ;;  %12583 = vmatprep.subr.bf16.mxu1 %v16551_v47 }
 0x81d   :  { %v11401_v46 = vadd.f32 %v11383_v14, %v11307_v60 }
 0x81e   :  { %v11385_v15 = vpop.f32.mrf.mxu1 }
 0x81f   :  { %v11402_v27 = vadd.f32 %v11385_v15, %v11308_v55  ;;  %12584 = vmatpush1.bf16.msra.mxu1 %v16549_v7  ;;  %v16567_v7 = vld [vmem:[%s21930_s3 + $0x5c0] ss:$8 sps:$4 sm:$0xff]  }
 0x820   :  { %v11387_v16 = vpop.f32.mrf.mxu1  ;;  %12675 = vmatprep.subr.bf16.mxu1 %v16554_v0  ;;  %v16572_v0 = vld [vmem:[%s21930_s3 + $0x5f4] ss:$8 sps:$4 sm:$0xff]  }
 0x821   :  { %v11403_v8 = vadd.f32 %v11387_v16, %v11309_v34 }
 0x822   :  { %v11391_v45 = vpop.f32.mrf.mxu1  ;;  %14587 = vmatmul.mubr.msk.bf16.gmra.mxu1 %vm8543_vm3, %v20859_v38 }
 0x823   :  { %v11404_v59 = vadd.f32 %v11391_v45, %v11310_v28  ;;  %12601 = vmatprep.mubr.bf16.mxu1 %v22789_v22 }
 0x824   :  { %v11393_v1 = vpop.f32.mrf.mxu1 }
 0x825   :  { %v11405_v50 = vadd.f32 %v11393_v1, %v11311_v58 }
 0x826   :  { %v11395_v23 = vpop.f32.mrf.mxu1 }
 0x827   :  { %v11406_v33 = vadd.f32 %v11395_v23, %v11312_v31 }
 0x828   :  { %v11397_v5 = vpop.f32.mrf.mxu1 }
 0x829   :  { %v11407_v43 = vadd.f32 %v11397_v5, %v11313_v40  ;;  %v16569_v40 = vld [vmem:[%s21930_s3 + $0x5c4] ss:$8 sps:$4 sm:$0xff]  }
 0x82a   :  { %v11475_v19 = vpop.f32.mrf.mxu1  ;;  %14596 = vmatmul.mubr.msk.bf16.vlgmr.msra.gmra.mxu1 %vm8543_vm3, %v20889_v44  ;;  %v16575_v5 = vld [vmem:[%s21930_s3 + $0x5e4] ss:$8 sps:$4 sm:$0xff]  }
 0x82b   :  { %v11494_v38 = vadd.f32 %v11475_v19, %v11400_v36  ;;  %12676 = vmatpush1.bf16.msra.mxu1 %v16552_v3  ;;  %12611 = vmatprep.mubr.bf16.mxu1 %v22789_v22  ;;  %v16573_v19 = vld [vmem:[%s21930_s3 + $0x5e0] ss:$8 sps:$4 sm:$0xff]  }
 0x82c   :  { %v11477_v39 = vpop.f32.mrf.mxu1  ;;  %12677 = vmatprep.subr.bf16.mxu1 %v16557_v54 }
 0x82d   :  { %v11495_v42 = vadd.f32 %v11477_v39, %v11401_v46 }
 0x82e   :  { %v11479_v37 = vpop.f32.mrf.mxu1 }
 0x82f   :  { %v11496_v52 = vadd.f32 %v11479_v37, %v11402_v27  ;;  %12678 = vmatpush1.bf16.msra.mxu1 %v16555_v51  ;;  %v16578_v51 = vld [vmem:[%s21930_s3 + $0x614] ss:$8 sps:$4 sm:$0xff]  }
 0x830   :  { %v11481_v20 = vpop.f32.mrf.mxu1  ;;  %12769 = vmatprep.subr.bf16.mxu1 %v16560_v49 }
 0x831   :  { %v11497_v44 = vadd.f32 %v11481_v20, %v11403_v8  ;;  %v22845_v20 = vld [vmem:[#allocation21_spill] sm:$0xff] }
 0x832   :  { %v11485_v10 = vpop.f32.mrf.mxu1  ;;  %14597 = vmatmul.mubr.msk.bf16.gmra.mxu1 %vm8543_vm3, %v20881_v32 }
 0x833   :  { %v11498_v41 = vadd.f32 %v11485_v10, %v11404_v59  ;;  %12695 = vmatprep.mubr.bf16.mxu1 %v22789_v22 }
 0x834   :  { %v11487_v56 = vpop.f32.mrf.mxu1 }
 0x835   :  { %v11499_v61 = vadd.f32 %v11487_v56, %v11405_v50 }
 0x836   :  { %v11489_v9 = vpop.f32.mrf.mxu1 }
 0x837   :  { %v11500_v30 = vadd.f32 %v11489_v9, %v11406_v33  ;;  %v16570_v33 = vld [vmem:[%s21930_s3 + $0x5f0] ss:$8 sps:$4 sm:$0xff]  }
 0x838   :  { %v11491_v53 = vpop.f32.mrf.mxu1  ;;  %v16576_v9 = vld [vmem:[%s21930_s3 + $0x610] ss:$8 sps:$4 sm:$0xff]  }
 0x839   :  { %v11501_v26 = vadd.f32 %v11491_v53, %v11407_v43 }
 0x83a   :  { %v11569_v25 = vpop.f32.mrf.mxu1  ;;  %14606 = vmatmul.mubr.msk.bf16.vlgmr.msra.gmra.mxu1 %vm8543_vm3, %v20907_v4 }
 0x83b   :  { %v11588_v32 = vadd.f32 %v11569_v25, %v11494_v38  ;;  %12770 = vmatpush1.bf16.msra.mxu1 %v16558_v48  ;;  %12705 = vmatprep.mubr.bf16.mxu1 %v22789_v22  ;;  %v16581_v48 = vld [vmem:[%s21930_s3 + $0x604] ss:$8 sps:$4 sm:$0xff]  }
 0x83c   :  { %v11571_v60 = vpop.f32.mrf.mxu1  ;;  %12771 = vmatprep.subr.bf16.mxu1 %v16563_v21 }
 0x83d   :  { %v11589_v55 = vadd.f32 %v11571_v60, %v11495_v42 }
 0x83e   :  { %v11573_v6 = vpop.f32.mrf.mxu1 }
 0x83f   :  { %v11590_v34 = vadd.f32 %v11573_v6, %v11496_v52  ;;  %12772 = vmatpush1.bf16.msra.mxu1 %v16561_v57 }
 0x840   :  { %v11575_v17 = vpop.f32.mrf.mxu1  ;;  %12863 = vmatprep.subr.bf16.mxu1 %v16566_v12 }
 0x841   :  { %v11591_v4 = vadd.f32 %v11575_v17, %v11497_v44  ;;  %v22847_v17 = vld [vmem:[#allocation220_spill] sm:$0xff] }
 0x842   :  { %v11579_v28 = vpop.f32.mrf.mxu1  ;;  %14607 = vmatmul.mubr.msk.bf16.gmra.mxu1 %vm8543_vm3, %v20901_v24 }
 0x843   :  { %v11592_v11 = vadd.f32 %v11579_v28, %v11498_v41  ;;  %12789 = vmatprep.mubr.bf16.mxu1 %v22789_v22 }
 0x844   :  { %v11581_v58 = vpop.f32.mrf.mxu1 }
 0x845   :  { %v11593_v35 = vadd.f32 %v11581_v58, %v11499_v61 }
 0x846   :  { %v11583_v31 = vpop.f32.mrf.mxu1 }
 0x847   :  { %v11594_v2 = vadd.f32 %v11583_v31, %v11500_v30 }
 0x848   :  { %v11585_v47 = vpop.f32.mrf.mxu1 }
 0x849   :  { %v11595_v62 = vadd.f32 %v11585_v47, %v11501_v26  ;;  %v22846_v26 = vld [vmem:[#allocation22_spill] sm:$0xff] }
 0x84a   :  { %v11663_v36 = vpop.f32.mrf.mxu1  ;;  %14616 = vmatmul.mubr.msk.bf16.vlgmr.msra.gmra.mxu1 %vm8543_vm3, %v20926_v29 }
 0x84b   :  { %v11682_v24 = vadd.f32 %v11663_v36, %v11588_v32  ;;  %12864 = vmatpush1.bf16.msra.mxu1 %v16564_v63  ;;  %12799 = vmatprep.mubr.bf16.mxu1 %v22789_v22  ;;  %v16579_v32 = vld [vmem:[%s21930_s3 + $0x600] ss:$8 sps:$4 sm:$0xff]  }
 0x84c   :  { %v11665_v14 = vpop.f32.mrf.mxu1  ;;  %12865 = vmatprep.subr.bf16.mxu1 %v16569_v40  ;;  %v22848_v63 = vld [vmem:[#allocation23_spill] sm:$0xff] }
 0x84d   :  { %v11683_v46 = vadd.f32 %v11665_v14, %v11589_v55 }
 0x84e   :  { %v11667_v15 = vpop.f32.mrf.mxu1 }
 0x84f   :  { %v11684_v27 = vadd.f32 %v11667_v15, %v11590_v34  ;;  %12866 = vmatpush1.bf16.msra.mxu1 %v16567_v7  ;;  %v22849_v15 = vld [vmem:[#allocation222_spill] sm:$0xff] }
 0x850   :  { %v11669_v16 = vpop.f32.mrf.mxu1  ;;  %12957 = vmatprep.subr.bf16.mxu1 %v16572_v0 }
 0x851   :  { %v11685_v29 = vadd.f32 %v11669_v16, %v11591_v4 }
 0x852   :  { %v11673_v8 = vpop.f32.mrf.mxu1  ;;  %14617 = vmatmul.mubr.msk.bf16.gmra.mxu1 %vm8543_vm3, %v20923_v13 }
 0x853   :  { %v11686_v45 = vadd.f32 %v11673_v8, %v11592_v11  ;;  %12883 = vmatprep.mubr.bf16.mxu1 %v22789_v22 }
 0x854   :  { %v11675_v59 = vpop.f32.mrf.mxu1 }
 0x855   :  { %v11687_v1 = vadd.f32 %v11675_v59, %v11593_v35 }
 0x856   :  { %v11677_v50 = vpop.f32.mrf.mxu1 }
 0x857   :  { %v11688_v23 = vadd.f32 %v11677_v50, %v11594_v2 }
 0x858   :  { %v11679_v3 = vpop.f32.mrf.mxu1 }
 0x859   :  { %v11689_v54 = vadd.f32 %v11679_v3, %v11595_v62 }
 0x85a   :  { %v11757_v43 = vpop.f32.mrf.mxu1  ;;  %14626 = vmatmul.mubr.msk.bf16.vlgmr.msra.gmra.mxu1 %vm8543_vm3, %v20944_v18 }
 0x85b   :  { %v11776_v13 = vadd.f32 %v11757_v43, %v11682_v24  ;;  %12958 = vmatpush1.bf16.msra.mxu1 %v16570_v33  ;;  %12893 = vmatprep.mubr.bf16.mxu1 %v22789_v22 }
 0x85c   :  { %v11759_v38 = vpop.f32.mrf.mxu1  ;;  %12959 = vmatprep.subr.bf16.mxu1 %v16575_v5 }
 0x85d   :  { %v11777_v39 = vadd.f32 %v11759_v38, %v11683_v46 }
 0x85e   :  { %v11761_v49 = vpop.f32.mrf.mxu1 }
 0x85f   :  { %v11778_v42 = vadd.f32 %v11761_v49, %v11684_v27  ;;  %12960 = vmatpush1.bf16.msra.mxu1 %v16573_v19 }
 0x860   :  { %v11763_v37 = vpop.f32.mrf.mxu1  ;;  %13051 = vmatprep.subr.bf16.mxu1 %v16578_v51 }
 0x861   :  { %v11779_v18 = vadd.f32 %v11763_v37, %v11685_v29 }
 0x862   :  { %v11767_v52 = vpop.f32.mrf.mxu1  ;;  %14627 = vmatmul.mubr.msk.bf16.gmra.mxu1 %vm8543_vm3, %v22845_v20 }
 0x863   :  { %v11780_v44 = vadd.f32 %v11767_v52, %v11686_v45  ;;  %12977 = vmatprep.mubr.bf16.mxu1 %v22789_v22 }
 0x864   :  { %v11769_v10 = vpop.f32.mrf.mxu1 }
 0x865   :  { %v11781_v41 = vadd.f32 %v11769_v10, %v11687_v1 }
 0x866   :  { %v11771_v56 = vpop.f32.mrf.mxu1 }
 0x867   :  { %v11782_v61 = vadd.f32 %v11771_v56, %v11688_v23 }
 0x868   :  { %v11773_v30 = vpop.f32.mrf.mxu1 }
 0x869   :  { %v11783_v53 = vadd.f32 %v11773_v30, %v11689_v54 }
 0x86a   :  { %v11851_v21 = vpop.f32.mrf.mxu1  ;;  %14636 = vmatmul.mubr.msk.bf16.vlgmr.msra.gmra.mxu1 %vm8543_vm3, %v22846_v26 }
 0x86b   :  { %v11870_v25 = vadd.f32 %v11851_v21, %v11776_v13  ;;  %13052 = vmatpush1.bf16.msra.mxu1 %v16576_v9  ;;  %12987 = vmatprep.mubr.bf16.mxu1 %v22789_v22 }
 0x86c   :  { %v11853_v57 = vpop.f32.mrf.mxu1  ;;  %13053 = vmatprep.subr.bf16.mxu1 %v16581_v48 }
 0x86d   :  { %v11871_v60 = vadd.f32 %v11853_v57, %v11777_v39 }
 0x86e   :  { %v11855_v12 = vpop.f32.mrf.mxu1 }
 0x86f   :  { %v11872_v55 = vadd.f32 %v11855_v12, %v11778_v42  ;;  %13054 = vmatpush1.bf16.msra.mxu1 %v16579_v32 }
 0x870   :  { %v11857_v6 = vpop.f32.mrf.mxu1 }
 0x871   :  { %v11873_v24 = vadd.f32 %v11857_v6, %v11779_v18 }
 0x872   :  { %v11861_v34 = vpop.f32.mrf.mxu1  ;;  %14637 = vmatmul.mubr.msk.bf16.gmra.mxu1 %vm8543_vm3, %v22847_v17 }
 0x873   :  { %v11874_v4 = vadd.f32 %v11861_v34, %v11780_v44  ;;  %13071 = vmatprep.mubr.bf16.mxu1 %v22789_v22 }
 0x874   :  { %v11863_v28 = vpop.f32.mrf.mxu1 }
 0x875   :  { %v11875_v11 = vadd.f32 %v11863_v28, %v11781_v41 }
 0x876   :  { %v11865_v58 = vpop.f32.mrf.mxu1 }
 0x877   :  { %v11876_v35 = vadd.f32 %v11865_v58, %v11782_v61 }
 0x878   :  { %v11867_v31 = vpop.f32.mrf.mxu1 }
 0x879   :  { %v11877_v45 = vadd.f32 %v11867_v31, %v11783_v53 }
 0x87a   :  { %v11945_v2 = vpop.f32.mrf.mxu1  ;;  %14646 = vmatmul.mubr.msk.bf16.vlgmr.msra.gmra.mxu1 %vm8543_vm3, %v22848_v63 }
 0x87b   :  { %v11964_v47 = vadd.f32 %v11945_v2, %v11870_v25  ;;  %13081 = vmatprep.mubr.bf16.mxu1 %v22789_v22  ;;  %v16586_v2 = vld [vmem:[%s21931_s5 + $0x68] sm:$0xff]  }
 0x87c   :  { %v11947_v40 = vpop.f32.mrf.mxu1 }
 0x87d   :  { %v11965_v62 = vadd.f32 %v11947_v40, %v11871_v60  ;;  %v16582_v60 = vld [vmem:[%s21931_s5 + $0x78] sm:$0xff]  }
 0x87e   :  { %v11949_v36 = vpop.f32.mrf.mxu1  ;;  %15077 = vmatprep.subr.bf16.mxu1 %v16582_v60 }
 0x87f   :  { %v11966_v7 = vadd.f32 %v11949_v36, %v11872_v55  ;;  %v16583_v55 = vld [vmem:[%s21931_s5 + $0x38] sm:$0xff]  }
 0x880   :  { %v11951_v14 = vpop.f32.mrf.mxu1  ;;  %15078 = vmatpush3.bf16.msra.mxu1 %v16583_v55 }
 0x881   :  { %v11967_v0 = vadd.f32 %v11951_v14, %v11873_v24  ;;  %v16588_v24 = vld [vmem:[%s21931_s5 + $0x60] sm:$0xff]  }
 0x882   :  { %v11955_v46 = vpop.f32.mrf.mxu1  ;;  %14647 = vmatmul.mubr.msk.bf16.gmra.mxu1 %vm8543_vm3, %v22849_v15  ;;  %v16589_v14 = vld [vmem:[%s21931_s5 + $0x20] sm:$0xff]  }
 0x883   :  { %v11968_v27 = vadd.f32 %v11955_v46, %v11874_v4  ;;  %v16584_v4 = vld [vmem:[%s21931_s5 + $0x70] sm:$0xff]  }
 0x884   :  { %v11957_v16 = vpop.f32.mrf.mxu1  ;;  %15079 = vmatprep.subr.bf16.mxu1 %v16584_v4 }
 0x885   :  { %v11969_v29 = vadd.f32 %v11957_v16, %v11875_v11  ;;  %v16585_v11 = vld [vmem:[%s21931_s5 + $0x30] sm:$0xff]  }
 0x886   :  { %v11959_v8 = vpop.f32.mrf.mxu1  ;;  %15080 = vmatpush3.bf16.msra.mxu1 %v16585_v11 }
 0x887   :  { %v11970_v59 = vadd.f32 %v11959_v8, %v11876_v35  ;;  %15081 = vmatprep.subr.bf16.mxu1 %v16586_v2 }
 0x888   :  { %v11961_v1 = vpop.f32.mrf.mxu1 }
 0x889   :  { %v11971_v50 = vadd.f32 %v11961_v1, %v11877_v45  ;;  %v16592_v1 = vld [vmem:[%s21931_s5 + $0x50] sm:$0xff]  }
 0x88a   :  { %v12039_v22 = vpop.f32.mrf.mxu1 }
 0x88b   :  { %v12058_v23 = vadd.f32 %v12039_v22, %v11964_v47  ;;  %v16587_v47 = vld [vmem:[%s21931_s5 + $0x28] sm:$0xff]   ;;  %v16593_v22 = vld [vmem:[%s21931_s5 + $0x10] sm:$0xff]  }
 0x88c   :  { %v12041_v33 = vpop.f32.mrf.mxu1  ;;  %15082 = vmatpush3.bf16.msra.mxu1 %v16587_v47 }
 0x88d   :  { %v12059_v3 = vadd.f32 %v12041_v33, %v11965_v62  ;;  %15083 = vmatprep.subr.bf16.mxu1 %v16588_v24 }
 0x88e   :  { %v12043_v5 = vpop.f32.mrf.mxu1 }
 0x88f   :  { %v12060_v54 = vadd.f32 %v12043_v5, %v11966_v7  ;;  %v16594_v5 = vld [vmem:[%s21931_s5 + $0x48] sm:$0xff]  }
 0x890   :  { %v12045_v43 = vpop.f32.mrf.mxu1  ;;  %15084 = vmatpush3.bf16.msra.mxu1 %v16589_v14 }
 0x891   :  { %v12061_v13 = vadd.f32 %v12045_v43, %v11967_v0  ;;  %v16595_v43 = vld [vmem:[%s21931_s5 + $0x8] sm:$0xff]  }
 0x892   :  { %v12049_v19 = vpop.f32.mrf.mxu1 }
 0x893   :  { %v12062_v38 = vadd.f32 %v12049_v19, %v11968_v27  ;;  %v16590_v27 = vld [vmem:[%s21931_s5 + $0x58] sm:$0xff]  }
 0x894   :  { %v12051_v51 = vpop.f32.mrf.mxu1  ;;  %15085 = vmatprep.subr.bf16.mxu1 %v16590_v27 }
 0x895   :  { %v12063_v39 = vadd.f32 %v12051_v51, %v11969_v29  ;;  %v16591_v29 = vld [vmem:[%s21931_s5 + $0x18] sm:$0xff]   ;;  %v16596_v51 = vld [vmem:[%s21931_s5 + $0x40] sm:$0xff]  }
 0x896   :  { %v12053_v49 = vpop.f32.mrf.mxu1  ;;  %15086 = vmatpush3.bf16.msra.mxu1 %v16591_v29 }
 0x897   :  { %v12064_v42 = vadd.f32 %v12053_v49, %v11970_v59  ;;  %15087 = vmatprep.subr.bf16.mxu1 %v16592_v1  ;;  %v16597_v49 = vld [vmem:[%s21931_s5] sm:$0xff]  }
 0x898   :  { %v12055_v37 = vpop.f32.mrf.mxu1 }
 0x899   :  { %v12065_v18 = vadd.f32 %v12055_v37, %v11971_v50 }
 0x89a   :  { %v12133_v52 = vpop.f32.mrf.mxu1  ;;  %15088 = vmatpush3.bf16.msra.mxu1 %v16593_v22 }
 0x89b   :  { %v12152_v20 = vadd.f32 %v12133_v52, %v12058_v23  ;;  %15089 = vmatprep.subr.bf16.mxu1 %v16594_v5 }
 0x89c   :  { %v12135_v44 = vpop.f32.mrf.mxu1 }
 0x89d   :  { %v12153_v10 = vadd.f32 %v12135_v44, %v12059_v3 }
 0x89e   :  { %v12137_v41 = vpop.f32.mrf.mxu1  ;;  %15090 = vmatpush3.bf16.msra.mxu1 %v16595_v43 }
 0x89f   :  { %v12154_v56 = vadd.f32 %v12137_v41, %v12060_v54  ;;  %15091 = vmatprep.subr.bf16.mxu1 %v16596_v51 }
 0x8a0   :  { %v12139_v61 = vpop.f32.mrf.mxu1 }
 0x8a1   :  { %v12155_v9 = vadd.f32 %v12139_v61, %v12061_v13 }
 0x8a2   :  { %v12143_v30 = vpop.f32.mrf.mxu1  ;;  %15092 = vmatpush3.bf16.msra.mxu1 %v16597_v49 }
 0x8a3   :  { %v12156_v48 = vadd.f32 %v12143_v30, %v12062_v38 }
 0x8a4   :  { %v12145_v53 = vpop.f32.mrf.mxu1 }
 0x8a5   :  { %v12157_v21 = vadd.f32 %v12145_v53, %v12063_v39 }
 0x8a6   :  { %v12147_v26 = vpop.f32.mrf.mxu1 }
 0x8a7   :  { %v12158_v25 = vadd.f32 %v12147_v26, %v12064_v42 }
 0x8a8   :  { %v12149_v32 = vpop.f32.mrf.mxu1 }
 0x8a9   :  { %v12159_v57 = vadd.f32 %v12149_v32, %v12065_v18 }
 0x8aa   :  { %v12227_v12 = vpop.f32.mrf.mxu1 }
 0x8ab   :  { %v12246_v6 = vadd.f32 %v12227_v12, %v12152_v20 }
 0x8ac   :  { %v12229_v34 = vpop.f32.mrf.mxu1 }
 0x8ad   :  { %v12247_v17 = vadd.f32 %v12229_v34, %v12153_v10 }
 0x8ae   :  { %v12231_v28 = vpop.f32.mrf.mxu1 }
 0x8af   :  { %v12248_v58 = vadd.f32 %v12231_v28, %v12154_v56 }
 0x8b0   :  { %v12233_v35 = vpop.f32.mrf.mxu1 }
 0x8b1   :  { %v12249_v31 = vadd.f32 %v12233_v35, %v12155_v9 }
 0x8b2   :  { %v12237_v63 = vpop.f32.mrf.mxu1 }
 0x8b3   :  { %v12250_v40 = vadd.f32 %v12237_v63, %v12156_v48 }
 0x8b4   :  { %v12239_v62 = vpop.f32.mrf.mxu1 }
 0x8b5   :  { %v12251_v36 = vadd.f32 %v12239_v62, %v12157_v21 }
 0x8b6   :  { %v12241_v7 = vpop.f32.mrf.mxu1 }
 0x8b7   :  { %v12252_v0 = vadd.f32 %v12241_v7, %v12158_v25 }
 0x8b8   :  { %v12243_v46 = vpop.f32.mrf.mxu1 }
 0x8b9   :  { %v12253_v15 = vadd.f32 %v12243_v46, %v12159_v57 }
 0x8ba   :  { %v12321_v16 = vpop.f32.mrf.mxu1 }
 0x8bb   :  { %v12340_v8 = vadd.f32 %v12321_v16, %v12246_v6 }
 0x8bc   :  { %v12323_v45 = vpop.f32.mrf.mxu1 }
 0x8bd   :  { %v12341_v59 = vadd.f32 %v12323_v45, %v12247_v17 }
 0x8be   :  { %v12325_v50 = vpop.f32.mrf.mxu1 }
 0x8bf   :  { %v12342_v23 = vadd.f32 %v12325_v50, %v12248_v58 }
 0x8c0   :  { %v12327_v33 = vpop.f32.mrf.mxu1 }
 0x8c1   :  { %v12343_v3 = vadd.f32 %v12327_v33, %v12249_v31 }
 0x8c2   :  { %v12331_v54 = vpop.f32.mrf.mxu1 }
 0x8c3   :  { %v12344_v13 = vadd.f32 %v12331_v54, %v12250_v40 }
 0x8c4   :  { %v12333_v19 = vpop.f32.mrf.mxu1 }
 0x8c5   :  { %v12345_v38 = vadd.f32 %v12333_v19, %v12251_v36 }
 0x8c6   :  { %v12335_v39 = vpop.f32.mrf.mxu1 }
 0x8c7   :  { %v12346_v42 = vadd.f32 %v12335_v39, %v12252_v0 }
 0x8c8   :  { %v12337_v37 = vpop.f32.mrf.mxu1 }
 0x8c9   :  { %v12347_v18 = vadd.f32 %v12337_v37, %v12253_v15 }
 0x8ca   :  { %v12415_v52 = vpop.f32.mrf.mxu1 }
 0x8cb   :  { %v12434_v20 = vadd.f32 %v12415_v52, %v12340_v8 }
 0x8cc   :  { %v12417_v44 = vpop.f32.mrf.mxu1 }
 0x8cd   :  { %v12435_v10 = vadd.f32 %v12417_v44, %v12341_v59 }
 0x8ce   :  { %v12419_v41 = vpop.f32.mrf.mxu1 }
 0x8cf   :  { %v12436_v56 = vadd.f32 %v12419_v41, %v12342_v23 }
 0x8d0   :  { %v12421_v61 = vpop.f32.mrf.mxu1 }
 0x8d1   :  { %v12437_v9 = vadd.f32 %v12421_v61, %v12343_v3 }
 0x8d2   :  { %v12425_v30 = vpop.f32.mrf.mxu1 }
 0x8d3   :  { %v12438_v48 = vadd.f32 %v12425_v30, %v12344_v13 }
 0x8d4   :  { %v12427_v53 = vpop.f32.mrf.mxu1 }
 0x8d5   :  { %v12439_v21 = vadd.f32 %v12427_v53, %v12345_v38 }
 0x8d6   :  { %v12429_v26 = vpop.f32.mrf.mxu1 }
 0x8d7   :  { %v12440_v25 = vadd.f32 %v12429_v26, %v12346_v42 }
 0x8d8   :  { %v12431_v32 = vpop.f32.mrf.mxu1 }
 0x8d9   :  { %v12441_v57 = vadd.f32 %v12431_v32, %v12347_v18 }
 0x8da   :  { %v12509_v60 = vpop.f32.mrf.mxu1 }
 0x8db   :  { %v12528_v12 = vadd.f32 %v12509_v60, %v12434_v20 }
 0x8dc   :  { %v12511_v55 = vpop.f32.mrf.mxu1 }
 0x8dd   :  { %v12529_v6 = vadd.f32 %v12511_v55, %v12435_v10 }
 0x8de   :  { %v12513_v34 = vpop.f32.mrf.mxu1 }
 0x8df   :  { %v12530_v17 = vadd.f32 %v12513_v34, %v12436_v56 }
 0x8e0   :  { %v12515_v4 = vpop.f32.mrf.mxu1 }
 0x8e1   :  { %v12531_v28 = vadd.f32 %v12515_v4, %v12437_v9 }
 0x8e2   :  { %v12519_v11 = vpop.f32.mrf.mxu1 }
 0x8e3   :  { %v12532_v58 = vadd.f32 %v12519_v11, %v12438_v48  ;;  %v13100_v11 = vld [vmem:[%s21932_s4] sm:$0x3] }
 0x8e4   :  { %v12521_v35 = vpop.f32.mrf.mxu1 }
 0x8e5   :  { %v12533_v31 = vadd.f32 %v12521_v35, %v12439_v21  ;;  %v13102_v21 = vlaneseq }
 0x8e6   :  { %v12523_v2 = vpop.f32.mrf.mxu1 }
 0x8e7   :  { %v12534_v63 = vadd.f32 %v12523_v2, %v12440_v25  ;;  %v13103_v32 = vshrl.u32 %v13102_v21, 7 }
 0x8e8   :  { %v12525_v47 = vpop.f32.mrf.mxu1 }
 0x8e9   :  { %v12535_v40 = vadd.f32 %v12525_v47, %v12441_v57  ;;  %v13104_v34 = vsub.s32 0, %v13103_v32  ;;  %v13108_v35 = vsub.s32 1, %v13103_v32 }
 0x8ea   :  { %v12603_v62 = vpop.f32.mrf.mxu1 }
 0x8eb   :  { %v12622_v36 = vadd.f32 %v12603_v62, %v12528_v12 }
 0x8ec   :  { %v12605_v24 = vpop.f32.mrf.mxu1 }
 0x8ed   :  { %v12623_v7 = vadd.f32 %v12605_v24, %v12529_v6 }
 0x8ee   :  { %v12607_v14 = vpop.f32.mrf.mxu1 }
 0x8ef   :  { %v12624_v0 = vadd.f32 %v12607_v14, %v12530_v17 }
 0x8f0   :  { %v12609_v46 = vpop.f32.mrf.mxu1 }
 0x8f1   :  { %v12625_v15 = vadd.f32 %v12609_v46, %v12531_v28 }
 0x8f2   :  { %v12613_v27 = vpop.f32.mrf.mxu1 }
 0x8f3   :  { %v12626_v16 = vadd.f32 %v12613_v27, %v12532_v58 }
 0x8f4   :  { %v12615_v29 = vpop.f32.mrf.mxu1 }
 0x8f5   :  { %v12627_v8 = vadd.f32 %v12615_v29, %v12533_v31  ;;  %v13109_v29 = vrot.slane %v13100_v11, %v13108_v35 }
 0x8f6   :  { %v12617_v45 = vpop.f32.mrf.mxu1 }
 0x8f7   :  { %v21909_v59 = vadd.f32 %v12617_v45, %v12534_v63 }
 0x8f8   :  { %v12619_v1 = vpop.f32.mrf.mxu1 }
 0x8f9   :  { %v21911_v50 = vadd.f32 %v12619_v1, %v12535_v40 }
 0x8fa   :  { %v12697_v22 = vpop.f32.mrf.mxu1 }
 0x8fb   :  { %v12716_v57 = vadd.f32 %v12697_v22, %v12622_v36  ;;  %v13105_v36 = vrot.slane %v13100_v11, %v13104_v34 }
 0x8fc   :  { %v12699_v23 = vpop.f32.mrf.mxu1 }
 0x8fd   :  { %v12717_v12 = vadd.f32 %v12699_v23, %v12623_v7 }
 0x8fe   :  { %v12701_v33 = vpop.f32.mrf.mxu1 }
 0x8ff   :  { %v12718_v17 = vadd.f32 %v12701_v33, %v12624_v0 }
 0x900   :  { %v12703_v3 = vpop.f32.mrf.mxu1 }
 0x901   :  { %v12719_v31 = vadd.f32 %v12703_v3, %v12625_v15 }
 0x902   :  { %v12707_v5 = vpop.f32.mrf.mxu1 }
 0x903   :  { %v12720_v40 = vadd.f32 %v12707_v5, %v12626_v16 }
 0x904   :  { %v12709_v54 = vpop.f32.mrf.mxu1 }
 0x905   :  { %v12721_v0 = vadd.f32 %v12709_v54, %v12627_v8 }
 0x906   :  { %v12711_v43 = vpop.f32.mrf.mxu1 }
 0x907   :  { %v12722_v33 = vadd.f32 %v12711_v43, %v21909_v59 }
 0x908   :  { %v12713_v13 = vpop.f32.mrf.mxu1 }
 0x90a   :  { %v12791_v19 = vpop.f32.mrf.mxu1 }
 0x90b   :  { %v12810_v55 = vadd.f32 %v12791_v19, %v12716_v57 }
 0x90c   :  { %v12793_v38 = vpop.f32.mrf.mxu1 }
 0x90d   :  { %v12811_v4 = vadd.f32 %v12793_v38, %v12717_v12 }
 0x90e   :  { %v12795_v51 = vpop.f32.mrf.mxu1 }
 0x90f   :  { %v12812_v2 = vadd.f32 %v12795_v51, %v12718_v17  ;;  %v12723_v51 = vadd.f32 %v12713_v13, %v21911_v50 }
 0x910   :  { %v12797_v39 = vpop.f32.mrf.mxu1 }
 0x911   :  { %v12813_v24 = vadd.f32 %v12797_v39, %v12719_v31 }
 0x912   :  { %v12801_v49 = vpop.f32.mrf.mxu1 }
 0x913   :  { %v12814_v45 = vadd.f32 %v12801_v49, %v12720_v40 }
 0x914   :  { %v12803_v42 = vpop.f32.mrf.mxu1 }
 0x915   :  { %v12815_v15 = vadd.f32 %v12803_v42, %v12721_v0 }
 0x916   :  { %v12805_v37 = vpop.f32.mrf.mxu1 }
 0x917   :  { %v12816_v39 = vadd.f32 %v12805_v37, %v12722_v33 }
 0x918   :  { %v12807_v18 = vpop.f32.mrf.mxu1 }
 0x91a   :  { %v12885_v52 = vpop.f32.mrf.mxu1 }
 0x91b   :  { %v12904_v28 = vadd.f32 %v12885_v52, %v12810_v55 }
 0x91c   :  { %v12887_v20 = vpop.f32.mrf.mxu1 }
 0x91d   :  { %v12905_v63 = vadd.f32 %v12887_v20, %v12811_v4 }
 0x91e   :  { %v12889_v44 = vpop.f32.mrf.mxu1 }
 0x91f   :  { %v12906_v7 = vadd.f32 %v12889_v44, %v12812_v2 }
 0x920   :  { %v12891_v10 = vpop.f32.mrf.mxu1 }
 0x921   :  { %v12907_v1 = vadd.f32 %v12891_v10, %v12813_v24  ;;  %v12817_v10 = vadd.f32 %v12807_v18, %v12723_v51 }
 0x922   :  { %v12895_v41 = vpop.f32.mrf.mxu1 }
 0x923   :  { %v12908_v19 = vadd.f32 %v12895_v41, %v12814_v45 }
 0x924   :  { %v12897_v56 = vpop.f32.mrf.mxu1 }
 0x925   :  { %v12909_v52 = vadd.f32 %v12897_v56, %v12815_v15 }
 0x926   :  { %v12899_v61 = vpop.f32.mrf.mxu1 }
 0x928   :  { %v12901_v9 = vpop.f32.mrf.mxu1 }
 0x929   :  { %v12911_v21 = vadd.f32 %v12901_v9, %v12817_v10 }
 0x92a   :  { %v12979_v30 = vpop.f32.mrf.mxu1 }
 0x92b   :  { %v12998_v47 = vadd.f32 %v12979_v30, %v12904_v28  ;;  %v12910_v30 = vadd.f32 %v12899_v61, %v12816_v39 }
 0x92c   :  { %v12981_v48 = vpop.f32.mrf.mxu1 }
 0x92d   :  { %v12999_v14 = vadd.f32 %v12981_v48, %v12905_v63  ;;  %v14648_v63 = vld [vmem:[%s21933_s6] ss:$0 sm:$0xff] }
 0x92e   :  { %v12983_v53 = vpop.f32.mrf.mxu1 }
 0x92f   :  { %v13000_v22 = vadd.f32 %v12983_v53, %v12906_v7 }
 0x930   :  { %v12985_v26 = vpop.f32.mrf.mxu1 }
 0x931   :  { %v13001_v38 = vadd.f32 %v12985_v26, %v12907_v1 }
 0x932   :  { %v12989_v25 = vpop.f32.mrf.mxu1 }
 0x933   :  { %v13002_v8 = vadd.f32 %v12989_v25, %v12908_v19 }
 0x934   :  { %v12991_v60 = vpop.f32.mrf.mxu1 }
 0x935   :  { %v13003_v48 = vadd.f32 %v12991_v60, %v12909_v52 }
 0x936   :  { %v12993_v6 = vpop.f32.mrf.mxu1 }
 0x937   :  { %v13004_v26 = vadd.f32 %v12993_v6, %v12910_v30 }
 0x938   :  { %v12995_v58 = vpop.f32.mrf.mxu1 }
 0x939   :  { %v13005_v25 = vadd.f32 %v12995_v58, %v12911_v21 }
 0x93a   :  { %v13073_v62 = vpop.f32.mrf.mxu1 }
 0x93b   :  { %v13092_v46 = vadd.f32 %v13073_v62, %v12998_v47 }
 0x93c   :  { %v13075_v27 = vpop.f32.mrf.mxu1 }
 0x93d   :  { %v13093_v23 = vadd.f32 %v13075_v27, %v12999_v14  ;;  %v13112_v16 = vadd.f32 %v13105_v36, %v13092_v46 }
 0x93e   :  { %v13077_v3 = vpop.f32.mrf.mxu1 }
 0x93f   :  { %v13094_v5 = vadd.f32 %v13077_v3, %v13000_v22  ;;  %v13113_v54 = vadd.f32 %v13109_v29, %v13093_v23  ;;  %v13120_v59 = vmax.f32 %v13112_v16, 0.0 }
 0x940   :  { %v13079_v20 = vpop.f32.mrf.mxu1 }
 0x941   :  { %v13114_v44 = vadd.f32 %v13105_v36, %v13094_v5  ;;  %v13095_v49 = vadd.f32 %v13079_v20, %v13001_v38  ;;  %v13121_v57 = vmax.f32 %v13113_v54, 0.0 }
 0x942   :  { %v13083_v53 = vpop.f32.mrf.mxu1 }
 0x943   :  { %v13122_v43 = vmax.f32 %v13114_v44, 0.0  ;;  %v13115_v42 = vadd.f32 %v13109_v29, %v13095_v49  ;;  %v13096_v41 = vadd.f32 %v13083_v53, %v13002_v8 }
 0x944   :  { %v13085_v32 = vpop.f32.mrf.mxu1 }
 0x945   :  { %v13128_v50 = vpack.c.bf16 %v13122_v43, %v13120_v59  ;;  %v13123_v13 = vmax.f32 %v13115_v42, 0.0  ;;  %v13097_v37 = vadd.f32 %v13085_v32, %v13003_v48  ;;  %v13116_v12 = vadd.f32 %v13105_v36, %v13096_v41 }
 0x946   :  { %v13087_v56 = vpop.f32.mrf.mxu1 }
 0x947   :  { %v13098_v55 = vadd.f32 %v13087_v56, %v13004_v26  ;;  %v13129_v34 = vpack.c.bf16 %v13123_v13, %v13121_v57  ;;  %v13117_v61 = vadd.f32 %v13109_v29, %v13097_v37  ;;  %v13124_v4 = vmax.f32 %v13116_v12, 0.0 }
 0x948   :  { %v13089_v18 = vpop.f32.mrf.mxu1 }
 0x949   :  { %v13118_v60 = vadd.f32 %v13105_v36, %v13098_v55  ;;  %v13099_v17 = vadd.f32 %v13089_v18, %v13005_v25  ;;  %13299 = vmatprep.mubr.bf16.mxu1 %v13129_v34  ;;  %v13125_v6 = vmax.f32 %v13117_v61, 0.0 }
 0x94a   :  { %13300 = vmatmul.mubr.bf16.vlgmr.msra.gmra.mxu1 %v13128_v50 }
 0x94b   :  { %v13126_v28 = vmax.f32 %v13118_v60, 0.0  ;;  %v13119_v9 = vadd.f32 %v13109_v29, %v13099_v17 }
 0x94d   :  { %v13130_v11 = vpack.c.bf16 %v13126_v28, %v13124_v4  ;;  %v13127_v35 = vmax.f32 %v13119_v9, 0.0 }
 0x94f   :  { %v13131_v31 = vpack.c.bf16 %v13127_v35, %v13125_v6 }
 0x951   :  { %13307 = vmatprep.mubr.bf16.mxu1 %v13131_v31 }
 0x952   :  { %13308 = vmatmul.mubr.bf16.gmra.mxu1 %v13130_v11 }
 0xa0a   :  { %v15093_v2 = vpop.f32.mrf.mxu1 }
 0xa0c   :  { %v15094_v58 = vpop.f32.mrf.mxu1 }
 0xa0d   :  { %v15095_v47 = vadd.f32 %v15094_v58, %v15093_v2 }
 0xa0e   :  { %v15096_v40 = vpop.f32.mrf.mxu1 }
 0xa0f   :  { %v13302_v62 = vadd.f32 %v15095_v47, %v14648_v63 }
 0xa10   :  { %v15097_v36 = vpop.f32.mrf.mxu1 }
 0xa11   :  { %v15098_v24 = vadd.f32 %v15097_v36, %v15096_v40  ;;  %13316 = vmax.xlane.f32.xlu0 %v13302_v62 }
 0xa12   :  { %v15099_v7 = vpop.f32.mrf.mxu1 }
 0xa13   :  { %v13305_v14 = vadd.f32 %v15098_v24, %v14648_v63 }
 0xa14   :  { %v15100_v46 = vpop.f32.mrf.mxu1 }
 0xa15   :  { %v15101_v0 = vadd.f32 %v15100_v46, %v15099_v7  ;;  %13318 = vmax.xlane.f32.xlu0 %v13305_v14 }
 0xa16   :  { %v15102_v27 = vpop.f32.mrf.mxu1 }
 0xa17   :  { %v13310_v29 = vadd.f32 %v15101_v0, %v14648_v63 }
 0xa18   :  { %v15103_v45 = vpop.f32.mrf.mxu1 }
 0xa19   :  { %v15104_v1 = vadd.f32 %v15103_v45, %v15102_v27  ;;  %13320 = vmax.xlane.f32.xlu1 %v13310_v29 }
 0xa1b   :  { %v13313_v22 = vadd.f32 %v15104_v1, %v14648_v63 }
 0xa1d   :  { %13322 = vmax.xlane.f32.xlu1 %v13313_v22 }
 0xa9a   :  { %v13317_v23 = vpop.xlane.xlu0 %13316 }
 0xa9b   :  { %v13324_v33 = vsub.f32 %v13302_v62, %v13317_v23 }
 0xa9d   :  { %v13328_v15 = vmul.f32 1.442695, %v13324_v33 }
 0xa9e   :  { %v13319_v3 = vpop.xlane.xlu0 %13318 }
 0xa9f   :  { %16598 = vpow2.f32 %v13328_v15  ;;  %v13325_v19 = vsub.f32 %v13305_v14, %v13319_v3 }
 0xaa1   :  { %v13330_v38 = vmul.f32 1.442695, %v13325_v19 }
 0xaa2   :  { %v13321_v16 = vpop.xlane.xlu1 %13320 }
 0xaa3   :  { %16600 = vpow2.f32 %v13330_v38  ;;  %v13326_v5 = vsub.f32 %v13310_v29, %v13321_v16 }
 0xaa5   :  { %v13332_v51 = vmul.f32 1.442695, %v13326_v5 }
 0xaa6   :  { %v13323_v39 = vpop.xlane.xlu1 %13322 }
 0xaa7   :  { %16602 = vpow2.f32 %v13332_v51  ;;  %v13327_v52 = vsub.f32 %v13313_v22, %v13323_v39 }
 0xaa9   :  { %v13334_v20 = vmul.f32 1.442695, %v13327_v52 }
 0xaab   :  { %16604 = vpow2.f32 %v13334_v20 }
 0xaac   :  { %v16599_v8 = vpop.eup %16598 }
 0xaad   :  { %13336 = vadd.xlane.f32.xlu0 %v16599_v8 }
 0xab0   :  { %v16601_v54 = vpop.eup %16600 }
 0xab1   :  { %13338 = vadd.xlane.f32.xlu1 %v16601_v54 }
 0xab4   :  { %v16603_v44 = vpop.eup %16602 }
 0xab5   :  { %13340 = vadd.xlane.f32.xlu0 %v16603_v44 }
 0xab8   :  { %v16605_v49 = vpop.eup %16604 }
 0xab9   :  { %13342 = vadd.xlane.f32.xlu1 %v16605_v49 }
 0xb36   :  { %v13337_v10 = vpop.xlane.xlu0 %13336 }
 0xb37   :  { %16606 = vrcp.f32 %v13337_v10 }
 0xb3a   :  { %v13339_v30 = vpop.xlane.xlu1 %13338 }
 0xb3b   :  { %16608 = vrcp.f32 %v13339_v30 }
 0xb3e   :  { %v13341_v48 = vpop.xlane.xlu0 %13340 }
 0xb3f   :  { %16610 = vrcp.f32 %v13341_v48 }
 0xb42   :  { %v13343_v53 = vpop.xlane.xlu1 %13342 }
 0xb43   :  { %16612 = vrcp.f32 %v13343_v53 }
 0xb44   :  { %v16607_v59 = vpop.eup %16606 }
 0xb45   :  { %v13348_v42 = vmul.f32 %v16607_v59, %v16599_v8 }
 0xb48   :  { %v16609_v43 = vpop.eup %16608 }
 0xb49   :  { %v13349_v41 = vmul.f32 %v16609_v43, %v16601_v54 }
 0xb4b   :  { %v14676_v21 = vpack.c.bf16 %v13349_v41, %v13348_v42 }
 0xb4c   :  { %v16611_v26 = vpop.eup %16610 }
 0xb4d   :  { %14677 = vst [vmem:[%s21934_s7] sm:$0xff] %v14676_v21   ;;  %v13350_v57 = vmul.f32 %v16611_v26, %v16603_v44 }
 0xb50   :  { %v16613_v32 = vpop.eup %16612 }
 0xb51   :  { %v13351_v50 = vmul.f32 %v16613_v32, %v16605_v49 }
 0xb53   :  { %v14681_v13 = vpack.c.bf16 %v13351_v50, %v13350_v57 }
 0xb55   :  { %14683 = vst [vmem:[%s21934_s7 + $0x8] sm:$0xff] %v14681_v13  }

</bundles_post_ra>
